<compile_context>
chip_gen: v5e
topology: v5e:2x2
jax: 0.10.0
libtpu: 0.0.40
codegen_flags: <defaults>
</compile_context>

<pallas_src>
import functools

import jax
import jax.numpy as jnp
from jax import lax
from jax.experimental import pallas as pl
from jax.experimental.pallas import tpu as pltpu


# MXU-native operand dtype; every dot accumulates in f32.
COMPUTE_DTYPE = jnp.bfloat16


def _sl(a, off, length, axis):
    idx = [slice(None)] * a.ndim
    idx[axis] = slice(off, off + length)
    return a[tuple(idx)]


def _valid_window_max(x, k, axis):
    """Max over every length-k window along `axis` ('valid'): out = in - k + 1.

    Log-doubling: a 5-window costs 3 maxima per call instead of 4.
    """
    if k == 1:
        return x
    out_len = x.shape[axis] - k + 1
    cur, w = x, 1
    while 2 * w <= k:
        new_len = cur.shape[axis] - w
        cur = jnp.maximum(_sl(cur, 0, new_len, axis),
                          _sl(cur, w, new_len, axis))
        w *= 2
    if w < k:
        cur = jnp.maximum(_sl(cur, 0, out_len, axis),
                          _sl(cur, k - w, out_len, axis))
    return cur


# ----------------------------------------------------------------------------
# Kernel: fused cv1 (1x1+BN+ReLU) -> cascaded max pools -> cv2, one image/step
# ----------------------------------------------------------------------------
def _spp_kernel(x_ref, w1_ref, b1_ref, w2_ref, b2_ref, o_ref, ypad_ref, *,
                H, W, n_pool, k0, pad_h, pad_wl, pad_wr):
    """
    x_ref:    (H, W, C1)            bf16
    w1_ref:   (C1, Ch)              bf16, BN1 scale folded in
    b1_ref:   (1, Ch)               f32
    w2_ref:   ((n_pool+1)*Ch, C2)   bf16, BN2 scale folded in
    b2_ref:   (1, C2)               f32
    o_ref:    (H, W, C2)            f32
    ypad_ref: (H+2*pad_h, pad_wl+W+pad_wr, Ch) bf16 scratch (zero border)
    """
    C1 = x_ref.shape[-1]
    Ch = w1_ref.shape[-1]
    C2 = o_ref.shape[-1]
    Hp = H + 2 * pad_h
    Wp = pad_wl + W + pad_wr

    # ---- cv1: 1x1 conv == channel matmul (bf16 x bf16 -> f32) + bias + ReLU
    x = x_ref[...].reshape(H * W, C1)
    y = jnp.dot(x, w1_ref[...], preferred_element_type=jnp.float32)
    y = jnp.maximum(y + b1_ref[...], 0.0).astype(COMPUTE_DTYPE)   # (H*W, Ch)

    # Identity branch of the (virtual) concat, folded straight into cv2's acc.
    acc = jnp.dot(y, w2_ref[0:Ch, :], preferred_element_type=jnp.float32)

    # ---- zero only the thin border of the scratch; the interior is fully
    # overwritten below every grid step (a program_id==0-only zero would break
    # when the parallel batch axis is sharded across TensorCores).
    zdt = ypad_ref.dtype
    ypad_ref[0:pad_h, :, :] = jnp.zeros((pad_h, Wp, Ch), zdt)
    ypad_ref[pad_h + H:Hp, :, :] = jnp.zeros((pad_h, Wp, Ch), zdt)
    ypad_ref[:, 0:pad_wl, :] = jnp.zeros((Hp, pad_wl, Ch), zdt)
    ypad_ref[:, pad_wl + W:Wp, :] = jnp.zeros((Hp, pad_wr, Ch), zdt)

    # y >= 0 after ReLU, so a zero border == MaxPool2d's implicit -inf pad.
    ypad_ref[pad_h:pad_h + H, pad_wl:pad_wl + W, :] = y.reshape(H, W, Ch)

    # ---- SPPF-style cascade: single padded-plane load, then repeated 2-D
    # valid k0-window maxima.  After t stages the interior slice equals the
    # stride-1 SAME max pool with kernel t*(k0-1)+1 (== 5, 9, 13).  Each
    # pooled feature is immediately contracted into the cv2 accumulator and
    # dropped, so the four feature planes are never live together.
    plane = ypad_ref[...].astype(jnp.float32)        # one full VMEM load
    off_h, off_w = pad_h, pad_wl
    for t in range(1, n_pool + 1):
        plane = _valid_window_max(plane, k0, axis=1)   # W direction (sublane)
        plane = _valid_window_max(plane, k0, axis=0)   # H direction (major)
        off_h -= k0 // 2
        off_w -= k0 // 2
        pooled = plane[off_h:off_h + H, off_w:off_w + W, :]
        acc = acc + jnp.dot(
            pooled.reshape(H * W, Ch).astype(COMPUTE_DTYPE),
            w2_ref[t * Ch:(t + 1) * Ch, :],
            preferred_element_type=jnp.float32)

    out = jnp.maximum(acc + b2_ref[...], 0.0)
    o_ref[...] = out.reshape(H, W, C2).astype(o_ref.dtype)


# ----------------------------------------------------------------------------
# Wrapper
# ----------------------------------------------------------------------------
def _fold_bn(gamma, beta, mean, var, eps=1e-5):
    scale = gamma / jnp.sqrt(var + eps)
    bias = beta - mean * scale
    return scale.astype(jnp.float32), bias.astype(jnp.float32)


def spp_forward(x_nchw, params, k=(5, 9, 13)):
    """Pallas implementation of SPP.forward (NCHW in, NCHW out, eval-mode BN)."""
    k = tuple(k)
    N, C1, H, W = x_nchw.shape
    Ch = params["w1"].shape[1]                       # c_ = c1 // 2
    C2 = params["w2"].shape[1]
    n_pool = len(k)
    assert params["w2"].shape[0] == (n_pool + 1) * Ch
    k0 = k[0]
    # Cascading the k0-window t times == SAME max pool of size t*(k0-1)+1; the
    # default SPP sizes (5, 9, 13) satisfy this exactly.
    # TODO(synk): arbitrary k tuples would need independent per-k pooling.
    assert all(k[t] == (t + 1) * (k0 - 1) + 1 for t in range(n_pool)), k

    pad_h = n_pool * (k0 // 2)                       # 6 for (5, 9, 13)
    pad_wl = -(-pad_h // 16) * 16                    # sublane-aligned left pad
    pad_wr = pad_h
    Hp, Wp = H + 2 * pad_h, pad_wl + W + pad_wr

    # Fold inference BatchNorm into the conv weights (scale) + per-ch bias.
    s1, b1 = _fold_bn(params["gamma1"], params["beta1"],
                      params["mean1"], params["var1"])
    s2, b2 = _fold_bn(params["gamma2"], params["beta2"],
                      params["mean2"], params["var2"])
    w1 = (params["w1"] * s1[None, :]).astype(COMPUTE_DTYPE)   # (C1, Ch)
    w2 = (params["w2"] * s2[None, :]).astype(COMPUTE_DTYPE)   # (4*Ch, C2)

    # TODO(synk): keep the surrounding network NHWC/bf16 end-to-end to elide
    # this transpose+cast (it costs an extra HBM round trip of x).
    x_nhwc = jnp.transpose(x_nchw, (0, 2, 3, 1)).astype(COMPUTE_DTYPE)

    # VMEM budget from actual buffer sizes (2x margin), capped for v7x's 64 MiB.
    est = (2 * (H * W * C1 * 2 + H * W * C2 * 4)                  # x/out dbl-buf
           + 2 * ((C1 * Ch + (n_pool + 1) * Ch * C2) * 2 + (Ch + C2) * 4)
           + Hp * Wp * Ch * 2                                     # bf16 scratch
           + 2 * Hp * Wp * Ch * 4                                 # f32 cascade planes
           + H * W * Ch * 6                                       # y (f32 + bf16)
           + H * W * C2 * 4)                                      # f32 accumulator
    vmem_limit = int(min(max(2 * est, 8 * 1024 * 1024), 56 * 1024 * 1024))

    kernel = functools.partial(_spp_kernel, H=H, W=W, n_pool=n_pool, k0=k0,
                               pad_h=pad_h, pad_wl=pad_wl, pad_wr=pad_wr)

    # TODO(synk): for very large planes on v7x, add an H-tiled grid axis with a
    # pad_h-row halo via manual make_async_copy; SPP's deep features fit as-is.
    out_nhwc = pl.pallas_call(
        kernel,
        out_shape=jax.ShapeDtypeStruct((N, H, W, C2), jnp.float32),
        grid=(N,),
        in_specs=[
            pl.BlockSpec((None, H, W, C1), lambda n: (n, 0, 0, 0)),
            # Constant index maps: weights/biases are DMA'd once and stay
            # VMEM-resident across the batch grid.
            pl.BlockSpec((C1, Ch), lambda n: (0, 0)),
            pl.BlockSpec((1, Ch), lambda n: (0, 0)),
            pl.BlockSpec(((n_pool + 1) * Ch, C2), lambda n: (0, 0)),
            pl.BlockSpec((1, C2), lambda n: (0, 0)),
        ],
        out_specs=pl.BlockSpec((None, H, W, C2), lambda n: (n, 0, 0, 0)),
        scratch_shapes=[pltpu.VMEM((Hp, Wp, Ch), COMPUTE_DTYPE)],
        compiler_params=pltpu.CompilerParams(
            dimension_semantics=("parallel",),
            vmem_limit_bytes=vmem_limit),
    )(x_nhwc, w1, b1.reshape(1, Ch), w2, b2.reshape(1, C2))

    return jnp.transpose(out_nhwc, (0, 3, 1, 2))          # back to NCHW


# ----------------------------------------------------------------------------
# Pure-JAX reference (matched to the kernel's bf16 operand rounding)
# ----------------------------------------------------------------------------
def spp_reference(x_nchw, params, k=(5, 9, 13)):
    x = jnp.transpose(x_nchw, (0, 2, 3, 1)).astype(jnp.bfloat16)
    s1, b1 = _fold_bn(params["gamma1"], params["beta1"],
                      params["mean1"], params["var1"])
    s2, b2 = _fold_bn(params["gamma2"], params["beta2"],
                      params["mean2"], params["var2"])
    w1 = (params["w1"] * s1[None, :]).astype(jnp.bfloat16)
    w2 = (params["w2"] * s2[None, :]).astype(jnp.bfloat16)
    y = jnp.einsum("nhwc,cd->nhwd", x, w1, preferred_element_type=jnp.float32)
    y = jnp.maximum(y + b1, 0.0).astype(jnp.bfloat16).astype(jnp.float32)
    feats = [y]
    for kk in k:
        p = kk // 2
        feats.append(lax.reduce_window(
            y, -jnp.inf, lax.max,
            window_dimensions=(1, kk, kk, 1),
            window_strides=(1, 1, 1, 1),
            padding=((0, 0), (p, p), (p, p), (0, 0))))
    cat = jnp.concatenate(feats, axis=-1).astype(jnp.bfloat16)
    out = jnp.einsum("nhwc,cd->nhwd", cat, w2,
                     preferred_element_type=jnp.float32)
    out = jnp.maximum(out + b2, 0.0)
    return jnp.transpose(out, (0, 3, 1, 2))


# ----------------------------------------------------------------------------
# Deterministic synthetic parameters (no checkpoint)
# ----------------------------------------------------------------------------
def make_params(key, c1, c2, n_pool=3):
    c_ = c1 // 2
    ks = jax.random.split(key, 10)
    return {
        "w1": 0.3 * jax.random.normal(ks[0], (c1, c_), jnp.float32),
        "gamma1": 1.0 + 0.1 * jax.random.normal(ks[1], (c_,), jnp.float32),
        "beta1": 0.1 * jax.random.normal(ks[2], (c_,), jnp.float32),
        "mean1": 0.1 * jax.random.normal(ks[3], (c_,), jnp.float32),
        "var1": 1.0 + 0.1 * jax.random.uniform(ks[4], (c_,), jnp.float32),
        "w2": 0.2 * jax.random.normal(ks[5], ((n_pool + 1) * c_, c2),
                                      jnp.float32),
        "gamma2": 1.0 + 0.1 * jax.random.normal(ks[6], (c2,), jnp.float32),
        "beta2": 0.1 * jax.random.normal(ks[7], (c2,), jnp.float32),
        "mean2": 0.1 * jax.random.normal(ks[8], (c2,), jnp.float32),
        "var2": 1.0 + 0.1 * jax.random.uniform(ks[9], (c2,), jnp.float32),
    }


if __name__ == "__main__":
    key = jax.random.PRNGKey(0)
    kx, kp = jax.random.split(key)

    # SPP(c1=4, c2=8): c_ = 2, cv2 input channels = 4*c_ = 8
    N, C1, H, W = 2, 4, 16, 16
    C2 = 8

    x = jax.random.normal(kx, (N, C1, H, W), jnp.float32)
    params = make_params(kp, C1, C2)

    out = jax.block_until_ready(spp_forward(x, params))
    ref = jax.block_until_ready(spp_reference(x, params))

    assert out.shape == (N, C2, H, W)
    err = float(jnp.max(jnp.abs(out - ref)))
    assert jnp.allclose(out, ref, atol=1e-2, rtol=1e-2), (
        f"max abs diff = {err}")

    print("KERNEL_OK")
</pallas_src>

<mosaic_0001>
module attributes {stable_mosaic.version = 11 : i64} {
  func.func @_spp_kernel(%arg0: i32, %arg1: memref<1x16x16x4xbf16, #tpu.memory_space<vmem>>, %arg2: memref<4x2xbf16, #tpu.memory_space<vmem>>, %arg3: memref<1x2xf32, #tpu.memory_space<vmem>>, %arg4: memref<8x8xbf16, #tpu.memory_space<vmem>>, %arg5: memref<1x8xf32, #tpu.memory_space<vmem>>, %arg6: memref<1x16x16x8xf32, #tpu.memory_space<vmem>>, %arg7: memref<28x38x2xbf16, #tpu.memory_space<vmem>>) attributes {dimension_semantics = [#tpu.dimension_semantics<parallel>], iteration_bounds = array<i64: 2>, scalar_prefetch = 0 : i64, scratch_operands = 1 : i64, tpu.core_type = #tpu.core_type<tc>, window_params = [{transform_indices = @transform_0, window_bounds = array<i64: 1, 16, 16, 4>}, {pipeline_mode = #tpu.pipeline_mode<synchronous>, transform_indices = @transform_1, window_bounds = array<i64: 4, 2>}, {pipeline_mode = #tpu.pipeline_mode<synchronous>, transform_indices = @transform_2, window_bounds = array<i64: 1, 2>}, {pipeline_mode = #tpu.pipeline_mode<synchronous>, transform_indices = @transform_3, window_bounds = array<i64: 8, 8>}, {pipeline_mode = #tpu.pipeline_mode<synchronous>, transform_indices = @transform_4, window_bounds = array<i64: 1, 8>}, {transform_indices = @transform_5, window_bounds = array<i64: 1, 16, 16, 8>}]} {
    %c0 = arith.constant 0 : index
    %c0_0 = arith.constant 0 : index
    %c0_1 = arith.constant 0 : index
    %c0_2 = arith.constant 0 : index
    %0 = vector.load %arg1[%c0, %c0_0, %c0_1, %c0_2] : memref<1x16x16x4xbf16, #tpu.memory_space<vmem>>, vector<1x16x16x4xbf16>
    %1 = vector.shape_cast %0 : vector<1x16x16x4xbf16> to vector<16x16x4xbf16>
    %2 = vector.shape_cast %1 : vector<16x16x4xbf16> to vector<256x4xbf16>
    %c0_3 = arith.constant 0 : index
    %c0_4 = arith.constant 0 : index
    %3 = vector.load %arg2[%c0_3, %c0_4] : memref<4x2xbf16, #tpu.memory_space<vmem>>, vector<4x2xbf16>
    %cst = arith.constant dense<0.000000e+00> : vector<256x2xf32>
    %4 = tpu.matmul %2, %3, %cst {dimension_numbers = #tpu.dot_dimension_numbers<[1], [0], [0], [1], [0, 0, 1, 1], [], []>} : vector<256x4xbf16>, vector<4x2xbf16>, vector<256x2xf32> -> vector<256x2xf32>
    %c0_5 = arith.constant 0 : index
    %c0_6 = arith.constant 0 : index
    %5 = vector.load %arg3[%c0_5, %c0_6] : memref<1x2xf32, #tpu.memory_space<vmem>>, vector<1x2xf32>
    %6 = vector.broadcast %5 : vector<1x2xf32> to vector<256x2xf32>
    %7 = arith.addf %4, %6 : vector<256x2xf32>
    %cst_7 = arith.constant 0.000000e+00 : f32
    %8 = vector.broadcast %cst_7 : f32 to vector<256x2xf32>
    %9 = arith.maximumf %7, %8 : vector<256x2xf32>
    %10 = arith.truncf %9 : vector<256x2xf32> to vector<256x2xbf16>
    %c0_8 = arith.constant 0 : index
    %c0_9 = arith.constant 0 : index
    %11 = vector.load %arg4[%c0_8, %c0_9] : memref<8x8xbf16, #tpu.memory_space<vmem>>, vector<2x8xbf16>
    %cst_10 = arith.constant dense<0.000000e+00> : vector<256x8xf32>
    %12 = tpu.matmul %10, %11, %cst_10 {dimension_numbers = #tpu.dot_dimension_numbers<[1], [0], [0], [1], [0, 0, 1, 1], [], []>} : vector<256x2xbf16>, vector<2x8xbf16>, vector<256x8xf32> -> vector<256x8xf32>
    %cst_11 = arith.constant 0.000000e+00 : bf16
    %13 = vector.broadcast %cst_11 : bf16 to vector<6x38x2xbf16>
    %c0_12 = arith.constant 0 : index
    %c0_13 = arith.constant 0 : index
    %c0_14 = arith.constant 0 : index
    %14 = vector.load %arg7[%c0_12, %c0_13, %c0_14] : memref<28x38x2xbf16, #tpu.memory_space<vmem>>, vector<6x38x2xbf16>
    tpu.vector_store %arg7[%c0_12, %c0_13, %c0_14], %13 {strides = array<i32>} : memref<28x38x2xbf16, #tpu.memory_space<vmem>>, vector<6x38x2xbf16>,
    %cst_15 = arith.constant 0.000000e+00 : bf16
    %15 = vector.broadcast %cst_15 : bf16 to vector<6x38x2xbf16>
    %c22 = arith.constant 22 : index
    %c0_16 = arith.constant 0 : index
    %c0_17 = arith.constant 0 : index
    %16 = vector.load %arg7[%c22, %c0_16, %c0_17] : memref<28x38x2xbf16, #tpu.memory_space<vmem>>, vector<6x38x2xbf16>
    tpu.vector_store %arg7[%c22, %c0_16, %c0_17], %15 {strides = array<i32>} : memref<28x38x2xbf16, #tpu.memory_space<vmem>>, vector<6x38x2xbf16>,
    %cst_18 = arith.constant 0.000000e+00 : bf16
    %17 = vector.broadcast %cst_18 : bf16 to vector<28x16x2xbf16>
    %c0_19 = arith.constant 0 : index
    %c0_20 = arith.constant 0 : index
    %c0_21 = arith.constant 0 : index
    %18 = vector.load %arg7[%c0_19, %c0_20, %c0_21] : memref<28x38x2xbf16, #tpu.memory_space<vmem>>, vector<28x16x2xbf16>
    tpu.vector_store %arg7[%c0_19, %c0_20, %c0_21], %17 {strides = array<i32>} : memref<28x38x2xbf16, #tpu.memory_space<vmem>>, vector<28x16x2xbf16>,
    %cst_22 = arith.constant 0.000000e+00 : bf16
    %19 = vector.broadcast %cst_22 : bf16 to vector<28x6x2xbf16>
    %c0_23 = arith.constant 0 : index
    %c32 = arith.constant 32 : index
    %c0_24 = arith.constant 0 : index
    %20 = vector.load %arg7[%c0_23, %c32, %c0_24] : memref<28x38x2xbf16, #tpu.memory_space<vmem>>, vector<28x6x2xbf16>
    tpu.vector_store %arg7[%c0_23, %c32, %c0_24], %19 {strides = array<i32>} : memref<28x38x2xbf16, #tpu.memory_space<vmem>>, vector<28x6x2xbf16>,
    %21 = vector.shape_cast %10 : vector<256x2xbf16> to vector<16x16x2xbf16>
    %c6 = arith.constant 6 : index
    %c16 = arith.constant 16 : index
    %c0_25 = arith.constant 0 : index
    %22 = vector.load %arg7[%c6, %c16, %c0_25] : memref<28x38x2xbf16, #tpu.memory_space<vmem>>, vector<16x16x2xbf16>
    tpu.vector_store %arg7[%c6, %c16, %c0_25], %21 {strides = array<i32>} : memref<28x38x2xbf16, #tpu.memory_space<vmem>>, vector<16x16x2xbf16>,
    %c0_26 = arith.constant 0 : index
    %c0_27 = arith.constant 0 : index
    %c0_28 = arith.constant 0 : index
    %23 = vector.load %arg7[%c0_26, %c0_27, %c0_28] : memref<28x38x2xbf16, #tpu.memory_space<vmem>>, vector<28x38x2xbf16>
    %24 = arith.extf %23 : vector<28x38x2xbf16> to vector<28x38x2xf32>
    %25 = vector.extract_strided_slice %24 {offsets = [0, 0, 0], sizes = [28, 37, 2], strides = [1, 1, 1]} : vector<28x38x2xf32> to vector<28x37x2xf32>
    %26 = vector.extract_strided_slice %24 {offsets = [0, 1, 0], sizes = [28, 37, 2], strides = [1, 1, 1]} : vector<28x38x2xf32> to vector<28x37x2xf32>
    %27 = arith.maximumf %25, %26 : vector<28x37x2xf32>
    %28 = vector.extract_strided_slice %27 {offsets = [0, 0, 0], sizes = [28, 35, 2], strides = [1, 1, 1]} : vector<28x37x2xf32> to vector<28x35x2xf32>
    %29 = vector.extract_strided_slice %27 {offsets = [0, 2, 0], sizes = [28, 35, 2], strides = [1, 1, 1]} : vector<28x37x2xf32> to vector<28x35x2xf32>
    %30 = arith.maximumf %28, %29 : vector<28x35x2xf32>
    %31 = vector.extract_strided_slice %30 {offsets = [0, 0, 0], sizes = [28, 34, 2], strides = [1, 1, 1]} : vector<28x35x2xf32> to vector<28x34x2xf32>
    %32 = vector.extract_strided_slice %30 {offsets = [0, 1, 0], sizes = [28, 34, 2], strides = [1, 1, 1]} : vector<28x35x2xf32> to vector<28x34x2xf32>
    %33 = arith.maximumf %31, %32 : vector<28x34x2xf32>
    %34 = vector.extract_strided_slice %33 {offsets = [0, 0, 0], sizes = [27, 34, 2], strides = [1, 1, 1]} : vector<28x34x2xf32> to vector<27x34x2xf32>
    %35 = vector.extract_strided_slice %33 {offsets = [1, 0, 0], sizes = [27, 34, 2], strides = [1, 1, 1]} : vector<28x34x2xf32> to vector<27x34x2xf32>
    %36 = arith.maximumf %34, %35 : vector<27x34x2xf32>
    %37 = vector.extract_strided_slice %36 {offsets = [0, 0, 0], sizes = [25, 34, 2], strides = [1, 1, 1]} : vector<27x34x2xf32> to vector<25x34x2xf32>
    %38 = vector.extract_strided_slice %36 {offsets = [2, 0, 0], sizes = [25, 34, 2], strides = [1, 1, 1]} : vector<27x34x2xf32> to vector<25x34x2xf32>
    %39 = arith.maximumf %37, %38 : vector<25x34x2xf32>
    %40 = vector.extract_strided_slice %39 {offsets = [0, 0, 0], sizes = [24, 34, 2], strides = [1, 1, 1]} : vector<25x34x2xf32> to vector<24x34x2xf32>
    %41 = vector.extract_strided_slice %39 {offsets = [1, 0, 0], sizes = [24, 34, 2], strides = [1, 1, 1]} : vector<25x34x2xf32> to vector<24x34x2xf32>
    %42 = arith.maximumf %40, %41 : vector<24x34x2xf32>
    %43 = vector.extract_strided_slice %42 {offsets = [4, 14, 0], sizes = [16, 16, 2], strides = [1, 1, 1]} : vector<24x34x2xf32> to vector<16x16x2xf32>
    %44 = vector.shape_cast %43 : vector<16x16x2xf32> to vector<256x2xf32>
    %45 = arith.truncf %44 : vector<256x2xf32> to vector<256x2xbf16>
    %c2 = arith.constant 2 : index
    %c0_29 = arith.constant 0 : index
    %46 = vector.load %arg4[%c2, %c0_29] : memref<8x8xbf16, #tpu.memory_space<vmem>>, vector<2x8xbf16>
    %cst_30 = arith.constant dense<0.000000e+00> : vector<256x8xf32>
    %47 = tpu.matmul %45, %46, %cst_30 {dimension_numbers = #tpu.dot_dimension_numbers<[1], [0], [0], [1], [0, 0, 1, 1], [], []>} : vector<256x2xbf16>, vector<2x8xbf16>, vector<256x8xf32> -> vector<256x8xf32>
    %48 = arith.addf %12, %47 : vector<256x8xf32>
    %49 = vector.extract_strided_slice %42 {offsets = [0, 0, 0], sizes = [24, 33, 2], strides = [1, 1, 1]} : vector<24x34x2xf32> to vector<24x33x2xf32>
    %50 = vector.extract_strided_slice %42 {offsets = [0, 1, 0], sizes = [24, 33, 2], strides = [1, 1, 1]} : vector<24x34x2xf32> to vector<24x33x2xf32>
    %51 = arith.maximumf %49, %50 : vector<24x33x2xf32>
    %52 = vector.extract_strided_slice %51 {offsets = [0, 0, 0], sizes = [24, 31, 2], strides = [1, 1, 1]} : vector<24x33x2xf32> to vector<24x31x2xf32>
    %53 = vector.extract_strided_slice %51 {offsets = [0, 2, 0], sizes = [24, 31, 2], strides = [1, 1, 1]} : vector<24x33x2xf32> to vector<24x31x2xf32>
    %54 = arith.maximumf %52, %53 : vector<24x31x2xf32>
    %55 = vector.extract_strided_slice %54 {offsets = [0, 0, 0], sizes = [24, 30, 2], strides = [1, 1, 1]} : vector<24x31x2xf32> to vector<24x30x2xf32>
    %56 = vector.extract_strided_slice %54 {offsets = [0, 1, 0], sizes = [24, 30, 2], strides = [1, 1, 1]} : vector<24x31x2xf32> to vector<24x30x2xf32>
    %57 = arith.maximumf %55, %56 : vector<24x30x2xf32>
    %58 = vector.extract_strided_slice %57 {offsets = [0, 0, 0], sizes = [23, 30, 2], strides = [1, 1, 1]} : vector<24x30x2xf32> to vector<23x30x2xf32>
    %59 = vector.extract_strided_slice %57 {offsets = [1, 0, 0], sizes = [23, 30, 2], strides = [1, 1, 1]} : vector<24x30x2xf32> to vector<23x30x2xf32>
    %60 = arith.maximumf %58, %59 : vector<23x30x2xf32>
    %61 = vector.extract_strided_slice %60 {offsets = [0, 0, 0], sizes = [21, 30, 2], strides = [1, 1, 1]} : vector<23x30x2xf32> to vector<21x30x2xf32>
    %62 = vector.extract_strided_slice %60 {offsets = [2, 0, 0], sizes = [21, 30, 2], strides = [1, 1, 1]} : vector<23x30x2xf32> to vector<21x30x2xf32>
    %63 = arith.maximumf %61, %62 : vector<21x30x2xf32>
    %64 = vector.extract_strided_slice %63 {offsets = [0, 0, 0], sizes = [20, 30, 2], strides = [1, 1, 1]} : vector<21x30x2xf32> to vector<20x30x2xf32>
    %65 = vector.extract_strided_slice %63 {offsets = [1, 0, 0], sizes = [20, 30, 2], strides = [1, 1, 1]} : vector<21x30x2xf32> to vector<20x30x2xf32>
    %66 = arith.maximumf %64, %65 : vector<20x30x2xf32>
    %67 = vector.extract_strided_slice %66 {offsets = [2, 12, 0], sizes = [16, 16, 2], strides = [1, 1, 1]} : vector<20x30x2xf32> to vector<16x16x2xf32>
    %68 = vector.shape_cast %67 : vector<16x16x2xf32> to vector<256x2xf32>
    %69 = arith.truncf %68 : vector<256x2xf32> to vector<256x2xbf16>
    %c4 = arith.constant 4 : index
    %c0_31 = arith.constant 0 : index
    %70 = vector.load %arg4[%c4, %c0_31] : memref<8x8xbf16, #tpu.memory_space<vmem>>, vector<2x8xbf16>
    %cst_32 = arith.constant dense<0.000000e+00> : vector<256x8xf32>
    %71 = tpu.matmul %69, %70, %cst_32 {dimension_numbers = #tpu.dot_dimension_numbers<[1], [0], [0], [1], [0, 0, 1, 1], [], []>} : vector<256x2xbf16>, vector<2x8xbf16>, vector<256x8xf32> -> vector<256x8xf32>
    %72 = arith.addf %48, %71 : vector<256x8xf32>
    %73 = vector.extract_strided_slice %66 {offsets = [0, 0, 0], sizes = [20, 29, 2], strides = [1, 1, 1]} : vector<20x30x2xf32> to vector<20x29x2xf32>
    %74 = vector.extract_strided_slice %66 {offsets = [0, 1, 0], sizes = [20, 29, 2], strides = [1, 1, 1]} : vector<20x30x2xf32> to vector<20x29x2xf32>
    %75 = arith.maximumf %73, %74 : vector<20x29x2xf32>
    %76 = vector.extract_strided_slice %75 {offsets = [0, 0, 0], sizes = [20, 27, 2], strides = [1, 1, 1]} : vector<20x29x2xf32> to vector<20x27x2xf32>
    %77 = vector.extract_strided_slice %75 {offsets = [0, 2, 0], sizes = [20, 27, 2], strides = [1, 1, 1]} : vector<20x29x2xf32> to vector<20x27x2xf32>
    %78 = arith.maximumf %76, %77 : vector<20x27x2xf32>
    %79 = vector.extract_strided_slice %78 {offsets = [0, 0, 0], sizes = [20, 26, 2], strides = [1, 1, 1]} : vector<20x27x2xf32> to vector<20x26x2xf32>
    %80 = vector.extract_strided_slice %78 {offsets = [0, 1, 0], sizes = [20, 26, 2], strides = [1, 1, 1]} : vector<20x27x2xf32> to vector<20x26x2xf32>
    %81 = arith.maximumf %79, %80 : vector<20x26x2xf32>
    %82 = vector.extract_strided_slice %81 {offsets = [0, 0, 0], sizes = [19, 26, 2], strides = [1, 1, 1]} : vector<20x26x2xf32> to vector<19x26x2xf32>
    %83 = vector.extract_strided_slice %81 {offsets = [1, 0, 0], sizes = [19, 26, 2], strides = [1, 1, 1]} : vector<20x26x2xf32> to vector<19x26x2xf32>
    %84 = arith.maximumf %82, %83 : vector<19x26x2xf32>
    %85 = vector.extract_strided_slice %84 {offsets = [0, 0, 0], sizes = [17, 26, 2], strides = [1, 1, 1]} : vector<19x26x2xf32> to vector<17x26x2xf32>
    %86 = vector.extract_strided_slice %84 {offsets = [2, 0, 0], sizes = [17, 26, 2], strides = [1, 1, 1]} : vector<19x26x2xf32> to vector<17x26x2xf32>
    %87 = arith.maximumf %85, %86 : vector<17x26x2xf32>
    %88 = vector.extract_strided_slice %87 {offsets = [0, 0, 0], sizes = [16, 26, 2], strides = [1, 1, 1]} : vector<17x26x2xf32> to vector<16x26x2xf32>
    %89 = vector.extract_strided_slice %87 {offsets = [1, 0, 0], sizes = [16, 26, 2], strides = [1, 1, 1]} : vector<17x26x2xf32> to vector<16x26x2xf32>
    %90 = arith.maximumf %88, %89 : vector<16x26x2xf32>
    %91 = vector.extract_strided_slice %90 {offsets = [0, 10, 0], sizes = [16, 16, 2], strides = [1, 1, 1]} : vector<16x26x2xf32> to vector<16x16x2xf32>
    %92 = vector.shape_cast %91 : vector<16x16x2xf32> to vector<256x2xf32>
    %93 = arith.truncf %92 : vector<256x2xf32> to vector<256x2xbf16>
    %c6_33 = arith.constant 6 : index
    %c0_34 = arith.constant 0 : index
    %94 = vector.load %arg4[%c6_33, %c0_34] : memref<8x8xbf16, #tpu.memory_space<vmem>>, vector<2x8xbf16>
    %cst_35 = arith.constant dense<0.000000e+00> : vector<256x8xf32>
    %95 = tpu.matmul %93, %94, %cst_35 {dimension_numbers = #tpu.dot_dimension_numbers<[1], [0], [0], [1], [0, 0, 1, 1], [], []>} : vector<256x2xbf16>, vector<2x8xbf16>, vector<256x8xf32> -> vector<256x8xf32>
    %96 = arith.addf %72, %95 : vector<256x8xf32>
    %c0_36 = arith.constant 0 : index
    %c0_37 = arith.constant 0 : index
    %97 = vector.load %arg5[%c0_36, %c0_37] : memref<1x8xf32, #tpu.memory_space<vmem>>, vector<1x8xf32>
    %98 = vector.broadcast %97 : vector<1x8xf32> to vector<256x8xf32>
    %99 = arith.addf %96, %98 : vector<256x8xf32>
    %cst_38 = arith.constant 0.000000e+00 : f32
    %100 = vector.broadcast %cst_38 : f32 to vector<256x8xf32>
    %101 = arith.maximumf %99, %100 : vector<256x8xf32>
    %102 = vector.shape_cast %101 : vector<256x8xf32> to vector<16x16x8xf32>
    %c0_39 = arith.constant 0 : index
    %c0_40 = arith.constant 0 : index
    %c0_41 = arith.constant 0 : index
    %c0_42 = arith.constant 0 : index
    %103 = vector.load %arg6[%c0_39, %c0_40, %c0_41, %c0_42] : memref<1x16x16x8xf32, #tpu.memory_space<vmem>>, vector<1x16x16x8xf32>
    %104 = vector.shape_cast %103 : vector<1x16x16x8xf32> to vector<16x16x8xf32>
    %105 = vector.shape_cast %102 : vector<16x16x8xf32> to vector<1x16x16x8xf32>
    tpu.vector_store %arg6[%c0_39, %c0_40, %c0_41, %c0_42], %105 {strides = array<i32>} : memref<1x16x16x8xf32, #tpu.memory_space<vmem>>, vector<1x16x16x8xf32>,
    return
  }
  func.func @transform_0(%arg0: i32) -> (i32, i32, i32, i32) {
    %c0_i32 = arith.constant 0 : i32
    %c0_i32_0 = arith.constant 0 : i32
    %c0_i32_1 = arith.constant 0 : i32
    %c0_i32_2 = arith.constant 0 : i32
    return %arg0, %c0_i32, %c0_i32_0, %c0_i32_1 : i32, i32, i32, i32
  }
  func.func @transform_1(%arg0: i32) -> (i32, i32) {
    %c0_i32 = arith.constant 0 : i32
    %c0_i32_0 = arith.constant 0 : i32
    %c0_i32_1 = arith.constant 0 : i32
    return %c0_i32, %c0_i32_0 : i32, i32
  }
  func.func @transform_2(%arg0: i32) -> (i32, i32) {
    %c0_i32 = arith.constant 0 : i32
    %c0_i32_0 = arith.constant 0 : i32
    %c0_i32_1 = arith.constant 0 : i32
    return %c0_i32, %c0_i32_0 : i32, i32
  }
  func.func @transform_3(%arg0: i32) -> (i32, i32) {
    %c0_i32 = arith.constant 0 : i32
    %c0_i32_0 = arith.constant 0 : i32
    %c0_i32_1 = arith.constant 0 : i32
    return %c0_i32, %c0_i32_0 : i32, i32
  }
  func.func @transform_4(%arg0: i32) -> (i32, i32) {
    %c0_i32 = arith.constant 0 : i32
    %c0_i32_0 = arith.constant 0 : i32
    %c0_i32_1 = arith.constant 0 : i32
    return %c0_i32, %c0_i32_0 : i32, i32
  }
  func.func @transform_5(%arg0: i32) -> (i32, i32, i32, i32) {
    %c0_i32 = arith.constant 0 : i32
    %c0_i32_0 = arith.constant 0 : i32
    %c0_i32_1 = arith.constant 0 : i32
    %c0_i32_2 = arith.constant 0 : i32
    return %arg0, %c0_i32, %c0_i32_0, %c0_i32_1 : i32, i32, i32, i32
  }
}

</mosaic_0001>

<bundles_post_ra>
// kernel: tpu_custom_call.1
= control target key start
LH: loop header
LB: loop body
LE: loop exit
PB: predicated region body
PF: predicated region fallthrough
CT: control target
= control target key end

     0   :  { %s6922_s18 = smov 0   ;;  %s12044_s0 = inlined_call_operand.vmem [shape: bf16[2,16,16,4], index: 0, kind: input, shape index: {}]   ;;  %s12045_s1 = inlined_call_operand.vmem [shape: bf16[4,2], index: 1, kind: input, shape index: {}]   ;;  %s12046_s2 = inlined_call_operand.vmem [shape: f32[1,2], index: 2, kind: input, shape index: {}]   ;;  %s12047_s3 = inlined_call_operand.vmem [shape: bf16[8,8], index: 3, kind: input, shape index: {}]   ;;  %s12048_s4 = inlined_call_operand.vmem [shape: f32[1,8], index: 4, kind: input, shape index: {}]   ;;  %s12049_s5 = inlined_call_operand.vmem [shape: f32[2,16,16,8], index: 5, kind: output, shape index: {}]  }
   0x1 LB: > { %s6554_s19 = sadd.s32 4294967295, %s6889_s18   ;;  %p6558_p0 = scmp.ge.s32.totalorder %s6889_s18, 1  ;;  %s6889_s18 = sphi %s6922_s18, %s15_s18  }
   0x2   : > { %p187_p1 = scmp.lt.s32.totalorder %s6889_s18, 3 }
   0x4   : > { %p188_p2 = pnand %p6558_p0, %p187_p1 }
   0x6   : > { %191 = sbr.rel (%p188_p2) target bundleno = 1235 (0x4d3), region = 40 }
   0xb   : > { %v258_v0 = vld [vmem:[%s12045_s1] sm:$0x3]  ;;  %vm392_vm0 = vcmask 1041408   ;;  %p215_p3 = scmp.lt.s32.totalorder %s6554_s19, 1  ;;  %vm343_vm1 = vcmask 31744   ;;  %vm555_vm2 = vcmask 10240  }
   0xc   : > { %v394_v1 = vsel %vm392_vm0, %v258_v0, 0  ;;  %vm550_vm3 = vcmask 11264   ;;  %v6891_v18 = vmov 0   ;;  %v6979_v19 = vld [vmem:[%s12046_s2] ss:$0 sm:$0xff]  ;;  %vm3086_vm4 = vcmask 1040384  }
   0xd   : > { %403 = vmatpush.bf16.msra.mxu0 %v394_v1  ;;  %6867 = vmatpush.bf16.msra.mxu1 %v394_v1  ;;  %s13397_s19 = smov (!%p215_p3, %s6554_s19), 1  ;;  %687 = vst.msk [vmem:[#allocation2 + $0x178] sm:$0x7] %vm555_vm2, %v6891_v18  ;;  %vm3037_vm5 = vcmask 15360   ;;  %vm1066_vm6 = vcmask 1046528   ;;  %vm1599_vm7 = vcmask 1045504  }
   0xe   : > { %6868 = vmatpush.bf16.msra.mxu2 %v394_v1  ;;  %6869 = vmatpush.bf16.msra.mxu3 %v394_v1  ;;  %s6709_s22 = sshll.u32 %s13397_s19, 7  ;;  %552 = vst.msk [vmem:[#allocation2 + $0x4] sm:$0xf] %vm550_vm3, %v6891_v18  ;;  %vm4791_vm8 = vcmask 1043456   ;;  %vm6466_vm9 = vcmask 64512   ;;  %s6710_s13 = sshll.u32 %s13397_s19, 8 }
   0xf   : > { %s219_s25 = scalar_lea.vmem %s12044_s0, %s6709_s22  ;;  %553 = vst.msk [vmem:[#allocation2 + $0x8] sm:$0xf] %vm550_vm3, %v6891_v18  ;;  %s10874_s16 = scalar_lea.vmem %s12049_s5, %s6710_s13 }
  0x10   : > { %v6711_v2 = vld [vmem:[%s219_s25] sm:$0xff]  ;;  %v6712_v6 = vld [vmem:[%s219_s25 + $0x8] sm:$0xff]  ;;  %v6713_v10 = vld [vmem:[%s219_s25 + $0x10] sm:$0xff]  ;;  %554 = vst.msk [vmem:[#allocation2 + $0xc] sm:$0xf] %vm550_vm3, %v6891_v18 }
  0x11   : > { %v6715_v3 = vld [vmem:[%s219_s25 + $0x20] sm:$0xff]  ;;  %6627 = vmatmul.msk.bf16.vlgmr.msra.gmra.mxu0 %vm343_vm1, %v6711_v2  ;;  %v6716_v7 = vld [vmem:[%s219_s25 + $0x28] sm:$0xff]  ;;  %v6717_v11 = vld [vmem:[%s219_s25 + $0x30] sm:$0xff]  ;;  %556 = vst.msk [vmem:[#allocation2 + $0x10] sm:$0x7] %vm555_vm2, %v6891_v18 }
  0x12   : > { %v6719_v4 = vld [vmem:[%s219_s25 + $0x40] sm:$0xff]  ;;  %6631 = vmatmul.msk.bf16.vlgmr.msra.gmra.mxu1 %vm343_vm1, %v6715_v3  ;;  %v6720_v8 = vld [vmem:[%s219_s25 + $0x48] sm:$0xff]  ;;  %v6721_v12 = vld [vmem:[%s219_s25 + $0x50] sm:$0xff]  ;;  %558 = vst.msk [vmem:[#allocation2 + $0x18] sm:$0xf] %vm550_vm3, %v6891_v18 }
  0x13   : > { %v6723_v5 = vld [vmem:[%s219_s25 + $0x60] sm:$0xff]  ;;  %6635 = vmatmul.msk.bf16.vlgmr.msra.gmra.mxu2 %vm343_vm1, %v6719_v4  ;;  %v6724_v9 = vld [vmem:[%s219_s25 + $0x68] sm:$0xff]  ;;  %v6725_v13 = vld [vmem:[%s219_s25 + $0x70] sm:$0xff]  ;;  %559 = vst.msk [vmem:[#allocation2 + $0x1c] sm:$0xf] %vm550_vm3, %v6891_v18 }
  0x14   : > { %6639 = vmatmul.msk.bf16.vlgmr.msra.gmra.mxu3 %vm343_vm1, %v6723_v5  ;;  %v6714_v14 = vld [vmem:[%s219_s25 + $0x18] sm:$0xff]  ;;  %560 = vst.msk [vmem:[#allocation2 + $0x20] sm:$0xf] %vm550_vm3, %v6891_v18 }
  0x15   : > { %v6718_v15 = vld [vmem:[%s219_s25 + $0x38] sm:$0xff]  ;;  %561 = vst.msk [vmem:[#allocation2 + $0x24] sm:$0x7] %vm555_vm2, %v6891_v18 }
  0x16   : > { %v6722_v16 = vld [vmem:[%s219_s25 + $0x58] sm:$0xff]  ;;  %563 = vst.msk [vmem:[#allocation2 + $0x2c] sm:$0xf] %vm550_vm3, %v6891_v18 }
  0x17   : > { %v6726_v17 = vld [vmem:[%s219_s25 + $0x78] sm:$0xff]  ;;  %564 = vst.msk [vmem:[#allocation2 + $0x30] sm:$0xf] %vm550_vm3, %v6891_v18 }
  0x18   : > { %565 = vst.msk [vmem:[#allocation2 + $0x34] sm:$0xf] %vm550_vm3, %v6891_v18  ;;  %v7134_v0 = vld [vmem:[#allocation2 + $0x178] sm:$0x7] }
  0x19   : > { %566 = vst.msk [vmem:[#allocation2 + $0x38] sm:$0x7] %vm555_vm2, %v6891_v18  ;;  %v12050_v4 = vunpack.c.l.bf16 %v7134_v0 }
  0x1a   : > { %568 = vst.msk [vmem:[#allocation2 + $0x40] sm:$0xf] %vm550_vm3, %v6891_v18 }
  0x1b   : > { %569 = vst.msk [vmem:[#allocation2 + $0x44] sm:$0xf] %vm550_vm3, %v6891_v18 }
  0x1c   : > { %570 = vst.msk [vmem:[#allocation2 + $0x48] sm:$0xf] %vm550_vm3, %v6891_v18 }
  0x1d   : > { %571 = vst.msk [vmem:[#allocation2 + $0x4c] sm:$0x7] %vm555_vm2, %v6891_v18 }
  0x1e   : > { %573 = vst.msk [vmem:[#allocation2 + $0x54] sm:$0xf] %vm550_vm3, %v6891_v18 }
  0x1f   : > { %574 = vst.msk [vmem:[#allocation2 + $0x58] sm:$0xf] %vm550_vm3, %v6891_v18 }
  0x20   : > { %575 = vst.msk [vmem:[#allocation2 + $0x5c] sm:$0xf] %vm550_vm3, %v6891_v18 }
  0x21   : > { %6628 = vmatmul.msk.bf16.gmra.mxu0 %vm343_vm1, %v6712_v6  ;;  %576 = vst.msk [vmem:[#allocation2 + $0x60] sm:$0x7] %vm555_vm2, %v6891_v18  ;;  %v549_v6 = vld [vmem:[%s12047_s3] sm:$0x1] }
  0x22   : > { %6632 = vmatmul.msk.bf16.gmra.mxu1 %vm343_vm1, %v6716_v7  ;;  %578 = vst.msk [vmem:[#allocation2 + $0x68] sm:$0xf] %vm550_vm3, %v6891_v18  ;;  %v3308_v7 = vsel %vm3086_vm4, %v549_v6, 0 }
  0x23   : > { %6636 = vmatmul.msk.bf16.gmra.mxu2 %vm343_vm1, %v6720_v8  ;;  %579 = vst.msk [vmem:[#allocation2 + $0x6c] sm:$0xf] %vm550_vm3, %v6891_v18 }
  0x24   : > { %6640 = vmatmul.msk.bf16.gmra.mxu3 %vm343_vm1, %v6724_v9  ;;  %580 = vst.msk [vmem:[#allocation2 + $0x70] sm:$0xf] %vm550_vm3, %v6891_v18  ;;  %3317 = vmatpush.bf16.msrb.mxu2 %v3308_v7 }
  0x25   : > { %581 = vst.msk [vmem:[#allocation2 + $0x74] sm:$0x7] %vm555_vm2, %v6891_v18 }
  0x26   : > { %584 = vst.msk [vmem:[#allocation2 + $0x1bc] sm:$0xf] %vm550_vm3, %v6891_v18 }
  0x27   : > { %585 = vst.msk [vmem:[#allocation2 + $0x1c0] sm:$0xf] %vm550_vm3, %v6891_v18 }
  0x28   : > { %586 = vst.msk [vmem:[#allocation2 + $0x1c4] sm:$0xf] %vm550_vm3, %v6891_v18 }
  0x29   : > { %587 = vst.msk [vmem:[#allocation2 + $0x1c8] sm:$0x7] %vm555_vm2, %v6891_v18 }
  0x2a   : > { %589 = vst.msk [vmem:[#allocation2 + $0x1d0] sm:$0xf] %vm550_vm3, %v6891_v18 }
  0x2b   : > { %590 = vst.msk [vmem:[#allocation2 + $0x1d4] sm:$0xf] %vm550_vm3, %v6891_v18 }
  0x2c   : > { %591 = vst.msk [vmem:[#allocation2 + $0x1d8] sm:$0xf] %vm550_vm3, %v6891_v18 }
  0x2d   : > { %592 = vst.msk [vmem:[#allocation2 + $0x1dc] sm:$0x7] %vm555_vm2, %v6891_v18 }
  0x2e   : > { %594 = vst.msk [vmem:[#allocation2 + $0x1e4] sm:$0xf] %vm550_vm3, %v6891_v18 }
  0x2f   : > { %595 = vst.msk [vmem:[#allocation2 + $0x1e8] sm:$0xf] %vm550_vm3, %v6891_v18 }
  0x30   : > { %596 = vst.msk [vmem:[#allocation2 + $0x1ec] sm:$0xf] %vm550_vm3, %v6891_v18 }
  0x31   : > { %6629 = vmatmul.msk.bf16.gmra.mxu0 %vm343_vm1, %v6713_v10  ;;  %597 = vst.msk [vmem:[#allocation2 + $0x1f0] sm:$0x7] %vm555_vm2, %v6891_v18  ;;  %v7161_v10 = vrot.slane %v12050_v4, 1 }
  0x32   : > { %6633 = vmatmul.msk.bf16.gmra.mxu1 %vm343_vm1, %v6717_v11  ;;  %599 = vst.msk [vmem:[#allocation2 + $0x1f8] sm:$0xf] %vm550_vm3, %v6891_v18 }
  0x33   : > { %6637 = vmatmul.msk.bf16.gmra.mxu2 %vm343_vm1, %v6721_v12  ;;  %600 = vst.msk [vmem:[#allocation2 + $0x1fc] sm:$0xf] %vm550_vm3, %v6891_v18 }
  0x34   : > { %6641 = vmatmul.msk.bf16.gmra.mxu3 %vm343_vm1, %v6725_v13  ;;  %601 = vst.msk [vmem:[#allocation2 + $0x200] sm:$0xf] %vm550_vm3, %v6891_v18 }
  0x35   : > { %602 = vst.msk [vmem:[#allocation2 + $0x204] sm:$0x7] %vm555_vm2, %v6891_v18 }
  0x36   : > { %604 = vst.msk [vmem:[#allocation2 + $0x20c] sm:$0xf] %vm550_vm3, %v6891_v18 }
  0x37   : > { %605 = vst.msk [vmem:[#allocation2 + $0x210] sm:$0xf] %vm550_vm3, %v6891_v18 }
  0x38   : > { %606 = vst.msk [vmem:[#allocation2 + $0x214] sm:$0xf] %vm550_vm3, %v6891_v18 }
  0x39   : > { %607 = vst.msk [vmem:[#allocation2 + $0x218] sm:$0x7] %vm555_vm2, %v6891_v18 }
  0x3a   : > { %609 = vst.msk [vmem:[#allocation2 + $0x220] sm:$0xf] %vm550_vm3, %v6891_v18 }
  0x3b   : > { %610 = vst.msk [vmem:[#allocation2 + $0x224] sm:$0xf] %vm550_vm3, %v6891_v18 }
  0x3c   : > { %611 = vst.msk [vmem:[#allocation2 + $0x228] sm:$0xf] %vm550_vm3, %v6891_v18 }
  0x3d   : > { %612 = vst.msk [vmem:[#allocation2 + $0x22c] sm:$0x7] %vm555_vm2, %v6891_v18 }
  0x3e   : > { %626 = vst.msk [vmem:[#allocation2 + $0x7c] sm:$0xf] %vm550_vm3, %v6891_v18 }
  0x3f   : > { %628 = vst.msk [vmem:[#allocation2 + $0x90] sm:$0xf] %vm550_vm3, %v6891_v18 }
  0x40   : > { %630 = vst.msk [vmem:[#allocation2 + $0xa4] sm:$0xf] %vm550_vm3, %v6891_v18 }
  0x41   : > { %6630 = vmatmul.msk.bf16.gmra.mxu0 %vm343_vm1, %v6714_v14  ;;  %632 = vst.msk [vmem:[#allocation2 + $0xb8] sm:$0xf] %vm550_vm3, %v6891_v18 }
  0x42   : > { %6634 = vmatmul.msk.bf16.gmra.mxu1 %vm343_vm1, %v6718_v15  ;;  %634 = vst.msk [vmem:[#allocation2 + $0xcc] sm:$0xf] %vm550_vm3, %v6891_v18 }
  0x43   : > { %6638 = vmatmul.msk.bf16.gmra.mxu2 %vm343_vm1, %v6722_v16  ;;  %636 = vst.msk [vmem:[#allocation2 + $0xe0] sm:$0xf] %vm550_vm3, %v6891_v18 }
  0x44   : > { %6642 = vmatmul.msk.bf16.gmra.mxu3 %vm343_vm1, %v6726_v17  ;;  %638 = vst.msk [vmem:[#allocation2 + $0xf4] sm:$0xf] %vm550_vm3, %v6891_v18 }
  0x45   : > { %640 = vst.msk [vmem:[#allocation2 + $0x108] sm:$0xf] %vm550_vm3, %v6891_v18 }
  0x46   : > { %642 = vst.msk [vmem:[#allocation2 + $0x11c] sm:$0xf] %vm550_vm3, %v6891_v18 }
  0x47   : > { %644 = vst.msk [vmem:[#allocation2 + $0x130] sm:$0xf] %vm550_vm3, %v6891_v18 }
  0x48   : > { %646 = vst.msk [vmem:[#allocation2 + $0x144] sm:$0xf] %vm550_vm3, %v6891_v18 }
  0x49   : > { %648 = vst.msk [vmem:[#allocation2 + $0x158] sm:$0xf] %vm550_vm3, %v6891_v18 }
  0x4a   : > { %650 = vst.msk [vmem:[#allocation2 + $0x16c] sm:$0xf] %vm550_vm3, %v6891_v18 }
  0x4b   : > { %652 = vst.msk [vmem:[#allocation2 + $0x180] sm:$0xf] %vm550_vm3, %v6891_v18 }
  0x4c   : > { %654 = vst.msk [vmem:[#allocation2 + $0x194] sm:$0xf] %vm550_vm3, %v6891_v18 }
  0x4d   : > { %656 = vst.msk [vmem:[#allocation2 + $0x1a8] sm:$0xf] %vm550_vm3, %v6891_v18 }
  0x4e   : > { %675 = vst.msk [vmem:[#allocation2 + $0x88] sm:$0x7] %vm555_vm2, %v6891_v18 }
  0x4f   : > { %676 = vst.msk [vmem:[#allocation2 + $0x9c] sm:$0x7] %vm555_vm2, %v6891_v18 }
  0x50   : > { %677 = vst.msk [vmem:[#allocation2 + $0xb0] sm:$0x7] %vm555_vm2, %v6891_v18 }
  0x51   : > { %678 = vst.msk [vmem:[#allocation2 + $0xc4] sm:$0x7] %vm555_vm2, %v6891_v18 }
  0x52   : > { %679 = vst.msk [vmem:[#allocation2 + $0xd8] sm:$0x7] %vm555_vm2, %v6891_v18 }
  0x53   : > { %680 = vst.msk [vmem:[#allocation2 + $0xec] sm:$0x7] %vm555_vm2, %v6891_v18 }
  0x54   : > { %681 = vst.msk [vmem:[#allocation2 + $0x100] sm:$0x7] %vm555_vm2, %v6891_v18 }
  0x55   : > { %12426 = vst [vmem:[#allocation7_spill] sm:$0xff] %v7134_v0 }
  0x56   : > { %682 = vst.msk [vmem:[#allocation2 + $0x114] sm:$0x7] %vm555_vm2, %v6891_v18 }
  0x57   : > { %683 = vst.msk [vmem:[#allocation2 + $0x128] sm:$0x7] %vm555_vm2, %v6891_v18 }
  0x58   : > { %684 = vst.msk [vmem:[#allocation2 + $0x13c] sm:$0x7] %vm555_vm2, %v6891_v18 }
  0x59   : > { %685 = vst.msk [vmem:[#allocation2 + $0x150] sm:$0x7] %vm555_vm2, %v6891_v18 }
  0x5a   : > { %686 = vst.msk [vmem:[#allocation2 + $0x164] sm:$0x7] %vm555_vm2, %v6891_v18 }
  0x5b   : > { %688 = vst.msk [vmem:[#allocation2 + $0x18c] sm:$0x7] %vm555_vm2, %v6891_v18 }
  0x5c   : > { %689 = vst.msk [vmem:[#allocation2 + $0x1a0] sm:$0x7] %vm555_vm2, %v6891_v18 }
  0x5d   : > { %12428 = vst [vmem:[#allocation9_spill] sm:$0xff] %v7161_v10 }
  0x5e   : > { %690 = vst.msk [vmem:[#allocation2 + $0x1b4] sm:$0x7] %vm555_vm2, %v6891_v18 }
  0x5f   : > { %614 = vst.msk [vmem:[#allocation2 + $0x4] sm:$0xf] %vm550_vm3, %v6891_v18 }
  0x60   : > { %616 = vst.msk [vmem:[#allocation2 + $0x18] sm:$0xf] %vm550_vm3, %v6891_v18 }
  0x61   : > { %618 = vst.msk [vmem:[#allocation2 + $0x2c] sm:$0xf] %vm550_vm3, %v6891_v18 }
  0x62   : > { %620 = vst.msk [vmem:[#allocation2 + $0x40] sm:$0xf] %vm550_vm3, %v6891_v18 }
  0x63   : > { %622 = vst.msk [vmem:[#allocation2 + $0x54] sm:$0xf] %vm550_vm3, %v6891_v18 }
  0x64   : > { %624 = vst.msk [vmem:[#allocation2 + $0x68] sm:$0xf] %vm550_vm3, %v6891_v18 }
  0x65   : > { %658 = vst.msk [vmem:[#allocation2 + $0x1bc] sm:$0xf] %vm550_vm3, %v6891_v18 }
  0x66   : > { %660 = vst.msk [vmem:[#allocation2 + $0x1d0] sm:$0xf] %vm550_vm3, %v6891_v18 }
  0x67   : > { %662 = vst.msk [vmem:[#allocation2 + $0x1e4] sm:$0xf] %vm550_vm3, %v6891_v18 }
  0x68   : > { %664 = vst.msk [vmem:[#allocation2 + $0x1f8] sm:$0xf] %vm550_vm3, %v6891_v18 }
  0x69   : > { %666 = vst.msk [vmem:[#allocation2 + $0x20c] sm:$0xf] %vm550_vm3, %v6891_v18 }
  0x6a   : > { %668 = vst.msk [vmem:[#allocation2 + $0x220] sm:$0xf] %vm550_vm3, %v6891_v18 }
  0x6b   : > { %669 = vst.msk [vmem:[#allocation2 + $0x10] sm:$0x7] %vm555_vm2, %v6891_v18 }
  0x6c   : > { %670 = vst.msk [vmem:[#allocation2 + $0x24] sm:$0x7] %vm555_vm2, %v6891_v18 }
  0x6d   : > { %671 = vst.msk [vmem:[#allocation2 + $0x38] sm:$0x7] %vm555_vm2, %v6891_v18 }
  0x6e   : > { %672 = vst.msk [vmem:[#allocation2 + $0x4c] sm:$0x7] %vm555_vm2, %v6891_v18 }
  0x6f   : > { %673 = vst.msk [vmem:[#allocation2 + $0x60] sm:$0x7] %vm555_vm2, %v6891_v18 }
  0x70   : > { %674 = vst.msk [vmem:[#allocation2 + $0x74] sm:$0x7] %vm555_vm2, %v6891_v18 }
  0x71   : > { %691 = vst.msk [vmem:[#allocation2 + $0x1c8] sm:$0x7] %vm555_vm2, %v6891_v18 }
  0x72   : > { %692 = vst.msk [vmem:[#allocation2 + $0x1dc] sm:$0x7] %vm555_vm2, %v6891_v18 }
  0x73   : > { %693 = vst.msk [vmem:[#allocation2 + $0x1f0] sm:$0x7] %vm555_vm2, %v6891_v18 }
  0x74   : > { %694 = vst.msk [vmem:[#allocation2 + $0x204] sm:$0x7] %vm555_vm2, %v6891_v18 }
  0x75   : > { %695 = vst.msk [vmem:[#allocation2 + $0x218] sm:$0x7] %vm555_vm2, %v6891_v18 }
  0x76   : > { %696 = vst.msk [vmem:[#allocation2 + $0x22c] sm:$0x7] %vm555_vm2, %v6891_v18 }
  0x8e   : > { %v405_v20 = vpop.f32.mrf.mxu0 }
  0x8f   : > { %v425_v21 = vpop.f32.mrf.mxu1  ;;  %v406_v22 = vadd.f32 %v6979_v19, %v405_v20 }
  0x90   : > { %v426_v23 = vadd.f32 %v6979_v19, %v425_v21 }
  0x91   : > { %v485_v24 = vmax.f32 %v406_v22, 0.0 }
  0x92   : > { %v493_v25 = vmax.f32 %v426_v23, 0.0 }
  0x93   : > { %v517_v26 = vpack.c.bf16 %v485_v24, %v485_v24 }
  0x94   : > { %v6997_v27 = vpack.c.bf16 %v493_v25, %v493_v25 }
  0x95   : > { %698 = vst.msk [vmem:[#allocation2 + $0x80] sm:$0xf] %vm550_vm3, %v517_v26  ;;  %v3211_v44 = vunpack.c.l.b16 %v517_v26  ;;  %v7189_v26 = vld [vmem:[#allocation2 + $0x30] sm:$0xff]  }
  0x96   : > { %12422 = vst [vmem:[#allocation3_spill] sm:$0xff] %v6997_v27  ;;  %v445_v28 = vpop.f32.mrf.mxu2  ;;  %v407_v32 = vpop.f32.mrf.mxu0 }
  0x97   : > { %v465_v29 = vpop.f32.mrf.mxu3  ;;  %706 = vst.msk [vmem:[#allocation2 + $0xd0] sm:$0xf] %vm550_vm3, %v6997_v27  ;;  %v446_v30 = vadd.f32 %v6979_v19, %v445_v28  ;;  %v427_v33 = vpop.f32.mrf.mxu1  ;;  %v408_v34 = vadd.f32 %v6979_v19, %v407_v32  ;;  %v7286_v32 = vld [vmem:[#allocation2 + $0x18c] sm:$0x7]  ;;  %v7435_v27 = vld [vmem:[#allocation2 + $0x60] sm:$0x7] }
  0x98   : > { %v466_v31 = vadd.f32 %v6979_v19, %v465_v29  ;;  %v428_v35 = vadd.f32 %v6979_v19, %v427_v33  ;;  %12431 = vst [vmem:[#allocation12_spill] sm:$0xff] %v7189_v26 }
  0x99   : > { %v501_v36 = vmax.f32 %v446_v30, 0.0  ;;  %v486_v38 = vmax.f32 %v408_v34, 0.0  ;;  %12436 = vst [vmem:[#allocation17_spill] sm:$0xff] %v7286_v32 }
  0x9a   : > { %v509_v37 = vmax.f32 %v466_v31, 0.0  ;;  %v494_v39 = vmax.f32 %v428_v35, 0.0  ;;  %v7195_v31 = vld [vmem:[#allocation2 + $0x58] sm:$0xff]  }
  0x9b   : > { %v533_v40 = vpack.c.bf16 %v501_v36, %v501_v36  ;;  %v518_v42 = vpack.c.bf16 %v486_v38, %v486_v38  ;;  %v7199_v35 = vld [vmem:[#allocation2 + $0x18] sm:$0xff]   ;;  %v7201_v36 = vld [vmem:[#allocation2 + $0x20] sm:$0xf] }
  0x9c   : > { %v541_v41 = vpack.c.bf16 %v509_v37, %v509_v37  ;;  %v7014_v43 = vpack.c.bf16 %v494_v39, %v494_v39  ;;  %12432 = vst [vmem:[#allocation13_spill] sm:$0xff] %v7201_v36 }
  0x9d   : > { %714 = vst.msk [vmem:[#allocation2 + $0x120] sm:$0xf] %vm550_vm3, %v533_v40  ;;  %v3212_v45 = vunpack.c.l.b16 %v518_v42  ;;  %v3227_v53 = vunpack.c.l.b16 %v533_v40  ;;  %v12052_v40 = vunpack.c.l.bf16 %v7189_v26 }
  0x9e   : > { %12423 = vst [vmem:[#allocation4_spill] sm:$0xff] %v7014_v43  ;;  %v447_v46 = vpop.f32.mrf.mxu2  ;;  %v3235_v54 = vunpack.c.l.b16 %v541_v41  ;;  %v410_v61 = vpop.f32.mrf.mxu0 }
  0x9f   : > { %722 = vst.msk [vmem:[#allocation2 + $0x170] sm:$0xf] %vm550_vm3, %v541_v41  ;;  %v467_v47 = vpop.f32.mrf.mxu3  ;;  %v448_v48 = vadd.f32 %v6979_v19, %v447_v46  ;;  %v7023_v50 = vpack.c.b16 %v3212_v45, %v3211_v44  ;;  %v411_v62 = vadd.f32 %v6979_v19, %v410_v61  ;;  %v430_v11 = vpop.f32.mrf.mxu1  ;;  %v7210_v41 = vld [vmem:[#allocation2 + $0x48] sm:$0xf]  ;;  %v7227_v61 = vld [vmem:[#allocation2 + $0x70] sm:$0xf] }
  0xa0   : > { %699 = vst.msk [vmem:[#allocation2 + $0x84] sm:$0xf] %vm550_vm3, %v518_v42  ;;  %v468_v49 = vadd.f32 %v6979_v19, %v467_v47  ;;  %v431_v20 = vadd.f32 %v6979_v19, %v430_v11 }
  0xa1   : > { %707 = vst.msk [vmem:[#allocation2 + $0xd4] sm:$0xf] %vm550_vm3, %v7014_v43  ;;  %v502_v51 = vmax.f32 %v448_v48, 0.0  ;;  %v487_v1 = vmax.f32 %v411_v62, 0.0  ;;  %6659 = vmatmul.msk.bf16.vlgmr.msrb.gmra.mxu2 %vm3037_vm5, %v7023_v50  ;;  %v7214_v48 = vld [vmem:[#allocation2 + $0x2c] sm:$0xf] }
  0xa2   : > { %v510_v52 = vmax.f32 %v468_v49, 0.0  ;;  %v495_v34 = vmax.f32 %v431_v20, 0.0  ;;  %12433 = vst [vmem:[#allocation14_spill] sm:$0xff] %v7214_v48  ;;  %v12051_v49 = vunpack.c.h.bf16 %v7189_v26  ;;  %v7325_v62 = vld [vmem:[#allocation2 + $0x8] sm:$0xff]   ;;  %v7348_v50 = vld [vmem:[#allocation2 + $0x194] sm:$0xf] }
  0xa3   : > { %v534_v55 = vpack.c.bf16 %v502_v51, %v502_v51  ;;  %v7147_v5 = vpack.c.bf16 %v487_v1, %v487_v1  ;;  %12441 = vst [vmem:[#allocation22_spill] sm:$0xff] %v7348_v50 }
  0xa4   : > { %v542_v56 = vpack.c.bf16 %v510_v52, %v510_v52  ;;  %v12056_v52 = vunpack.c.l.bf16 %v7199_v35 }
  0xa5   : > { %715 = vst.msk [vmem:[#allocation2 + $0x124] sm:$0xf] %vm550_vm3, %v534_v55  ;;  %v3228_v57 = vunpack.c.l.b16 %v534_v55  ;;  %v3213_v37 = vunpack.c.l.b16 %v7147_v5  ;;  %v7224_v55 = vpack.c.bf16 %v495_v34, %v495_v34  ;;  %v7268_v34 = vrot.slane %v12051_v49, 1  ;;  %v7288_v49 = vld [vmem:[#allocation2 + $0x68] sm:$0xff]  }
  0xa6   : > { %v3236_v58 = vunpack.c.l.b16 %v542_v56  ;;  %723 = vst.msk [vmem:[#allocation2 + $0x174] sm:$0xf] %vm550_vm3, %v542_v56  ;;  %v450_v14 = vpop.f32.mrf.mxu2  ;;  %v412_v21 = vpop.f32.mrf.mxu0 }
  0xa7   : > { %v7035_v59 = vpack.c.b16 %v3228_v57, %v3227_v53  ;;  %700 = vst.msk [vmem:[#allocation2 + $0x94] sm:$0xf] %vm550_vm3, %v7147_v5  ;;  %v470_v15 = vpop.f32.mrf.mxu3  ;;  %v432_v22 = vpop.f32.mrf.mxu1  ;;  %v413_v23 = vadd.f32 %v6979_v19, %v412_v21  ;;  %v451_v24 = vadd.f32 %v6979_v19, %v450_v14  ;;  %v7212_v42 = vld [vmem:[#allocation2 + $0x80] sm:$0xff]   ;;  %v12055_v53 = vunpack.c.h.bf16 %v7199_v35 }
  0xa8   : > { %v7037_v60 = vpack.c.b16 %v3236_v58, %v3235_v54  ;;  %v471_v25 = vadd.f32 %v6979_v19, %v470_v15  ;;  %v433_v39 = vadd.f32 %v6979_v19, %v432_v22  ;;  %v12054_v54 = vunpack.c.l.bf16 %v7201_v36  ;;  %12434 = vst [vmem:[#allocation15_spill] sm:$0xff] %v7224_v55  ;;  %v7250_v15 = vld [vmem:[#allocation2 + $0x40] sm:$0xff]   ;;  %v7341_v58 = vld [vmem:[#allocation2 + $0x9c] sm:$0x7] }
  0xa9   : > { %12424 = vst [vmem:[#allocation5_spill] sm:$0xff] %v7035_v59  ;;  %v488_v30 = vmax.f32 %v413_v23, 0.0  ;;  %v503_v44 = vmax.f32 %v451_v24, 0.0  ;;  %v1074_v21 = vrot.slane %v12056_v52, 1  ;;  %v1075_v22 = vrot.slane %v12055_v53, 1 }
  0xaa   : > { %12425 = vst [vmem:[#allocation6_spill] sm:$0xff] %v7037_v60  ;;  %v511_v45 = vmax.f32 %v471_v25, 0.0  ;;  %v496_v1 = vmax.f32 %v433_v39, 0.0  ;;  %v7259_v23 = vrot.slane %v12054_v54, 1  ;;  %v813_v52 = vld [vmem:[#allocation2 + $0x1a0] sm:$0x7] }
  0xab   : > { %v7206_v38 = vpack.c.bf16 %v488_v30, %v488_v30  ;;  %v1082_v30 = vrot.slane %v12052_v40, 1  ;;  %708 = vst.msk [vmem:[#allocation2 + $0xe4] sm:$0xf] %vm550_vm3, %v7224_v55 }
  0xac   : > { %v7240_v11 = vpack.c.bf16 %v511_v45, %v511_v45  ;;  %v7273_v39 = vpack.c.bf16 %v496_v1, %v496_v1  ;;  %v7295_v40 = vsel %vm1066_vm6, %v1075_v22, %v7259_v23 }
  0xad   : > { %v6857_v63 = vld [vmem:[#allocation2 + $0x170] sm:$0xff]   ;;  %v3214_v51 = vunpack.c.l.b16 %v7206_v38  ;;  %12437 = vst [vmem:[#allocation18_spill] sm:$0xff] %v7295_v40 }
  0xae   : > { %v6801_v2 = vunpack.c.l.bf16 %v6857_v63  ;;  %v6802_v3 = vunpack.c.h.bf16 %v6857_v63  ;;  %v452_v46 = vpop.f32.mrf.mxu2  ;;  %v415_v56 = vpop.f32.mrf.mxu0  ;;  %v12053_v63 = vunpack.c.l.bf16 %v7214_v48  ;;  %v7245_v14 = vld [vmem:[#allocation2 + $0x90] sm:$0xff]   ;;  %12435 = vst [vmem:[#allocation16_spill] sm:$0xff] %v7273_v39 }
  0xaf   : > { %v472_v47 = vpop.f32.mrf.mxu3  ;;  %v435_v57 = vpop.f32.mrf.mxu1  ;;  %v453_v1 = vadd.f32 %v6979_v19, %v452_v46  ;;  %724 = vst.msk [vmem:[#allocation2 + $0x184] sm:$0xf] %vm550_vm3, %v7240_v11 }
  0xb0   : > { %v7157_v8 = vrot.slane %v6801_v2, 1  ;;  %v1196_v9 = vrot.slane %v6802_v3, 1  ;;  %v1081_v25 = vrot.slane %v12053_v63, 1  ;;  %v473_v33 = vadd.f32 %v6979_v19, %v472_v47  ;;  %701 = vst.msk [vmem:[#allocation2 + $0x98] sm:$0xf] %vm550_vm3, %v7206_v38 }
  0xb1   : > { %v12057_v63 = vunpack.c.l.bf16 %v7286_v32  ;;  %v7304_v47 = vsel %vm1066_vm6, %v1082_v30, %v7268_v34  ;;  %709 = vst.msk [vmem:[#allocation2 + $0xe8] sm:$0xf] %vm550_vm3, %v7273_v39 }
  0xb2   : > { %12427 = vst [vmem:[#allocation8_spill] sm:$0xff] %v7157_v8  ;;  %v1197_v12 = vsel %vm1066_vm6, %v7157_v8, %v1196_v9  ;;  %v1199_v13 = vsel %vm1066_vm6, %v1196_v9, %v7161_v10  ;;  %v7238_v9 = vpack.c.bf16 %v503_v44, %v503_v44  ;;  %v7275_v44 = vld [vmem:[#allocation2 + $0x54] sm:$0xf]  ;;  %v7300_v46 = vsel %vm1066_vm6, %v1081_v25, %v1082_v30 }
  0xb3   : > { %v7177_v16 = vmax.f32 %v6801_v2, %v1197_v12  ;;  %v7179_v17 = vmax.f32 %v6802_v3, %v1199_v13  ;;  %v3244_v2 = vpack.c.b16 %v3214_v51, %v3213_v37  ;;  %v7233_v3 = vld [vmem:[#allocation2 + $0x7c] sm:$0xf]  ;;  %v416_v12 = vadd.f32 %v6979_v19, %v415_v56  ;;  %v7243_v13 = vld [vmem:[#allocation2 + $0x88] sm:$0x7]  ;;  %12438 = vst [vmem:[#allocation19_spill] sm:$0xff] %v7300_v46 }
  0xb4   : > { %v3229_v37 = vunpack.c.l.b16 %v7238_v9  ;;  %12439 = vst [vmem:[#allocation20_spill] sm:$0xff] %v7304_v47  ;;  %v512_v7 = vmax.f32 %v473_v33, 0.0  ;;  %v3237_v51 = vunpack.c.l.b16 %v7240_v11  ;;  %v7332_v24 = vrot.slane %v12057_v63, 1  ;;  %v7454_v47 = vld [vmem:[#allocation2 + $0xb0] sm:$0x7] }
  0xb5   : > { %12429 = vst [vmem:[#allocation10_spill] sm:$0xff] %v7177_v16  ;;  %6660 = vmatmul.msk.bf16.gmra.mxu2 %vm3037_vm5, %v3244_v2  ;;  %v489_v56 = vmax.f32 %v416_v12, 0.0  ;;  %v7291_v12 = vsel %vm1066_vm6, %v1074_v21, %v1075_v22  ;;  %v504_v21 = vmax.f32 %v453_v1, 0.0  ;;  %v436_v22 = vadd.f32 %v6979_v19, %v435_v57 }
  0xb6   : > { %12430 = vst [vmem:[#allocation11_spill] sm:$0xff] %v7179_v17  ;;  %v455_v2 = vpop.f32.mrf.mxu2  ;;  %v417_v54 = vpop.f32.mrf.mxu0  ;;  %v7321_v33 = vpack.c.bf16 %v512_v7, %v512_v7  ;;  %v7335_v7 = vld [vmem:[#allocation2 + $0x4] sm:$0xf]  ;;  %v7375_v17 = vld [vmem:[#allocation2 + $0x10] sm:$0x7]  ;;  %v12450_v10 = vunpack.c.l.bf16 %v7325_v62  ;;  %v12451_v8 = vunpack.c.h.bf16 %v7325_v62 }
  0xb7   : > { %v475_v28 = vpop.f32.mrf.mxu3  ;;  %v437_v53 = vpop.f32.mrf.mxu1  ;;  %v418_v45 = vadd.f32 %v6979_v19, %v417_v54  ;;  %v7313_v25 = vpack.c.bf16 %v489_v56, %v489_v56  ;;  %v7319_v1 = vpack.c.bf16 %v504_v21, %v504_v21  ;;  %v456_v54 = vadd.f32 %v6979_v19, %v455_v2  ;;  %12440 = vst [vmem:[#allocation21_spill] sm:$0xff] %v7332_v24 }
  0xb8   : > { %v438_v57 = vadd.f32 %v6979_v19, %v437_v53  ;;  %v476_v21 = vadd.f32 %v6979_v19, %v475_v28  ;;  %v3238_v2 = vunpack.c.l.b16 %v7321_v33  ;;  %v497_v30 = vmax.f32 %v436_v22, 0.0  ;;  %716 = vst.msk [vmem:[#allocation2 + $0x134] sm:$0xf] %vm550_vm3, %v7238_v9 }
  0xb9   : > { %v490_v20 = vmax.f32 %v418_v45, 0.0  ;;  %v3230_v53 = vunpack.c.l.b16 %v7319_v1  ;;  %v505_v5 = vmax.f32 %v456_v54, 0.0  ;;  %v3215_v63 = vunpack.c.l.b16 %v7313_v25  ;;  %717 = vst.msk [vmem:[#allocation2 + $0x138] sm:$0xf] %vm550_vm3, %v7319_v1 }
  0xba   : > { %v7356_v54 = vpack.c.b16 %v3238_v2, %v3237_v51  ;;  %v513_v29 = vmax.f32 %v476_v21, 0.0  ;;  %v498_v60 = vmax.f32 %v438_v57, 0.0  ;;  %v925_v21 = vunpack.c.l.bf16 %v813_v52  ;;  %725 = vst.msk [vmem:[#allocation2 + $0x188] sm:$0xf] %vm550_vm3, %v7321_v33 }
  0xbb   : > { %v7346_v28 = vpack.c.bf16 %v490_v20, %v490_v20  ;;  %v7354_v22 = vpack.c.b16 %v3230_v53, %v3229_v37  ;;  %v7366_v37 = vpack.c.bf16 %v497_v30, %v497_v30  ;;  %v7372_v53 = vpack.c.bf16 %v505_v5, %v505_v5  ;;  %v7393_v5 = vld [vmem:[#allocation2 + $0x38] sm:$0x7]  ;;  %702 = vst.msk [vmem:[#allocation2 + $0xa8] sm:$0xf] %vm550_vm3, %v7313_v25 }
  0xbc   : > { %12443 = vst [vmem:[#allocation24_spill] sm:$0xff] %v7356_v54  ;;  %v7379_v30 = vpack.c.bf16 %v513_v29, %v513_v29  ;;  %v7383_v52 = vrot.slane %v925_v21, 1  ;;  %v7385_v54 = vld [vmem:[#allocation2 + $0x24] sm:$0x7]  ;;  %v7425_v55 = vrot.slane %v12451_v8, 1 }
  0xbd   : > { %12442 = vst [vmem:[#allocation23_spill] sm:$0xff] %v7354_v22  ;;  %v3216_v20 = vunpack.c.l.b16 %v7346_v28 }
  0xbe   : > { %v457_v45 = vpop.f32.mrf.mxu2  ;;  %v420_v16 = vpop.f32.mrf.mxu0  ;;  %12444 = vst [vmem:[#allocation25_spill] sm:$0xff] %v7366_v37  ;;  %v7416_v22 = vmax.f32 %v925_v21, %v7383_v52 }
  0xbf   : > { %v477_v56 = vpop.f32.mrf.mxu3  ;;  %v458_v59 = vadd.f32 %v6979_v19, %v457_v45  ;;  %v440_v6 = vpop.f32.mrf.mxu1  ;;  %v421_v45 = vadd.f32 %v6979_v19, %v420_v16  ;;  %v3245_v4 = vpack.c.b16 %v3216_v20, %v3215_v63  ;;  %12446 = vst [vmem:[#allocation27_spill] sm:$0xff] %v7385_v54 }
  0xc0   : > { %v478_v51 = vadd.f32 %v6979_v19, %v477_v56  ;;  %v7381_v56 = vpack.c.bf16 %v498_v60, %v498_v60  ;;  %v12447_v60 = vunpack.c.l.bf16 %v7335_v7  ;;  %12449 = vst [vmem:[#allocation28_spill] sm:$0xff] %v7416_v22  ;;  %v441_v18 = vadd.f32 %v6979_v19, %v440_v6  ;;  %v7447_v6 = vld [vmem:[#allocation2 + $0xa4] sm:$0xf] }
  0xc1   : > { %v506_v2 = vmax.f32 %v458_v59, 0.0  ;;  %v3231_v59 = vunpack.c.l.b16 %v7372_v53  ;;  %v491_v63 = vmax.f32 %v421_v45, 0.0  ;;  %710 = vst.msk [vmem:[#allocation2 + $0xf8] sm:$0xf] %vm550_vm3, %v7366_v37 }
  0xc2   : > { %12445 = vst [vmem:[#allocation26_spill] sm:$0xff] %v7381_v56  ;;  %v514_v57 = vmax.f32 %v478_v51, 0.0  ;;  %v1067_v29 = vrot.slane %v12447_v60, 1  ;;  %v3239_v51 = vunpack.c.l.b16 %v7379_v30  ;;  %v499_v26 = vmax.f32 %v441_v18, 0.0 }
  0xc3   : > { %v7390_v16 = vpack.c.bf16 %v506_v2, %v506_v2  ;;  %v12448_v2 = vunpack.c.l.bf16 %v7348_v50  ;;  %v7432_v21 = vpack.c.bf16 %v491_v63, %v491_v63  ;;  %718 = vst.msk [vmem:[#allocation2 + $0x148] sm:$0xf] %vm550_vm3, %v7372_v53  ;;  %v4920_v53 = vld [vmem:[%s12047_s3] sm:$0x4] }
  0xc4   : > { %v7409_v45 = vpack.c.bf16 %v514_v57, %v514_v57  ;;  %v1068_v57 = vrot.slane %v12450_v10, 1  ;;  %v7437_v10 = vld [vmem:[#allocation2 + $0x74] sm:$0x7]  ;;  %726 = vst.msk [vmem:[#allocation2 + $0x198] sm:$0xf] %vm550_vm3, %v7379_v30  ;;  %v4922_v25 = vunpack.c.l.b16 %v4920_v53 }
  0xc5   : > { %6661 = vmatmul.msk.bf16.gmra.mxu2 %vm3037_vm5, %v3245_v4  ;;  %v7404_v32 = vrot.slane %v12448_v2, 1  ;;  %v3232_v4 = vunpack.c.l.b16 %v7390_v16  ;;  %v7418_v2 = vld [vmem:[#allocation2 + $0x4c] sm:$0x7]  ;;  %v3217_v1 = vunpack.c.l.b16 %v7432_v21  ;;  %703 = vst.msk [vmem:[#allocation2 + $0xac] sm:$0xf] %vm550_vm3, %v7346_v28 }
  0xc6   : > { %v460_v60 = vpop.f32.mrf.mxu2  ;;  %v3240_v9 = vunpack.c.l.b16 %v7409_v45  ;;  %v422_v43 = vpop.f32.mrf.mxu0  ;;  %v7475_v33 = vsel %vm1066_vm6, %v1068_v57, %v7425_v55  ;;  %711 = vst.msk [vmem:[#allocation2 + $0xfc] sm:$0xf] %vm550_vm3, %v7381_v56  ;;  %v808_v28 = vld [vmem:[#allocation2 + $0x188] sm:$0xf] }
  0xc7   : > { %v480_v0 = vpop.f32.mrf.mxu3  ;;  %v7429_v20 = vpack.c.b16 %v3232_v4, %v3231_v59  ;;  %v442_v50 = vpop.f32.mrf.mxu1  ;;  %v461_v8 = vadd.f32 %v6979_v19, %v460_v60  ;;  %v423_v59 = vadd.f32 %v6979_v19, %v422_v43  ;;  %v7445_v4 = vld [vmem:[#allocation2 + $0x1b4] sm:$0x7]  ;;  %719 = vst.msk [vmem:[#allocation2 + $0x14c] sm:$0xf] %vm550_vm3, %v7390_v16 }
  0xc8   : > { %v481_v11 = vadd.f32 %v6979_v19, %v480_v0  ;;  %v443_v63 = vadd.f32 %v6979_v19, %v442_v50  ;;  %v929_v38 = vunpack.c.l.bf16 %v7445_v4  ;;  %v7466_v4 = vsel %vm1066_vm6, %v1067_v29, %v1068_v57  ;;  %727 = vst.msk [vmem:[#allocation2 + $0x19c] sm:$0xf] %vm550_vm3, %v7409_v45 }
  0xc9   : > { %12452 = vst [vmem:[#allocation29_spill] sm:$0xff] %v7429_v20  ;;  %v7451_v20 = vpack.c.b16 %v3240_v9, %v3239_v51  ;;  %v507_v43 = vmax.f32 %v461_v8, 0.0  ;;  %v492_v60 = vmax.f32 %v423_v59, 0.0  ;;  %v7479_v59 = vpack.c.bf16 %v499_v26, %v499_v26 }
  0xca   : > { %v515_v50 = vmax.f32 %v481_v11, 0.0  ;;  %v500_v11 = vmax.f32 %v443_v63, 0.0  ;;  %v7481_v18 = vrot.slane %v929_v38, 1  ;;  %v12455_v51 = vunpack.c.l.bf16 %v7375_v17  ;;  %v7488_v63 = vld [vmem:[#allocation2 + $0x180] sm:$0xff]   ;;  %704 = vst.msk [vmem:[#allocation2 + $0xbc] sm:$0xf] %vm550_vm3, %v7432_v21 }
  0xcb   : > { %12453 = vst [vmem:[#allocation30_spill] sm:$0xff] %v7451_v20  ;;  %v7471_v8 = vpack.c.bf16 %v492_v60, %v492_v60  ;;  %v539_v57 = vpack.c.bf16 %v507_v43, %v507_v43  ;;  %v12457_v0 = vunpack.c.l.bf16 %v7385_v54  ;;  %v6805_v37 = vunpack.c.l.bf16 %v7488_v63 }
  0xcc   : > { %12454 = vst [vmem:[#allocation31_spill] sm:$0xff] %v7479_v59  ;;  %v7486_v60 = vrot.slane %v12455_v51, 1  ;;  %v547_v48 = vpack.c.bf16 %v515_v50, %v515_v50  ;;  %v7511_v43 = vpack.c.bf16 %v500_v11, %v500_v11  ;;  %v4923_v11 = vpack.c.b16 %v4922_v25, %v4922_v25 }
  0xcd   : > { %12456 = vst [vmem:[#allocation32_spill] sm:$0xff] %v7488_v63  ;;  %v3218_v26 = vunpack.c.l.b16 %v7471_v8  ;;  %v7495_v20 = vrot.slane %v12457_v0, 1  ;;  %v3032_v0 = vld [vmem:[%s12047_s3] sm:$0x2]  ;;  %v12481_v45 = vunpack.c.l.bf16 %v7418_v2 }
  0xce   : > { %v462_v9 = vpop.f32.mrf.mxu2  ;;  %12458 = vst [vmem:[#allocation33_spill] sm:$0xff] %v7511_v43  ;;  %v3034_v30 = vunpack.c.l.b16 %v3032_v0  ;;  %v920_v0 = vunpack.c.l.bf16 %v808_v28  ;;  %v4924_v16 = vrot.slane %v4923_v11, 2 }
  0xcf   : > { %v482_v29 = vpop.f32.mrf.mxu3  ;;  %v463_v51 = vadd.f32 %v6979_v19, %v462_v9  ;;  %v3246_v50 = vpack.c.b16 %v3218_v26, %v3217_v1  ;;  %v1200_v9 = vrot.slane %v6805_v37, 1  ;;  %v3233_v1 = vunpack.c.l.b16 %v539_v57  ;;  %712 = vst.msk [vmem:[#allocation2 + $0x10c] sm:$0xf] %vm550_vm3, %v7479_v59 }
  0xd0   : > { %v483_v39 = vadd.f32 %v6979_v19, %v482_v29  ;;  %v6221_v19 = vld [vmem:[%s12047_s3] sm:$0x8]  ;;  %v12459_v29 = vunpack.c.h.bf16 %v7488_v63  ;;  %v3035_v26 = vpack.c.b16 %v3034_v30, %v3034_v30  ;;  %v3241_v63 = vunpack.c.l.b16 %v547_v48  ;;  %720 = vst.msk [vmem:[#allocation2 + $0x15c] sm:$0xf] %vm550_vm3, %v539_v57 }
  0xd1   : > { %v508_v54 = vmax.f32 %v463_v51, 0.0  ;;  %v6223_v53 = vunpack.c.l.b16 %v6221_v19  ;;  %v7534_v19 = vrot.slane %v920_v0, 1  ;;  %v4974_v21 = vsel %vm3086_vm4, %v4924_v16, 0  ;;  %728 = vst.msk [vmem:[#allocation2 + $0x1ac] sm:$0xf] %vm550_vm3, %v547_v48 }
  0xd2   : > { %v7518_v46 = vrot.slane %v12459_v29, 1  ;;  %v516_v36 = vmax.f32 %v483_v39, 0.0  ;;  %v7530_v39 = vmax.f32 %v929_v38, %v7481_v18  ;;  %v3036_v51 = vrot.slane %v3035_v26, 1  ;;  %4983 = vmatpush.bf16.msrb.mxu3 %v4974_v21  ;;  %705 = vst.msk [vmem:[#allocation2 + $0xc0] sm:$0xf] %vm550_vm3, %v7471_v8 }
  0xd3   : > { %v540_v29 = vpack.c.bf16 %v508_v54, %v508_v54  ;;  %v6224_v25 = vpack.c.b16 %v6223_v53, %v6223_v53  ;;  %12462 = vst [vmem:[#allocation36_spill] sm:$0xff] %v7534_v19  ;;  %v7555_v53 = vld [vmem:[#allocation2 + $0x98] sm:$0xf]  ;;  %v7560_v16 = vsel %vm1066_vm6, %v7425_v55, %v7486_v60  ;;  %v7565_v48 = vsel %vm1066_vm6, %v7259_v23, %v7495_v20 }
  0xd4   : > { %12460 = vst [vmem:[#allocation34_spill] sm:$0xff] %v7518_v46  ;;  %v548_v40 = vpack.c.bf16 %v516_v36, %v516_v36  ;;  %v1202_v30 = vsel %vm1066_vm6, %v1200_v9, %v7518_v46  ;;  %v3088_v38 = vsel %vm3086_vm4, %v3036_v51, 0  ;;  %v1206_v9 = vsel %vm1066_vm6, %v7534_v19, %v7332_v24  ;;  %v7575_v51 = vld [vmem:[#allocation2 + $0xa8] sm:$0xff]  }
  0xd5   : > { %6662 = vmatmul.msk.bf16.gmra.mxu2 %vm3037_vm5, %v3246_v50  ;;  %12461 = vst [vmem:[#allocation35_spill] sm:$0xff] %v7530_v39  ;;  %v3234_v36 = vunpack.c.l.b16 %v540_v29  ;;  %v6225_v50 = vrot.slane %v6224_v25, 3  ;;  %3097 = vmatpush.bf16.msrb.mxu1 %v3088_v38  ;;  %v7550_v26 = vmax.f32 %v6805_v37, %v1202_v30  ;;  %v7569_v37 = vld [vmem:[#allocation2 + $0x148] sm:$0xff]   ;;  %v12468_v55 = vunpack.c.l.bf16 %v7393_v5  ;;  %v6859_v30 = vld [vmem:[#allocation2 + $0x198] sm:$0xff]  }
  0xd6   : > { %v3242_v54 = vunpack.c.l.b16 %v548_v40  ;;  %12467 = vst [vmem:[#allocation41_spill] sm:$0xff] %v7569_v37  ;;  %v12470_v21 = vunpack.c.h.bf16 %v7250_v15  ;;  %v12495_v19 = vrot.slane %v7416_v22, 2 }
  0xd7   : > { %v7546_v28 = vpack.c.b16 %v3234_v36, %v3233_v1  ;;  %12465 = vst [vmem:[#allocation39_spill] sm:$0xff] %v7550_v26  ;;  %v6275_v57 = vsel %vm3086_vm4, %v6225_v50, 0  ;;  %v7579_v25 = vrot.slane %v12468_v55, 1  ;;  %v12469_v36 = vunpack.c.l.bf16 %v7250_v15 }
  0xd8   : > { %v7548_v11 = vpack.c.b16 %v3242_v54, %v3241_v63  ;;  %v7567_v63 = vmax.f32 %v920_v0, %v1206_v9  ;;  %713 = vst.msk [vmem:[#allocation2 + $0x110] sm:$0xf] %vm550_vm3, %v7511_v43  ;;  %6284 = vmatpush.bf16.msrb.mxu0 %v6275_v57  ;;  %v1089_v38 = vrot.slane %v12470_v21, 1  ;;  %v6809_v50 = vunpack.c.l.bf16 %v6859_v30 }
  0xd9   : > { %12463 = vst [vmem:[#allocation37_spill] sm:$0xff] %v7546_v28  ;;  %v1088_v54 = vrot.slane %v12469_v36, 1  ;;  %v6810_v9 = vunpack.c.h.bf16 %v6859_v30  ;;  %v12471_v55 = vunpack.c.l.bf16 %v7335_v7  ;;  %v12472_v21 = vunpack.c.l.bf16 %v7210_v41  ;;  %v7614_v36 = vld [vmem:[#allocation2 + $0x158] sm:$0xff]  }
  0xda   : > { %12464 = vst [vmem:[#allocation38_spill] sm:$0xff] %v7548_v11  ;;  %v1208_v0 = vrot.slane %v6809_v50, 1  ;;  %v12473_v57 = vunpack.c.l.bf16 %v7325_v62  ;;  %v12475_v7 = vunpack.c.l.bf16 %v7569_v37  ;;  %v7621_v30 = vsel %vm1066_vm6, %v7268_v34, %v7579_v25 }
  0xdb   : > { %12466 = vst [vmem:[#allocation40_spill] sm:$0xff] %v7567_v63  ;;  %v7593_v8 = vmax.f32 %v12471_v55, %v7466_v4  ;;  %v1091_v1 = vrot.slane %v12472_v21, 1  ;;  %v12477_v55 = vunpack.c.h.bf16 %v7569_v37  ;;  %v7616_v21 = vld [vmem:[#allocation2 + $0x1a8] sm:$0xff]   ;;  %v7632_v11 = vrot.slane %v12481_v45, 1 }
  0xdc   : > { %721 = vst.msk [vmem:[#allocation2 + $0x160] sm:$0xf] %vm550_vm3, %v540_v29  ;;  %v7604_v23 = vmax.f32 %v12473_v57, %v7475_v33  ;;  %v7608_v4 = vrot.slane %v12475_v7, 1  ;;  %v7624_v33 = vsel %vm1066_vm6, %v1088_v54, %v1089_v38  ;;  %v12483_v54 = vunpack.c.l.bf16 %v7275_v44 }
  0xdd   : > { %729 = vst.msk [vmem:[#allocation2 + $0x1b0] sm:$0xf] %vm550_vm3, %v548_v40  ;;  %v1210_v40 = vrot.slane %v6810_v9, 1  ;;  %v7612_v29 = vrot.slane %v12477_v55, 1  ;;  %v7637_v34 = vsel %vm1066_vm6, %v1089_v38, %v1091_v1  ;;  %v12488_v26 = vunpack.c.l.bf16 %v7616_v21 }
  0xde   : > { %12474 = vst [vmem:[#allocation42_spill] sm:$0xff] %v7604_v23  ;;  %v1095_v59 = vrot.slane %v12483_v54, 1  ;;  %v7655_v54 = vsel %vm1066_vm6, %v7404_v32, %v1208_v0  ;;  %v1094_v45 = vsel %vm1066_vm6, %v1091_v1, %v7632_v11  ;;  %v12493_v32 = vunpack.c.l.bf16 %v7288_v49 }
  0xdf   : > { %12476 = vst [vmem:[#allocation43_spill] sm:$0xff] %v7608_v4  ;;  %v1211_v57 = vsel %vm1066_vm6, %v1208_v0, %v1210_v40  ;;  %v1213_v7 = vsel %vm1066_vm6, %v1210_v40, %v7383_v52  ;;  %v12484_v40 = vunpack.c.l.bf16 %v7195_v31  ;;  %v1214_v63 = vrot.slane %v12488_v26, 1 }
  0xe0   : > { %12478 = vst [vmem:[#allocation44_spill] sm:$0xff] %v7612_v29  ;;  %v7634_v28 = vmax.f32 %v6809_v50, %v1211_v57  ;;  %v1457_v43 = vmax.f32 %v6810_v9, %v1213_v7  ;;  %v12485_v9 = vunpack.c.h.bf16 %v7195_v31  ;;  %v12486_v7 = vunpack.c.l.bf16 %v7435_v27 }
  0xe1   : > { %12479 = vst [vmem:[#allocation45_spill] sm:$0xff] %v7614_v36  ;;  %v1096_v55 = vrot.slane %v12484_v40, 1  ;;  %v1102_v0 = vrot.slane %v12493_v32, 1  ;;  %v12496_v1 = vunpack.c.l.bf16 %v7614_v36  ;;  %v12528_v23 = vunpack.c.h.bf16 %v7199_v35 }
  0xe2   : > { %12480 = vst [vmem:[#allocation46_spill] sm:$0xff] %v7616_v21  ;;  %v1743_v50 = vrot.slane %v1457_v43, 2  ;;  %v1098_v38 = vrot.slane %v12485_v9, 1  ;;  %v7651_v24 = vrot.slane %v12486_v7, 1  ;;  %v12490_v37 = vrot.slane %v7634_v28, 2 }
  0xe3   : > { %12482 = vst [vmem:[#allocation47_spill] sm:$0xff] %v7634_v28  ;;  %v7659_v52 = vld [vmem:[#allocation2 + $0x160] sm:$0xf]  ;;  %v12491_v7 = vunpack.c.h.bf16 %v7616_v21  ;;  %v7679_v4 = vrot.slane %v12496_v1, 1  ;;  %v1097_v32 = vsel %vm1066_vm6, %v1095_v59, %v1096_v55  ;;  %v12502_v1 = vunpack.c.l.bf16 %v7227_v61 }
  0xe4   : > { %v816_v57 = vld [vmem:[#allocation2 + $0x1b0] sm:$0xf]  ;;  %12487 = vst [vmem:[#allocation48_spill] sm:$0xff] %v7655_v54  ;;  %v1744_v9 = vsel %vm1599_vm7, %v12490_v37, %v1743_v50  ;;  %v12494_v54 = vunpack.c.h.bf16 %v7288_v49  ;;  %v12498_v37 = vunpack.c.h.bf16 %v7614_v36  ;;  %v1101_v22 = vsel %vm1066_vm6, %v1098_v38, %v7651_v24 }
  0xe5   : > { %12489 = vst [vmem:[#allocation49_spill] sm:$0xff] %v7659_v52  ;;  %v928_v40 = vunpack.c.l.bf16 %v816_v57  ;;  %v7668_v46 = vrot.slane %v12491_v7, 1  ;;  %v1746_v57 = vsel %vm1599_vm7, %v1743_v50, %v12495_v19  ;;  %v7693_v19 = vmax.f32 %v7634_v28, %v1744_v9 }
  0xe6   : > { %v1103_v26 = vrot.slane %v12494_v54, 1  ;;  %12497 = vst [vmem:[#allocation51_spill] sm:$0xff] %v7679_v4  ;;  %v7683_v29 = vrot.slane %v12498_v37, 1  ;;  %v1099_v54 = vsel %vm1066_vm6, %v1096_v55, %v1098_v38  ;;  %v1105_v37 = vrot.slane %v12502_v1, 1 }
  0xe7   : > { %12492 = vst [vmem:[#allocation50_spill] sm:$0xff] %v7668_v46  ;;  %v7685_v7 = vrot.slane %v928_v40, 1  ;;  %v12503_v36 = vunpack.c.l.bf16 %v7437_v10  ;;  %v7702_v4 = vmax.f32 %v1457_v43, %v1746_v57  ;;  %v7706_v59 = vsel %vm1066_vm6, %v1214_v63, %v7668_v46 }
  0xe8   : > { %12499 = vst [vmem:[#allocation52_spill] sm:$0xff] %v7683_v29  ;;  %v1104_v38 = vsel %vm1066_vm6, %v1102_v0, %v1103_v26  ;;  %v12507_v9 = vunpack.c.l.bf16 %v7233_v3  ;;  %v12509_v1 = vunpack.c.h.bf16 %v7212_v42  ;;  %v12510_v43 = vunpack.c.l.bf16 %v7243_v13 }
  0xe9   : > { %12500 = vst [vmem:[#allocation53_spill] sm:$0xff] %v7685_v7  ;;  %v1220_v50 = vsel %vm1066_vm6, %v7685_v7, %v7481_v18  ;;  %v1107_v21 = vrot.slane %v12503_v36, 1  ;;  %v12508_v18 = vunpack.c.l.bf16 %v7212_v42  ;;  %v12511_v63 = vunpack.c.l.bf16 %v7245_v14 }
  0xea   : > { %12501 = vst [vmem:[#allocation54_spill] sm:$0xff] %v7693_v19  ;;  %v7708_v55 = vmax.f32 %v928_v40, %v1220_v50  ;;  %v1109_v28 = vrot.slane %v12507_v9, 1  ;;  %v1112_v7 = vrot.slane %v12509_v1, 1  ;;  %v1114_v36 = vrot.slane %v12510_v43, 1 }
  0xeb   : > { %12504 = vst [vmem:[#allocation55_spill] sm:$0xff] %v7702_v4  ;;  %v1110_v29 = vrot.slane %v12508_v18, 1  ;;  %v1116_v40 = vrot.slane %v12511_v63, 1  ;;  %v12512_v50 = vunpack.c.h.bf16 %v7245_v14  ;;  %v12513_v46 = vunpack.c.l.bf16 %v7555_v53 }
  0xec   : > { %12505 = vst [vmem:[#allocation56_spill] sm:$0xff] %v7706_v59  ;;  %v1106_v4 = vsel %vm1066_vm6, %v1103_v26, %v1105_v37  ;;  %v1108_v18 = vsel %vm1066_vm6, %v1105_v37, %v1107_v21  ;;  %v12514_v52 = vunpack.c.l.bf16 %v7341_v58  ;;  %v12515_v57 = vrot.slane %v7530_v39, 2 }
  0xed   : > { %12506 = vst [vmem:[#allocation57_spill] sm:$0xff] %v7708_v55  ;;  %v1117_v0 = vrot.slane %v12512_v50, 1  ;;  %v1119_v9 = vrot.slane %v12513_v46, 1  ;;  %v1111_v1 = vsel %vm1066_vm6, %v1109_v28, %v1110_v29  ;;  %v12516_v19 = vrot.slane %v7708_v55, 2 }
  0xee   : > { %v1121_v43 = vrot.slane %v12514_v52, 1  ;;  %v1113_v50 = vsel %vm1066_vm6, %v1110_v29, %v1112_v7  ;;  %v1115_v46 = vsel %vm1066_vm6, %v1112_v7, %v1114_v36  ;;  %v12518_v26 = vunpack.c.l.bf16 %v7447_v6 }
  0xef   : > { %v7736_v63 = vsel %vm1599_vm7, %v12516_v19, %v12515_v57  ;;  %v1118_v37 = vsel %vm1066_vm6, %v1116_v40, %v1117_v0  ;;  %v1120_v28 = vsel %vm1066_vm6, %v1117_v0, %v1119_v9  ;;  %v12519_v52 = vunpack.c.l.bf16 %v7575_v51 }
  0xf0   : > { %12517 = vst [vmem:[#allocation58_spill] sm:$0xff] %v7736_v63  ;;  %v1123_v59 = vrot.slane %v12518_v26, 1  ;;  %v12520_v39 = vunpack.c.h.bf16 %v7575_v51  ;;  %v1122_v19 = vsel %vm1066_vm6, %v1119_v9, %v1121_v43  ;;  %v12521_v57 = vunpack.c.l.bf16 %v7454_v47 }
  0xf1   : > { %v1124_v56 = vrot.slane %v12519_v52, 1  ;;  %v12522_v7 = vunpack.c.h.bf16 %v7325_v62  ;;  %v12523_v40 = vunpack.c.l.bf16 %v7375_v17  ;;  %v12530_v17 = vld [vmem:[#allocation13_spill] sm:$0xff] }
  0xf2   : > { %v1126_v55 = vrot.slane %v12520_v39, 1  ;;  %v1128_v29 = vrot.slane %v12521_v57, 1  ;;  %v12525_v39 = vunpack.c.l.bf16 %v7199_v35  ;;  %v12527_v57 = vld [vmem:[#allocation18_spill] sm:$0xff]  ;;  %v12537_v35 = vld [vmem:[#allocation20_spill] sm:$0xff] }
  0xf3   : > { %v7754_v63 = vmax.f32 %v12522_v7, %v7560_v16  ;;  %v7759_v0 = vmax.f32 %v12523_v40, %v7486_v60  ;;  %v1125_v26 = vsel %vm1066_vm6, %v1123_v59, %v1124_v56  ;;  %v7771_v62 = vmax.f32 %v12528_v23, %v12527_v57  ;;  %v12532_v59 = vld [vmem:[#allocation27_spill] sm:$0xff]  ;;  %v12538_v23 = vld [vmem:[#allocation12_spill] sm:$0xff] }
  0xf4   : > { %v1127_v52 = vsel %vm1066_vm6, %v1124_v56, %v1126_v55  ;;  %v7766_v9 = vmax.f32 %v12525_v39, %v7291_v12  ;;  %v1129_v16 = vsel %vm1066_vm6, %v1126_v55, %v1128_v29  ;;  %v12531_v60 = vunpack.c.l.bf16 %v12530_v17  ;;  %v12535_v12 = vld [vmem:[#allocation14_spill] sm:$0xff] }
  0xf5   : > { %12524 = vst [vmem:[#allocation59_spill] sm:$0xff] %v7759_v0  ;;  %v12533_v56 = vunpack.c.l.bf16 %v12532_v59  ;;  %v12534_v0 = vld [vmem:[#allocation19_spill] sm:$0xff]  ;;  %v12536_v39 = vunpack.c.l.bf16 %v12535_v12  ;;  %v12539_v57 = vunpack.c.l.bf16 %v12538_v23  ;;  %v12540_v55 = vunpack.c.h.bf16 %v12538_v23 }
  0xf6   : > { %12526 = vst [vmem:[#allocation60_spill] sm:$0xff] %v7766_v9  ;;  %v7777_v7 = vmax.f32 %v12531_v60, %v7565_v48  ;;  %v12541_v17 = vunpack.c.l.bf16 %v7393_v5  ;;  %v12542_v60 = vunpack.c.l.bf16 %v7250_v15  ;;  %v12543_v59 = vunpack.c.h.bf16 %v7250_v15 }
  0xf7   : > { %12529 = vst [vmem:[#allocation18_spill] sm:$0xff] %v7771_v62  ;;  %v7782_v40 = vmax.f32 %v12533_v56, %v7495_v20  ;;  %v7787_v9 = vmax.f32 %v12536_v39, %v12534_v0  ;;  %v7792_v62 = vmax.f32 %v12539_v57, %v12537_v35  ;;  %v7797_v48 = vmax.f32 %v12540_v55, %v7621_v30 }
  0xf8   : > { %v7802_v20 = vmax.f32 %v12541_v17, %v7579_v25  ;;  %v7807_v0 = vmax.f32 %v12542_v60, %v7624_v33  ;;  %v7812_v56 = vmax.f32 %v12543_v59, %v7637_v34  ;;  %v12544_v12 = vunpack.c.l.bf16 %v7210_v41 }
  0xf9   : > { %v12545_v30 = vunpack.c.l.bf16 %v7418_v2  ;;  %v12546_v25 = vunpack.c.l.bf16 %v7275_v44  ;;  %v12547_v33 = vunpack.c.l.bf16 %v7195_v31  ;;  %v12548_v15 = vunpack.c.h.bf16 %v7195_v31 }
  0xfa   : > { %v7816_v39 = vmax.f32 %v12544_v12, %v1094_v45  ;;  %v12549_v41 = vunpack.c.l.bf16 %v7435_v27  ;;  %v12550_v2 = vunpack.c.l.bf16 %v7288_v49  ;;  %v12552_v44 = vunpack.c.h.bf16 %v7288_v49 }
  0xfb   : > { %v7821_v5 = vmax.f32 %v12545_v30, %v7632_v11  ;;  %v7825_v35 = vmax.f32 %v12546_v25, %v1097_v32  ;;  %v7829_v23 = vmax.f32 %v12547_v33, %v1099_v54  ;;  %v7833_v34 = vmax.f32 %v12548_v15, %v1101_v22 }
  0xfc   : > { %v7838_v45 = vmax.f32 %v12549_v41, %v7651_v24  ;;  %v7842_v11 = vmax.f32 %v12550_v2, %v1104_v38  ;;  %v7846_v32 = vmax.f32 %v12552_v44, %v1106_v4  ;;  %v12554_v54 = vunpack.c.l.bf16 %v7227_v61 }
  0xfd   : > { %v12556_v31 = vunpack.c.l.bf16 %v7437_v10  ;;  %v12558_v27 = vunpack.c.l.bf16 %v7233_v3  ;;  %v12560_v55 = vunpack.c.l.bf16 %v7212_v42  ;;  %v12562_v49 = vunpack.c.h.bf16 %v7212_v42  ;;  %v12582_v30 = vld [vmem:[#allocation60_spill] sm:$0xff] }
  0xfe   : > { %12551 = vst [vmem:[#allocation13_spill] sm:$0xff] %v7842_v11  ;;  %v7850_v57 = vmax.f32 %v12554_v54, %v1108_v18  ;;  %v12564_v61 = vunpack.c.l.bf16 %v7243_v13  ;;  %v12566_v10 = vunpack.c.l.bf16 %v7245_v14  ;;  %v12568_v3 = vunpack.c.h.bf16 %v7245_v14 }
  0xff   : > { %12553 = vst [vmem:[#allocation27_spill] sm:$0xff] %v7846_v32  ;;  %v7854_v22 = vmax.f32 %v12556_v31, %v1107_v21  ;;  %v7858_v24 = vmax.f32 %v12558_v27, %v1111_v1  ;;  %v7862_v38 = vmax.f32 %v12560_v55, %v1113_v50  ;;  %v7866_v4 = vmax.f32 %v12562_v49, %v1115_v46 }
 0x100   : > { %12555 = vst [vmem:[#allocation19_spill] sm:$0xff] %v7850_v57  ;;  %v7870_v18 = vmax.f32 %v12564_v61, %v1114_v36  ;;  %v7874_v21 = vmax.f32 %v12566_v10, %v1118_v37  ;;  %v7878_v1 = vmax.f32 %v12568_v3, %v1120_v28  ;;  %v12570_v17 = vunpack.c.l.bf16 %v7555_v53 }
 0x101   : > { %12557 = vst [vmem:[#allocation14_spill] sm:$0xff] %v7854_v22  ;;  %v12572_v42 = vunpack.c.l.bf16 %v7341_v58  ;;  %v12574_v13 = vunpack.c.l.bf16 %v7447_v6  ;;  %v12575_v60 = vunpack.c.l.bf16 %v7575_v51  ;;  %v12577_v14 = vunpack.c.h.bf16 %v7575_v51 }
 0x102   : > { %12559 = vst [vmem:[#allocation20_spill] sm:$0xff] %v7858_v24  ;;  %v7882_v50 = vmax.f32 %v12570_v17, %v1122_v19  ;;  %v12579_v53 = vunpack.c.l.bf16 %v7454_v47  ;;  %v1600_v58 = vrot.slane %v7593_v8, 2  ;;  %v1603_v6 = vrot.slane %v7754_v63, 2 }
 0x103   : > { %12561 = vst [vmem:[#allocation12_spill] sm:$0xff] %v7862_v38  ;;  %v7886_v46 = vmax.f32 %v12572_v42, %v1121_v43  ;;  %v7890_v36 = vmax.f32 %v12574_v13, %v1125_v26  ;;  %v7894_v37 = vmax.f32 %v12575_v60, %v1127_v52  ;;  %v7898_v28 = vmax.f32 %v12577_v14, %v1129_v16  ;;  %v12580_v43 = vld [vmem:[#allocation42_spill] sm:$0xff]  ;;  %v12581_v26 = vld [vmem:[#allocation59_spill] sm:$0xff] }
 0x104   : > { %12563 = vst [vmem:[#allocation61_spill] sm:$0xff] %v7866_v4  ;;  %v7902_v19 = vmax.f32 %v12579_v53, %v1128_v29  ;;  %v1601_v59 = vrot.slane %v12580_v43, 2  ;;  %v12115_v12 = vrot.slane %v12581_v26, 2  ;;  %v1607_v25 = vrot.slane %v12582_v30, 2  ;;  %v12583_v52 = vld [vmem:[#allocation18_spill] sm:$0xff] }
 0x105   : > { %12565 = vst [vmem:[#allocation62_spill] sm:$0xff] %v7870_v18  ;;  %v1608_v33 = vrot.slane %v12583_v52, 2  ;;  %v1610_v51 = vrot.slane %v7777_v7, 2  ;;  %v12114_v16 = vrot.slane %v7782_v40, 2  ;;  %v1614_v47 = vrot.slane %v7787_v9, 2 }
 0x106   : > { %12567 = vst [vmem:[#allocation63_spill] sm:$0xff] %v7874_v21  ;;  %v1602_v29 = vsel %vm1599_vm7, %v1600_v58, %v1601_v59  ;;  %v1604_v15 = vsel %vm1599_vm7, %v1601_v59, %v1603_v6  ;;  %v1606_v41 = vsel %vm1599_vm7, %v1603_v6, %v12115_v12  ;;  %v1615_v2 = vrot.slane %v7792_v62, 2 }
 0x107   : > { %12569 = vst [vmem:[#allocation64_spill] sm:$0xff] %v7878_v1  ;;  %v1609_v44 = vsel %vm1599_vm7, %v1607_v25, %v1608_v33  ;;  %v1611_v54 = vsel %vm1599_vm7, %v1608_v33, %v1610_v51  ;;  %v1613_v31 = vsel %vm1599_vm7, %v1610_v51, %v12114_v16  ;;  %v1617_v27 = vrot.slane %v7797_v48, 2 }
 0x108   : > { %12571 = vst [vmem:[#allocation65_spill] sm:$0xff] %v7882_v50  ;;  %v1616_v55 = vsel %vm1599_vm7, %v1614_v47, %v1615_v2  ;;  %v1619_v49 = vrot.slane %v7802_v20, 2  ;;  %v1621_v61 = vrot.slane %v7807_v0, 2  ;;  %v1622_v10 = vrot.slane %v7812_v56, 2 }
 0x109   : > { %12573 = vst [vmem:[#allocation66_spill] sm:$0xff] %v7886_v46  ;;  %v1618_v3 = vsel %vm1599_vm7, %v1615_v2, %v1617_v27  ;;  %v1624_v17 = vrot.slane %v7816_v39, 2  ;;  %v1626_v42 = vrot.slane %v7821_v5, 2  ;;  %v1628_v13 = vrot.slane %v7825_v35, 2 }
 0x10a   : > { %12576 = vst [vmem:[#allocation67_spill] sm:$0xff] %v7894_v37  ;;  %v1620_v60 = vsel %vm1599_vm7, %v1617_v27, %v1619_v49  ;;  %v1623_v14 = vsel %vm1599_vm7, %v1621_v61, %v1622_v10  ;;  %v1629_v53 = vrot.slane %v7829_v23, 2  ;;  %v1631_v58 = vrot.slane %v7833_v34, 2 }
 0x10b   : > { %12578 = vst [vmem:[#allocation68_spill] sm:$0xff] %v7898_v28  ;;  %v1625_v59 = vsel %vm1599_vm7, %v1622_v10, %v1624_v17  ;;  %v1627_v6 = vsel %vm1599_vm7, %v1624_v17, %v1626_v42  ;;  %v1633_v25 = vrot.slane %v7838_v45, 2  ;;  %v1635_v33 = vrot.slane %v7842_v11, 2 }
 0x10c   : > { %v1630_v51 = vsel %vm1599_vm7, %v1628_v13, %v1629_v53  ;;  %v1632_v47 = vsel %vm1599_vm7, %v1629_v53, %v1631_v58  ;;  %v1636_v2 = vrot.slane %v7846_v32, 2  ;;  %v1638_v27 = vrot.slane %v7850_v57, 2 }
 0x10d   : > { %v1634_v61 = vsel %vm1599_vm7, %v1631_v58, %v1633_v25  ;;  %v1640_v16 = vrot.slane %v7854_v22, 2  ;;  %v1642_v10 = vrot.slane %v7858_v24, 2  ;;  %v1643_v17 = vrot.slane %v7862_v38, 2 }
 0x10e   : > { %v1637_v12 = vsel %vm1599_vm7, %v1635_v33, %v1636_v2  ;;  %v1639_v11 = vsel %vm1599_vm7, %v1636_v2, %v1638_v27  ;;  %v1645_v13 = vrot.slane %v7866_v4, 2  ;;  %v1647_v53 = vrot.slane %v7870_v18, 2 }
 0x10f   : > { %v1641_v32 = vsel %vm1599_vm7, %v1638_v27, %v1640_v16  ;;  %v1644_v57 = vsel %vm1599_vm7, %v1642_v10, %v1643_v17  ;;  %v1649_v58 = vrot.slane %v7874_v21, 2  ;;  %v1650_v22 = vrot.slane %v7878_v1, 2 }
 0x110   : > { %v1646_v24 = vsel %vm1599_vm7, %v1643_v17, %v1645_v13  ;;  %v1648_v38 = vsel %vm1599_vm7, %v1645_v13, %v1647_v53  ;;  %v1652_v33 = vrot.slane %v7882_v50, 2  ;;  %v1654_v2 = vrot.slane %v7886_v46, 2 }
 0x111   : > { %v1651_v4 = vsel %vm1599_vm7, %v1649_v58, %v1650_v22  ;;  %v1656_v18 = vrot.slane %v7890_v36, 2  ;;  %v1657_v27 = vrot.slane %v7894_v37, 2  ;;  %v1659_v10 = vrot.slane %v7898_v28, 2 }
 0x112   : > { %v1653_v21 = vsel %vm1599_vm7, %v1650_v22, %v1652_v33  ;;  %v1655_v1 = vsel %vm1599_vm7, %v1652_v33, %v1654_v2  ;;  %v1661_v17 = vrot.slane %v7902_v19, 2  ;;  %v7969_v13 = vmax.f32 %v7593_v8, %v1602_v29 }
 0x113   : > { %v1658_v50 = vsel %vm1599_vm7, %v1656_v18, %v1657_v27  ;;  %v1660_v46 = vsel %vm1599_vm7, %v1657_v27, %v1659_v10  ;;  %v7974_v58 = vmax.f32 %v12580_v43, %v1604_v15  ;;  %v7977_v37 = vmax.f32 %v7754_v63, %v1606_v41 }
 0x114   : > { %v1662_v28 = vsel %vm1599_vm7, %v1659_v10, %v1661_v17  ;;  %v12584_v22 = vrot.slane %v12581_v26, 2  ;;  %v7986_v8 = vmax.f32 %v12582_v30, %v1609_v44  ;;  %v7989_v18 = vmax.f32 %v12583_v52, %v1611_v54 }
 0x115   : > { %v7992_v29 = vmax.f32 %v7777_v7, %v1613_v31  ;;  %v12585_v43 = vrot.slane %v7782_v40, 2  ;;  %v8000_v15 = vmax.f32 %v7787_v9, %v1616_v55  ;;  %v8006_v30 = vmax.f32 %v7797_v48, %v1620_v60 }
 0x116   : > { %v7983_v33 = vmax.f32 %v12581_v26, %v12584_v22  ;;  %v8003_v26 = vmax.f32 %v7792_v62, %v1618_v3  ;;  %v8009_v52 = vmax.f32 %v7802_v20, %v1619_v49  ;;  %v8012_v7 = vmax.f32 %v7807_v0, %v1623_v14 }
 0x117   : > { %v7997_v63 = vmax.f32 %v7782_v40, %v12585_v43  ;;  %v8015_v41 = vmax.f32 %v7812_v56, %v1625_v59  ;;  %v8018_v40 = vmax.f32 %v7816_v39, %v1627_v6  ;;  %v8021_v9 = vmax.f32 %v7821_v5, %v1626_v42  ;;  %v12588_v56 = vld [vmem:[#allocation13_spill] sm:$0xff]  ;;  %v12590_v39 = vld [vmem:[#allocation27_spill] sm:$0xff] }
 0x118   : > { %v8024_v62 = vmax.f32 %v7825_v35, %v1630_v51  ;;  %v8027_v48 = vmax.f32 %v7829_v23, %v1632_v47  ;;  %v8030_v20 = vmax.f32 %v7833_v34, %v1634_v61  ;;  %v8033_v0 = vmax.f32 %v7838_v45, %v1633_v25  ;;  %v12592_v5 = vld [vmem:[#allocation19_spill] sm:$0xff]  ;;  %v12594_v35 = vld [vmem:[#allocation14_spill] sm:$0xff]  ;;  %v12596_v23 = vld [vmem:[#allocation20_spill] sm:$0xff] }
 0x119   : > { %v8036_v44 = vmax.f32 %v12588_v56, %v1637_v12  ;;  %v8039_v54 = vmax.f32 %v12590_v39, %v1639_v11  ;;  %v8042_v31 = vmax.f32 %v12592_v5, %v1641_v32  ;;  %v8045_v55 = vmax.f32 %v12594_v35, %v1640_v16  ;;  %v12598_v34 = vld [vmem:[#allocation12_spill] sm:$0xff]  ;;  %v12600_v45 = vld [vmem:[#allocation61_spill] sm:$0xff]  ;;  %v12602_v12 = vld [vmem:[#allocation62_spill] sm:$0xff] }
 0x11a   : > { %12586 = vst [vmem:[#allocation42_spill] sm:$0xff] %v8030_v20  ;;  %v8048_v49 = vmax.f32 %v12596_v23, %v1644_v57  ;;  %v8051_v3 = vmax.f32 %v12598_v34, %v1646_v24  ;;  %v8054_v42 = vmax.f32 %v12600_v45, %v1648_v38  ;;  %v8057_v60 = vmax.f32 %v12602_v12, %v1647_v53  ;;  %v12604_v11 = vld [vmem:[#allocation63_spill] sm:$0xff]  ;;  %v12606_v32 = vld [vmem:[#allocation64_spill] sm:$0xff]  ;;  %v12608_v16 = vld [vmem:[#allocation65_spill] sm:$0xff] }
 0x11b   : > { %12587 = vst [vmem:[#allocation59_spill] sm:$0xff] %v8033_v0  ;;  %v8060_v14 = vmax.f32 %v12604_v11, %v1651_v4  ;;  %v8063_v59 = vmax.f32 %v12606_v32, %v1653_v21  ;;  %v8066_v6 = vmax.f32 %v12608_v16, %v1655_v1  ;;  %v12610_v57 = vld [vmem:[#allocation66_spill] sm:$0xff]  ;;  %v8072_v24 = vmax.f32 %v7890_v36, %v1658_v50  ;;  %v12612_v38 = vld [vmem:[#allocation67_spill] sm:$0xff]  ;;  %v12614_v47 = vld [vmem:[#allocation68_spill] sm:$0xff] }
 0x11c   : > { %12589 = vst [vmem:[#allocation60_spill] sm:$0xff] %v8036_v44  ;;  %v8069_v25 = vmax.f32 %v12610_v57, %v1654_v2  ;;  %v8075_v51 = vmax.f32 %v12612_v38, %v1660_v46  ;;  %v8078_v61 = vmax.f32 %v12614_v47, %v1662_v28  ;;  %v8081_v4 = vmax.f32 %v7902_v19, %v1661_v17 }
 0x11d   : > { %12591 = vst [vmem:[#allocation18_spill] sm:$0xff] %v8039_v54  ;;  %v2132_v21 = vrot.slane %v7969_v13, 1  ;;  %v2133_v1 = vrot.slane %v7974_v58, 1  ;;  %v2135_v53 = vrot.slane %v7977_v37, 1  ;;  %v2137_v2 = vrot.slane %v7983_v33, 1 }
 0x11e   : > { %12593 = vst [vmem:[#allocation13_spill] sm:$0xff] %v8042_v31  ;;  %v2139_v50 = vrot.slane %v7986_v8, 1  ;;  %v2140_v36 = vrot.slane %v7989_v18, 1  ;;  %v2142_v28 = vrot.slane %v7992_v29, 1  ;;  %v2144_v19 = vrot.slane %v7997_v63, 1 }
 0x11f   : > { %12595 = vst [vmem:[#allocation27_spill] sm:$0xff] %v8045_v55  ;;  %v8090_v46 = vsel %vm1066_vm6, %v2132_v21, %v2133_v1  ;;  %v2146_v27 = vrot.slane %v8000_v15, 1  ;;  %v8096_v10 = vsel %vm1066_vm6, %v2133_v1, %v2135_v53  ;;  %v8099_v17 = vsel %vm1066_vm6, %v2135_v53, %v2137_v2 }
 0x120   : > { %12597 = vst [vmem:[#allocation19_spill] sm:$0xff] %v8048_v49  ;;  %v2141_v22 = vsel %vm1066_vm6, %v2139_v50, %v2140_v36  ;;  %v2147_v43 = vrot.slane %v8003_v26, 1  ;;  %v2143_v56 = vsel %vm1066_vm6, %v2140_v36, %v2142_v28  ;;  %v2145_v39 = vsel %vm1066_vm6, %v2142_v28, %v2144_v19 }
 0x121   : > { %12599 = vst [vmem:[#allocation14_spill] sm:$0xff] %v8051_v3  ;;  %v2149_v5 = vrot.slane %v8006_v30, 1  ;;  %v2151_v35 = vrot.slane %v8009_v52, 1  ;;  %v2153_v34 = vrot.slane %v8012_v7, 1  ;;  %v2154_v45 = vrot.slane %v8015_v41, 1 }
 0x122   : > { %12601 = vst [vmem:[#allocation20_spill] sm:$0xff] %v8054_v42  ;;  %v2148_v23 = vsel %vm1066_vm6, %v2146_v27, %v2147_v43  ;;  %v2156_v12 = vrot.slane %v8018_v40, 1  ;;  %v2158_v16 = vrot.slane %v8021_v9, 1  ;;  %v2160_v57 = vrot.slane %v8024_v62, 1 }
 0x123   : > { %12603 = vst [vmem:[#allocation12_spill] sm:$0xff] %v8057_v60  ;;  %v2150_v11 = vsel %vm1066_vm6, %v2147_v43, %v2149_v5  ;;  %v2152_v32 = vsel %vm1066_vm6, %v2149_v5, %v2151_v35  ;;  %v2155_v38 = vsel %vm1066_vm6, %v2153_v34, %v2154_v45  ;;  %v2161_v21 = vrot.slane %v8027_v48, 1 }
 0x124   : > { %12605 = vst [vmem:[#allocation61_spill] sm:$0xff] %v8060_v14  ;;  %v2157_v47 = vsel %vm1066_vm6, %v2154_v45, %v2156_v12  ;;  %v2163_v1 = vrot.slane %v8030_v20, 1  ;;  %v2159_v53 = vsel %vm1066_vm6, %v2156_v12, %v2158_v16  ;;  %v2165_v50 = vrot.slane %v8033_v0, 1 }
 0x125   : > { %12607 = vst [vmem:[#allocation62_spill] sm:$0xff] %v8063_v59  ;;  %v2167_v36 = vrot.slane %v8036_v44, 1  ;;  %v2168_v28 = vrot.slane %v8039_v54, 1  ;;  %v2162_v27 = vsel %vm1066_vm6, %v2160_v57, %v2161_v21  ;;  %v2170_v5 = vrot.slane %v8042_v31, 1 }
 0x126   : > { %12609 = vst [vmem:[#allocation63_spill] sm:$0xff] %v8066_v6  ;;  %v2164_v43 = vsel %vm1066_vm6, %v2161_v21, %v2163_v1  ;;  %v2172_v34 = vrot.slane %v8045_v55, 1  ;;  %v2166_v45 = vsel %vm1066_vm6, %v2163_v1, %v2165_v50  ;;  %v2174_v12 = vrot.slane %v8048_v49, 1 }
 0x127   : > { %12611 = vst [vmem:[#allocation64_spill] sm:$0xff] %v8072_v24  ;;  %v2169_v20 = vsel %vm1066_vm6, %v2167_v36, %v2168_v28  ;;  %v2175_v0 = vrot.slane %v8051_v3, 1  ;;  %v2171_v44 = vsel %vm1066_vm6, %v2168_v28, %v2170_v5  ;;  %v2177_v57 = vrot.slane %v8054_v42, 1 }
 0x128   : > { %12613 = vst [vmem:[#allocation65_spill] sm:$0xff] %v8075_v51  ;;  %v2173_v54 = vsel %vm1066_vm6, %v2170_v5, %v2172_v34  ;;  %v2179_v21 = vrot.slane %v8057_v60, 1  ;;  %v2181_v55 = vrot.slane %v8060_v14, 1  ;;  %v2182_v1 = vrot.slane %v8063_v59, 1 }
 0x129   : > { %12615 = vst [vmem:[#allocation66_spill] sm:$0xff] %v8081_v4  ;;  %v2176_v31 = vsel %vm1066_vm6, %v2174_v12, %v2175_v0  ;;  %v2184_v36 = vrot.slane %v8066_v6, 1  ;;  %v2178_v49 = vsel %vm1066_vm6, %v2175_v0, %v2177_v57  ;;  %v2186_v28 = vrot.slane %v8069_v25, 1 }
 0x12a   : > { %v2180_v3 = vsel %vm1066_vm6, %v2177_v57, %v2179_v21  ;;  %v2188_v5 = vrot.slane %v8072_v24, 1  ;;  %v2183_v42 = vsel %vm1066_vm6, %v2181_v55, %v2182_v1  ;;  %v2189_v12 = vrot.slane %v8075_v51, 1 }
 0x12b   : > { %v2185_v60 = vsel %vm1066_vm6, %v2182_v1, %v2184_v36  ;;  %v2191_v14 = vrot.slane %v8078_v61, 1  ;;  %v2187_v59 = vsel %vm1066_vm6, %v2184_v36, %v2186_v28  ;;  %v2193_v6 = vrot.slane %v8081_v4, 1 }
 0x12c   : > { %v2440_v0 = vmax.f32 %v7969_v13, %v8090_v46  ;;  %v2441_v57 = vmax.f32 %v7974_v58, %v8096_v10  ;;  %v2190_v24 = vsel %vm1066_vm6, %v2188_v5, %v2189_v12  ;;  %v2442_v1 = vmax.f32 %v7977_v37, %v8099_v17  ;;  %v12617_v17 = vld [vmem:[#allocation59_spill] sm:$0xff] }
 0x12d   : > { %v2192_v55 = vsel %vm1066_vm6, %v2189_v12, %v2191_v14  ;;  %v8158_v51 = vmax.f32 %v7983_v33, %v2137_v2  ;;  %v2194_v36 = vsel %vm1066_vm6, %v2191_v14, %v2193_v6  ;;  %v8162_v4 = vmax.f32 %v7986_v8, %v2141_v22  ;;  %v12618_v22 = vld [vmem:[#allocation60_spill] sm:$0xff] }
 0x12e   : > { %v8165_v13 = vmax.f32 %v7989_v18, %v2143_v56  ;;  %v8168_v58 = vmax.f32 %v7992_v29, %v2145_v39  ;;  %v8171_v46 = vmax.f32 %v7997_v63, %v2144_v19  ;;  %v8174_v10 = vmax.f32 %v8000_v15, %v2148_v23  ;;  %v12621_v23 = vld [vmem:[#allocation27_spill] sm:$0xff] }
 0x12f   : > { %v8177_v37 = vmax.f32 %v8003_v26, %v2150_v11  ;;  %v8180_v33 = vmax.f32 %v8006_v30, %v2152_v32  ;;  %v8183_v8 = vmax.f32 %v8009_v52, %v2151_v35  ;;  %v2452_v18 = vmax.f32 %v8012_v7, %v2155_v38  ;;  %v12616_v26 = vld [vmem:[#allocation42_spill] sm:$0xff]  ;;  %v12620_v35 = vld [vmem:[#allocation13_spill] sm:$0xff]  ;;  %v12622_v11 = vld [vmem:[#allocation19_spill] sm:$0xff] }
 0x130   : > { %v2453_v29 = vmax.f32 %v8015_v41, %v2157_v47  ;;  %v2454_v14 = vmax.f32 %v8018_v40, %v2159_v53  ;;  %v2455_v63 = vmax.f32 %v8021_v9, %v2158_v16  ;;  %v2456_v15 = vmax.f32 %v8024_v62, %v2162_v27  ;;  %v12619_v52 = vld [vmem:[#allocation18_spill] sm:$0xff]  ;;  %v12624_v16 = vld [vmem:[#allocation20_spill] sm:$0xff]  ;;  %v12626_v47 = vld [vmem:[#allocation61_spill] sm:$0xff] }
 0x131   : > { %v2457_v2 = vmax.f32 %v8027_v48, %v2164_v43  ;;  %v2458_v19 = vmax.f32 %v12616_v26, %v2166_v45  ;;  %v2459_v30 = vmax.f32 %v12617_v17, %v2165_v50  ;;  %v2460_v56 = vmax.f32 %v12618_v22, %v2169_v20  ;;  %v12623_v32 = vld [vmem:[#allocation14_spill] sm:$0xff]  ;;  %v12625_v38 = vld [vmem:[#allocation12_spill] sm:$0xff]  ;;  %v12628_v43 = vld [vmem:[#allocation63_spill] sm:$0xff] }
 0x132   : > { %v2461_v39 = vmax.f32 %v12619_v52, %v2171_v44  ;;  %v2462_v7 = vmax.f32 %v12620_v35, %v2173_v54  ;;  %v2463_v41 = vmax.f32 %v12621_v23, %v2172_v34  ;;  %v2464_v40 = vmax.f32 %v12622_v11, %v2176_v31  ;;  %v12627_v27 = vld [vmem:[#allocation62_spill] sm:$0xff]  ;;  %v12629_v45 = vld [vmem:[#allocation64_spill] sm:$0xff]  ;;  %v12630_v34 = vld [vmem:[#allocation65_spill] sm:$0xff] }
 0x133   : > { %v2465_v9 = vmax.f32 %v12623_v32, %v2178_v49  ;;  %v2466_v62 = vmax.f32 %v12624_v16, %v2180_v3  ;;  %v2467_v48 = vmax.f32 %v12625_v38, %v2179_v21  ;;  %v2468_v53 = vmax.f32 %v12626_v47, %v2183_v42  ;;  %v12631_v49 = vld [vmem:[#allocation66_spill] sm:$0xff] }
 0x134   : > { %v2469_v50 = vmax.f32 %v12627_v27, %v2185_v60  ;;  %v2470_v20 = vmax.f32 %v12628_v43, %v2187_v59  ;;  %v2471_v44 = vmax.f32 %v8069_v25, %v2186_v28  ;;  %v8206_v54 = vmax.f32 %v12629_v45, %v2190_v24 }
 0x135   : > { %v8209_v5 = vmax.f32 %v12630_v34, %v2192_v55  ;;  %v8212_v31 = vmax.f32 %v8078_v61, %v2194_v36  ;;  %v8215_v3 = vmax.f32 %v12631_v49, %v2193_v6  ;;  %v2552_v42 = vmax.f32 %v2440_v0, %v8162_v4 }
 0x136   : > { %v2553_v60 = vmax.f32 %v2441_v57, %v8165_v13  ;;  %v2554_v59 = vmax.f32 %v2442_v1, %v8168_v58  ;;  %v2555_v25 = vmax.f32 %v8158_v51, %v8171_v46  ;;  %v2556_v24 = vmax.f32 %v8162_v4, %v8174_v10 }
 0x137   : > { %v2557_v21 = vmax.f32 %v8165_v13, %v8177_v37  ;;  %v2558_v61 = vmax.f32 %v8168_v58, %v8180_v33  ;;  %v2559_v6 = vmax.f32 %v8171_v46, %v8183_v8  ;;  %v2560_v28 = vmax.f32 %v8174_v10, %v2452_v18 }
 0x138   : > { %v2561_v12 = vmax.f32 %v8177_v37, %v2453_v29  ;;  %v2562_v0 = vmax.f32 %v8180_v33, %v2454_v14  ;;  %v2563_v51 = vmax.f32 %v8183_v8, %v2455_v63  ;;  %v2564_v57 = vmax.f32 %v2452_v18, %v2456_v15 }
 0x139   : > { %v2565_v55 = vmax.f32 %v2453_v29, %v2457_v2  ;;  %v2566_v4 = vmax.f32 %v2454_v14, %v2458_v19  ;;  %v2567_v1 = vmax.f32 %v2455_v63, %v2459_v30  ;;  %v2568_v36 = vmax.f32 %v2456_v15, %v2460_v56 }
 0x13a   : > { %v2569_v13 = vmax.f32 %v2457_v2, %v2461_v39  ;;  %v2570_v26 = vmax.f32 %v2458_v19, %v2462_v7  ;;  %v2571_v17 = vmax.f32 %v2459_v30, %v2463_v41  ;;  %v2572_v58 = vmax.f32 %v2460_v56, %v2464_v40 }
 0x13b   : > { %v2573_v22 = vmax.f32 %v2461_v39, %v2465_v9  ;;  %v2574_v52 = vmax.f32 %v2462_v7, %v2466_v62  ;;  %v2575_v46 = vmax.f32 %v2463_v41, %v2467_v48  ;;  %v8234_v35 = vmax.f32 %v2464_v40, %v2468_v53 }
 0x13c   : > { %v8236_v10 = vmax.f32 %v2465_v9, %v2469_v50  ;;  %v8238_v37 = vmax.f32 %v2466_v62, %v2470_v20  ;;  %v8240_v33 = vmax.f32 %v2467_v48, %v2471_v44  ;;  %v8243_v8 = vmax.f32 %v2468_v53, %v8206_v54 }
 0x13d   : > { %v8246_v18 = vmax.f32 %v2469_v50, %v8209_v5  ;;  %v8249_v29 = vmax.f32 %v2470_v20, %v8212_v31  ;;  %v8252_v14 = vmax.f32 %v2471_v44, %v8215_v3  ;;  %v2660_v63 = vmax.f32 %v2552_v42, %v2560_v28 }
 0x13e   : > { %v2661_v15 = vmax.f32 %v2553_v60, %v2561_v12  ;;  %v2662_v2 = vmax.f32 %v2554_v59, %v2562_v0  ;;  %v2663_v19 = vmax.f32 %v2555_v25, %v2563_v51  ;;  %v2664_v30 = vmax.f32 %v2556_v24, %v2564_v57 }
 0x13f   : > { %v2665_v56 = vmax.f32 %v2557_v21, %v2565_v55  ;;  %v2666_v39 = vmax.f32 %v2558_v61, %v2566_v4  ;;  %v2667_v7 = vmax.f32 %v2559_v6, %v2567_v1  ;;  %v2668_v23 = vmax.f32 %v2560_v28, %v2568_v36 }
 0x140   : > { %v2669_v41 = vmax.f32 %v2561_v12, %v2569_v13  ;;  %v2670_v11 = vmax.f32 %v2562_v0, %v2570_v26  ;;  %v8254_v40 = vmax.f32 %v2563_v51, %v2571_v17  ;;  %v2672_v32 = vmax.f32 %v2564_v57, %v2572_v58 }
 0x141   : > { %v2673_v9 = vmax.f32 %v2565_v55, %v2573_v22  ;;  %v2674_v16 = vmax.f32 %v2566_v4, %v2574_v52  ;;  %v8256_v62 = vmax.f32 %v2567_v1, %v2575_v46  ;;  %v2676_v38 = vmax.f32 %v2568_v36, %v8234_v35 }
 0x142   : > { %v2677_v48 = vmax.f32 %v2569_v13, %v8236_v10  ;;  %v2678_v47 = vmax.f32 %v2570_v26, %v8238_v37  ;;  %v2679_v53 = vmax.f32 %v2571_v17, %v8240_v33  ;;  %v8263_v27 = vmax.f32 %v2572_v58, %v8243_v8 }
 0x143   : > { %v8266_v50 = vmax.f32 %v2573_v22, %v8246_v18  ;;  %v8269_v43 = vmax.f32 %v2574_v52, %v8249_v29  ;;  %v8272_v20 = vmax.f32 %v2575_v46, %v8252_v14  ;;  %v8274_v44 = vmax.f32 %v2660_v63, %v2664_v30 }
 0x144   : > { %v8276_v45 = vmax.f32 %v2661_v15, %v2665_v56  ;;  %v8278_v34 = vmax.f32 %v2662_v2, %v2666_v39  ;;  %v8280_v49 = vmax.f32 %v2663_v19, %v2667_v7  ;;  %v2764_v42 = vmax.f32 %v2664_v30, %v2668_v23 }
 0x145   : > { %v2765_v60 = vmax.f32 %v2665_v56, %v2669_v41  ;;  %v2766_v59 = vmax.f32 %v2666_v39, %v2670_v11  ;;  %v2767_v25 = vmax.f32 %v2667_v7, %v8254_v40  ;;  %v8283_v24 = vmax.f32 %v2668_v23, %v2672_v32 }
 0x146   : > { %v8285_v21 = vmax.f32 %v2669_v41, %v2673_v9  ;;  %v8287_v61 = vmax.f32 %v2670_v11, %v2674_v16  ;;  %v2772_v6 = vmax.f32 %v2672_v32, %v2676_v38  ;;  %v2773_v28 = vmax.f32 %v2673_v9, %v2677_v48 }
 0x147   : > { %v2774_v12 = vmax.f32 %v2674_v16, %v2678_v47  ;;  %v2775_v0 = vmax.f32 %v8256_v62, %v2679_v53  ;;  %v2776_v51 = vmax.f32 %v2676_v38, %v8263_v27  ;;  %v2777_v57 = vmax.f32 %v2677_v48, %v8266_v50 }
 0x148   : > { %v2778_v55 = vmax.f32 %v2678_v47, %v8269_v43  ;;  %v2779_v4 = vmax.f32 %v2679_v53, %v8272_v20  ;;  %v3454_v26 = vrot.slane %v2764_v42, 1  ;;  %v3455_v52 = vrot.slane %v2765_v60, 1 }
 0x149   : > { %v2904_v17 = vrot.slane %v2776_v51, 6  ;;  %v2905_v58 = vrot.slane %v2777_v57, 6  ;;  %v3457_v46 = vrot.slane %v2766_v59, 1  ;;  %v3459_v63 = vrot.slane %v2767_v25, 1 }
 0x14a   : > { %v2907_v22 = vrot.slane %v2778_v55, 6  ;;  %v3456_v56 = vsel %vm1066_vm6, %v3454_v26, %v3455_v52  ;;  %v3468_v11 = vrot.slane %v2772_v6, 1  ;;  %v3469_v32 = vrot.slane %v2773_v28, 1 }
 0x14b   : > { %v2906_v19 = vsel %vm392_vm0, %v2904_v17, %v2905_v58  ;;  %v3458_v23 = vsel %vm1066_vm6, %v3455_v52, %v3457_v46  ;;  %v3460_v41 = vsel %vm1066_vm6, %v3457_v46, %v3459_v63  ;;  %v3471_v9 = vrot.slane %v2774_v12, 1 }
 0x14c   : > { %v2908_v30 = vsel %vm392_vm0, %v2905_v58, %v2907_v22  ;;  %v3473_v16 = vrot.slane %v2775_v0, 1  ;;  %v3475_v38 = vrot.slane %v2776_v51, 1  ;;  %v3476_v48 = vrot.slane %v2777_v57, 1 }
 0x14d   : > { %v3016_v7 = vpack.c.bf16 %v2908_v30, %v2906_v19  ;;  %v3478_v47 = vrot.slane %v2778_v55, 1  ;;  %v3480_v53 = vrot.slane %v2779_v4, 1  ;;  %v8306_v17 = vmax.f32 %v2764_v42, %v3456_v56 }
 0x14e   : > { %v3470_v26 = vsel %vm1066_vm6, %v3468_v11, %v3469_v32  ;;  %v3472_v58 = vsel %vm1066_vm6, %v3469_v32, %v3471_v9  ;;  %v3474_v22 = vsel %vm1066_vm6, %v3471_v9, %v3473_v16  ;;  %v8311_v52 = vmax.f32 %v2765_v60, %v3458_v23 }
 0x14f   : > { %6643 = vmatmul.msk.bf16.vlgmr.msrb.gmra.mxu1 %vm3037_vm5, %v3016_v7  ;;  %v3477_v46 = vsel %vm1066_vm6, %v3475_v38, %v3476_v48  ;;  %v3479_v19 = vsel %vm1066_vm6, %v3476_v48, %v3478_v47  ;;  %v3481_v30 = vsel %vm1066_vm6, %v3478_v47, %v3480_v53  ;;  %v8316_v7 = vmax.f32 %v2766_v59, %v3460_v41  ;;  %v768_v38 = vld [vmem:[#allocation2 + $0xc0] sm:$0xf]  ;;  %v12637_v47 = vld [vmem:[#allocation4_spill] sm:$0xff] }
 0x150   : > { %v8318_v39 = vmax.f32 %v2767_v25, %v3459_v63  ;;  %v8320_v42 = vmax.f32 %v2772_v6, %v3470_v26  ;;  %v8322_v56 = vmax.f32 %v2773_v28, %v3472_v58  ;;  %v8324_v11 = vmax.f32 %v2774_v12, %v3474_v22  ;;  %v6848_v63 = vld [vmem:[#allocation2 + $0xb8] sm:$0xff]   ;;  %v769_v6 = vld [vmem:[#allocation2 + $0xc4] sm:$0x7]  ;;  %v12639_v25 = vld [vmem:[#allocation15_spill] sm:$0xff] }
 0x151   : > { %v8326_v32 = vmax.f32 %v2775_v0, %v3473_v16  ;;  %v3727_v60 = vmax.f32 %v2776_v51, %v3477_v46  ;;  %v3728_v23 = vmax.f32 %v2777_v57, %v3479_v19  ;;  %v3729_v9 = vmax.f32 %v2778_v55, %v3481_v30  ;;  %v12635_v16 = vld [vmem:[#allocation3_spill] sm:$0xff]  ;;  %v12641_v48 = vld [vmem:[#allocation16_spill] sm:$0xff] }
 0x152   : > { %12632 = vst [vmem:[#allocation67_spill] sm:$0xff] %v8320_v42  ;;  %v3730_v15 = vmax.f32 %v2779_v4, %v3480_v53  ;;  %v12636_v4 = vunpack.c.l.b16 %v12635_v16  ;;  %v12638_v53 = vunpack.c.l.b16 %v12637_v47  ;;  %v6765_v58 = vunpack.c.l.bf16 %v6848_v63  ;;  %v6849_v30 = vld [vmem:[#allocation2 + $0xd0] sm:$0xff]  }
 0x153   : > { %12633 = vst [vmem:[#allocation68_spill] sm:$0xff] %v8324_v11  ;;  %v3931_v41 = vrot.slane %v3727_v60, 2  ;;  %v3932_v51 = vrot.slane %v3728_v23, 2  ;;  %v3934_v57 = vrot.slane %v3729_v9, 2  ;;  %v6766_v22 = vunpack.c.h.bf16 %v6848_v63 }
 0x154   : > { %12634 = vst [vmem:[#allocation42_spill] sm:$0xff] %v8326_v32  ;;  %v3936_v55 = vrot.slane %v3730_v15, 2  ;;  %v3247_v26 = vpack.c.b16 %v12638_v53, %v12636_v4  ;;  %v880_v46 = vunpack.c.l.bf16 %v768_v38  ;;  %v881_v19 = vunpack.c.l.bf16 %v769_v6  ;;  %v770_v4 = vld [vmem:[#allocation2 + $0xcc] sm:$0xf] }
 0x155   : > { %v3933_v28 = vsel %vm1599_vm7, %v3931_v41, %v3932_v51  ;;  %v3935_v12 = vsel %vm1599_vm7, %v3932_v51, %v3934_v57  ;;  %v12640_v15 = vunpack.c.l.b16 %v12639_v25  ;;  %v12642_v16 = vunpack.c.l.b16 %v12641_v48 }
 0x156   : > { %v3937_v0 = vsel %vm1599_vm7, %v3934_v57, %v3936_v55  ;;  %6663 = vmatmul.msk.bf16.gmra.mxu2 %vm3037_vm5, %v3247_v26  ;;  %v8348_v47 = vmax.f32 %v3727_v60, %v3933_v28  ;;  %v8350_v38 = vmax.f32 %v3728_v23, %v3935_v12  ;;  %v1130_v6 = vrot.slane %v6765_v58, 1  ;;  %v773_v55 = vld [vmem:[#allocation2 + $0xd8] sm:$0x7] }
 0x157   : > { %v8346_v59 = vpack.c.b16 %v12642_v16, %v12640_v15  ;;  %v8352_v63 = vmax.f32 %v3729_v9, %v3937_v0  ;;  %v1131_v41 = vrot.slane %v6766_v22, 1  ;;  %v1133_v51 = vrot.slane %v880_v46, 1 }
 0x158   : > { %12643 = vst [vmem:[#allocation59_spill] sm:$0xff] %v8348_v47  ;;  %v1135_v53 = vrot.slane %v881_v19, 1  ;;  %v6769_v57 = vunpack.c.l.bf16 %v6849_v30  ;;  %v6770_v48 = vunpack.c.h.bf16 %v6849_v30  ;;  %v882_v15 = vunpack.c.l.bf16 %v770_v4 }
 0x159   : > { %12644 = vst [vmem:[#allocation60_spill] sm:$0xff] %v8350_v38  ;;  %v1132_v16 = vsel %vm1066_vm6, %v1130_v6, %v1131_v41  ;;  %v1134_v60 = vsel %vm1066_vm6, %v1131_v41, %v1133_v51  ;;  %v885_v2 = vunpack.c.l.bf16 %v773_v55 }
 0x15a   : > { %12645 = vst [vmem:[#allocation18_spill] sm:$0xff] %v8352_v63  ;;  %v1136_v23 = vsel %vm1066_vm6, %v1133_v51, %v1135_v53  ;;  %v1414_v9 = vmax.f32 %v881_v19, %v1135_v53  ;;  %v1411_v28 = vmax.f32 %v6765_v58, %v1132_v16  ;;  %v1412_v12 = vmax.f32 %v6766_v22, %v1134_v60 }
 0x15b   : > { %v1413_v0 = vmax.f32 %v880_v46, %v1136_v23  ;;  %v1137_v1 = vrot.slane %v882_v15, 1  ;;  %v1138_v36 = vrot.slane %v6769_v57, 1  ;;  %v1140_v63 = vrot.slane %v6770_v48, 1 }
 0x15c   : > { %v1668_v13 = vrot.slane %v1414_v9, 2  ;;  %v1663_v26 = vrot.slane %v1411_v28, 2  ;;  %v1664_v47 = vrot.slane %v1412_v12, 2  ;;  %v1142_v30 = vrot.slane %v885_v2, 1 }
 0x15d   : > { %v1666_v25 = vrot.slane %v1413_v0, 2  ;;  %v1139_v6 = vsel %vm1066_vm6, %v1137_v1, %v1138_v36  ;;  %v1141_v41 = vsel %vm1066_vm6, %v1138_v36, %v1140_v63  ;;  %v8363_v19 = vmax.f32 %v8254_v40, %v8256_v62 }
 0x15e   : > { %v1947_v4 = vmax.f32 %v1414_v9, %v1668_v13  ;;  %v1665_v58 = vsel %vm1599_vm7, %v1663_v26, %v1664_v47  ;;  %v1143_v51 = vsel %vm1066_vm6, %v1140_v63, %v1142_v30  ;;  %v1415_v23 = vmax.f32 %v882_v15, %v1139_v6 }
 0x15f   : > { %v1667_v22 = vsel %vm1599_vm7, %v1664_v47, %v1666_v25  ;;  %v1669_v46 = vsel %vm1599_vm7, %v1666_v25, %v1668_v13  ;;  %v1944_v53 = vmax.f32 %v1411_v28, %v1665_v58  ;;  %v1416_v1 = vmax.f32 %v6769_v57, %v1141_v41 }
 0x160   : > { %v1945_v55 = vmax.f32 %v1412_v12, %v1667_v22  ;;  %v1946_v16 = vmax.f32 %v1413_v0, %v1669_v46  ;;  %v2200_v60 = vrot.slane %v1947_v4, 1  ;;  %v1417_v9 = vmax.f32 %v6770_v48, %v1143_v51 }
 0x161   : > { %v1418_v36 = vmax.f32 %v885_v2, %v1142_v30  ;;  %v2195_v38 = vrot.slane %v1944_v53, 1  ;;  %v1670_v26 = vrot.slane %v1415_v23, 2  ;;  %v1671_v11 = vrot.slane %v1416_v1, 2 }
 0x162   : > { %v2196_v32 = vrot.slane %v1945_v55, 1  ;;  %v2198_v40 = vrot.slane %v1946_v16, 1  ;;  %v8369_v62 = vmax.f32 %v1947_v4, %v2200_v60  ;;  %v1673_v47 = vrot.slane %v1417_v9, 2 }
 0x163   : > { %v1675_v42 = vrot.slane %v1418_v36, 2  ;;  %v1672_v28 = vsel %vm1599_vm7, %v1670_v26, %v1671_v11 }
 0x164   : > { %v2197_v13 = vsel %vm1066_vm6, %v2195_v38, %v2196_v32  ;;  %v2199_v63 = vsel %vm1066_vm6, %v2196_v32, %v2198_v40  ;;  %v2201_v25 = vsel %vm1066_vm6, %v2198_v40, %v2200_v60  ;;  %v8376_v57 = vmax.f32 %v8215_v3, %v8369_v62 }
 0x165   : > { %v2476_v2 = vmax.f32 %v1944_v53, %v2197_v13  ;;  %v2477_v48 = vmax.f32 %v1945_v55, %v2199_v63  ;;  %v2478_v15 = vmax.f32 %v1946_v16, %v2201_v25  ;;  %v1674_v32 = vsel %vm1599_vm7, %v1671_v11, %v1673_v47  ;;  %v12650_v53 = vld [vmem:[#allocation25_spill] sm:$0xff]  ;;  %v12652_v16 = vld [vmem:[#allocation26_spill] sm:$0xff] }
 0x166   : > { %12646 = vst [vmem:[#allocation13_spill] sm:$0xff] %v8376_v57  ;;  %v8381_v12 = vmax.f32 %v8240_v33, %v8376_v57  ;;  %6664 = vmatmul.msk.bf16.gmra.mxu2 %vm3037_vm5, %v8346_v59  ;;  %v1676_v38 = vsel %vm1599_vm7, %v1673_v47, %v1675_v42  ;;  %v1948_v0 = vmax.f32 %v1415_v23, %v1672_v28  ;;  %v12651_v55 = vunpack.c.l.b16 %v12650_v53 }
 0x167   : > { %v8388_v3 = vmax.f32 %v8206_v54, %v2476_v2  ;;  %v8391_v30 = vmax.f32 %v8209_v5, %v2477_v48  ;;  %v8394_v4 = vmax.f32 %v8212_v31, %v2478_v15  ;;  %v1949_v6 = vmax.f32 %v1416_v1, %v1674_v32 }
 0x168   : > { %v2783_v33 = vmax.f32 %v8272_v20, %v8381_v12  ;;  %v1950_v41 = vmax.f32 %v1417_v9, %v1676_v38  ;;  %v1951_v59 = vmax.f32 %v1418_v36, %v1675_v42  ;;  %v2202_v58 = vrot.slane %v1948_v0, 1 }
 0x169   : > { %12647 = vst [vmem:[#allocation27_spill] sm:$0xff] %v8388_v3  ;;  %v2684_v11 = vmax.f32 %v8234_v35, %v8388_v3  ;;  %v2685_v54 = vmax.f32 %v8236_v10, %v8391_v30  ;;  %v2686_v5 = vmax.f32 %v8238_v37, %v8394_v4  ;;  %v2203_v22 = vrot.slane %v1949_v6, 1 }
 0x16a   : > { %12648 = vst [vmem:[#allocation19_spill] sm:$0xff] %v8391_v30  ;;  %v3487_v46 = vrot.slane %v2783_v33, 1  ;;  %v2205_v31 = vrot.slane %v1950_v41, 1  ;;  %v2207_v51 = vrot.slane %v1951_v59, 1  ;;  %v12653_v20 = vunpack.c.l.b16 %v12652_v16 }
 0x16b   : > { %12649 = vst [vmem:[#allocation14_spill] sm:$0xff] %v8394_v4  ;;  %v2780_v42 = vmax.f32 %v8263_v27, %v2684_v11  ;;  %v2781_v23 = vmax.f32 %v8266_v50, %v2685_v54  ;;  %v2782_v35 = vmax.f32 %v8269_v43, %v2686_v5  ;;  %v2204_v10 = vsel %vm1066_vm6, %v2202_v58, %v2203_v22 }
 0x16c   : > { %v3249_v60 = vpack.c.b16 %v12653_v20, %v12651_v55  ;;  %v3734_v1 = vmax.f32 %v2783_v33, %v3487_v46  ;;  %v2206_v37 = vsel %vm1066_vm6, %v2203_v22, %v2205_v31  ;;  %v2208_v9 = vsel %vm1066_vm6, %v2205_v31, %v2207_v51 }
 0x16d   : > { %v8414_v36 = vmax.f32 %v1948_v0, %v2204_v10  ;;  %v2909_v40 = vrot.slane %v2780_v42, 6  ;;  %v2910_v26 = vrot.slane %v2781_v23, 6  ;;  %v2912_v47 = vrot.slane %v2782_v35, 6 }
 0x16e   : > { %v3482_v13 = vrot.slane %v2780_v42, 1  ;;  %v3483_v63 = vrot.slane %v2781_v23, 1  ;;  %v3485_v25 = vrot.slane %v2782_v35, 1  ;;  %v3943_v27 = vrot.slane %v3734_v1, 2 }
 0x16f   : > { %12654 = vst [vmem:[#allocation20_spill] sm:$0xff] %v8414_v36  ;;  %v8416_v28 = vmax.f32 %v1949_v6, %v2206_v37  ;;  %v2911_v50 = vsel %vm392_vm0, %v2909_v40, %v2910_v26  ;;  %v2913_v43 = vsel %vm392_vm0, %v2910_v26, %v2912_v47  ;;  %v8420_v32 = vmax.f32 %v1950_v41, %v2208_v9 }
 0x170   : > { %v8422_v38 = vmax.f32 %v1951_v59, %v2207_v51  ;;  %v3017_v33 = vpack.c.bf16 %v2913_v43, %v2911_v50  ;;  %v3484_v0 = vsel %vm1066_vm6, %v3482_v13, %v3483_v63  ;;  %v3486_v58 = vsel %vm1066_vm6, %v3483_v63, %v3485_v25 }
 0x171   : > { %12655 = vst [vmem:[#allocation12_spill] sm:$0xff] %v8416_v28  ;;  %v3488_v22 = vsel %vm1066_vm6, %v3485_v25, %v3487_v46  ;;  %v3731_v31 = vmax.f32 %v2780_v42, %v3484_v0  ;;  %v3732_v53 = vmax.f32 %v2781_v23, %v3486_v58  ;;  %v8428_v6 = vmax.f32 %v2476_v2, %v8414_v36 }
 0x172   : > { %12656 = vst [vmem:[#allocation61_spill] sm:$0xff] %v8420_v32  ;;  %v3733_v55 = vmax.f32 %v2782_v35, %v3488_v22  ;;  %6644 = vmatmul.msk.bf16.gmra.mxu1 %vm3037_vm5, %v3017_v33  ;;  %v8432_v41 = vmax.f32 %v2477_v48, %v8416_v28  ;;  %v8435_v59 = vmax.f32 %v2478_v15, %v8420_v32  ;;  %v12662_v46 = vrot.slane %v8276_v45, 1 }
 0x173   : > { %12657 = vst [vmem:[#allocation62_spill] sm:$0xff] %v8422_v38  ;;  %v8439_v51 = vmax.f32 %v8369_v62, %v8422_v38  ;;  %v12663_v16 = vrot.slane %v8274_v44, 1  ;;  %v3938_v2 = vrot.slane %v3731_v31, 2  ;;  %v3939_v42 = vrot.slane %v3732_v53, 2 }
 0x174   : > { %12658 = vst [vmem:[#allocation63_spill] sm:$0xff] %v8428_v6  ;;  %v3941_v23 = vrot.slane %v3733_v55, 2  ;;  %v8448_v48 = vmax.f32 %v8243_v8, %v8428_v6  ;;  %v8452_v15 = vmax.f32 %v8246_v18, %v8432_v41  ;;  %v8456_v62 = vmax.f32 %v8249_v29, %v8435_v59 }
 0x175   : > { %12659 = vst [vmem:[#allocation64_spill] sm:$0xff] %v8432_v41  ;;  %v3449_v20 = vsel %vm1066_vm6, %v12663_v16, %v12662_v46  ;;  %v8460_v35 = vmax.f32 %v8252_v14, %v8439_v51  ;;  %v12668_v10 = vrot.slane %v8278_v34, 1  ;;  %v12669_v1 = vmov %v12662_v46 }
 0x176   : > { %12660 = vst [vmem:[#allocation65_spill] sm:$0xff] %v8435_v59  ;;  %v3940_v8 = vsel %vm1599_vm7, %v3938_v2, %v3939_v42  ;;  %v3942_v9 = vsel %vm1599_vm7, %v3939_v42, %v3941_v23  ;;  %v3944_v18 = vsel %vm1599_vm7, %v3941_v23, %v3943_v27  ;;  %v2784_v40 = vmax.f32 %v2684_v11, %v8448_v48 }
 0x177   : > { %12661 = vst [vmem:[#allocation66_spill] sm:$0xff] %v8439_v51  ;;  %v3451_v37 = vsel %vm1066_vm6, %v12669_v1, %v12668_v10  ;;  %v4158_v29 = vmax.f32 %v3731_v31, %v3940_v8  ;;  %v4159_v26 = vmax.f32 %v3732_v53, %v3942_v9  ;;  %v4160_v47 = vmax.f32 %v3733_v55, %v3944_v18 }
 0x178   : > { %12664 = vst [vmem:[#allocation3_spill] sm:$0xff] %v8448_v48  ;;  %v2785_v14 = vmax.f32 %v2685_v54, %v8452_v15  ;;  %6665 = vmatmul.msk.bf16.gmra.mxu2 %vm3037_vm5, %v3249_v60  ;;  %v2786_v13 = vmax.f32 %v2686_v5, %v8456_v62  ;;  %v2787_v63 = vmax.f32 %v8381_v12, %v8460_v35  ;;  %v2914_v25 = vrot.slane %v2784_v40, 6 }
 0x179   : > { %12665 = vst [vmem:[#allocation4_spill] sm:$0xff] %v8452_v15  ;;  %v3489_v50 = vrot.slane %v2784_v40, 1  ;;  %v4312_v43 = vrot.slane %v4158_v29, 1  ;;  %v4313_v33 = vrot.slane %v4159_v26, 1  ;;  %v4315_v0 = vrot.slane %v4160_v47, 1 }
 0x17a   : > { %12666 = vst [vmem:[#allocation15_spill] sm:$0xff] %v8456_v62  ;;  %v2915_v27 = vrot.slane %v2785_v14, 6  ;;  %v2917_v58 = vrot.slane %v2786_v13, 6  ;;  %v3490_v11 = vrot.slane %v2785_v14, 1  ;;  %v3492_v22 = vrot.slane %v2786_v13, 1 }
 0x17b   : > { %12667 = vst [vmem:[#allocation16_spill] sm:$0xff] %v8460_v35  ;;  %v3494_v31 = vrot.slane %v2787_v63, 1  ;;  %v4314_v53 = vsel %vm1066_vm6, %v4312_v43, %v4313_v33  ;;  %v4316_v54 = vsel %vm1066_vm6, %v4313_v33, %v4315_v0  ;;  %v8478_v60 = vmax.f32 %v4160_v47, %v4315_v0 }
 0x17c   : > { %v2916_v5 = vsel %vm392_vm0, %v2914_v25, %v2915_v27  ;;  %v8481_v55 = vmax.f32 %v4158_v29, %v4314_v53  ;;  %v8483_v12 = vmax.f32 %v4159_v26, %v4316_v54  ;;  %v2918_v46 = vsel %vm392_vm0, %v2915_v27, %v2917_v58 }
 0x17d   : > { %v3491_v16 = vsel %vm1066_vm6, %v3489_v50, %v3490_v11  ;;  %v3018_v2 = vpack.c.bf16 %v2918_v46, %v2916_v5  ;;  %v3493_v42 = vsel %vm1066_vm6, %v3490_v11, %v3492_v22  ;;  %v3495_v23 = vsel %vm1066_vm6, %v3492_v22, %v3494_v31 }
 0x17e   : > { %v3735_v10 = vmax.f32 %v2784_v40, %v3491_v16  ;;  %v3736_v1 = vmax.f32 %v2785_v14, %v3493_v42  ;;  %v3737_v8 = vmax.f32 %v2786_v13, %v3495_v23  ;;  %v3738_v9 = vmax.f32 %v2787_v63, %v3494_v31 }
 0x17f   : > { %v3452_v18 = vrot.slane %v8280_v49, 1  ;;  %v12670_v29 = vrot.slane %v8285_v21, 1  ;;  %v12671_v26 = vrot.slane %v8283_v24, 1  ;;  %v12672_v50 = vrot.slane %v8287_v61, 1 }
 0x180   : > { %v3945_v47 = vrot.slane %v3735_v10, 2  ;;  %v3466_v40 = vrot.slane %v8363_v19, 1  ;;  %v3946_v14 = vrot.slane %v3736_v1, 2  ;;  %v3948_v13 = vrot.slane %v3737_v8, 2 }
 0x181   : > { %v3463_v25 = vsel %vm1066_vm6, %v12671_v26, %v12670_v29  ;;  %v12673_v43 = vmov %v12670_v29  ;;  %v3950_v63 = vrot.slane %v3738_v9, 2  ;;  %v12674_v0 = vrot.slane %v8278_v34, 1 }
 0x182   : > { %v3465_v33 = vsel %vm1066_vm6, %v12673_v43, %v12672_v50  ;;  %v12675_v58 = vmov %v12672_v50  ;;  %v3711_v22 = vmax.f32 %v8274_v44, %v3449_v20  ;;  %v3712_v31 = vmax.f32 %v8276_v45, %v3451_v37  ;;  %6645 = vmatmul.msk.bf16.gmra.mxu1 %vm3037_vm5, %v3018_v2 }
 0x183   : > { %v3453_v27 = vsel %vm1066_vm6, %v12674_v0, %v3452_v18  ;;  %v3467_v11 = vsel %vm1066_vm6, %v12675_v58, %v3466_v40  ;;  %v3947_v54 = vsel %vm1599_vm7, %v3945_v47, %v3946_v14  ;;  %v3949_v5 = vsel %vm1599_vm7, %v3946_v14, %v3948_v13 }
 0x184   : > { %v3713_v53 = vmax.f32 %v8278_v34, %v3453_v27  ;;  %v3951_v46 = vsel %vm1599_vm7, %v3948_v13, %v3950_v63  ;;  %v3714_v16 = vmax.f32 %v8280_v49, %v3452_v18  ;;  %v4161_v42 = vmax.f32 %v3735_v10, %v3947_v54 }
 0x185   : > { %v4162_v23 = vmax.f32 %v3736_v1, %v3949_v5  ;;  %v4163_v9 = vmax.f32 %v3737_v8, %v3951_v46  ;;  %v3719_v29 = vmax.f32 %v8283_v24, %v3463_v25  ;;  %v3720_v44 = vmax.f32 %v8285_v21, %v3465_v33  ;;  %v12684_v5 = vld [vmem:[#allocation67_spill] sm:$0xff] }
 0x186   : > { %v3721_v45 = vmax.f32 %v8287_v61, %v3467_v11  ;;  %v3722_v34 = vmax.f32 %v8363_v19, %v3466_v40  ;;  %v3903_v20 = vrot.slane %v3711_v22, 2  ;;  %v4317_v37 = vrot.slane %v4161_v42, 1 }
 0x187   : > { %v4318_v47 = vrot.slane %v4162_v23, 1  ;;  %v4320_v26 = vrot.slane %v4163_v9, 1  ;;  %v3904_v50 = vrot.slane %v3712_v31, 2  ;;  %v3906_v43 = vrot.slane %v3713_v53, 2 }
 0x188   : > { %v3908_v49 = vrot.slane %v3714_v16, 2  ;;  %v12676_v2 = vrot.slane %v8311_v52, 2  ;;  %v12677_v10 = vrot.slane %v8306_v17, 2  ;;  %v12678_v24 = vrot.slane %v8316_v7, 2 }
 0x189   : > { %v4319_v19 = vsel %vm1066_vm6, %v4317_v37, %v4318_v47  ;;  %v4321_v8 = vsel %vm1066_vm6, %v4318_v47, %v4320_v26  ;;  %v8531_v18 = vmax.f32 %v4163_v9, %v4320_v26  ;;  %v3905_v25 = vsel %vm1599_vm7, %v3903_v20, %v3904_v50  ;;  %v12689_v37 = vld [vmem:[#allocation42_spill] sm:$0xff] }
 0x18a   : > { %v3912_v1 = vsel %vm1599_vm7, %v12677_v10, %v12676_v2  ;;  %v12679_v21 = vmov %v12676_v2  ;;  %v8534_v33 = vmax.f32 %v4161_v42, %v4319_v19  ;;  %v8536_v40 = vmax.f32 %v4162_v23, %v4321_v8  ;;  %v12686_v42 = vld [vmem:[#allocation68_spill] sm:$0xff] }
 0x18b   : > { %v3914_v61 = vsel %vm1599_vm7, %v12679_v21, %v12678_v24  ;;  %12680 = vst [vmem:[#allocation25_spill] sm:$0xff] %v8531_v18  ;;  %v3907_v14 = vsel %vm1599_vm7, %v3904_v50, %v3906_v43  ;;  %v3909_v13 = vsel %vm1599_vm7, %v3906_v43, %v3908_v49  ;;  %v3915_v63 = vrot.slane %v8318_v39, 2 }
 0x18c   : > { %12681 = vst [vmem:[#allocation26_spill] sm:$0xff] %v8534_v33  ;;  %v3917_v0 = vrot.slane %v3719_v29, 2  ;;  %v3918_v27 = vrot.slane %v3720_v44, 2  ;;  %v3920_v58 = vrot.slane %v3721_v45, 2  ;;  %v3922_v11 = vrot.slane %v3722_v34, 2 }
 0x18d   : > { %12682 = vst [vmem:[#allocation69_spill] sm:$0xff] %v8536_v40  ;;  %v12683_v54 = vrot.slane %v8322_v56, 2  ;;  %v12685_v46 = vrot.slane %v12684_v5, 2  ;;  %v12687_v9 = vrot.slane %v12686_v42, 2  ;;  %v3929_v47 = vrot.slane %v12689_v37, 2 }
 0x18e   : > { %v12690_v39 = vmov %v12678_v24  ;;  %v3919_v34 = vsel %vm1599_vm7, %v3917_v0, %v3918_v27  ;;  %v3921_v50 = vsel %vm1599_vm7, %v3918_v27, %v3920_v58  ;;  %v4143_v43 = vmax.f32 %v3711_v22, %v3905_v25 }
 0x18f   : > { %v3926_v16 = vsel %vm1599_vm7, %v12685_v46, %v12683_v54  ;;  %v12688_v23 = vmov %v12683_v54  ;;  %v3916_v26 = vsel %vm1599_vm7, %v12690_v39, %v3915_v63  ;;  %v3923_v49 = vsel %vm1599_vm7, %v3920_v58, %v3922_v11 }
 0x190   : > { %v3928_v20 = vsel %vm1599_vm7, %v12688_v23, %v12687_v9  ;;  %v12691_v2 = vmov %v12687_v9  ;;  %v4144_v24 = vmax.f32 %v3712_v31, %v3907_v14  ;;  %v4145_v21 = vmax.f32 %v3713_v53, %v3909_v13 }
 0x191   : > { %v3930_v10 = vsel %vm1599_vm7, %v12691_v2, %v3929_v47  ;;  %v4146_v19 = vmax.f32 %v8306_v17, %v3912_v1  ;;  %v4147_v8 = vmax.f32 %v8311_v52, %v3914_v61  ;;  %v4148_v54 = vmax.f32 %v8316_v7, %v3916_v26  ;;  %v12696_v26 = vld [vmem:[#allocation18_spill] sm:$0xff] }
 0x192   : > { %v4149_v63 = vmax.f32 %v3719_v29, %v3919_v34  ;;  %v4150_v46 = vmax.f32 %v3720_v44, %v3921_v50  ;;  %v4151_v0 = vmax.f32 %v3721_v45, %v3923_v49  ;;  %v4152_v27 = vmax.f32 %v12684_v5, %v3926_v16 }
 0x193   : > { %v4153_v22 = vmax.f32 %v8322_v56, %v3928_v20  ;;  %v4154_v25 = vmax.f32 %v12686_v42, %v3930_v10  ;;  %v4287_v58 = vrot.slane %v4143_v43, 1  ;;  %v4288_v11 = vrot.slane %v4144_v24, 1  ;;  %v12692_v42 = vld [vmem:[#allocation60_spill] sm:$0xff]  ;;  %v12694_v20 = vld [vmem:[#allocation59_spill] sm:$0xff] }
 0x194   : > { %v4290_v9 = vrot.slane %v4145_v21, 1  ;;  %v4292_v31 = vrot.slane %v4146_v19, 1  ;;  %v4293_v53 = vrot.slane %v4147_v8, 1  ;;  %v4295_v14 = vrot.slane %v4148_v54, 1 }
 0x195   : > { %v4297_v17 = vrot.slane %v4149_v63, 1  ;;  %v4289_v52 = vsel %vm1066_vm6, %v4287_v58, %v4288_v11  ;;  %v4298_v29 = vrot.slane %v4150_v46, 1  ;;  %v4300_v44 = vrot.slane %v4151_v0, 1 }
 0x196   : > { %v4291_v7 = vsel %vm1066_vm6, %v4288_v11, %v4290_v9  ;;  %v4294_v45 = vsel %vm1066_vm6, %v4292_v31, %v4293_v53  ;;  %v4296_v1 = vsel %vm1066_vm6, %v4293_v53, %v4295_v14  ;;  %v4302_v56 = vrot.slane %v4152_v27, 1 }
 0x197   : > { %v4303_v61 = vrot.slane %v4153_v22, 1  ;;  %v4299_v13 = vsel %vm1066_vm6, %v4297_v17, %v4298_v29  ;;  %v4301_v5 = vsel %vm1066_vm6, %v4298_v29, %v4300_v44  ;;  %v4305_v16 = vrot.slane %v4154_v25, 1 }
 0x198   : > { %v12693_v23 = vrot.slane %v12692_v42, 1  ;;  %v12695_v37 = vrot.slane %v12694_v20, 1  ;;  %v4310_v34 = vrot.slane %v12696_v26, 1  ;;  %v4479_v50 = vmax.f32 %v4143_v43, %v4289_v52 }
 0x199   : > { %v4304_v39 = vsel %vm1066_vm6, %v4302_v56, %v4303_v61  ;;  %v4480_v49 = vmax.f32 %v4144_v24, %v4291_v7  ;;  %v4306_v2 = vsel %vm1066_vm6, %v4303_v61, %v4305_v16  ;;  %v4481_v10 = vmax.f32 %v4145_v21, %v4290_v9 }
 0x19a   : > { %v4309_v47 = vsel %vm1066_vm6, %v12695_v37, %v12693_v23  ;;  %v4482_v58 = vmax.f32 %v4146_v19, %v4294_v45  ;;  %v4483_v11 = vmax.f32 %v4147_v8, %v4296_v1  ;;  %v12697_v31 = vmov %v12693_v23  ;;  %v8732_v1 = vld [vmem:[#allocation2 + $0x13c] sm:$0x7] }
 0x19b   : > { %v4311_v53 = vsel %vm1066_vm6, %v12697_v31, %v4310_v34  ;;  %v4484_v17 = vmax.f32 %v4148_v54, %v4295_v14  ;;  %v4485_v29 = vmax.f32 %v4149_v63, %v4299_v13  ;;  %v4486_v35 = vmax.f32 %v4150_v46, %v4301_v5 }
 0x19c   : > { %v4487_v62 = vmax.f32 %v4151_v0, %v4300_v44  ;;  %v4488_v23 = vmax.f32 %v4152_v27, %v4304_v39  ;;  %v4489_v37 = vmax.f32 %v4153_v22, %v4306_v2  ;;  %v4490_v56 = vmax.f32 %v4154_v25, %v4305_v16  ;;  %v12715_v39 = vld [vmem:[#allocation46_spill] sm:$0xff] }
 0x19d   : > { %v4491_v15 = vmax.f32 %v12694_v20, %v4309_v47  ;;  %v4492_v43 = vmax.f32 %v12692_v42, %v4311_v53  ;;  %v4493_v24 = vmax.f32 %v12696_v26, %v4310_v34  ;;  %v8587_v21 = vmax.f32 %v4479_v50, %v4482_v58  ;;  %v12714_v47 = vld [vmem:[#allocation56_spill] sm:$0xff]  ;;  %v12718_v50 = vld [vmem:[#allocation58_spill] sm:$0xff] }
 0x19e   : > { %v8589_v19 = vmax.f32 %v4480_v49, %v4483_v11  ;;  %v4553_v8 = vmax.f32 %v4481_v10, %v4484_v17  ;;  %v4554_v9 = vmax.f32 %v4482_v58, %v4485_v29  ;;  %v4555_v52 = vmax.f32 %v4483_v11, %v4486_v35  ;;  %v12719_v49 = vld [vmem:[#allocation57_spill] sm:$0xff] }
 0x19f   : > { %12698 = vst [vmem:[#allocation67_spill] sm:$0xff] %v8587_v21  ;;  %v4556_v54 = vmax.f32 %v4484_v17, %v4487_v62  ;;  %v8591_v63 = vmax.f32 %v4485_v29, %v4488_v23  ;;  %v8593_v46 = vmax.f32 %v4486_v35, %v4489_v37  ;;  %v4559_v0 = vmax.f32 %v4487_v62, %v4490_v56  ;;  %v8747_v21 = vld [vmem:[#allocation2 + $0x1bc] sm:$0xf] }
 0x1a0   : > { %12699 = vst [vmem:[#allocation68_spill] sm:$0xff] %v8589_v19  ;;  %v4560_v27 = vmax.f32 %v4488_v23, %v4491_v15  ;;  %v4561_v22 = vmax.f32 %v4489_v37, %v4492_v43  ;;  %v4562_v25 = vmax.f32 %v4490_v56, %v4493_v24  ;;  %v8596_v14 = vmax.f32 %v4491_v15, %v8481_v55  ;;  %v12726_v37 = vld [vmem:[#allocation49_spill] sm:$0xff]  ;;  %v8680_v15 = vld [vmem:[#allocation2 + $0xf8] sm:$0xff]   ;;  %v8718_v19 = vld [vmem:[#allocation2 + $0x110] sm:$0xf] }
 0x1a1   : > { %12700 = vst [vmem:[#allocation42_spill] sm:$0xff] %v8591_v63  ;;  %v8599_v7 = vmax.f32 %v4492_v43, %v8483_v12  ;;  %v8602_v44 = vmax.f32 %v4493_v24, %v8478_v60  ;;  %v8606_v45 = vmax.f32 %v8481_v55, %v8534_v33  ;;  %v8610_v35 = vmax.f32 %v8483_v12, %v8536_v40 }
 0x1a2   : > { %12701 = vst [vmem:[#allocation60_spill] sm:$0xff] %v8593_v46  ;;  %v8614_v62 = vmax.f32 %v8478_v60, %v8531_v18  ;;  %v8620_v61 = vmax.f32 %v4553_v8, %v4559_v0  ;;  %v8622_v13 = vmax.f32 %v4554_v9, %v4560_v27  ;;  %v8624_v55 = vmax.f32 %v4555_v52, %v4561_v22  ;;  %v8668_v8 = vld [vmem:[#allocation2 + $0xe0] sm:$0xff]  }
 0x1a3   : > { %12702 = vst [vmem:[#allocation59_spill] sm:$0xff] %v8596_v14  ;;  %v8626_v5 = vmax.f32 %v4556_v54, %v4562_v25  ;;  %v4626_v12 = vmax.f32 %v8591_v63, %v8596_v14  ;;  %v4627_v60 = vmax.f32 %v8593_v46, %v8599_v7  ;;  %v4628_v16 = vmax.f32 %v4559_v0, %v8602_v44  ;;  %v12729_v54 = vld [vmem:[#allocation53_spill] sm:$0xff]  ;;  %v12730_v0 = vld [vmem:[#allocation50_spill] sm:$0xff] }
 0x1a4   : > { %12703 = vst [vmem:[#allocation18_spill] sm:$0xff] %v8599_v7  ;;  %v8634_v42 = vmax.f32 %v4560_v27, %v8606_v45  ;;  %v8637_v20 = vmax.f32 %v4561_v22, %v8610_v35  ;;  %v12716_v26 = vunpack.c.l.bf16 %v12715_v39  ;;  %v8646_v2 = vmax.f32 %v12719_v49, %v12718_v50  ;;  %v8695_v46 = vld [vmem:[#allocation2 + $0xe8] sm:$0xf]  ;;  %v8743_v63 = vld [vmem:[#allocation2 + $0x164] sm:$0x7] }
 0x1a5   : > { %12704 = vst [vmem:[#allocation70_spill] sm:$0xff] %v8602_v44  ;;  %v8649_v10 = vmax.f32 %v4562_v25, %v8614_v62  ;;  %v8652_v58 = vmax.f32 %v8622_v13, %v4626_v12  ;;  %v8655_v11 = vmax.f32 %v8624_v55, %v4627_v60  ;;  %v8658_v31 = vmax.f32 %v8626_v5, %v4628_v16 }
 0x1a6   : > { %12705 = vst [vmem:[#allocation71_spill] sm:$0xff] %v8606_v45  ;;  %v8642_v34 = vmax.f32 %v12716_v26, %v12714_v47  ;;  %v4689_v53 = vmax.f32 %v4626_v12, %v8634_v42  ;;  %v4690_v17 = vmax.f32 %v4627_v60, %v8637_v20  ;;  %v12727_v56 = vunpack.c.l.bf16 %v12726_v37  ;;  %v8775_v45 = vld [vmem:[#allocation2 + $0x1dc] sm:$0x7] }
 0x1a7   : > { %12706 = vst [vmem:[#allocation72_spill] sm:$0xff] %v8610_v35  ;;  %v4691_v24 = vmax.f32 %v4628_v16, %v8649_v10  ;;  %v8674_v27 = vsel %vm1066_vm6, %v12730_v0, %v12729_v54  ;;  %v8720_v54 = vld [vmem:[#allocation2 + $0x114] sm:$0x7]  ;;  %v12751_v7 = vunpack.c.h.bf16 %v8680_v15 }
 0x1a8   : > { %12707 = vst [vmem:[#allocation73_spill] sm:$0xff] %v8614_v62  ;;  %v8665_v43 = vrot.slane %v12727_v56, 1  ;;  %v4792_v22 = vrot.slane %v4689_v53, 4  ;;  %v4793_v25 = vrot.slane %v4690_v17, 4  ;;  %v5119_v60 = vrot.slane %v4689_v53, 1 }
 0x1a9   : > { %12708 = vst [vmem:[#allocation74_spill] sm:$0xff] %v8620_v61  ;;  %v4795_v12 = vrot.slane %v4691_v24, 4  ;;  %v5120_v47 = vrot.slane %v4690_v17, 1  ;;  %v5122_v26 = vrot.slane %v4691_v24, 1  ;;  %v8686_v61 = vld [vmem:[#allocation2 + $0x108] sm:$0xff]  }
 0x1aa   : > { %12709 = vst [vmem:[#allocation75_spill] sm:$0xff] %v8622_v13  ;;  %v4794_v56 = vsel %vm4791_vm8, %v4792_v22, %v4793_v25  ;;  %v8755_v13 = vld [vmem:[#allocation2 + $0x1d8] sm:$0xf]  ;;  %v12753_v18 = vunpack.c.l.bf16 %v8686_v61 }
 0x1ab   : > { %12710 = vst [vmem:[#allocation76_spill] sm:$0xff] %v8624_v55  ;;  %v4796_v23 = vsel %vm4791_vm8, %v4793_v25, %v4795_v12  ;;  %v5121_v0 = vsel %vm1066_vm6, %v5119_v60, %v5120_v47  ;;  %v5123_v52 = vsel %vm1066_vm6, %v5120_v47, %v5122_v26  ;;  %v8697_v25 = vld [vmem:[#allocation2 + $0xec] sm:$0x7]  ;;  %v8699_v12 = vld [vmem:[#allocation2 + $0xf4] sm:$0xf]  ;;  %v8703_v47 = vld [vmem:[#allocation2 + $0x1c0] sm:$0xff]   ;;  %v12779_v37 = vunpack.c.l.bf16 %v8755_v13 }
 0x1ac   : > { %12711 = vst [vmem:[#allocation77_spill] sm:$0xff] %v8626_v5  ;;  %v8688_v5 = vld [vmem:[#allocation2 + $0x120] sm:$0xff]   ;;  %v4904_v50 = vpack.c.bf16 %v4796_v23, %v4794_v56  ;;  %v8690_v16 = vmax.f32 %v4689_v53, %v5121_v0  ;;  %v8692_v22 = vmax.f32 %v4690_v17, %v5123_v52  ;;  %v8701_v60 = vld [vmem:[#allocation2 + $0x130] sm:$0xff]   ;;  %v8714_v0 = vmax.f32 %v4691_v24, %v5122_v26  ;;  %v8722_v23 = vld [vmem:[#allocation2 + $0x11c] sm:$0xf] }
 0x1ad   : > { %12712 = vst [vmem:[#allocation78_spill] sm:$0xff] %v8634_v42  ;;  %v8709_v52 = vld [vmem:[#allocation2 + $0x100] sm:$0x7]  ;;  %v8711_v56 = vld [vmem:[#allocation2 + $0x1d0] sm:$0xff]   ;;  %v8730_v26 = vld [vmem:[#allocation2 + $0x138] sm:$0xf]  ;;  %v12747_v42 = vunpack.c.l.bf16 %v8695_v46  ;;  %v12748_v62 = vunpack.c.l.bf16 %v8697_v25  ;;  %v12749_v53 = vunpack.c.l.bf16 %v8699_v12 }
 0x1ae   : > { %12713 = vst [vmem:[#allocation79_spill] sm:$0xff] %v8637_v20  ;;  %6675 = vmatmul.msk.bf16.vlgmr.msrb.gmra.mxu3 %vm3037_vm5, %v4904_v50  ;;  %v8737_v55 = vld [vmem:[#allocation2 + $0x144] sm:$0xf]  ;;  %v8739_v17 = vld [vmem:[#allocation2 + $0x150] sm:$0x7]  ;;  %v12752_v14 = vunpack.c.l.bf16 %v8709_v52  ;;  %v1158_v40 = vrot.slane %v12753_v18, 1  ;;  %v12759_v18 = vunpack.c.h.bf16 %v8688_v5 }
 0x1af   : > { %12717 = vst [vmem:[#allocation56_spill] sm:$0xff] %v8642_v34  ;;  %v8745_v24 = vld [vmem:[#allocation2 + $0x16c] sm:$0xf]  ;;  %v1149_v50 = vrot.slane %v12748_v62, 1  ;;  %v1151_v44 = vrot.slane %v12749_v53, 1  ;;  %v12755_v62 = vunpack.c.l.bf16 %v8718_v19  ;;  %v12756_v53 = vunpack.c.l.bf16 %v8720_v54  ;;  %v12772_v34 = vld [vmem:[#allocation44_spill] sm:$0xff] }
 0x1b0   : > { %12720 = vst [vmem:[#allocation58_spill] sm:$0xff] %v8646_v2  ;;  %v1168_v57 = vrot.slane %v12759_v18, 1 }
 0x1b1   : > { %12721 = vst [vmem:[#allocation80_spill] sm:$0xff] %v8649_v10  ;;  %v12750_v10 = vunpack.c.l.bf16 %v8680_v15  ;;  %v1161_v48 = vrot.slane %v12755_v62, 1  ;;  %v1163_v51 = vrot.slane %v12756_v53, 1  ;;  %v12761_v53 = vunpack.c.l.bf16 %v8701_v60 }
 0x1b2   : > { %12722 = vst [vmem:[#allocation81_spill] sm:$0xff] %v8652_v58  ;;  %v12744_v58 = vunpack.c.l.bf16 %v8668_v8 }
 0x1b3   : > { %12723 = vst [vmem:[#allocation82_spill] sm:$0xff] %v8655_v11  ;;  %v1152_v20 = vrot.slane %v12750_v10, 1  ;;  %v12757_v10 = vunpack.c.l.bf16 %v8722_v23  ;;  %v1172_v30 = vrot.slane %v12761_v53, 1  ;;  %v1164_v53 = vsel %vm1066_vm6, %v1161_v48, %v1163_v51 }
 0x1b4   : > { %12724 = vst [vmem:[#allocation83_spill] sm:$0xff] %v8658_v31  ;;  %v8726_v31 = vld [vmem:[#allocation2 + $0x128] sm:$0x7]  ;;  %v1144_v35 = vrot.slane %v12744_v58, 1  ;;  %v1154_v58 = vrot.slane %v12751_v7, 1  ;;  %v12758_v7 = vunpack.c.l.bf16 %v8688_v5 }
 0x1b5   : > { %12731 = vst [vmem:[#allocation53_spill] sm:$0xff] %v8674_v27  ;;  %v1165_v59 = vrot.slane %v12757_v10, 1  ;;  %v12762_v10 = vunpack.c.h.bf16 %v8701_v60 }
 0x1b6   : > { %12732 = vst [vmem:[#allocation50_spill] sm:$0xff] %v8690_v16  ;;  %v1147_v16 = vrot.slane %v12747_v42, 1  ;;  %v12754_v42 = vunpack.c.h.bf16 %v8686_v61  ;;  %v1166_v41 = vrot.slane %v12758_v7, 1  ;;  %v12763_v7 = vunpack.c.l.bf16 %v8730_v26 }
 0x1b7   : > { %12733 = vst [vmem:[#allocation84_spill] sm:$0xff] %v8692_v22  ;;  %v8753_v22 = vld [vmem:[#allocation2 + $0x1c8] sm:$0x7]  ;;  %v1173_v3 = vrot.slane %v12762_v10, 1  ;;  %v1155_v18 = vsel %vm1066_vm6, %v1152_v20, %v1154_v58 }
 0x1b8   : > { %12734 = vst [vmem:[#allocation85_spill] sm:$0xff] %v8703_v47  ;;  %v1159_v33 = vrot.slane %v12754_v42, 1  ;;  %v12760_v42 = vunpack.c.l.bf16 %v8726_v31  ;;  %v1175_v38 = vrot.slane %v12763_v7, 1  ;;  %v1167_v28 = vsel %vm1066_vm6, %v1165_v59, %v1166_v41 }
 0x1b9   : > { %12735 = vst [vmem:[#allocation86_spill] sm:$0xff] %v8711_v56  ;;  %v1169_v10 = vsel %vm1066_vm6, %v1166_v41, %v1168_v57  ;;  %v12768_v41 = vunpack.c.l.bf16 %v8745_v24 }
 0x1ba   : > { %12736 = vst [vmem:[#allocation87_spill] sm:$0xff] %v8714_v0  ;;  %v12745_v0 = vunpack.c.h.bf16 %v8668_v8  ;;  %v1170_v4 = vrot.slane %v12760_v42, 1  ;;  %v1160_v42 = vsel %vm1066_vm6, %v1158_v40, %v1159_v33  ;;  %v1176_v40 = vsel %vm1066_vm6, %v1173_v3, %v1175_v38 }
 0x1bb   : > { %12737 = vst [vmem:[#allocation88_spill] sm:$0xff] %v8737_v55  ;;  %v1193_v29 = vrot.slane %v12768_v41, 1 }
 0x1bc   : > { %12738 = vst [vmem:[#allocation89_spill] sm:$0xff] %v8739_v17  ;;  %v1145_v11 = vrot.slane %v12745_v0, 1  ;;  %v1156_v0 = vrot.slane %v12752_v14, 1  ;;  %v1150_v14 = vsel %vm1066_vm6, %v1147_v16, %v1149_v50  ;;  %v1171_v7 = vsel %vm1066_vm6, %v1168_v57, %v1170_v4 }
 0x1bd   : > { %12739 = vst [vmem:[#allocation90_spill] sm:$0xff] %v8743_v63  ;;  %v12769_v57 = vunpack.c.l.bf16 %v8747_v21 }
 0x1be   : > { %12740 = vst [vmem:[#allocation91_spill] sm:$0xff] %v8745_v24  ;;  %v1146_v6 = vsel %vm1066_vm6, %v1144_v35, %v1145_v11  ;;  %v1148_v62 = vsel %vm1066_vm6, %v1145_v11, %v1147_v16  ;;  %v1153_v35 = vsel %vm1066_vm6, %v1151_v44, %v1152_v20  ;;  %v1157_v32 = vsel %vm1066_vm6, %v1154_v58, %v1156_v0 }
 0x1bf   : > { %12741 = vst [vmem:[#allocation92_spill] sm:$0xff] %v8747_v21  ;;  %v1162_v11 = vsel %vm1066_vm6, %v1159_v33, %v1161_v48  ;;  %v12764_v16 = vunpack.c.l.bf16 %v8732_v1  ;;  %v12765_v44 = vunpack.c.l.bf16 %v8737_v55  ;;  %v1174_v58 = vsel %vm1066_vm6, %v1172_v30, %v1173_v3  ;;  %v12773_v3 = vld [vmem:[#allocation43_spill] sm:$0xff] }
 0x1c0   : > { %12742 = vst [vmem:[#allocation93_spill] sm:$0xff] %v8753_v22  ;;  %v12766_v33 = vunpack.c.l.bf16 %v8739_v17  ;;  %v12767_v48 = vunpack.c.l.bf16 %v8743_v63  ;;  %v1221_v9 = vrot.slane %v12769_v57, 1  ;;  %v1183_v39 = vsel %vm1066_vm6, %v12773_v3, %v12772_v34  ;;  %v12783_v17 = vld [vmem:[#allocation8_spill] sm:$0xff] }
 0x1c1   : > { %12743 = vst [vmem:[#allocation94_spill] sm:$0xff] %v8755_v13  ;;  %v1177_v36 = vrot.slane %v12764_v16, 1  ;;  %v1179_v20 = vrot.slane %v12765_v44, 1  ;;  %v12770_v16 = vunpack.c.l.bf16 %v8703_v47  ;;  %v12771_v44 = vunpack.c.h.bf16 %v8703_v47  ;;  %v12778_v47 = vld [vmem:[#allocation51_spill] sm:$0xff] }
 0x1c2   : > { %12746 = vst [vmem:[#allocation95_spill] sm:$0xff] %v8775_v45  ;;  %v1184_v2 = vrot.slane %v12766_v33, 1  ;;  %v1191_v59 = vrot.slane %v12767_v48, 1  ;;  %v12774_v33 = vunpack.c.l.bf16 %v8753_v22  ;;  %v12775_v48 = vunpack.c.l.bf16 %v8711_v56 }
 0x1c3   : > { %v1222_v49 = vrot.slane %v12770_v16, 1  ;;  %v1224_v30 = vrot.slane %v12771_v44, 1  ;;  %v12776_v21 = vunpack.c.h.bf16 %v8711_v56  ;;  %v1178_v24 = vsel %vm1066_vm6, %v1175_v38, %v1177_v36  ;;  %v12777_v44 = vld [vmem:[#allocation52_spill] sm:$0xff]  ;;  %v12781_v56 = vld [vmem:[#allocation34_spill] sm:$0xff] }
 0x1c4   : > { %v8847_v27 = vrot.slane %v12774_v33, 1  ;;  %v1228_v41 = vrot.slane %v12775_v48, 1  ;;  %v1181_v16 = vsel %vm1066_vm6, %v1179_v20, %v12773_v3  ;;  %v1188_v63 = vsel %vm1066_vm6, %v12778_v47, %v12777_v44 }
 0x1c5   : > { %v1229_v57 = vrot.slane %v12776_v21, 1  ;;  %v1231_v22 = vrot.slane %v12779_v37, 1  ;;  %v1185_v33 = vsel %vm1066_vm6, %v12772_v34, %v1184_v2  ;;  %v1190_v48 = vsel %vm1066_vm6, %v12777_v44, %v8665_v43  ;;  %v12780_v21 = vld [vmem:[#allocation36_spill] sm:$0xff] }
 0x1c6   : > { %v1204_v38 = vsel %vm1066_vm6, %v12781_v56, %v12780_v21  ;;  %v12782_v20 = vunpack.c.l.bf16 %v8775_v45  ;;  %v1192_v47 = vsel %vm1066_vm6, %v8665_v43, %v1191_v59  ;;  %v1195_v37 = vsel %vm1066_vm6, %v1193_v29, %v12783_v17 }
 0x1c7   : > { %v1223_v13 = vsel %vm1066_vm6, %v1221_v9, %v1222_v49  ;;  %v1225_v34 = vsel %vm1066_vm6, %v1222_v49, %v1224_v30  ;;  %v1227_v44 = vsel %vm1066_vm6, %v1224_v30, %v8847_v27  ;;  %v1230_v55 = vsel %vm1066_vm6, %v1228_v41, %v1229_v57 }
 0x1c8   : > { %v1233_v3 = vrot.slane %v12782_v20, 1  ;;  %v12784_v56 = vunpack.c.l.bf16 %v8668_v8  ;;  %v12785_v20 = vunpack.c.h.bf16 %v8668_v8  ;;  %v1232_v43 = vsel %vm1066_vm6, %v1229_v57, %v1231_v22 }
 0x1c9   : > { %v12786_v29 = vunpack.c.l.bf16 %v8695_v46  ;;  %v12787_v49 = vunpack.c.l.bf16 %v8697_v25  ;;  %v12788_v30 = vunpack.c.l.bf16 %v8699_v12  ;;  %v12789_v8 = vunpack.c.l.bf16 %v8680_v15 }
 0x1ca   : > { %v8882_v21 = vmax.f32 %v12784_v56, %v1146_v6  ;;  %v8886_v45 = vmax.f32 %v12785_v20, %v1148_v62  ;;  %v1234_v6 = vsel %vm1066_vm6, %v1231_v22, %v1233_v3  ;;  %v12790_v57 = vunpack.c.h.bf16 %v8680_v15 }
 0x1cb   : > { %v8891_v9 = vmax.f32 %v12786_v29, %v1150_v14  ;;  %v8895_v17 = vmax.f32 %v12787_v49, %v1149_v50  ;;  %v8899_v41 = vmax.f32 %v12788_v30, %v1153_v35  ;;  %v8904_v62 = vmax.f32 %v12789_v8, %v1155_v18  ;;  %v12813_v49 = vld [vmem:[#allocation88_spill] sm:$0xff]  ;;  %v12816_v30 = vld [vmem:[#allocation41_spill] sm:$0xff] }
 0x1cc   : > { %v8908_v56 = vmax.f32 %v12790_v57, %v1157_v32  ;;  %v12791_v46 = vunpack.c.l.bf16 %v8709_v52  ;;  %v12792_v25 = vunpack.c.l.bf16 %v8686_v61  ;;  %v12793_v12 = vunpack.c.h.bf16 %v8686_v61  ;;  %v12821_v57 = vld [vmem:[#allocation89_spill] sm:$0xff] }
 0x1cd   : > { %v12794_v22 = vunpack.c.l.bf16 %v8718_v19  ;;  %v12795_v15 = vunpack.c.l.bf16 %v8720_v54  ;;  %v12797_v52 = vunpack.c.l.bf16 %v8722_v23  ;;  %v12799_v20 = vunpack.c.l.bf16 %v8688_v5 }
 0x1ce   : > { %v8912_v14 = vmax.f32 %v12791_v46, %v1156_v0  ;;  %v8916_v50 = vmax.f32 %v12792_v25, %v1160_v42  ;;  %v8920_v35 = vmax.f32 %v12793_v12, %v1162_v11  ;;  %v12801_v61 = vunpack.c.h.bf16 %v8688_v5  ;;  %v12824_v46 = vld [vmem:[#allocation45_spill] sm:$0xff] }
 0x1cf   : > { %v8924_v18 = vmax.f32 %v12794_v22, %v1164_v53  ;;  %v8928_v32 = vmax.f32 %v12795_v15, %v1163_v51  ;;  %v8932_v0 = vmax.f32 %v12797_v52, %v1167_v28  ;;  %v8936_v42 = vmax.f32 %v12799_v20, %v1169_v10  ;;  %v12829_v12 = vld [vmem:[#allocation49_spill] sm:$0xff]  ;;  %v12832_v15 = vld [vmem:[#allocation90_spill] sm:$0xff]  ;;  %v12835_v20 = vld [vmem:[#allocation91_spill] sm:$0xff] }
 0x1d0   : > { %v8940_v11 = vmax.f32 %v12801_v61, %v1171_v7  ;;  %v12803_v19 = vunpack.c.l.bf16 %v8726_v31  ;;  %v12805_v54 = vunpack.c.l.bf16 %v8701_v60  ;;  %v12807_v23 = vunpack.c.h.bf16 %v8701_v60 }
 0x1d1   : > { %12796 = vst [vmem:[#allocation44_spill] sm:$0xff] %v8928_v32  ;;  %v12809_v29 = vunpack.c.l.bf16 %v8730_v26  ;;  %v12811_v5 = vunpack.c.l.bf16 %v8732_v1  ;;  %v12814_v31 = vunpack.c.l.bf16 %v12813_v49  ;;  %v12817_v8 = vunpack.c.l.bf16 %v12816_v30  ;;  %v12845_v49 = vld [vmem:[#allocation21_spill] sm:$0xff] }
 0x1d2   : > { %12798 = vst [vmem:[#allocation43_spill] sm:$0xff] %v8932_v0  ;;  %v8944_v53 = vmax.f32 %v12803_v19, %v1170_v4  ;;  %v8948_v51 = vmax.f32 %v12805_v54, %v1174_v58  ;;  %v8952_v28 = vmax.f32 %v12807_v23, %v1176_v40  ;;  %v12819_v60 = vunpack.c.h.bf16 %v12816_v30  ;;  %v12838_v19 = vld [vmem:[#allocation9_spill] sm:$0xff]  ;;  %v12839_v54 = vld [vmem:[#allocation7_spill] sm:$0xff] }
 0x1d3   : > { %12800 = vst [vmem:[#allocation52_spill] sm:$0xff] %v8936_v42  ;;  %v8956_v10 = vmax.f32 %v12809_v29, %v1178_v24  ;;  %v8960_v7 = vmax.f32 %v12811_v5, %v1177_v36  ;;  %v8964_v4 = vmax.f32 %v12814_v31, %v1181_v16  ;;  %v8968_v58 = vmax.f32 %v12817_v8, %v1183_v39  ;;  %v12842_v29 = vld [vmem:[#allocation32_spill] sm:$0xff]  ;;  %v12850_v8 = vld [vmem:[#allocation22_spill] sm:$0xff] }
 0x1d4   : > { %12802 = vst [vmem:[#allocation51_spill] sm:$0xff] %v8940_v11  ;;  %v8972_v40 = vmax.f32 %v12819_v60, %v1185_v33  ;;  %v12822_v26 = vunpack.c.l.bf16 %v12821_v57  ;;  %v12825_v1 = vunpack.c.l.bf16 %v12824_v46  ;;  %v12827_v25 = vunpack.c.h.bf16 %v12824_v46 }
 0x1d5   : > { %12804 = vst [vmem:[#allocation36_spill] sm:$0xff] %v8944_v53  ;;  %v12830_v22 = vunpack.c.l.bf16 %v12829_v12  ;;  %v12833_v52 = vunpack.c.l.bf16 %v12832_v15  ;;  %v12836_v61 = vunpack.c.l.bf16 %v12835_v20  ;;  %v12851_v60 = vunpack.c.l.bf16 %v12850_v8  ;;  %v12857_v20 = vld [vmem:[#allocation92_spill] sm:$0xff] }
 0x1d6   : > { %12806 = vst [vmem:[#allocation34_spill] sm:$0xff] %v8948_v51  ;;  %v8976_v24 = vmax.f32 %v12822_v26, %v1184_v2  ;;  %v8980_v36 = vmax.f32 %v12825_v1, %v1188_v63  ;;  %v8984_v16 = vmax.f32 %v12827_v25, %v1190_v48  ;;  %v12840_v63 = vunpack.c.l.bf16 %v12839_v54  ;;  %v12854_v26 = vld [vmem:[#allocation46_spill] sm:$0xff]  ;;  %v12860_v54 = vld [vmem:[#allocation85_spill] sm:$0xff] }
 0x1d7   : > { %12808 = vst [vmem:[#allocation8_spill] sm:$0xff] %v8952_v28  ;;  %v8988_v39 = vmax.f32 %v12830_v22, %v1192_v47  ;;  %v8992_v33 = vmax.f32 %v12833_v52, %v1191_v59  ;;  %v8996_v2 = vmax.f32 %v12836_v61, %v1195_v37  ;;  %v12843_v48 = vunpack.c.h.bf16 %v12842_v29  ;;  %v12846_v47 = vld [vmem:[#allocation17_spill] sm:$0xff]  ;;  %v12849_v59 = vld [vmem:[#allocation48_spill] sm:$0xff] }
 0x1d8   : > { %12810 = vst [vmem:[#allocation96_spill] sm:$0xff] %v8956_v10  ;;  %v9001_v23 = vmax.f32 %v12840_v63, %v12838_v19  ;;  %v12847_v31 = vunpack.c.l.bf16 %v12846_v47  ;;  %v9015_v57 = vmax.f32 %v12851_v60, %v12849_v59  ;;  %v12853_v37 = vld [vmem:[#allocation53_spill] sm:$0xff]  ;;  %v12855_v46 = vunpack.c.h.bf16 %v12854_v26 }
 0x1d9   : > { %12812 = vst [vmem:[#allocation97_spill] sm:$0xff] %v8960_v7  ;;  %v9005_v5 = vmax.f32 %v12843_v48, %v1204_v38  ;;  %v1677_v25 = vrot.slane %v8882_v21, 2  ;;  %v1678_v38 = vrot.slane %v8886_v45, 2  ;;  %v1680_v12 = vrot.slane %v8891_v9, 2  ;;  %v12865_v59 = vld [vmem:[#allocation93_spill] sm:$0xff] }
 0x1da   : > { %12815 = vst [vmem:[#allocation88_spill] sm:$0xff] %v8964_v4  ;;  %v9010_v30 = vmax.f32 %v12847_v31, %v12845_v49  ;;  %v9020_v1 = vmax.f32 %v12855_v46, %v12853_v37  ;;  %v12218_v22 = vrot.slane %v8895_v17, 2  ;;  %v1684_v15 = vrot.slane %v8899_v41, 2  ;;  %v12867_v37 = vld [vmem:[#allocation86_spill] sm:$0xff] }
 0x1db   : > { %12818 = vst [vmem:[#allocation41_spill] sm:$0xff] %v8968_v58  ;;  %v1685_v52 = vrot.slane %v8904_v62, 2  ;;  %v12858_v61 = vunpack.c.l.bf16 %v12857_v20  ;;  %v12861_v63 = vunpack.c.l.bf16 %v12860_v54  ;;  %v1687_v48 = vrot.slane %v8908_v56, 2  ;;  %v12872_v20 = vld [vmem:[#allocation94_spill] sm:$0xff] }
 0x1dc   : > { %12820 = vst [vmem:[#allocation98_spill] sm:$0xff] %v8972_v40  ;;  %v12217_v49 = vrot.slane %v8912_v14, 2  ;;  %v12863_v47 = vunpack.c.h.bf16 %v12860_v54  ;;  %v12866_v8 = vunpack.c.l.bf16 %v12865_v59  ;;  %v12875_v54 = vld [vmem:[#allocation95_spill] sm:$0xff]  ;;  %v9064_v59 = vsel %vm1599_vm7, %v1677_v25, %v1678_v38 }
 0x1dd   : > { %12823 = vst [vmem:[#allocation89_spill] sm:$0xff] %v8976_v24  ;;  %v9030_v19 = vmax.f32 %v12858_v61, %v1223_v13  ;;  %v9034_v29 = vmax.f32 %v12861_v63, %v1225_v34  ;;  %v12868_v13 = vunpack.c.l.bf16 %v12867_v37  ;;  %v12870_v34 = vunpack.c.h.bf16 %v12867_v37 }
 0x1de   : > { %12826 = vst [vmem:[#allocation45_spill] sm:$0xff] %v8980_v36  ;;  %v9040_v31 = vmax.f32 %v12863_v47, %v1227_v44  ;;  %v9045_v60 = vmax.f32 %v12866_v8, %v8847_v27  ;;  %v12873_v61 = vunpack.c.l.bf16 %v12872_v20  ;;  %v12876_v44 = vunpack.c.l.bf16 %v12875_v54 }
 0x1df   : > { %12828 = vst [vmem:[#allocation99_spill] sm:$0xff] %v8984_v16  ;;  %v9049_v26 = vmax.f32 %v12868_v13, %v1230_v55  ;;  %v9053_v46 = vmax.f32 %v12870_v34, %v1232_v43  ;;  %v1691_v27 = vrot.slane %v8916_v50, 2  ;;  %v9068_v55 = vsel %vm1599_vm7, %v1678_v38, %v1680_v12 }
 0x1e0   : > { %12831 = vst [vmem:[#allocation49_spill] sm:$0xff] %v8988_v39  ;;  %v9057_v63 = vmax.f32 %v12873_v61, %v1234_v6  ;;  %v9061_v47 = vmax.f32 %v12876_v44, %v1233_v3  ;;  %v9073_v43 = vsel %vm1599_vm7, %v1680_v12, %v12218_v22  ;;  %v9076_v6 = vsel %vm1599_vm7, %v1684_v15, %v1685_v52 }
 0x1e1   : > { %12834 = vst [vmem:[#allocation90_spill] sm:$0xff] %v8992_v33  ;;  %v1692_v8 = vrot.slane %v8920_v35, 2  ;;  %v9080_v3 = vsel %vm1599_vm7, %v1685_v52, %v1687_v48  ;;  %v9085_v25 = vsel %vm1599_vm7, %v1687_v48, %v12217_v49  ;;  %v1694_v38 = vrot.slane %v8924_v18, 2 }
 0x1e2   : > { %12837 = vst [vmem:[#allocation91_spill] sm:$0xff] %v8996_v2  ;;  %v1698_v12 = vrot.slane %v8932_v0, 2  ;;  %v1699_v13 = vrot.slane %v8936_v42, 2  ;;  %v1701_v15 = vrot.slane %v8940_v11, 2  ;;  %v1705_v52 = vrot.slane %v8948_v51, 2  ;;  %v12895_v42 = vld [vmem:[#allocation56_spill] sm:$0xff] }
 0x1e3   : > { %12841 = vst [vmem:[#allocation9_spill] sm:$0xff] %v9001_v23  ;;  %v1706_v20 = vrot.slane %v8952_v28, 2  ;;  %v1708_v61 = vrot.slane %v8956_v10, 2  ;;  %v1712_v54 = vrot.slane %v8964_v4, 2  ;;  %v1713_v44 = vrot.slane %v8968_v58, 2  ;;  %v12897_v0 = vld [vmem:[#allocation57_spill] sm:$0xff] }
 0x1e4   : > { %12844 = vst [vmem:[#allocation7_spill] sm:$0xff] %v9005_v5  ;;  %v1715_v49 = vrot.slane %v8972_v40, 2  ;;  %v1693_v37 = vsel %vm1599_vm7, %v1691_v27, %v1692_v8  ;;  %v1695_v34 = vsel %vm1599_vm7, %v1692_v8, %v1694_v38  ;;  %v1719_v51 = vrot.slane %v8980_v36, 2 }
 0x1e5   : > { %12848 = vst [vmem:[#allocation32_spill] sm:$0xff] %v9010_v30  ;;  %v1720_v28 = vrot.slane %v8984_v16, 2  ;;  %v12877_v10 = vrot.slane %v8928_v32, 2  ;;  %v1700_v4 = vsel %vm1599_vm7, %v1698_v12, %v1699_v13  ;;  %v1702_v58 = vsel %vm1599_vm7, %v1699_v13, %v1701_v15 }
 0x1e6   : > { %12852 = vst [vmem:[#allocation21_spill] sm:$0xff] %v9015_v57  ;;  %v1722_v40 = vrot.slane %v8988_v39, 2  ;;  %v12878_v22 = vrot.slane %v8944_v53, 2  ;;  %v1707_v8 = vsel %vm1599_vm7, %v1705_v52, %v1706_v20  ;;  %v1709_v36 = vsel %vm1599_vm7, %v1706_v20, %v1708_v61  ;;  %v12881_v52 = vld [vmem:[#allocation11_spill] sm:$0xff]  ;;  %v12883_v53 = vld [vmem:[#allocation10_spill] sm:$0xff] }
 0x1e7   : > { %12856 = vst [vmem:[#allocation17_spill] sm:$0xff] %v9020_v1  ;;  %v1697_v48 = vsel %vm1599_vm7, %v1694_v38, %v12877_v10  ;;  %v12879_v11 = vrot.slane %v8960_v7, 2  ;;  %v1714_v38 = vsel %vm1599_vm7, %v1712_v54, %v1713_v44  ;;  %v1716_v12 = vsel %vm1599_vm7, %v1713_v44, %v1715_v49 }
 0x1e8   : > { %12859 = vst [vmem:[#allocation48_spill] sm:$0xff] %v9030_v19  ;;  %v1704_v27 = vsel %vm1599_vm7, %v1701_v15, %v12878_v22  ;;  %v12880_v13 = vrot.slane %v8976_v24, 2  ;;  %v1721_v22 = vsel %vm1599_vm7, %v1719_v51, %v1720_v28  ;;  %v1726_v15 = vrot.slane %v8996_v2, 2 }
 0x1e9   : > { %12862 = vst [vmem:[#allocation22_spill] sm:$0xff] %v9034_v29  ;;  %v1711_v10 = vsel %vm1599_vm7, %v1708_v61, %v12879_v11  ;;  %v12882_v20 = vrot.slane %v12881_v52, 2  ;;  %v12884_v16 = vrot.slane %v12883_v53, 2  ;;  %v1731_v11 = vrot.slane %v9001_v23, 2 }
 0x1ea   : > { %12864 = vst [vmem:[#allocation53_spill] sm:$0xff] %v9040_v31  ;;  %v1718_v39 = vsel %vm1599_vm7, %v1715_v49, %v12880_v13  ;;  %v1723_v61 = vsel %vm1599_vm7, %v1720_v28, %v1722_v40  ;;  %v1734_v54 = vrot.slane %v9005_v5, 2  ;;  %v1738_v44 = vrot.slane %v9010_v30, 2 }
 0x1eb   : > { %12869 = vst [vmem:[#allocation46_spill] sm:$0xff] %v9049_v26  ;;  %v1730_v7 = vsel %vm1599_vm7, %v12884_v16, %v12882_v20  ;;  %v1740_v49 = vrot.slane %v9015_v57, 2  ;;  %v12885_v51 = vrot.slane %v8992_v33, 2  ;;  %v1748_v2 = vrot.slane %v9020_v1, 2  ;;  %v12888_v1 = vld [vmem:[#allocation39_spill] sm:$0xff]  ;;  %v12890_v33 = vld [vmem:[#allocation40_spill] sm:$0xff] }
 0x1ec   : > { %12871 = vst [vmem:[#allocation92_spill] sm:$0xff] %v9053_v46  ;;  %v1754_v24 = vrot.slane %v9030_v19, 2  ;;  %v1755_v16 = vrot.slane %v9034_v29, 2  ;;  %v1757_v20 = vrot.slane %v9040_v31, 2  ;;  %v1761_v5 = vrot.slane %v9049_v26, 2 }
 0x1ed   : > { %12874 = vst [vmem:[#allocation85_spill] sm:$0xff] %v9057_v63  ;;  %v1725_v13 = vsel %vm1599_vm7, %v1722_v40, %v12885_v51  ;;  %v1762_v30 = vrot.slane %v9053_v46, 2  ;;  %v12886_v57 = vrot.slane %v12883_v53, 2  ;;  %v12887_v40 = vrot.slane %v12881_v52, 2 }
 0x1ee   : > { %v1764_v19 = vrot.slane %v9057_v63, 2  ;;  %v12889_v31 = vrot.slane %v12888_v1, 2  ;;  %v12891_v26 = vrot.slane %v12890_v33, 2  ;;  %v12896_v63 = vrot.slane %v12895_v42, 2 }
 0x1ef   : > { %v1728_v23 = vsel %vm1599_vm7, %v1726_v15, %v12886_v57  ;;  %v1732_v51 = vsel %vm1599_vm7, %v12887_v40, %v1731_v11  ;;  %v12893_v15 = vld [vmem:[#allocation47_spill] sm:$0xff]  ;;  %v12898_v1 = vrot.slane %v12897_v0, 2  ;;  %v1756_v32 = vsel %vm1599_vm7, %v1754_v24, %v1755_v16 }
 0x1f0   : > { %v1735_v28 = vsel %vm1599_vm7, %v12889_v31, %v1734_v54  ;;  %v1737_v46 = vsel %vm1599_vm7, %v1734_v54, %v12891_v26  ;;  %v12892_v53 = vmov %v12891_v26  ;;  %v12894_v52 = vrot.slane %v12893_v15, 2 }
 0x1f1   : > { %v1739_v57 = vsel %vm1599_vm7, %v12892_v53, %v1738_v44  ;;  %v1749_v29 = vsel %vm1599_vm7, %v12896_v63, %v1748_v2  ;;  %v1751_v31 = vsel %vm1599_vm7, %v1748_v2, %v12898_v1  ;;  %v9176_v26 = vmax.f32 %v8882_v21, %v9064_v59 }
 0x1f2   : > { %v1742_v40 = vsel %vm1599_vm7, %v1740_v49, %v12894_v52  ;;  %v1758_v53 = vsel %vm1599_vm7, %v1755_v16, %v1757_v20  ;;  %v12899_v54 = vrot.slane %v9045_v60, 2  ;;  %v1763_v49 = vsel %vm1599_vm7, %v1761_v5, %v1762_v30  ;;  %v12914_v16 = vld [vmem:[#allocation51_spill] sm:$0xff] }
 0x1f3   : > { %v9185_v63 = vmax.f32 %v8886_v45, %v9068_v55  ;;  %v1765_v0 = vsel %vm1599_vm7, %v1762_v30, %v1764_v19  ;;  %v12900_v24 = vrot.slane %v9061_v47, 2  ;;  %v9193_v21 = vmax.f32 %v8891_v9, %v9073_v43 }
 0x1f4   : > { %v1760_v52 = vsel %vm1599_vm7, %v1757_v20, %v12899_v54  ;;  %v12901_v1 = vrot.slane %v8895_v17, 2  ;;  %v9202_v5 = vmax.f32 %v8899_v41, %v9076_v6  ;;  %v9206_v45 = vmax.f32 %v8904_v62, %v9080_v3  ;;  %v12907_v62 = vld [vmem:[#allocation44_spill] sm:$0xff] }
 0x1f5   : > { %v1767_v2 = vsel %vm1599_vm7, %v1764_v19, %v12900_v24  ;;  %v9210_v30 = vmax.f32 %v8908_v56, %v9085_v25  ;;  %v12905_v9 = vrot.slane %v8912_v14, 2  ;;  %v9221_v55 = vmax.f32 %v8920_v35, %v1695_v34  ;;  %v12910_v56 = vld [vmem:[#allocation43_spill] sm:$0xff]  ;;  %v12912_v25 = vld [vmem:[#allocation52_spill] sm:$0xff]  ;;  %v12924_v24 = vld [vmem:[#allocation97_spill] sm:$0xff] }
 0x1f6   : > { %v9198_v59 = vmax.f32 %v8895_v17, %v12901_v1  ;;  %12902 = vst [vmem:[#allocation93_spill] sm:$0xff] %v9202_v5  ;;  %v9218_v17 = vmax.f32 %v8916_v50, %v1693_v37  ;;  %v9224_v41 = vmax.f32 %v8924_v18, %v1697_v48  ;;  %v12908_v43 = vrot.slane %v12907_v62, 2  ;;  %v12916_v37 = vld [vmem:[#allocation36_spill] sm:$0xff]  ;;  %v12918_v18 = vld [vmem:[#allocation34_spill] sm:$0xff] }
 0x1f7   : > { %12903 = vst [vmem:[#allocation86_spill] sm:$0xff] %v9206_v45  ;;  %v9215_v19 = vmax.f32 %v8912_v14, %v12905_v9  ;;  %v9232_v3 = vmax.f32 %v12910_v56, %v1700_v4  ;;  %v9235_v14 = vmax.f32 %v12912_v25, %v1702_v58  ;;  %v9238_v50 = vmax.f32 %v12914_v16, %v1704_v27  ;;  %v12920_v20 = vld [vmem:[#allocation8_spill] sm:$0xff]  ;;  %v12930_v56 = vld [vmem:[#allocation98_spill] sm:$0xff]  ;;  %v12932_v25 = vld [vmem:[#allocation89_spill] sm:$0xff] }
 0x1f8   : > { %12904 = vst [vmem:[#allocation94_spill] sm:$0xff] %v9210_v30  ;;  %v9229_v6 = vmax.f32 %v12907_v62, %v12908_v43  ;;  %v12917_v35 = vrot.slane %v12916_v37, 2  ;;  %v9246_v48 = vmax.f32 %v12918_v18, %v1707_v8  ;;  %v9249_v15 = vmax.f32 %v12920_v20, %v1709_v36  ;;  %v12922_v54 = vld [vmem:[#allocation96_spill] sm:$0xff]  ;;  %v12928_v62 = vld [vmem:[#allocation41_spill] sm:$0xff] }
 0x1f9   : > { %12906 = vst [vmem:[#allocation95_spill] sm:$0xff] %v9224_v41  ;;  %v9252_v4 = vmax.f32 %v12922_v54, %v1711_v10  ;;  %v12925_v58 = vrot.slane %v12924_v24, 2  ;;  %v12926_v27 = vld [vmem:[#allocation88_spill] sm:$0xff]  ;;  %v9263_v43 = vmax.f32 %v12928_v62, %v1716_v12  ;;  %v9266_v8 = vmax.f32 %v12930_v56, %v1718_v39  ;;  %v12935_v10 = vld [vmem:[#allocation45_spill] sm:$0xff]  ;;  %v12941_v54 = vld [vmem:[#allocation90_spill] sm:$0xff] }
 0x1fa   : > { %12909 = vst [vmem:[#allocation40_spill] sm:$0xff] %v9229_v6  ;;  %v9243_v34 = vmax.f32 %v12916_v37, %v12917_v35  ;;  %v9260_v9 = vmax.f32 %v12926_v27, %v1714_v38  ;;  %v12933_v36 = vrot.slane %v12932_v25, 2  ;;  %v9274_v37 = vmax.f32 %v12935_v10, %v1721_v22  ;;  %v12937_v35 = vld [vmem:[#allocation99_spill] sm:$0xff]  ;;  %v12939_v20 = vld [vmem:[#allocation49_spill] sm:$0xff]  ;;  %v12946_v27 = vld [vmem:[#allocation10_spill] sm:$0xff] }
 0x1fb   : > { %12911 = vst [vmem:[#allocation47_spill] sm:$0xff] %v9232_v3  ;;  %v9257_v1 = vmax.f32 %v12924_v24, %v12925_v58  ;;  %v9277_v18 = vmax.f32 %v12937_v35, %v1723_v61  ;;  %v9280_v38 = vmax.f32 %v12939_v20, %v1725_v13  ;;  %v12942_v12 = vrot.slane %v12941_v54, 2  ;;  %v12944_v39 = vld [vmem:[#allocation91_spill] sm:$0xff] }
 0x1fc   : > { %12913 = vst [vmem:[#allocation56_spill] sm:$0xff] %v9235_v14  ;;  %v9271_v16 = vmax.f32 %v12932_v25, %v12933_v36  ;;  %v9288_v58 = vmax.f32 %v12944_v39, %v1728_v23  ;;  %v9291_v62 = vmax.f32 %v12946_v27, %v1730_v7  ;;  %v12948_v56 = vld [vmem:[#allocation11_spill] sm:$0xff]  ;;  %v12950_v25 = vld [vmem:[#allocation9_spill] sm:$0xff]  ;;  %v9306_v20 = vmax.f32 %v12890_v33, %v1739_v57  ;;  %v12957_v23 = vld [vmem:[#allocation32_spill] sm:$0xff] }
 0x1fd   : > { %12915 = vst [vmem:[#allocation57_spill] sm:$0xff] %v9238_v50  ;;  %v9285_v24 = vmax.f32 %v12941_v54, %v12942_v12  ;;  %v9294_v22 = vmax.f32 %v12948_v56, %v1732_v51  ;;  %v9297_v61 = vmax.f32 %v12950_v25, %v1731_v11  ;;  %v12952_v36 = vld [vmem:[#allocation39_spill] sm:$0xff]  ;;  %v9309_v54 = vmax.f32 %v12957_v23, %v1738_v44  ;;  %v12959_v7 = vld [vmem:[#allocation21_spill] sm:$0xff]  ;;  %v12961_v51 = vld [vmem:[#allocation28_spill] sm:$0xff] }
 0x1fe   : > { %12919 = vst [vmem:[#allocation44_spill] sm:$0xff] %v9246_v48  ;;  %v9300_v13 = vmax.f32 %v12952_v36, %v1735_v28  ;;  %v12954_v10 = vld [vmem:[#allocation7_spill] sm:$0xff]  ;;  %v9312_v12 = vmax.f32 %v12959_v7, %v1742_v40  ;;  %v12962_v39 = vrot.slane %v12961_v51, 2  ;;  %v9320_v28 = vmax.f32 %v12895_v42, %v1749_v29  ;;  %v12965_v27 = vld [vmem:[#allocation17_spill] sm:$0xff]  ;;  %v12970_v44 = vld [vmem:[#allocation48_spill] sm:$0xff] }
 0x1ff   : > { %12921 = vst [vmem:[#allocation43_spill] sm:$0xff] %v9249_v15  ;;  %v9303_v35 = vmax.f32 %v12954_v10, %v1737_v46  ;;  %v9323_v46 = vmax.f32 %v12965_v27, %v1751_v31  ;;  %v12967_v56 = vld [vmem:[#allocation35_spill] sm:$0xff]  ;;  %v9331_v25 = vmax.f32 %v12970_v44, %v1756_v32  ;;  %v12972_v40 = vld [vmem:[#allocation22_spill] sm:$0xff]  ;;  %v12974_v10 = vld [vmem:[#allocation53_spill] sm:$0xff]  ;;  %v2209_v42 = vrot.slane %v9176_v26, 1 }
 0x200   : > { %12923 = vst [vmem:[#allocation52_spill] sm:$0xff] %v9252_v4  ;;  %v9317_v11 = vmax.f32 %v12961_v51, %v12962_v39  ;;  %v12968_v33 = vrot.slane %v12967_v56, 2  ;;  %v9334_v36 = vmax.f32 %v12972_v40, %v1758_v53  ;;  %v9337_v23 = vmax.f32 %v12974_v10, %v1760_v52  ;;  %v12980_v10 = vld [vmem:[#allocation92_spill] sm:$0xff] }
 0x201   : > { %12927 = vst [vmem:[#allocation51_spill] sm:$0xff] %v9260_v9  ;;  %v2210_v29 = vrot.slane %v9185_v63, 1  ;;  %v2212_v31 = vrot.slane %v9193_v21, 1  ;;  %v2216_v51 = vrot.slane %v9202_v5, 1  ;;  %v2217_v39 = vrot.slane %v9206_v45, 1  ;;  %v12982_v45 = vld [vmem:[#allocation85_spill] sm:$0xff] }
 0x202   : > { %12929 = vst [vmem:[#allocation36_spill] sm:$0xff] %v9263_v43  ;;  %v9328_v57 = vmax.f32 %v12967_v56, %v12968_v33  ;;  %v2219_v32 = vrot.slane %v9210_v30, 1  ;;  %v12976_v27 = vrot.slane %v9045_v60, 2  ;;  %v12978_v56 = vld [vmem:[#allocation46_spill] sm:$0xff]  ;;  %v2223_v44 = vrot.slane %v9218_v17, 1 }
 0x203   : > { %12931 = vst [vmem:[#allocation34_spill] sm:$0xff] %v9266_v8  ;;  %v9353_v33 = vmax.f32 %v12978_v56, %v1763_v49  ;;  %v2224_v40 = vrot.slane %v9221_v55, 1  ;;  %v9358_v7 = vmax.f32 %v12980_v10, %v1765_v0  ;;  %v9361_v5 = vmax.f32 %v12982_v45, %v1767_v2 }
 0x204   : > { %12934 = vst [vmem:[#allocation8_spill] sm:$0xff] %v9271_v16  ;;  %v9350_v52 = vmax.f32 %v9045_v60, %v12976_v27  ;;  %v2226_v53 = vrot.slane %v9224_v41, 1  ;;  %v12984_v60 = vrot.slane %v9061_v47, 2  ;;  %v9371_v49 = vsel %vm1066_vm6, %v2209_v42, %v2210_v29 }
 0x205   : > { %12936 = vst [vmem:[#allocation96_spill] sm:$0xff] %v9274_v37  ;;  %v9374_v56 = vsel %vm1066_vm6, %v2210_v29, %v2212_v31  ;;  %v12986_v0 = vrot.slane %v9198_v59, 1  ;;  %v9382_v45 = vsel %vm1066_vm6, %v2216_v51, %v2217_v39  ;;  %v9385_v10 = vsel %vm1066_vm6, %v2217_v39, %v2219_v32 }
 0x206   : > { %12938 = vst [vmem:[#allocation97_spill] sm:$0xff] %v9277_v18  ;;  %v9368_v27 = vmax.f32 %v9061_v47, %v12984_v60  ;;  %v12987_v47 = vrot.slane %v9215_v19, 1  ;;  %v2230_v42 = vrot.slane %v9232_v3, 1  ;;  %v9394_v29 = vsel %vm1066_vm6, %v2223_v44, %v2224_v40 }
 0x207   : > { %12940 = vst [vmem:[#allocation88_spill] sm:$0xff] %v9280_v38  ;;  %v9379_v2 = vsel %vm1066_vm6, %v2212_v31, %v12986_v0  ;;  %v2231_v30 = vrot.slane %v9235_v14, 1  ;;  %v2233_v31 = vrot.slane %v9238_v50, 1  ;;  %v9400_v0 = vsel %vm1066_vm6, %v2224_v40, %v2226_v53 }
 0x208   : > { %12943 = vst [vmem:[#allocation41_spill] sm:$0xff] %v9285_v24  ;;  %v9390_v60 = vsel %vm1066_vm6, %v2219_v32, %v12987_v47  ;;  %v12988_v39 = vrot.slane %v9229_v6, 1  ;;  %v2237_v32 = vrot.slane %v9246_v48, 1  ;;  %v2238_v47 = vrot.slane %v9249_v15, 1 }
 0x209   : > { %12945 = vst [vmem:[#allocation98_spill] sm:$0xff] %v9288_v58  ;;  %v2240_v44 = vrot.slane %v9252_v4, 1  ;;  %v2244_v50 = vrot.slane %v9260_v9, 1  ;;  %v2245_v51 = vrot.slane %v9263_v43, 1  ;;  %v2247_v40 = vrot.slane %v9266_v8, 1 }
 0x20a   : > { %12947 = vst [vmem:[#allocation89_spill] sm:$0xff] %v9291_v62  ;;  %v9405_v41 = vsel %vm1066_vm6, %v2226_v53, %v12988_v39  ;;  %v2251_v6 = vrot.slane %v9274_v37, 1  ;;  %v2252_v53 = vrot.slane %v9277_v18, 1  ;;  %v9418_v39 = vsel %vm1066_vm6, %v2230_v42, %v2231_v30 }
 0x20b   : > { %12949 = vst [vmem:[#allocation45_spill] sm:$0xff] %v9294_v22  ;;  %v9421_v15 = vsel %vm1066_vm6, %v2231_v30, %v2233_v31  ;;  %v2254_v14 = vrot.slane %v9280_v38, 1  ;;  %v12989_v43 = vrot.slane %v9243_v34, 1  ;;  %v2258_v3 = vrot.slane %v9288_v58, 1 }
 0x20c   : > { %12951 = vst [vmem:[#allocation99_spill] sm:$0xff] %v9297_v61  ;;  %v2259_v37 = vrot.slane %v9291_v62, 1  ;;  %v2261_v18 = vrot.slane %v9294_v22, 1  ;;  %v2239_v42 = vsel %vm1066_vm6, %v2237_v32, %v2238_v47  ;;  %v2241_v30 = vsel %vm1066_vm6, %v2238_v47, %v2240_v44 }
 0x20d   : > { %12953 = vst [vmem:[#allocation49_spill] sm:$0xff] %v9300_v13  ;;  %v9428_v8 = vsel %vm1066_vm6, %v2233_v31, %v12989_v43  ;;  %v12990_v4 = vrot.slane %v9257_v1, 1  ;;  %v2246_v48 = vsel %vm1066_vm6, %v2244_v50, %v2245_v51  ;;  %v2248_v43 = vsel %vm1066_vm6, %v2245_v51, %v2247_v40 }
 0x20e   : > { %12955 = vst [vmem:[#allocation90_spill] sm:$0xff] %v9303_v35  ;;  %v12991_v31 = vrot.slane %v9271_v16, 1  ;;  %v2253_v22 = vsel %vm1066_vm6, %v2251_v6, %v2252_v53  ;;  %v2255_v32 = vsel %vm1066_vm6, %v2252_v53, %v2254_v14  ;;  %v12992_v47 = vrot.slane %v9285_v24, 1  ;;  %v12996_v24 = vld [vmem:[#allocation54_spill] sm:$0xff] }
 0x20f   : > { %12956 = vst [vmem:[#allocation91_spill] sm:$0xff] %v9306_v20  ;;  %v2243_v38 = vsel %vm1066_vm6, %v2240_v44, %v12990_v4  ;;  %v2265_v4 = vrot.slane %v9300_v13, 1  ;;  %v2266_v44 = vrot.slane %v9303_v35, 1  ;;  %v2260_v50 = vsel %vm1066_vm6, %v2258_v3, %v2259_v37  ;;  %v12994_v13 = vld [vmem:[#allocation55_spill] sm:$0xff] }
 0x210   : > { %12958 = vst [vmem:[#allocation10_spill] sm:$0xff] %v9309_v54  ;;  %v2250_v62 = vsel %vm1066_vm6, %v2247_v40, %v12991_v31  ;;  %v2257_v58 = vsel %vm1066_vm6, %v2254_v14, %v12992_v47  ;;  %v2262_v51 = vsel %vm1066_vm6, %v2259_v37, %v2261_v18  ;;  %v2268_v9 = vrot.slane %v9306_v20, 1 }
 0x211   : > { %12960 = vst [vmem:[#allocation11_spill] sm:$0xff] %v9312_v12  ;;  %v12993_v6 = vrot.slane %v9297_v61, 1  ;;  %v2272_v31 = vrot.slane %v9312_v12, 1  ;;  %v2279_v47 = vrot.slane %v9320_v28, 1  ;;  %v2280_v35 = vrot.slane %v9323_v46, 1 }
 0x212   : > { %12963 = vst [vmem:[#allocation9_spill] sm:$0xff] %v9317_v11  ;;  %v2286_v37 = vrot.slane %v9331_v25, 1  ;;  %v2287_v20 = vrot.slane %v9334_v36, 1  ;;  %v2267_v40 = vsel %vm1066_vm6, %v2265_v4, %v2266_v44  ;;  %v12995_v61 = vrot.slane %v12994_v13, 1 }
 0x213   : > { %12964 = vst [vmem:[#allocation39_spill] sm:$0xff] %v9320_v28  ;;  %v2264_v53 = vsel %vm1066_vm6, %v2261_v18, %v12993_v6  ;;  %v12997_v18 = vrot.slane %v12996_v24, 1  ;;  %v2289_v14 = vrot.slane %v9337_v23, 1  ;;  %v12998_v3 = vrot.slane %v9309_v54, 1 }
 0x214   : > { %12966 = vst [vmem:[#allocation7_spill] sm:$0xff] %v9323_v46  ;;  %v2269_v46 = vsel %vm1066_vm6, %v2266_v44, %v2268_v9  ;;  %v2294_v4 = vrot.slane %v9358_v7, 1  ;;  %v2296_v44 = vrot.slane %v9361_v5, 1  ;;  %v13004_v24 = vrot.slane %v9328_v57, 1 }
 0x215   : > { %12969 = vst [vmem:[#allocation32_spill] sm:$0xff] %v9328_v57  ;;  %v2276_v6 = vsel %vm1066_vm6, %v12997_v18, %v12995_v61  ;;  %v12999_v12 = vmov %v12997_v18  ;;  %v13000_v61 = vrot.slane %v9317_v11, 1  ;;  %v13001_v18 = vrot.slane %v12994_v13, 1  ;;  %v13026_v57 = vld [vmem:[#allocation34_spill] sm:$0xff] }
 0x216   : > { %12971 = vst [vmem:[#allocation21_spill] sm:$0xff] %v9331_v25  ;;  %v2271_v25 = vsel %vm1066_vm6, %v2268_v9, %v12998_v3  ;;  %v2274_v16 = vsel %vm1066_vm6, %v2272_v31, %v12999_v12  ;;  %v2281_v9 = vsel %vm1066_vm6, %v2279_v47, %v2280_v35  ;;  %v13002_v3 = vld [vmem:[#allocation58_spill] sm:$0xff]  ;;  %v2288_v11 = vsel %vm1066_vm6, %v2286_v37, %v2287_v20 }
 0x217   : > { %12973 = vst [vmem:[#allocation28_spill] sm:$0xff] %v9334_v36  ;;  %v2293_v36 = vrot.slane %v9353_v33, 1  ;;  %v2278_v28 = vsel %vm1066_vm6, %v13001_v18, %v13000_v61  ;;  %v2290_v61 = vsel %vm1066_vm6, %v2287_v20, %v2289_v14  ;;  %v13006_v18 = vrot.slane %v9350_v52, 1  ;;  %v13008_v20 = vld [vmem:[#allocation93_spill] sm:$0xff] }
 0x218   : > { %12975 = vst [vmem:[#allocation17_spill] sm:$0xff] %v9337_v23  ;;  %v2484_v47 = vmax.f32 %v9176_v26, %v9371_v49 }
 0x219   : > { %12977 = vst [vmem:[#allocation35_spill] sm:$0xff] %v9350_v52  ;;  %v2292_v23 = vsel %vm1066_vm6, %v2289_v14, %v13006_v18  ;;  %v2297_v14 = vsel %vm1066_vm6, %v2294_v4, %v2296_v44  ;;  %v13009_v18 = vrot.slane %v9368_v27, 1 }
 0x21a   : > { %12979 = vst [vmem:[#allocation48_spill] sm:$0xff] %v9353_v33  ;;  %v13003_v33 = vrot.slane %v13002_v3, 1 }
 0x21b   : > { %12981 = vst [vmem:[#allocation22_spill] sm:$0xff] %v9358_v7  ;;  %v2299_v26 = vsel %vm1066_vm6, %v2296_v44, %v13009_v18  ;;  %v13014_v44 = vld [vmem:[#allocation40_spill] sm:$0xff]  ;;  %v13016_v18 = vld [vmem:[#allocation47_spill] sm:$0xff] }
 0x21c   : > { %12983 = vst [vmem:[#allocation53_spill] sm:$0xff] %v9361_v5  ;;  %v2283_v7 = vsel %vm1066_vm6, %v2280_v35, %v13003_v33  ;;  %v13005_v12 = vmov %v13003_v33  ;;  %v2485_v35 = vmax.f32 %v9185_v63, %v9374_v56  ;;  %v2295_v33 = vsel %vm1066_vm6, %v2293_v36, %v2294_v4  ;;  %v13010_v63 = vld [vmem:[#allocation86_spill] sm:$0xff]  ;;  %v13013_v4 = vld [vmem:[#allocation95_spill] sm:$0xff] }
 0x21d   : > { %12985 = vst [vmem:[#allocation46_spill] sm:$0xff] %v9368_v27  ;;  %v2285_v31 = vsel %vm1066_vm6, %v13005_v12, %v13004_v24  ;;  %v2486_v5 = vmax.f32 %v9193_v21, %v9379_v2  ;;  %v13007_v24 = vrot.slane %v9198_v59, 1  ;;  %v2488_v12 = vmax.f32 %v13008_v20, %v9382_v45  ;;  %v13011_v36 = vld [vmem:[#allocation94_spill] sm:$0xff]  ;;  %v13022_v27 = vld [vmem:[#allocation52_spill] sm:$0xff] }
 0x21e   : > { %v2489_v49 = vmax.f32 %v13010_v63, %v9385_v10  ;;  %v2490_v56 = vmax.f32 %v13011_v36, %v9390_v60  ;;  %v13012_v21 = vrot.slane %v9215_v19, 1  ;;  %v2493_v45 = vmax.f32 %v9221_v55, %v9400_v0  ;;  %v13017_v63 = vld [vmem:[#allocation56_spill] sm:$0xff] }
 0x21f   : > { %v2487_v37 = vmax.f32 %v9198_v59, %v13007_v24  ;;  %v2492_v59 = vmax.f32 %v9218_v17, %v9394_v29  ;;  %v2494_v24 = vmax.f32 %v13013_v4, %v9405_v41  ;;  %v13015_v20 = vrot.slane %v13014_v44, 1  ;;  %v13020_v29 = vld [vmem:[#allocation44_spill] sm:$0xff]  ;;  %v13021_v41 = vld [vmem:[#allocation43_spill] sm:$0xff] }
 0x220   : > { %v2491_v2 = vmax.f32 %v9215_v19, %v13012_v21  ;;  %v2496_v60 = vmax.f32 %v13016_v18, %v9418_v39  ;;  %v2497_v36 = vmax.f32 %v13017_v63, %v9421_v15  ;;  %v13018_v19 = vld [vmem:[#allocation57_spill] sm:$0xff]  ;;  %v13019_v17 = vrot.slane %v9243_v34, 1  ;;  %v13025_v15 = vld [vmem:[#allocation36_spill] sm:$0xff] }
 0x221   : > { %v2495_v10 = vmax.f32 %v13014_v44, %v13015_v20  ;;  %v2498_v21 = vmax.f32 %v13018_v19, %v9428_v8  ;;  %v2500_v0 = vmax.f32 %v13020_v29, %v2239_v42  ;;  %v2501_v4 = vmax.f32 %v13021_v41, %v2241_v30  ;;  %v13024_v20 = vld [vmem:[#allocation51_spill] sm:$0xff]  ;;  %v13027_v19 = vld [vmem:[#allocation8_spill] sm:$0xff]  ;;  %v13030_v29 = vld [vmem:[#allocation97_spill] sm:$0xff] }
 0x222   : > { %v2499_v55 = vmax.f32 %v9243_v34, %v13019_v17  ;;  %v2502_v52 = vmax.f32 %v13022_v27, %v2243_v38  ;;  %v13023_v44 = vrot.slane %v9257_v1, 1  ;;  %v2504_v18 = vmax.f32 %v13024_v20, %v2246_v48  ;;  %v13029_v17 = vld [vmem:[#allocation96_spill] sm:$0xff]  ;;  %v13032_v27 = vld [vmem:[#allocation41_spill] sm:$0xff] }
 0x223   : > { %v2505_v63 = vmax.f32 %v13025_v15, %v2248_v43  ;;  %v2506_v8 = vmax.f32 %v13026_v57, %v2250_v62  ;;  %v13028_v3 = vrot.slane %v13027_v19, 1  ;;  %v2508_v42 = vmax.f32 %v13029_v17, %v2253_v22  ;;  %v13031_v41 = vld [vmem:[#allocation88_spill] sm:$0xff]  ;;  %v13035_v20 = vld [vmem:[#allocation89_spill] sm:$0xff]  ;;  %v13037_v57 = vld [vmem:[#allocation99_spill] sm:$0xff] }
 0x224   : > { %v2503_v39 = vmax.f32 %v9257_v1, %v13023_v44  ;;  %v2509_v30 = vmax.f32 %v13030_v29, %v2255_v32  ;;  %v2510_v38 = vmax.f32 %v13031_v41, %v2257_v58  ;;  %v13033_v13 = vrot.slane %v13032_v27, 1  ;;  %v13034_v44 = vld [vmem:[#allocation98_spill] sm:$0xff]  ;;  %v13036_v15 = vld [vmem:[#allocation45_spill] sm:$0xff]  ;;  %v13042_v58 = vld [vmem:[#allocation91_spill] sm:$0xff] }
 0x225   : > { %v2507_v34 = vmax.f32 %v13027_v19, %v13028_v3  ;;  %v2512_v48 = vmax.f32 %v13034_v44, %v2260_v50  ;;  %v2513_v43 = vmax.f32 %v13035_v20, %v2262_v51  ;;  %v2514_v62 = vmax.f32 %v13036_v15, %v2264_v53  ;;  %v13040_v22 = vld [vmem:[#allocation49_spill] sm:$0xff]  ;;  %v13041_v32 = vld [vmem:[#allocation90_spill] sm:$0xff]  ;;  %v13046_v50 = vld [vmem:[#allocation11_spill] sm:$0xff] }
 0x226   : > { %v2511_v1 = vmax.f32 %v13032_v27, %v13033_v13  ;;  %v13038_v54 = vrot.slane %v13037_v57, 1  ;;  %v2516_v19 = vmax.f32 %v13040_v22, %v2267_v40  ;;  %v2517_v17 = vmax.f32 %v13041_v32, %v2269_v46  ;;  %v13043_v41 = vld [vmem:[#allocation10_spill] sm:$0xff]  ;;  %v13048_v20 = vld [vmem:[#allocation55_spill] sm:$0xff] }
 0x227   : > { %v2518_v29 = vmax.f32 %v13042_v58, %v2271_v25  ;;  %v13044_v13 = vrot.slane %v13043_v41, 1  ;;  %v2520_v51 = vmax.f32 %v13046_v50, %v2274_v16  ;;  %v13047_v44 = vld [vmem:[#allocation54_spill] sm:$0xff]  ;;  %v2522_v15 = vmax.f32 %v13048_v20, %v2278_v28  ;;  %v13052_v40 = vld [vmem:[#allocation39_spill] sm:$0xff]  ;;  %v13058_v16 = vld [vmem:[#allocation21_spill] sm:$0xff] }
 0x228   : > { %v9568_v3 = vmax.f32 %v13037_v57, %v13038_v54  ;;  %v2521_v53 = vmax.f32 %v13047_v44, %v2276_v6  ;;  %v13049_v54 = vld [vmem:[#allocation9_spill] sm:$0xff]  ;;  %v2524_v46 = vmax.f32 %v13052_v40, %v2281_v9  ;;  %v13053_v22 = vld [vmem:[#allocation7_spill] sm:$0xff]  ;;  %v13054_v32 = vld [vmem:[#allocation58_spill] sm:$0xff]  ;;  %v2528_v6 = vmax.f32 %v13058_v16, %v2288_v11 }
 0x229   : > { %v9576_v27 = vmax.f32 %v13043_v41, %v13044_v13  ;;  %v13050_v57 = vrot.slane %v13049_v54, 1  ;;  %v2525_v25 = vmax.f32 %v13053_v22, %v2283_v7  ;;  %v2526_v58 = vmax.f32 %v13054_v32, %v2285_v31  ;;  %v13055_v13 = vld [vmem:[#allocation32_spill] sm:$0xff]  ;;  %v13060_v44 = vld [vmem:[#allocation17_spill] sm:$0xff]  ;;  %v13070_v11 = vld [vmem:[#allocation62_spill] sm:$0xff] }
 0x22a   : > { %13039 = vst [vmem:[#allocation92_spill] sm:$0xff] %v9568_v3  ;;  %v13056_v41 = vrot.slane %v13055_v13, 1  ;;  %v13059_v50 = vld [vmem:[#allocation28_spill] sm:$0xff]  ;;  %v2530_v20 = vmax.f32 %v13060_v44, %v2292_v23  ;;  %v13065_v7 = vld [vmem:[#allocation53_spill] sm:$0xff]  ;;  %v2595_v16 = vmax.f32 %v13070_v11, %v2487_v37  ;;  %v2598_v23 = vmax.f32 %v2486_v5, %v2490_v56 }
 0x22b   : > { %13045 = vst [vmem:[#allocation85_spill] sm:$0xff] %v9576_v27  ;;  %v9584_v3 = vmax.f32 %v13049_v54, %v13050_v57  ;;  %v2529_v28 = vmax.f32 %v13059_v50, %v2290_v61  ;;  %v13061_v54 = vld [vmem:[#allocation48_spill] sm:$0xff]  ;;  %v9604_v40 = vmax.f32 %v13065_v7, %v2299_v26  ;;  %v2596_v61 = vmax.f32 %v2484_v47, %v2488_v12 }
 0x22c   : > { %v9592_v27 = vmax.f32 %v13055_v13, %v13056_v41  ;;  %v9598_v57 = vmax.f32 %v13061_v54, %v2295_v33  ;;  %v13067_v31 = vld [vmem:[#allocation20_spill] sm:$0xff]  ;;  %v13069_v41 = vld [vmem:[#allocation61_spill] sm:$0xff]  ;;  %v2597_v50 = vmax.f32 %v2485_v35, %v2489_v49  ;;  %v2599_v44 = vmax.f32 %v2487_v37, %v2491_v2 }
 0x22d   : > { %13051 = vst [vmem:[#allocation93_spill] sm:$0xff] %v9584_v3  ;;  %v13063_v3 = vld [vmem:[#allocation22_spill] sm:$0xff]  ;;  %v2592_v22 = vmax.f32 %v13067_v31, %v2484_v47  ;;  %v13068_v32 = vld [vmem:[#allocation12_spill] sm:$0xff]  ;;  %v2600_v33 = vmax.f32 %v2488_v12, %v2492_v59  ;;  %v2601_v54 = vmax.f32 %v2489_v49, %v2493_v45  ;;  %v2606_v26 = vmax.f32 %v2494_v24, %v2498_v21 }
 0x22e   : > { %13057 = vst [vmem:[#allocation86_spill] sm:$0xff] %v9592_v27  ;;  %v9601_v9 = vmax.f32 %v13063_v3, %v2297_v14  ;;  %v2593_v13 = vmax.f32 %v13068_v32, %v2485_v35  ;;  %v2594_v27 = vmax.f32 %v13069_v41, %v2486_v5  ;;  %v2603_v14 = vmax.f32 %v2491_v2, %v2495_v10 }
 0x22f   : > { %13062 = vst [vmem:[#allocation94_spill] sm:$0xff] %v9598_v57  ;;  %v2602_v57 = vmax.f32 %v2490_v56, %v2494_v24  ;;  %v2604_v3 = vmax.f32 %v2492_v59, %v2496_v60  ;;  %v2607_v7 = vmax.f32 %v2495_v10, %v2499_v55  ;;  %v2609_v31 = vmax.f32 %v2497_v36, %v2501_v4 }
 0x230   : > { %13064 = vst [vmem:[#allocation95_spill] sm:$0xff] %v9601_v9  ;;  %v2605_v9 = vmax.f32 %v2493_v45, %v2497_v36  ;;  %v2610_v32 = vmax.f32 %v2498_v21, %v2502_v52  ;;  %v2611_v41 = vmax.f32 %v2499_v55, %v2503_v39  ;;  %v2612_v11 = vmax.f32 %v2500_v0, %v2504_v18 }
 0x231   : > { %13066 = vst [vmem:[#allocation40_spill] sm:$0xff] %v9604_v40  ;;  %v2608_v40 = vmax.f32 %v2496_v60, %v2500_v0  ;;  %v2613_v47 = vmax.f32 %v2501_v4, %v2505_v63  ;;  %v2614_v35 = vmax.f32 %v2502_v52, %v2506_v8  ;;  %v2615_v5 = vmax.f32 %v2503_v39, %v2507_v34  ;;  %v13072_v24 = vld [vmem:[#allocation92_spill] sm:$0xff] }
 0x232   : > { %v2616_v37 = vmax.f32 %v2504_v18, %v2508_v42  ;;  %v2617_v12 = vmax.f32 %v2505_v63, %v2509_v30  ;;  %v2618_v49 = vmax.f32 %v2506_v8, %v2510_v38  ;;  %v9610_v56 = vmax.f32 %v2507_v34, %v2511_v1  ;;  %v13074_v39 = vld [vmem:[#allocation85_spill] sm:$0xff] }
 0x233   : > { %v2620_v2 = vmax.f32 %v2508_v42, %v2512_v48  ;;  %v2621_v59 = vmax.f32 %v2509_v30, %v2513_v43  ;;  %v2622_v45 = vmax.f32 %v2510_v38, %v2514_v62  ;;  %v2623_v10 = vmax.f32 %v2511_v1, %v13072_v24  ;;  %v13089_v24 = vld [vmem:[#allocation63_spill] sm:$0xff] }
 0x234   : > { %13071 = vst [vmem:[#allocation47_spill] sm:$0xff] %v9610_v56  ;;  %v2624_v60 = vmax.f32 %v2512_v48, %v2516_v19  ;;  %v2625_v36 = vmax.f32 %v2513_v43, %v2517_v17  ;;  %v2626_v21 = vmax.f32 %v2514_v62, %v2518_v29  ;;  %v2628_v55 = vmax.f32 %v2516_v19, %v2520_v51  ;;  %v13073_v52 = vld [vmem:[#allocation93_spill] sm:$0xff] }
 0x235   : > { %v2629_v0 = vmax.f32 %v2517_v17, %v2521_v53  ;;  %v2630_v4 = vmax.f32 %v2518_v29, %v2522_v15  ;;  %v9615_v18 = vmax.f32 %v13074_v39, %v13073_v52  ;;  %v2632_v63 = vmax.f32 %v2520_v51, %v2524_v46  ;;  %v13085_v17 = vld [vmem:[#allocation27_spill] sm:$0xff]  ;;  %v13088_v52 = vld [vmem:[#allocation13_spill] sm:$0xff]  ;;  %v13090_v39 = vld [vmem:[#allocation64_spill] sm:$0xff] }
 0x236   : > { %v2633_v8 = vmax.f32 %v2521_v53, %v2525_v25  ;;  %v2634_v34 = vmax.f32 %v2522_v15, %v2526_v58  ;;  %v9617_v56 = vmax.f32 %v2524_v46, %v2528_v6  ;;  %v9619_v42 = vmax.f32 %v2525_v25, %v2529_v28  ;;  %v13079_v38 = vld [vmem:[#allocation94_spill] sm:$0xff]  ;;  %v13086_v51 = vld [vmem:[#allocation19_spill] sm:$0xff] }
 0x237   : > { %13075 = vst [vmem:[#allocation56_spill] sm:$0xff] %v9615_v18  ;;  %v9621_v30 = vmax.f32 %v2526_v58, %v2530_v20  ;;  %v9624_v1 = vmax.f32 %v2528_v6, %v13079_v38  ;;  %v13081_v48 = vld [vmem:[#allocation95_spill] sm:$0xff]  ;;  %v2692_v29 = vmax.f32 %v13085_v17, %v2592_v22  ;;  %v2693_v53 = vmax.f32 %v13086_v51, %v2593_v13  ;;  %v13087_v15 = vld [vmem:[#allocation14_spill] sm:$0xff]  ;;  %v13091_v6 = vld [vmem:[#allocation65_spill] sm:$0xff] }
 0x238   : > { %13076 = vst [vmem:[#allocation57_spill] sm:$0xff] %v9617_v56  ;;  %v9627_v43 = vmax.f32 %v2529_v28, %v13081_v48  ;;  %v13083_v62 = vld [vmem:[#allocation40_spill] sm:$0xff]  ;;  %v2694_v46 = vmax.f32 %v13087_v15, %v2594_v27  ;;  %v2695_v25 = vmax.f32 %v13088_v52, %v2595_v16  ;;  %v2696_v58 = vmax.f32 %v13089_v24, %v2596_v61 }
 0x239   : > { %13077 = vst [vmem:[#allocation44_spill] sm:$0xff] %v9619_v42  ;;  %v9630_v19 = vmax.f32 %v2530_v20, %v13083_v62  ;;  %v2698_v38 = vmax.f32 %v13091_v6, %v2598_v23  ;;  %v2700_v48 = vmax.f32 %v2592_v22, %v2600_v33  ;;  %v2702_v20 = vmax.f32 %v2594_v27, %v2602_v57 }
 0x23a   : > { %13078 = vst [vmem:[#allocation43_spill] sm:$0xff] %v9621_v30  ;;  %v2697_v30 = vmax.f32 %v13090_v39, %v2597_v50  ;;  %v2703_v62 = vmax.f32 %v2595_v16, %v2603_v14  ;;  %v2705_v17 = vmax.f32 %v2597_v50, %v2605_v9  ;;  %v2706_v42 = vmax.f32 %v2598_v23, %v2606_v26 }
 0x23b   : > { %13080 = vst [vmem:[#allocation52_spill] sm:$0xff] %v9624_v1  ;;  %v13092_v1 = vld [vmem:[#allocation66_spill] sm:$0xff]  ;;  %v2707_v51 = vmax.f32 %v2599_v44, %v2607_v7  ;;  %v2708_v56 = vmax.f32 %v2600_v33, %v2608_v40  ;;  %v2709_v15 = vmax.f32 %v2601_v54, %v2609_v31  ;;  %v2710_v18 = vmax.f32 %v2602_v57, %v2610_v32  ;;  %v13093_v16 = vld [vmem:[#allocation47_spill] sm:$0xff] }
 0x23c   : > { %13082 = vst [vmem:[#allocation51_spill] sm:$0xff] %v9627_v43  ;;  %v2699_v28 = vmax.f32 %v13092_v1, %v2599_v44  ;;  %v2701_v43 = vmax.f32 %v2593_v13, %v2601_v54  ;;  %v2711_v52 = vmax.f32 %v2603_v14, %v2611_v41  ;;  %v2712_v24 = vmax.f32 %v2604_v3, %v2612_v11 }
 0x23d   : > { %13084 = vst [vmem:[#allocation36_spill] sm:$0xff] %v9630_v19  ;;  %v2704_v19 = vmax.f32 %v2596_v61, %v2604_v3  ;;  %v2713_v39 = vmax.f32 %v2605_v9, %v2613_v47  ;;  %v2714_v6 = vmax.f32 %v2606_v26, %v2614_v35  ;;  %v2715_v1 = vmax.f32 %v2607_v7, %v2615_v5 }
 0x23e   : > { %v2716_v22 = vmax.f32 %v2608_v40, %v2616_v37  ;;  %v2717_v13 = vmax.f32 %v2609_v31, %v2617_v12  ;;  %v2718_v27 = vmax.f32 %v2610_v32, %v2618_v49  ;;  %v9641_v61 = vmax.f32 %v2611_v41, %v13093_v16  ;;  %v13096_v7 = vld [vmem:[#allocation56_spill] sm:$0xff] }
 0x23f   : > { %v2720_v50 = vmax.f32 %v2612_v11, %v2620_v2  ;;  %v2721_v23 = vmax.f32 %v2613_v47, %v2621_v59  ;;  %v2722_v44 = vmax.f32 %v2614_v35, %v2622_v45  ;;  %v9643_v33 = vmax.f32 %v2615_v5, %v2623_v10  ;;  %v13098_v41 = vld [vmem:[#allocation57_spill] sm:$0xff] }
 0x240   : > { %13094 = vst [vmem:[#allocation34_spill] sm:$0xff] %v9641_v61  ;;  %v2724_v54 = vmax.f32 %v2616_v37, %v2624_v60  ;;  %v2725_v57 = vmax.f32 %v2617_v12, %v2625_v36  ;;  %v2726_v14 = vmax.f32 %v2618_v49, %v2626_v21  ;;  %v2728_v3 = vmax.f32 %v2620_v2, %v2628_v55  ;;  %v13099_v11 = vld [vmem:[#allocation44_spill] sm:$0xff] }
 0x241   : > { %13095 = vst [vmem:[#allocation8_spill] sm:$0xff] %v9643_v33  ;;  %v2729_v9 = vmax.f32 %v2621_v59, %v2629_v0  ;;  %v2730_v26 = vmax.f32 %v2622_v45, %v2630_v4  ;;  %v9646_v40 = vmax.f32 %v2623_v10, %v13096_v7  ;;  %v2732_v31 = vmax.f32 %v2624_v60, %v2632_v63  ;;  %v13100_v35 = vld [vmem:[#allocation43_spill] sm:$0xff]  ;;  %v13108_v60 = vld [vmem:[#allocation4_spill] sm:$0xff] }
 0x242   : > { %v2733_v32 = vmax.f32 %v2625_v36, %v2633_v8  ;;  %v2734_v16 = vmax.f32 %v2626_v21, %v2634_v34  ;;  %v2736_v61 = vmax.f32 %v2628_v55, %v13098_v41  ;;  %v2737_v47 = vmax.f32 %v2629_v0, %v13099_v11  ;;  %v13101_v33 = vld [vmem:[#allocation52_spill] sm:$0xff]  ;;  %v13107_v45 = vld [vmem:[#allocation3_spill] sm:$0xff] }
 0x243   : > { %13097 = vst [vmem:[#allocation96_spill] sm:$0xff] %v9646_v40  ;;  %v9651_v5 = vmax.f32 %v2630_v4, %v13100_v35  ;;  %v9654_v37 = vmax.f32 %v2632_v63, %v13101_v33  ;;  %v13103_v12 = vld [vmem:[#allocation51_spill] sm:$0xff]  ;;  %v9663_v10 = vmax.f32 %v13107_v45, %v2692_v29  ;;  %v9666_v36 = vmax.f32 %v13108_v60, %v2693_v53  ;;  %v13110_v0 = vld [vmem:[#allocation16_spill] sm:$0xff] }
 0x244   : > { %v9657_v49 = vmax.f32 %v2633_v8, %v13103_v12  ;;  %v13105_v2 = vld [vmem:[#allocation36_spill] sm:$0xff]  ;;  %v13109_v21 = vld [vmem:[#allocation15_spill] sm:$0xff]  ;;  %v9672_v4 = vmax.f32 %v13110_v0, %v2695_v25  ;;  %v9674_v63 = vmax.f32 %v2692_v29, %v2696_v58  ;;  %v9676_v33 = vmax.f32 %v2693_v53, %v2697_v30 }
 0x245   : > { %13102 = vst [vmem:[#allocation97_spill] sm:$0xff] %v9654_v37  ;;  %v9660_v59 = vmax.f32 %v2634_v34, %v13105_v2  ;;  %v9669_v55 = vmax.f32 %v13109_v21, %v2694_v46  ;;  %v9678_v8 = vmax.f32 %v2694_v46, %v2698_v38  ;;  %v9680_v34 = vmax.f32 %v2695_v25, %v2699_v28 }
 0x246   : > { %13104 = vst [vmem:[#allocation88_spill] sm:$0xff] %v9657_v49  ;;  %v9682_v2 = vmax.f32 %v2696_v58, %v2700_v48  ;;  %v9684_v45 = vmax.f32 %v2697_v30, %v2701_v43  ;;  %v9686_v60 = vmax.f32 %v2698_v38, %v2702_v20  ;;  %v9688_v12 = vmax.f32 %v2699_v28, %v2703_v62 }
 0x247   : > { %13106 = vst [vmem:[#allocation41_spill] sm:$0xff] %v9660_v59  ;;  %v9690_v21 = vmax.f32 %v2700_v48, %v2704_v19  ;;  %v9692_v0 = vmax.f32 %v2701_v43, %v2705_v17  ;;  %v9694_v29 = vmax.f32 %v2702_v20, %v2706_v42  ;;  %v9696_v53 = vmax.f32 %v2703_v62, %v2707_v51 }
 0x248   : > { %13111 = vst [vmem:[#allocation98_spill] sm:$0xff] %v9688_v12  ;;  %v9698_v46 = vmax.f32 %v2704_v19, %v2708_v56  ;;  %v9700_v25 = vmax.f32 %v2705_v17, %v2709_v15  ;;  %v9702_v58 = vmax.f32 %v2706_v42, %v2710_v18  ;;  %v9704_v30 = vmax.f32 %v2707_v51, %v2711_v52  ;;  %v13122_v17 = vld [vmem:[#allocation34_spill] sm:$0xff] }
 0x249   : > { %v9706_v38 = vmax.f32 %v2708_v56, %v2712_v24  ;;  %v9708_v28 = vmax.f32 %v2709_v15, %v2713_v39  ;;  %v9710_v48 = vmax.f32 %v2710_v18, %v2714_v6  ;;  %v9712_v43 = vmax.f32 %v2711_v52, %v2715_v1 }
 0x24a   : > { %13112 = vst [vmem:[#allocation89_spill] sm:$0xff] %v9698_v46  ;;  %v9714_v20 = vmax.f32 %v2712_v24, %v2716_v22  ;;  %v9716_v62 = vmax.f32 %v2713_v39, %v2717_v13  ;;  %v9718_v19 = vmax.f32 %v2714_v6, %v2718_v27  ;;  %v9721_v35 = vmax.f32 %v2715_v1, %v13122_v17 }
 0x24b   : > { %13113 = vst [vmem:[#allocation45_spill] sm:$0xff] %v9700_v25  ;;  %v9723_v42 = vmax.f32 %v2716_v22, %v2720_v50  ;;  %v9725_v51 = vmax.f32 %v2717_v13, %v2721_v23  ;;  %v9727_v56 = vmax.f32 %v2718_v27, %v2722_v44  ;;  %v9729_v15 = vmax.f32 %v2720_v50, %v2724_v54 }
 0x24c   : > { %13114 = vst [vmem:[#allocation99_spill] sm:$0xff] %v9702_v58  ;;  %v9731_v18 = vmax.f32 %v2721_v23, %v2725_v57  ;;  %v9733_v52 = vmax.f32 %v2722_v44, %v2726_v14  ;;  %v9735_v24 = vmax.f32 %v2724_v54, %v2728_v3  ;;  %v9737_v39 = vmax.f32 %v2725_v57, %v2729_v9 }
 0x24d   : > { %13115 = vst [vmem:[#allocation49_spill] sm:$0xff] %v9706_v38  ;;  %v9739_v6 = vmax.f32 %v2726_v14, %v2730_v26  ;;  %v9741_v1 = vmax.f32 %v2728_v3, %v2732_v31  ;;  %v2919_v22 = vrot.slane %v9663_v10, 6  ;;  %v2920_v13 = vrot.slane %v9666_v36, 6 }
 0x24e   : > { %13116 = vst [vmem:[#allocation90_spill] sm:$0xff] %v9708_v28  ;;  %v2922_v27 = vrot.slane %v9669_v55, 6  ;;  %v9746_v50 = vmax.f32 %v2729_v9, %v2733_v32  ;;  %v9748_v23 = vmax.f32 %v2730_v26, %v2734_v16  ;;  %v9750_v44 = vmax.f32 %v2732_v31, %v2736_v61 }
 0x24f   : > { %13117 = vst [vmem:[#allocation91_spill] sm:$0xff] %v9710_v48  ;;  %v9752_v54 = vmax.f32 %v2733_v32, %v2737_v47  ;;  %v9755_v57 = vmax.f32 %v2734_v16, %v9651_v5  ;;  %v9758_v14 = vmax.f32 %v2736_v61, %v9654_v37  ;;  %v2921_v3 = vsel %vm392_vm0, %v2919_v22, %v2920_v13 }
 0x250   : > { %13118 = vst [vmem:[#allocation10_spill] sm:$0xff] %v9712_v43  ;;  %v2923_v11 = vsel %vm392_vm0, %v2920_v13, %v2922_v27  ;;  %v9763_v41 = vmax.f32 %v2737_v47, %v9657_v49  ;;  %v3496_v26 = vrot.slane %v9663_v10, 1  ;;  %v3497_v31 = vrot.slane %v9666_v36, 1 }
 0x251   : > { %13119 = vst [vmem:[#allocation11_spill] sm:$0xff] %v9714_v20  ;;  %v3019_v9 = vpack.c.bf16 %v2923_v11, %v2921_v3  ;;  %v3499_v32 = vrot.slane %v9669_v55, 1  ;;  %v3501_v16 = vrot.slane %v9672_v4, 1  ;;  %v3503_v7 = vrot.slane %v9674_v63, 1 }
 0x252   : > { %13120 = vst [vmem:[#allocation54_spill] sm:$0xff] %v9716_v62  ;;  %v3510_v61 = vrot.slane %v9682_v2, 1  ;;  %v3504_v22 = vrot.slane %v9676_v33, 1  ;;  %v3511_v47 = vrot.slane %v9684_v45, 1  ;;  %v3513_v11 = vrot.slane %v9686_v60, 1 }
 0x253   : > { %13121 = vst [vmem:[#allocation55_spill] sm:$0xff] %v9718_v19  ;;  %6646 = vmatmul.msk.bf16.gmra.mxu1 %vm3037_vm5, %v3019_v9  ;;  %v3517_v13 = vrot.slane %v9690_v21, 1  ;;  %v3506_v27 = vrot.slane %v9678_v8, 1  ;;  %v3508_v3 = vrot.slane %v9680_v34, 1  ;;  %v3518_v49 = vrot.slane %v9692_v0, 1 }
 0x254   : > { %13123 = vst [vmem:[#allocation9_spill] sm:$0xff] %v9721_v35  ;;  %v3520_v37 = vrot.slane %v9694_v29, 1  ;;  %v3514_v9 = vsel %vm1066_vm6, %v3511_v47, %v3513_v11  ;;  %v3525_v17 = vrot.slane %v9700_v25, 1  ;;  %v3502_v25 = vsel %vm1066_vm6, %v3499_v32, %v3501_v16 }
 0x255   : > { %13124 = vst [vmem:[#allocation39_spill] sm:$0xff] %v9723_v42  ;;  %v3519_v40 = vsel %vm1066_vm6, %v3517_v13, %v3518_v49  ;;  %v3532_v13 = vrot.slane %v9708_v28, 1 }
 0x256   : > { %13125 = vst [vmem:[#allocation7_spill] sm:$0xff] %v9725_v51 }
 0x257   : > { %13126 = vst [vmem:[#allocation58_spill] sm:$0xff] %v9727_v56 }
 0x258   : > { %13127 = vst [vmem:[#allocation32_spill] sm:$0xff] %v9729_v15 }
 0x259   : > { %13128 = vst [vmem:[#allocation21_spill] sm:$0xff] %v9731_v18 }
 0x25a   : > { %13129 = vst [vmem:[#allocation28_spill] sm:$0xff] %v9733_v52 }
 0x25b   : > { %13130 = vst [vmem:[#allocation17_spill] sm:$0xff] %v9735_v24 }
 0x25c   : > { %13131 = vst [vmem:[#allocation48_spill] sm:$0xff] %v9737_v39 }
 0x25d   : > { %13132 = vst [vmem:[#allocation22_spill] sm:$0xff] %v9739_v6  ;;  %v3500_v6 = vsel %vm1066_vm6, %v3497_v31, %v3499_v32 }
 0x25e   : > { %13133 = vst [vmem:[#allocation53_spill] sm:$0xff] %v9741_v1  ;;  %v3536_v1 = vrot.slane %v9712_v43, 1 }
 0x25f   : > { %13134 = vst [vmem:[#allocation20_spill] sm:$0xff] %v9746_v50  ;;  %v3531_v50 = vrot.slane %v9706_v38, 1 }
 0x260   : > { %13135 = vst [vmem:[#allocation12_spill] sm:$0xff] %v9748_v23  ;;  %v9790_v23 = vmax.f32 %v9651_v5, %v9660_v59  ;;  %v3505_v5 = vsel %vm1066_vm6, %v3503_v7, %v3504_v22  ;;  %v3509_v59 = vsel %vm1066_vm6, %v3506_v27, %v3508_v3 }
 0x261   : > { %13136 = vst [vmem:[#allocation61_spill] sm:$0xff] %v9750_v44  ;;  %v3524_v44 = vrot.slane %v9698_v46, 1  ;;  %v3745_v32 = vmax.f32 %v9678_v8, %v3509_v59 }
 0x262   : > { %13137 = vst [vmem:[#allocation62_spill] sm:$0xff] %v9752_v54  ;;  %v3521_v54 = vsel %vm1066_vm6, %v3518_v49, %v3520_v37  ;;  %v3534_v49 = vrot.slane %v9710_v48, 1 }
 0x263   : > { %13138 = vst [vmem:[#allocation27_spill] sm:$0xff] %v9755_v57  ;;  %v3522_v57 = vrot.slane %v9696_v53, 1  ;;  %v3526_v48 = vsel %vm1066_vm6, %v3524_v44, %v3525_v17  ;;  %v3741_v44 = vmax.f32 %v9669_v55, %v3502_v25  ;;  %v3752_v55 = vmax.f32 %v9692_v0, %v3521_v54  ;;  %v13146_v54 = vld [vmem:[#allocation90_spill] sm:$0xff] }
 0x264   : > { %13139 = vst [vmem:[#allocation19_spill] sm:$0xff] %v9758_v14  ;;  %v3529_v14 = vrot.slane %v9704_v30, 1  ;;  %v9848_v59 = vmax.f32 %v9698_v46, %v3526_v48 }
 0x265   : > { %13140 = vst [vmem:[#allocation14_spill] sm:$0xff] %v9763_v41  ;;  %v3512_v41 = vsel %vm1066_vm6, %v3510_v61, %v3511_v47  ;;  %v3498_v61 = vsel %vm1066_vm6, %v3496_v26, %v3497_v31  ;;  %v3527_v47 = vrot.slane %v9702_v58, 1  ;;  %v3507_v26 = vsel %vm1066_vm6, %v3504_v22, %v3506_v27 }
 0x266   : > { %13141 = vst [vmem:[#allocation13_spill] sm:$0xff] %v9790_v23  ;;  %v13142_v23 = vrot.slane %v9688_v12, 1  ;;  %v3523_v28 = vsel %vm1066_vm6, %v3520_v37, %v3522_v57  ;;  %v3533_v22 = vsel %vm1066_vm6, %v3531_v50, %v3532_v13  ;;  %v3535_v27 = vsel %vm1066_vm6, %v3532_v13, %v3534_v49 }
 0x267   : > { %v3528_v43 = vsel %vm1066_vm6, %v3525_v17, %v3527_v47  ;;  %v3530_v31 = vsel %vm1066_vm6, %v3527_v47, %v3529_v14  ;;  %v3537_v12 = vsel %vm1066_vm6, %v3534_v49, %v3536_v1  ;;  %v3740_v37 = vmax.f32 %v9666_v36, %v3500_v6 }
 0x268   : > { %v3516_v38 = vsel %vm1066_vm6, %v3513_v11, %v13142_v23  ;;  %v3739_v23 = vmax.f32 %v9663_v10, %v3498_v61  ;;  %v3742_v17 = vmax.f32 %v9672_v4, %v3501_v16  ;;  %v3743_v11 = vmax.f32 %v9674_v63, %v3505_v5  ;;  %v13150_v5 = vld [vmem:[#allocation10_spill] sm:$0xff] }
 0x269   : > { %v3744_v47 = vmax.f32 %v9676_v33, %v3507_v26  ;;  %v3746_v50 = vmax.f32 %v9680_v34, %v3508_v3  ;;  %v9835_v13 = vmax.f32 %v9682_v2, %v3512_v41  ;;  %v9838_v49 = vmax.f32 %v9684_v45, %v3514_v9  ;;  %v13143_v34 = vld [vmem:[#allocation45_spill] sm:$0xff] }
 0x26a   : > { %v3751_v10 = vmax.f32 %v9690_v21, %v3519_v40  ;;  %v9842_v36 = vmax.f32 %v9686_v60, %v3516_v38  ;;  %v3753_v4 = vmax.f32 %v9694_v29, %v3523_v28  ;;  %v3754_v25 = vmax.f32 %v9696_v53, %v3522_v57  ;;  %v13144_v38 = vld [vmem:[#allocation49_spill] sm:$0xff]  ;;  %v13148_v28 = vld [vmem:[#allocation91_spill] sm:$0xff] }
 0x26b   : > { %v9851_v41 = vmax.f32 %v13143_v34, %v3528_v43  ;;  %v9854_v6 = vmax.f32 %v9702_v58, %v3530_v31  ;;  %v9857_v40 = vmax.f32 %v9704_v30, %v3529_v14  ;;  %v9860_v16 = vmax.f32 %v13144_v38, %v3533_v22  ;;  %v13152_v58 = vld [vmem:[#allocation31_spill] sm:$0xff] }
 0x26c   : > { %v9863_v3 = vmax.f32 %v13146_v54, %v3535_v27  ;;  %v9866_v53 = vmax.f32 %v13148_v28, %v3537_v12  ;;  %v3952_v48 = vrot.slane %v3739_v23, 2  ;;  %v3953_v57 = vrot.slane %v3740_v37, 2 }
 0x26d   : > { %13145 = vst [vmem:[#allocation63_spill] sm:$0xff] %v9860_v16  ;;  %v3955_v9 = vrot.slane %v3741_v44, 2  ;;  %v3957_v43 = vrot.slane %v3742_v17, 2  ;;  %v3959_v61 = vrot.slane %v3743_v11, 2  ;;  %v9869_v26 = vmax.f32 %v13150_v5, %v3536_v1 }
 0x26e   : > { %13147 = vst [vmem:[#allocation64_spill] sm:$0xff] %v9863_v3  ;;  %v3960_v31 = vrot.slane %v3744_v47, 2  ;;  %v3962_v30 = vrot.slane %v3745_v32, 2  ;;  %v3964_v14 = vrot.slane %v3746_v50, 2  ;;  %v3954_v22 = vsel %vm1599_vm7, %v3952_v48, %v3953_v57 }
 0x26f   : > { %13149 = vst [vmem:[#allocation65_spill] sm:$0xff] %v9866_v53  ;;  %v3956_v7 = vsel %vm1599_vm7, %v3953_v57, %v3955_v9  ;;  %v3958_v27 = vsel %vm1599_vm7, %v3955_v9, %v3957_v43  ;;  %v3966_v12 = vrot.slane %v9835_v13, 2  ;;  %v3967_v1 = vrot.slane %v9838_v49, 2 }
 0x270   : > { %13151 = vst [vmem:[#allocation66_spill] sm:$0xff] %v9869_v26  ;;  %v3961_v24 = vsel %vm1599_vm7, %v3959_v61, %v3960_v31  ;;  %v3963_v39 = vsel %vm1599_vm7, %v3960_v31, %v3962_v30  ;;  %v3965_v17 = vsel %vm1599_vm7, %v3962_v30, %v3964_v14  ;;  %v3973_v5 = vrot.slane %v3751_v10, 2 }
 0x271   : > { %v3974_v52 = vrot.slane %v3752_v55, 2  ;;  %v3976_v15 = vrot.slane %v3753_v4, 2  ;;  %v3978_v50 = vrot.slane %v3754_v25, 2  ;;  %v3969_v48 = vrot.slane %v9842_v36, 2 }
 0x272   : > { %v3980_v57 = vrot.slane %v9848_v59, 2  ;;  %v3981_v9 = vrot.slane %v9851_v41, 2  ;;  %v3983_v43 = vrot.slane %v9854_v6, 2  ;;  %v4164_v56 = vmax.f32 %v3739_v23, %v3954_v22  ;;  %v13156_v23 = vld [vmem:[#allocation98_spill] sm:$0xff] }
 0x273   : > { %v3975_v61 = vsel %vm1599_vm7, %v3973_v5, %v3974_v52  ;;  %v3977_v31 = vsel %vm1599_vm7, %v3974_v52, %v3976_v15  ;;  %v3979_v30 = vsel %vm1599_vm7, %v3976_v15, %v3978_v50  ;;  %v4165_v25 = vmax.f32 %v3740_v37, %v3956_v7  ;;  %v13154_v50 = vld [vmem:[#allocation33_spill] sm:$0xff] }
 0x274   : > { %v4166_v42 = vmax.f32 %v3741_v44, %v3958_v27  ;;  %v4167_v51 = vmax.f32 %v3743_v11, %v3961_v24  ;;  %v4168_v28 = vmax.f32 %v3744_v47, %v3963_v39  ;;  %v4169_v35 = vmax.f32 %v3745_v32, %v3965_v17 }
 0x275   : > { %v4173_v19 = vmax.f32 %v3751_v10, %v3975_v61  ;;  %v4174_v20 = vmax.f32 %v3752_v55, %v3977_v31  ;;  %v4175_v62 = vmax.f32 %v3753_v4, %v3979_v30  ;;  %v4322_v54 = vrot.slane %v4164_v56, 1 }
 0x276   : > { %v4323_v38 = vrot.slane %v4165_v25, 1  ;;  %v4327_v5 = vrot.slane %v4167_v51, 1  ;;  %v4328_v26 = vrot.slane %v4168_v28, 1  ;;  %v13153_v15 = vunpack.c.l.b16 %v13152_v58 }
 0x277   : > { %v4337_v52 = vrot.slane %v4173_v19, 1  ;;  %v13155_v14 = vunpack.c.l.b16 %v13154_v50  ;;  %v4338_v18 = vrot.slane %v4174_v20, 1  ;;  %v13157_v7 = vrot.slane %v13156_v23, 1 }
 0x278   : > { %v3968_v39 = vsel %vm1599_vm7, %v3966_v12, %v3967_v1  ;;  %v3970_v32 = vsel %vm1599_vm7, %v3967_v1, %v3969_v48  ;;  %v3982_v37 = vsel %vm1599_vm7, %v3980_v57, %v3981_v9  ;;  %v3984_v44 = vsel %vm1599_vm7, %v3981_v9, %v3983_v43 }
 0x279   : > { %v3250_v16 = vpack.c.b16 %v13155_v14, %v13153_v15  ;;  %v3750_v24 = vmax.f32 %v13156_v23, %v13157_v7  ;;  %v3985_v58 = vrot.slane %v9857_v40, 2  ;;  %v4170_v11 = vmax.f32 %v9835_v13, %v3968_v39 }
 0x27a   : > { %v4171_v10 = vmax.f32 %v9838_v49, %v3970_v32  ;;  %v4176_v55 = vmax.f32 %v9848_v59, %v3982_v37  ;;  %v4177_v4 = vmax.f32 %v9851_v41, %v3984_v44  ;;  %v4324_v27 = vsel %vm1066_vm6, %v4322_v54, %v4323_v38 }
 0x27b   : > { %6666 = vmatmul.msk.bf16.gmra.mxu2 %vm3037_vm5, %v3250_v16  ;;  %v3971_v47 = vrot.slane %v3750_v24, 2  ;;  %v3986_v22 = vsel %vm1599_vm7, %v3983_v43, %v3985_v58  ;;  %v4325_v16 = vrot.slane %v4166_v42, 1  ;;  %v4329_v12 = vsel %vm1066_vm6, %v4327_v5, %v4328_v26 }
 0x27c   : > { %v4178_v40 = vmax.f32 %v9854_v6, %v3986_v22  ;;  %v4330_v1 = vrot.slane %v4169_v35, 1  ;;  %v4332_v13 = vrot.slane %v4170_v11, 1  ;;  %v4333_v59 = vrot.slane %v4171_v10, 1 }
 0x27d   : > { %v3972_v17 = vsel %vm1599_vm7, %v3969_v48, %v3971_v47  ;;  %v4326_v49 = vsel %vm1066_vm6, %v4323_v38, %v4325_v16  ;;  %v4339_v41 = vsel %vm1066_vm6, %v4337_v52, %v4338_v18  ;;  %v4340_v43 = vrot.slane %v4175_v62, 1  ;;  %v13162_v47 = vld [vmem:[#allocation69_spill] sm:$0xff] }
 0x27e   : > { %v4172_v57 = vmax.f32 %v9842_v36, %v3972_v17  ;;  %v4331_v9 = vsel %vm1066_vm6, %v4328_v26, %v4330_v1  ;;  %v4342_v54 = vrot.slane %v4176_v55, 1  ;;  %v4343_v61 = vrot.slane %v4177_v4, 1 }
 0x27f   : > { %v4334_v31 = vsel %vm1066_vm6, %v4332_v13, %v4333_v59  ;;  %v4345_v48 = vrot.slane %v4178_v40, 1  ;;  %v4500_v14 = vmax.f32 %v4164_v56, %v4324_v27  ;;  %v4341_v6 = vsel %vm1066_vm6, %v4338_v18, %v4340_v43  ;;  %v13163_v27 = vld [vmem:[#allocation25_spill] sm:$0xff]  ;;  %v13171_v13 = vld [vmem:[#allocation18_spill] sm:$0xff] }
 0x280   : > { %v4335_v30 = vrot.slane %v4172_v57, 1  ;;  %v4344_v5 = vsel %vm1066_vm6, %v4342_v54, %v4343_v61  ;;  %v4501_v36 = vmax.f32 %v4165_v25, %v4326_v49  ;;  %v4502_v15 = vmax.f32 %v4166_v42, %v4325_v16  ;;  %v13161_v42 = vld [vmem:[#allocation26_spill] sm:$0xff] }
 0x281   : > { %v4346_v52 = vsel %vm1066_vm6, %v4343_v61, %v4345_v48  ;;  %v4503_v50 = vmax.f32 %v4167_v51, %v4329_v12  ;;  %v4504_v26 = vmax.f32 %v4168_v28, %v4331_v9  ;;  %v4505_v23 = vmax.f32 %v4169_v35, %v4330_v1  ;;  %v13172_v49 = vld [vmem:[#allocation70_spill] sm:$0xff]  ;;  %v13175_v61 = vld [vmem:[#allocation73_spill] sm:$0xff] }
 0x282   : > { %v4336_v38 = vsel %vm1066_vm6, %v4333_v59, %v4335_v30  ;;  %v4506_v7 = vmax.f32 %v4170_v11, %v4334_v31  ;;  %v4508_v39 = vmax.f32 %v4172_v57, %v4335_v30  ;;  %v4509_v32 = vmax.f32 %v4173_v19, %v4339_v41  ;;  %v13173_v41 = vld [vmem:[#allocation71_spill] sm:$0xff] }
 0x283   : > { %v4507_v24 = vmax.f32 %v4171_v10, %v4336_v38  ;;  %v4510_v37 = vmax.f32 %v4174_v20, %v4341_v6  ;;  %v4511_v44 = vmax.f32 %v4175_v62, %v4340_v43  ;;  %v9919_v56 = vmax.f32 %v4176_v55, %v4344_v5  ;;  %v13174_v43 = vld [vmem:[#allocation72_spill] sm:$0xff] }
 0x284   : > { %v9921_v18 = vmax.f32 %v4177_v4, %v4346_v52  ;;  %v9923_v58 = vmax.f32 %v4178_v40, %v4345_v48  ;;  %v4569_v25 = vmax.f32 %v13161_v42, %v4500_v14  ;;  %v4570_v22 = vmax.f32 %v13162_v47, %v4501_v36  ;;  %v13170_v40 = vld [vmem:[#allocation59_spill] sm:$0xff]  ;;  %v13176_v48 = vld [vmem:[#allocation5_spill] sm:$0xff] }
 0x285   : > { %13158 = vst [vmem:[#allocation3_spill] sm:$0xff] %v9919_v56  ;;  %v4571_v51 = vmax.f32 %v13163_v27, %v4502_v15  ;;  %v4572_v28 = vmax.f32 %v4500_v14, %v4503_v50  ;;  %v4573_v35 = vmax.f32 %v4501_v36, %v4504_v26  ;;  %v4574_v11 = vmax.f32 %v4502_v15, %v4505_v23 }
 0x286   : > { %13159 = vst [vmem:[#allocation4_spill] sm:$0xff] %v9921_v18  ;;  %v4575_v10 = vmax.f32 %v4503_v50, %v4506_v7  ;;  %v4576_v16 = vmax.f32 %v4504_v26, %v4507_v24  ;;  %v4577_v19 = vmax.f32 %v4505_v23, %v4508_v39  ;;  %v9928_v20 = vmax.f32 %v4506_v7, %v4509_v32  ;;  %v13182_v26 = vld [vmem:[#allocation78_spill] sm:$0xff]  ;;  %v13183_v7 = vld [vmem:[#allocation79_spill] sm:$0xff] }
 0x287   : > { %13160 = vst [vmem:[#allocation15_spill] sm:$0xff] %v9923_v58  ;;  %v9930_v62 = vmax.f32 %v4507_v24, %v4510_v37  ;;  %v9932_v55 = vmax.f32 %v4508_v39, %v4511_v44  ;;  %v9935_v4 = vmax.f32 %v4509_v32, %v9919_v56  ;;  %v9938_v12 = vmax.f32 %v4510_v37, %v9921_v18  ;;  %v13184_v39 = vld [vmem:[#allocation80_spill] sm:$0xff]  ;;  %v13208_v18 = vld [vmem:[#allocation87_spill] sm:$0xff] }
 0x288   : > { %13164 = vst [vmem:[#allocation16_spill] sm:$0xff] %v9928_v20  ;;  %v9941_v17 = vmax.f32 %v4511_v44, %v9923_v58  ;;  %v4632_v1 = vmax.f32 %v13170_v40, %v4569_v25  ;;  %v4633_v57 = vmax.f32 %v13171_v13, %v4570_v22  ;;  %v4634_v59 = vmax.f32 %v13172_v49, %v4571_v51 }
 0x289   : > { %13165 = vst [vmem:[#allocation10_spill] sm:$0xff] %v9930_v62  ;;  %v4635_v9 = vmax.f32 %v13173_v41, %v4572_v28  ;;  %v4636_v54 = vmax.f32 %v13174_v43, %v4573_v35  ;;  %v4637_v31 = vmax.f32 %v13175_v61, %v4574_v11  ;;  %v4638_v30 = vmax.f32 %v4569_v25, %v4575_v10  ;;  %v13185_v41 = vld [vmem:[#allocation75_spill] sm:$0xff]  ;;  %v13187_v43 = vld [vmem:[#allocation42_spill] sm:$0xff] }
 0x28a   : > { %13166 = vst [vmem:[#allocation31_spill] sm:$0xff] %v9932_v55  ;;  %v4639_v14 = vmax.f32 %v4570_v22, %v4576_v16  ;;  %v4640_v6 = vmax.f32 %v4571_v51, %v4577_v19  ;;  %v9952_v5 = vmax.f32 %v4572_v28, %v9928_v20  ;;  %v9955_v36 = vmax.f32 %v4573_v35, %v9930_v62 }
 0x28b   : > { %13167 = vst [vmem:[#allocation33_spill] sm:$0xff] %v9935_v4  ;;  %6667 = vmatmul.msk.bf16.gmra.mxu2 %vm3037_vm5, %v13176_v48  ;;  %v9958_v15 = vmax.f32 %v4574_v11, %v9932_v55  ;;  %v9961_v38 = vmax.f32 %v4575_v10, %v9935_v4  ;;  %v9964_v52 = vmax.f32 %v4576_v16, %v9938_v12 }
 0x28c   : > { %13168 = vst [vmem:[#allocation98_spill] sm:$0xff] %v9938_v12  ;;  %v9967_v50 = vmax.f32 %v4577_v19, %v9941_v17  ;;  %v4692_v23 = vmax.f32 %v13182_v26, %v4632_v1  ;;  %v4693_v24 = vmax.f32 %v13183_v7, %v4633_v57  ;;  %v4694_v32 = vmax.f32 %v13184_v39, %v4634_v59 }
 0x28d   : > { %13169 = vst [vmem:[#allocation26_spill] sm:$0xff] %v9941_v17  ;;  %v9972_v37 = vmax.f32 %v4632_v1, %v4635_v9  ;;  %v9974_v44 = vmax.f32 %v4633_v57, %v4636_v54  ;;  %v9976_v42 = vmax.f32 %v4634_v59, %v4637_v31  ;;  %v9978_v25 = vmax.f32 %v4635_v9, %v4638_v30  ;;  %v13186_v9 = vld [vmem:[#allocation67_spill] sm:$0xff] }
 0x28e   : > { %13177 = vst [vmem:[#allocation69_spill] sm:$0xff] %v9952_v5  ;;  %v9980_v47 = vmax.f32 %v4636_v54, %v4639_v14  ;;  %v9982_v22 = vmax.f32 %v4637_v31, %v4640_v6  ;;  %v9985_v27 = vmax.f32 %v4638_v30, %v9952_v5  ;;  %v9988_v51 = vmax.f32 %v4639_v14, %v9955_v36 }
 0x28f   : > { %13178 = vst [vmem:[#allocation25_spill] sm:$0xff] %v9955_v36  ;;  %v9991_v28 = vmax.f32 %v4640_v6, %v9958_v15  ;;  %v4797_v35 = vrot.slane %v4692_v23, 4  ;;  %v4798_v11 = vrot.slane %v4693_v24, 4  ;;  %v4800_v10 = vrot.slane %v4694_v32, 4 }
 0x290   : > { %13179 = vst [vmem:[#allocation59_spill] sm:$0xff] %v9958_v15  ;;  %v5124_v16 = vrot.slane %v4692_v23, 1  ;;  %v5125_v19 = vrot.slane %v4693_v24, 1  ;;  %v5127_v40 = vrot.slane %v4694_v32, 1  ;;  %v5129_v1 = vrot.slane %v9972_v37, 1 }
 0x291   : > { %13180 = vst [vmem:[#allocation18_spill] sm:$0xff] %v9964_v52  ;;  %v5130_v13 = vrot.slane %v9974_v44, 1  ;;  %v4799_v57 = vsel %vm4791_vm8, %v4797_v35, %v4798_v11  ;;  %v4801_v49 = vsel %vm4791_vm8, %v4798_v11, %v4800_v10  ;;  %v5132_v59 = vrot.slane %v9976_v42, 1 }
 0x292   : > { %13181 = vst [vmem:[#allocation70_spill] sm:$0xff] %v9967_v50  ;;  %v13188_v54 = vmax.f32 %v13186_v9, %v13187_v43  ;;  %v4905_v31 = vpack.c.bf16 %v4801_v49, %v4799_v57  ;;  %v5126_v30 = vsel %vm1066_vm6, %v5124_v16, %v5125_v19  ;;  %v5128_v48 = vsel %vm1066_vm6, %v5125_v19, %v5127_v40  ;;  %v13189_v57 = vld [vmem:[#allocation76_spill] sm:$0xff] }
 0x293   : > { %v5131_v14 = vsel %vm1066_vm6, %v5129_v1, %v5130_v13  ;;  %v5133_v6 = vsel %vm1066_vm6, %v5130_v13, %v5132_v59  ;;  %v5278_v26 = vmax.f32 %v4692_v23, %v5126_v30  ;;  %v5279_v7 = vmax.f32 %v4693_v24, %v5128_v48  ;;  %v13190_v49 = vld [vmem:[#allocation68_spill] sm:$0xff]  ;;  %v13193_v13 = vld [vmem:[#allocation77_spill] sm:$0xff]  ;;  %v13194_v23 = vld [vmem:[#allocation74_spill] sm:$0xff] }
 0x294   : > { %v4683_v61 = vmax.f32 %v13188_v54, %v13185_v41  ;;  %v5280_v39 = vmax.f32 %v4694_v32, %v5127_v40  ;;  %6676 = vmatmul.msk.bf16.gmra.mxu3 %vm3037_vm5, %v4905_v31  ;;  %v5281_v35 = vmax.f32 %v9972_v37, %v5131_v14  ;;  %v5282_v11 = vmax.f32 %v9974_v44, %v5133_v6  ;;  %v13191_v16 = vld [vmem:[#allocation60_spill] sm:$0xff] }
 0x295   : > { %v5283_v10 = vmax.f32 %v9976_v42, %v5132_v59  ;;  %v13192_v41 = vmax.f32 %v13190_v49, %v13191_v16  ;;  %v5404_v9 = vrot.slane %v5278_v26, 2  ;;  %v5405_v1 = vrot.slane %v5279_v7, 2  ;;  %v13195_v16 = vld [vmem:[#allocation82_spill] sm:$0xff] }
 0x296   : > { %v5407_v43 = vrot.slane %v5280_v39, 2  ;;  %v4685_v24 = vmax.f32 %v13194_v23, %v13193_v13  ;;  %v5409_v32 = vrot.slane %v5281_v35, 2  ;;  %v5410_v40 = vrot.slane %v5282_v11, 2  ;;  %v13197_v13 = vld [vmem:[#allocation81_spill] sm:$0xff] }
 0x297   : > { %v4684_v19 = vmax.f32 %v13192_v41, %v13189_v57  ;;  %v5109_v54 = vrot.slane %v4683_v61, 1  ;;  %v5406_v30 = vsel %vm1599_vm7, %v5404_v9, %v5405_v1  ;;  %v13196_v41 = vrot.slane %v13195_v16, 1  ;;  %v13199_v9 = vld [vmem:[#allocation83_spill] sm:$0xff] }
 0x298   : > { %v5408_v48 = vsel %vm1599_vm7, %v5405_v1, %v5407_v43  ;;  %v10018_v59 = vmax.f32 %v5280_v39, %v5407_v43  ;;  %v5112_v14 = vrot.slane %v4685_v24, 1  ;;  %v10020_v6 = vmax.f32 %v5278_v26, %v5406_v30 }
 0x299   : > { %v5110_v31 = vrot.slane %v4684_v19, 1  ;;  %v10022_v57 = vmax.f32 %v5279_v7, %v5408_v48  ;;  %v13198_v23 = vrot.slane %v13197_v13, 1  ;;  %v13200_v4 = vrot.slane %v13199_v9, 1  ;;  %v13202_v7 = vld [vmem:[#allocation23_spill] sm:$0xff] }
 0x29a   : > { %v13201_v39 = vmov %v13196_v41  ;;  %v5271_v43 = vmax.f32 %v4685_v24, %v5112_v14 }
 0x29b   : > { %v5111_v49 = vsel %vm1066_vm6, %v5109_v54, %v5110_v31  ;;  %v5116_v17 = vsel %vm1066_vm6, %v13198_v23, %v13196_v41  ;;  %v5113_v12 = vsel %vm1066_vm6, %v5110_v31, %v5112_v14  ;;  %v5118_v1 = vsel %vm1066_vm6, %v13201_v39, %v13200_v4  ;;  %6668 = vmatmul.msk.bf16.gmra.mxu2 %vm3037_vm5, %v13202_v7  ;;  %v13204_v14 = vld [vmem:[#allocation84_spill] sm:$0xff]  ;;  %v13206_v39 = vld [vmem:[#allocation50_spill] sm:$0xff] }
 0x29c   : > { %v5269_v26 = vmax.f32 %v4683_v61, %v5111_v49  ;;  %v5684_v54 = vrot.slane %v10020_v6, 1  ;;  %v5685_v30 = vrot.slane %v10022_v57, 1  ;;  %v5270_v48 = vmax.f32 %v4684_v19, %v5113_v12 }
 0x29d   : > { %v5272_v41 = vmax.f32 %v13197_v13, %v5116_v17  ;;  %v5273_v31 = vmax.f32 %v13195_v16, %v5118_v1  ;;  %v13203_v23 = vmov %v13200_v4  ;;  %v5392_v4 = vrot.slane %v5271_v43, 2 }
 0x29e   : > { %v5274_v62 = vmax.f32 %v13199_v9, %v13203_v23  ;;  %v5389_v55 = vrot.slane %v5269_v26, 2  ;;  %v5390_v61 = vrot.slane %v5270_v48, 2  ;;  %v13205_v49 = vrot.slane %v13204_v14, 2 }
 0x29f   : > { %v5394_v24 = vrot.slane %v5272_v41, 2  ;;  %v13207_v7 = vrot.slane %v13206_v39, 2  ;;  %v5402_v12 = vrot.slane %v13208_v18, 2  ;;  %v5395_v19 = vrot.slane %v5273_v31, 2 }
 0x2a0   : > { %v5397_v17 = vrot.slane %v5274_v62, 2  ;;  %v5411_v16 = vsel %vm1599_vm7, %v5409_v32, %v5410_v40  ;;  %v5412_v13 = vrot.slane %v5283_v10, 2  ;;  %v5391_v1 = vsel %vm1599_vm7, %v5389_v55, %v5390_v61 }
 0x2a1   : > { %v5401_v20 = vsel %vm1599_vm7, %v13207_v7, %v13205_v49  ;;  %v5393_v9 = vsel %vm1599_vm7, %v5390_v61, %v5392_v4  ;;  %v13209_v23 = vmov %v13205_v49  ;;  %v5551_v56 = vmax.f32 %v5271_v43, %v5392_v4 }
 0x2a2   : > { %v5403_v58 = vsel %vm1599_vm7, %v13209_v23, %v5402_v12  ;;  %v5396_v3 = vsel %vm1599_vm7, %v5394_v24, %v5395_v19  ;;  %v5398_v49 = vsel %vm1599_vm7, %v5395_v19, %v5397_v17  ;;  %v5413_v7 = vsel %vm1599_vm7, %v5410_v40, %v5412_v13 }
 0x2a3   : > { %v5549_v53 = vmax.f32 %v5269_v26, %v5391_v1  ;;  %v5550_v34 = vmax.f32 %v5270_v48, %v5393_v9  ;;  %v5552_v46 = vmax.f32 %v5272_v41, %v5396_v3  ;;  %v5553_v32 = vmax.f32 %v5273_v31, %v5398_v49 }
 0x2a4   : > { %v5554_v15 = vmax.f32 %v5274_v62, %v5397_v17  ;;  %v5555_v55 = vmax.f32 %v13206_v39, %v5401_v20  ;;  %v5556_v61 = vmax.f32 %v13204_v14, %v5403_v58  ;;  %v5557_v50 = vmax.f32 %v13208_v18, %v5402_v12 }
 0x2a5   : > { %v5561_v36 = vmax.f32 %v5281_v35, %v5411_v16  ;;  %v5562_v23 = vmax.f32 %v5282_v11, %v5413_v7  ;;  %v5563_v43 = vmax.f32 %v5283_v10, %v5412_v13  ;;  %v5669_v4 = vrot.slane %v5549_v53, 1 }
 0x2a6   : > { %v5670_v24 = vrot.slane %v5550_v34, 1  ;;  %v5672_v52 = vrot.slane %v5551_v56, 1  ;;  %v5674_v19 = vrot.slane %v5552_v46, 1  ;;  %v5675_v5 = vrot.slane %v5553_v32, 1 }
 0x2a7   : > { %v5677_v40 = vrot.slane %v5554_v15, 1  ;;  %v5679_v3 = vrot.slane %v5555_v55, 1  ;;  %v5680_v48 = vrot.slane %v5556_v61, 1  ;;  %v5682_v62 = vrot.slane %v5557_v50, 1 }
 0x2a8   : > { %v5671_v26 = vsel %vm1066_vm6, %v5669_v4, %v5670_v24  ;;  %v5673_v20 = vsel %vm1066_vm6, %v5670_v24, %v5672_v52  ;;  %v5676_v58 = vsel %vm1066_vm6, %v5674_v19, %v5675_v5  ;;  %v5686_v35 = vsel %vm1066_vm6, %v5684_v54, %v5685_v30  ;;  %v13210_v4 = vld [vmem:[#allocation29_spill] sm:$0xff] }
 0x2a9   : > { %v5678_v18 = vsel %vm1066_vm6, %v5675_v5, %v5677_v40  ;;  %v5681_v11 = vsel %vm1066_vm6, %v5679_v3, %v5680_v48  ;;  %v5683_v10 = vsel %vm1066_vm6, %v5680_v48, %v5682_v62  ;;  %v5687_v41 = vrot.slane %v10018_v59, 1 }
 0x2aa   : > { %v5689_v31 = vrot.slane %v5561_v36, 1  ;;  %v5690_v14 = vrot.slane %v5562_v23, 1  ;;  %v5692_v39 = vrot.slane %v5563_v43, 1  ;;  %v5829_v12 = vmax.f32 %v5549_v53, %v5671_v26 }
 0x2ab   : > { %v5830_v17 = vmax.f32 %v5550_v34, %v5673_v20  ;;  %v5688_v16 = vsel %vm1066_vm6, %v5685_v30, %v5687_v41  ;;  %v5831_v13 = vmax.f32 %v5551_v56, %v5672_v52  ;;  %v5832_v1 = vmax.f32 %v5552_v46, %v5676_v58  ;;  %6669 = vmatmul.msk.bf16.gmra.mxu2 %vm3037_vm5, %v13210_v4 }
 0x2ac   : > { %v5833_v9 = vmax.f32 %v5553_v32, %v5678_v18  ;;  %v5691_v5 = vsel %vm1066_vm6, %v5689_v31, %v5690_v14  ;;  %v5693_v54 = vsel %vm1066_vm6, %v5690_v14, %v5692_v39  ;;  %v5834_v49 = vmax.f32 %v5554_v15, %v5677_v40 }
 0x2ad   : > { %v5835_v7 = vmax.f32 %v5555_v55, %v5681_v11  ;;  %v5836_v24 = vmax.f32 %v5556_v61, %v5683_v10  ;;  %v5837_v19 = vmax.f32 %v5557_v50, %v5682_v62  ;;  %v5838_v3 = vmax.f32 %v10020_v6, %v5686_v35 }
 0x2ae   : > { %v5839_v34 = vmax.f32 %v10022_v57, %v5688_v16  ;;  %v5840_v53 = vmax.f32 %v10018_v59, %v5687_v41  ;;  %v10079_v56 = vmax.f32 %v5561_v36, %v5691_v5  ;;  %v10081_v46 = vmax.f32 %v5562_v23, %v5693_v54 }
 0x2af   : > { %v10083_v52 = vmax.f32 %v5563_v43, %v5692_v39  ;;  %v5889_v30 = vmax.f32 %v5829_v12, %v5832_v1  ;;  %v5890_v15 = vmax.f32 %v5830_v17, %v5833_v9  ;;  %v5891_v32 = vmax.f32 %v5831_v13, %v5834_v49  ;;  %v10123_v17 = vpop.f32.mrf.mxu2 }
 0x2b0   : > { %v5892_v55 = vmax.f32 %v5832_v1, %v5835_v7  ;;  %v5893_v40 = vmax.f32 %v5833_v9, %v5836_v24  ;;  %v5894_v26 = vmax.f32 %v5834_v49, %v5837_v19  ;;  %v10085_v61 = vmax.f32 %v5835_v7, %v5838_v3 }
 0x2b1   : > { %v10087_v50 = vmax.f32 %v5836_v24, %v5839_v34  ;;  %v10089_v6 = vmax.f32 %v5837_v19, %v5840_v53  ;;  %v10092_v59 = vmax.f32 %v5838_v3, %v10079_v56  ;;  %v10095_v36 = vmax.f32 %v5839_v34, %v10081_v46 }
 0x2b2   : > { %v10098_v57 = vmax.f32 %v5840_v53, %v10083_v52  ;;  %v5946_v23 = vmax.f32 %v5889_v30, %v10085_v61  ;;  %v2924_v48 = vrot.slane %v9674_v63, 6  ;;  %v2925_v62 = vrot.slane %v9676_v33, 6 }
 0x2b3   : > { %v5947_v43 = vmax.f32 %v5890_v15, %v10087_v50  ;;  %v5948_v20 = vmax.f32 %v5891_v32, %v10089_v6  ;;  %v10106_v58 = vmax.f32 %v5892_v55, %v10092_v59  ;;  %v10109_v18 = vmax.f32 %v5893_v40, %v10095_v36 }
 0x2b4   : > { %v10112_v35 = vmax.f32 %v5894_v26, %v10098_v57  ;;  %v2926_v11 = vsel %vm392_vm0, %v2924_v48, %v2925_v62  ;;  %v2927_v10 = vrot.slane %v9678_v8, 6  ;;  %v4802_v41 = vrot.slane %v9972_v37, 4  ;;  %v13211_v48 = vld [vmem:[#allocation37_spill] sm:$0xff] }
 0x2b5   : > { %v4803_v63 = vrot.slane %v9974_v44, 4  ;;  %v5997_v33 = vmax.f32 %v5946_v23, %v10106_v58  ;;  %v5998_v31 = vmax.f32 %v5947_v43, %v10109_v18  ;;  %v4805_v39 = vrot.slane %v9976_v42, 4 }
 0x2b6   : > { %v5999_v14 = vmax.f32 %v5948_v20, %v10112_v35  ;;  %v2928_v12 = vsel %vm392_vm0, %v2925_v62, %v2927_v10  ;;  %v5134_v8 = vrot.slane %v9978_v25, 1  ;;  %v5135_v37 = vrot.slane %v9980_v47, 1 }
 0x2b7   : > { %v4804_v16 = vsel %vm4791_vm8, %v4802_v41, %v4803_v63  ;;  %v6093_v13 = vrot.slane %v5997_v33, 2  ;;  %v6094_v44 = vrot.slane %v5998_v31, 2  ;;  %v3020_v9 = vpack.c.bf16 %v2928_v12, %v2926_v11  ;;  %v10157_v12 = vpop.f32.mrf.mxu2 }
 0x2b8   : > { %v6096_v1 = vrot.slane %v5999_v14, 2  ;;  %v4806_v5 = vsel %vm4791_vm8, %v4803_v63, %v4805_v39  ;;  %v5136_v54 = vsel %vm1066_vm6, %v5134_v8, %v5135_v37  ;;  %v5137_v42 = vrot.slane %v9982_v22, 1 }
 0x2b9   : > { %v2929_v49 = vrot.slane %v9682_v2, 6  ;;  %v6095_v7 = vsel %vm1599_vm7, %v6093_v13, %v6094_v44  ;;  %6647 = vmatmul.msk.bf16.gmra.mxu1 %vm3037_vm5, %v3020_v9  ;;  %v4906_v24 = vpack.c.bf16 %v4806_v5, %v4804_v16  ;;  %v5284_v19 = vmax.f32 %v9978_v25, %v5136_v54 }
 0x2ba   : > { %v6097_v4 = vsel %vm1599_vm7, %v6094_v44, %v6096_v1  ;;  %v5138_v34 = vsel %vm1066_vm6, %v5135_v37, %v5137_v42  ;;  %v5286_v53 = vmax.f32 %v9982_v22, %v5137_v42  ;;  %v2930_v30 = vrot.slane %v9684_v45, 6 }
 0x2bb   : > { %v6205_v3 = vpack.c.bf16 %v6097_v4, %v6095_v7  ;;  %6677 = vmatmul.msk.bf16.gmra.mxu3 %vm3037_vm5, %v4906_v24  ;;  %v5285_v2 = vmax.f32 %v9980_v47, %v5138_v34  ;;  %v5414_v15 = vrot.slane %v5284_v19, 2  ;;  %v2932_v32 = vrot.slane %v9686_v60, 6  ;;  %6670 = vmatmul.msk.bf16.gmra.mxu2 %vm3037_vm5, %v13211_v48 }
 0x2bc   : > { %v4807_v55 = vrot.slane %v9978_v25, 4  ;;  %v5417_v40 = vrot.slane %v5286_v53, 2  ;;  %v2931_v26 = vsel %vm392_vm0, %v2929_v49, %v2930_v30  ;;  %v4808_v23 = vrot.slane %v9980_v47, 4 }
 0x2bd   : > { %6691 = vmatmul.msk.bf16.vlgmr.msrb.gmra.mxu0 %vm3037_vm5, %v6205_v3  ;;  %v4810_v43 = vrot.slane %v9982_v22, 4  ;;  %v5415_v45 = vrot.slane %v5285_v2, 2  ;;  %v2933_v62 = vsel %vm392_vm0, %v2930_v30, %v2932_v32  ;;  %v5139_v20 = vrot.slane %v9985_v27, 1 }
 0x2be   : > { %v5140_v60 = vrot.slane %v9988_v51, 1  ;;  %v5566_v25 = vmax.f32 %v5286_v53, %v5417_v40  ;;  %v3021_v11 = vpack.c.bf16 %v2933_v62, %v2931_v26  ;;  %v4809_v10 = vsel %vm4791_vm8, %v4807_v55, %v4808_v23 }
 0x2bf   : > { %v4811_v41 = vsel %vm4791_vm8, %v4808_v23, %v4810_v43  ;;  %v5416_v47 = vsel %vm1599_vm7, %v5414_v15, %v5415_v45  ;;  %v5418_v22 = vsel %vm1599_vm7, %v5415_v45, %v5417_v40  ;;  %v5142_v16 = vrot.slane %v9991_v28, 1  ;;  %v10202_v62 = vpop.f32.mrf.mxu2 }
 0x2c0   : > { %v4907_v63 = vpack.c.bf16 %v4811_v41, %v4809_v10  ;;  %v5141_v33 = vsel %vm1066_vm6, %v5139_v20, %v5140_v60  ;;  %v5564_v31 = vmax.f32 %v5284_v19, %v5416_v47  ;;  %v5565_v14 = vmax.f32 %v5285_v2, %v5418_v22 }
 0x2c1   : > { %v5697_v39 = vrot.slane %v5566_v25, 1  ;;  %v5287_v8 = vmax.f32 %v9985_v27, %v5141_v33  ;;  %v2934_v37 = vrot.slane %v9690_v21, 6  ;;  %v2935_v13 = vrot.slane %v9692_v0, 6 }
 0x2c2   : > { %v2937_v44 = vrot.slane %v9694_v29, 6  ;;  %v5694_v1 = vrot.slane %v5564_v31, 1  ;;  %v5695_v9 = vrot.slane %v5565_v14, 1  ;;  %v5143_v54 = vsel %vm1066_vm6, %v5140_v60, %v5142_v16 }
 0x2c3   : > { %v5846_v5 = vmax.f32 %v5566_v25, %v5697_v39  ;;  %v5288_v42 = vmax.f32 %v9988_v51, %v5143_v54  ;;  %v5289_v49 = vmax.f32 %v9991_v28, %v5142_v16  ;;  %v5419_v7 = vrot.slane %v5287_v8, 2  ;;  %v13215_v16 = vld [vmem:[#allocation25_spill] sm:$0xff] }
 0x2c4   : > { %v10168_v4 = vsel %vm392_vm0, %v2934_v37, %v2935_v13  ;;  %v5696_v24 = vsel %vm1066_vm6, %v5694_v1, %v5695_v9  ;;  %v5698_v21 = vsel %vm1066_vm6, %v5695_v9, %v5697_v39  ;;  %v10176_v29 = vsel %vm392_vm0, %v2935_v13, %v2937_v44  ;;  %v13214_v39 = vld [vmem:[#allocation18_spill] sm:$0xff]  ;;  %v13217_v13 = vld [vmem:[#allocation59_spill] sm:$0xff] }
 0x2c5   : > { %v10173_v0 = vmax.f32 %v10083_v52, %v5846_v5  ;;  %v5844_v19 = vmax.f32 %v5564_v31, %v5696_v24  ;;  %v5845_v3 = vmax.f32 %v5565_v14, %v5698_v21  ;;  %v5420_v34 = vrot.slane %v5288_v42, 2  ;;  %v13216_v37 = vld [vmem:[#allocation70_spill] sm:$0xff] }
 0x2c6   : > { %v5422_v53 = vrot.slane %v5289_v49, 2  ;;  %v3022_v2 = vpack.c.bf16 %v10176_v29, %v10168_v4  ;;  %v4812_v15 = vrot.slane %v9985_v27, 4  ;;  %v4813_v32 = vrot.slane %v9988_v51, 4 }
 0x2c7   : > { %v5954_v30 = vmax.f32 %v10089_v6, %v10173_v0  ;;  %v10185_v52 = vmax.f32 %v10079_v56, %v5844_v19  ;;  %v10188_v55 = vmax.f32 %v10081_v46, %v5845_v3  ;;  %v5421_v40 = vsel %vm1599_vm7, %v5419_v7, %v5420_v34 }
 0x2c8   : > { %v5423_v26 = vsel %vm1599_vm7, %v5420_v34, %v5422_v53  ;;  %v5567_v6 = vmax.f32 %v5287_v8, %v5421_v40  ;;  %v5569_v48 = vmax.f32 %v5289_v49, %v5422_v53  ;;  %v10199_v56 = vsel %vm4791_vm8, %v4812_v15, %v4813_v32 }
 0x2c9   : > { %v6002_v23 = vmax.f32 %v10112_v35, %v5954_v30  ;;  %v5568_v43 = vmax.f32 %v5288_v42, %v5423_v26  ;;  %v5952_v27 = vmax.f32 %v10085_v61, %v10185_v52  ;;  %v5953_v51 = vmax.f32 %v10087_v50, %v10188_v55  ;;  %6648 = vmatmul.msk.bf16.gmra.mxu1 %vm3037_vm5, %v3021_v11  ;;  %v13212_v11 = vld [vmem:[#allocation69_spill] sm:$0xff] }
 0x2ca   : > { %v4815_v46 = vrot.slane %v9991_v28, 4  ;;  %v5699_v35 = vrot.slane %v5567_v6, 1  ;;  %v5702_v60 = vrot.slane %v5569_v48, 1  ;;  %v4704_v10 = vmax.f32 %v13212_v11, %v9961_v38 }
 0x2cb   : > { %v6101_v45 = vrot.slane %v6002_v23, 2  ;;  %v5700_v20 = vrot.slane %v5568_v43, 1  ;;  %v6000_v25 = vmax.f32 %v10106_v58, %v5952_v27  ;;  %v6001_v61 = vmax.f32 %v10109_v18, %v5953_v51  ;;  %6678 = vmatmul.msk.bf16.gmra.mxu3 %vm3037_vm5, %v4907_v63  ;;  %v13213_v58 = vld [vmem:[#allocation6_spill] sm:$0xff] }
 0x2cc   : > { %v10208_v50 = vsel %vm4791_vm8, %v4813_v32, %v4815_v46  ;;  %v10214_v47 = vmax.f32 %v5569_v48, %v5702_v60  ;;  %6671 = vmatmul.msk.bf16.gmra.mxu2 %vm3037_vm5, %v13213_v58  ;;  %v4705_v8 = vmax.f32 %v13215_v16, %v13214_v39  ;;  %v4706_v44 = vmax.f32 %v13217_v13, %v13216_v37  ;;  %v13219_v32 = vld [vmem:[#allocation45_spill] sm:$0xff] }
 0x2cd   : > { %v5701_v28 = vsel %vm1066_vm6, %v5699_v35, %v5700_v20  ;;  %v5703_v41 = vsel %vm1066_vm6, %v5700_v20, %v5702_v60  ;;  %v4908_v22 = vpack.c.bf16 %v10208_v50, %v10199_v56  ;;  %v6098_v18 = vrot.slane %v6000_v25, 2  ;;  %v13220_v48 = vld [vmem:[#allocation65_spill] sm:$0xff]  ;;  %v13222_v20 = vld [vmem:[#allocation99_spill] sm:$0xff] }
 0x2ce   : > { %v6099_v63 = vrot.slane %v6001_v61, 2  ;;  %v10220_v33 = vmax.f32 %v5567_v6, %v5701_v28  ;;  %v10222_v31 = vmax.f32 %v5568_v43, %v5703_v41  ;;  %v10225_v14 = vmax.f32 %v5846_v5, %v10214_v47 }
 0x2cf   : > { %v5144_v1 = vrot.slane %v4704_v10, 1  ;;  %v5145_v24 = vrot.slane %v4705_v8, 1  ;;  %v5147_v21 = vrot.slane %v4706_v44, 1  ;;  %v3990_v56 = vrot.slane %v13220_v48, 2 }
 0x2d0   : > { %v6100_v9 = vsel %vm1599_vm7, %v6098_v18, %v6099_v63  ;;  %v6102_v54 = vsel %vm1599_vm7, %v6099_v63, %v6101_v45  ;;  %v10234_v42 = vmax.f32 %v5844_v19, %v10220_v33  ;;  %v10237_v49 = vmax.f32 %v5845_v3, %v10222_v31  ;;  %v13218_v19 = vld [vmem:[#allocation89_spill] sm:$0xff]  ;;  %v10260_v45 = vpop.f32.mrf.mxu2 }
 0x2d1   : > { %v6206_v7 = vpack.c.bf16 %v6102_v54, %v6100_v9  ;;  %v10241_v5 = vmax.f32 %v10098_v57, %v10225_v14  ;;  %v2939_v15 = vrot.slane %v13218_v19, 6  ;;  %v2940_v3 = vrot.slane %v13219_v32, 6  ;;  %13221 = vst [vmem:[#allocation71_spill] sm:$0xff] %v10260_v45 }
 0x2d2   : > { %v10245_v34 = vmax.f32 %v10092_v59, %v10234_v42  ;;  %v10249_v53 = vmax.f32 %v10095_v36, %v10237_v49  ;;  %v5146_v57 = vsel %vm1066_vm6, %v5144_v1, %v5145_v24  ;;  %v5148_v26 = vsel %vm1066_vm6, %v5145_v24, %v5147_v21 }
 0x2d3   : > { %6692 = vmatmul.msk.bf16.gmra.mxu0 %vm3037_vm5, %v6206_v7  ;;  %v6005_v40 = vmax.f32 %v5954_v30, %v10241_v5  ;;  %v5292_v23 = vmax.f32 %v4706_v44, %v5147_v21  ;;  %v5290_v43 = vmax.f32 %v4704_v10, %v5146_v57  ;;  %v5291_v36 = vmax.f32 %v4705_v8, %v5148_v26  ;;  %v13223_v7 = vld [vmem:[#allocation64_spill] sm:$0xff]  ;;  %v13225_v21 = vld [vmem:[#allocation63_spill] sm:$0xff] }
 0x2d4   : > { %v6003_v59 = vmax.f32 %v5952_v27, %v10245_v34  ;;  %v6004_v6 = vmax.f32 %v5953_v51, %v10249_v53  ;;  %v2942_v60 = vrot.slane %v13222_v20, 6  ;;  %v10264_v28 = vsel %vm392_vm0, %v2939_v15, %v2940_v3 }
 0x2d5   : > { %v6106_v46 = vrot.slane %v6005_v40, 2  ;;  %v5427_v35 = vrot.slane %v5292_v23, 2  ;;  %v5424_v61 = vrot.slane %v5290_v43, 2  ;;  %v5425_v50 = vrot.slane %v5291_v36, 2 }
 0x2d6   : > { %v6103_v30 = vrot.slane %v6003_v59, 2  ;;  %v6104_v25 = vrot.slane %v6004_v6, 2  ;;  %v4817_v27 = vrot.slane %v4704_v10, 4  ;;  %v4818_v51 = vrot.slane %v4705_v8, 4 }
 0x2d7   : > { %v5572_v11 = vmax.f32 %v5292_v23, %v5427_v35  ;;  %v5426_v18 = vsel %vm1599_vm7, %v5424_v61, %v5425_v50  ;;  %v5428_v63 = vsel %vm1599_vm7, %v5425_v50, %v5427_v35  ;;  %v10275_v10 = vsel %vm392_vm0, %v2940_v3, %v2942_v60 }
 0x2d8   : > { %v6105_v41 = vsel %vm1599_vm7, %v6103_v30, %v6104_v25  ;;  %v6107_v58 = vsel %vm1599_vm7, %v6104_v25, %v6106_v46  ;;  %v5570_v13 = vmax.f32 %v5290_v43, %v5426_v18  ;;  %v5571_v1 = vmax.f32 %v5291_v36, %v5428_v63  ;;  %v13229_v36 = vld [vmem:[#allocation24_spill] sm:$0xff]  ;;  %v10313_v61 = vpop.f32.mrf.mxu2  ;;  %v13256_v25 = vld [vmem:[#allocation30_spill] sm:$0xff] }
 0x2d9   : > { %v6207_v16 = vpack.c.bf16 %v6107_v58, %v6105_v41  ;;  %v5707_v9 = vrot.slane %v5572_v11, 1  ;;  %6649 = vmatmul.msk.bf16.gmra.mxu1 %vm3037_vm5, %v3022_v2  ;;  %v10278_v8 = vsel %vm4791_vm8, %v4817_v27, %v4818_v51  ;;  %v4820_v54 = vrot.slane %v4706_v44, 4  ;;  %v13228_v44 = vld [vmem:[#allocation66_spill] sm:$0xff]  ;;  %13231 = vst [vmem:[#allocation72_spill] sm:$0xff] %v10313_v61 }
 0x2da   : > { %v13224_v24 = vrot.slane %v13223_v7, 2  ;;  %v13226_v19 = vrot.slane %v13225_v21, 2  ;;  %v5704_v32 = vrot.slane %v5570_v13, 1  ;;  %v5705_v40 = vrot.slane %v5571_v1, 1 }
 0x2db   : > { %v10285_v57 = vmax.f32 %v5572_v11, %v5707_v9  ;;  %6679 = vmatmul.msk.bf16.gmra.mxu3 %vm3037_vm5, %v4908_v22  ;;  %v10292_v2 = vsel %vm4791_vm8, %v4818_v51, %v4820_v54  ;;  %v3992_v3 = vrot.slane %v13228_v44, 2  ;;  %v13241_v44 = vld [vmem:[#allocation15_spill] sm:$0xff] }
 0x2dc   : > { %v3989_v15 = vsel %vm1599_vm7, %v13226_v19, %v13224_v24  ;;  %v13227_v4 = vmov %v13224_v24  ;;  %v5706_v59 = vsel %vm1066_vm6, %v5704_v32, %v5705_v40  ;;  %v5708_v6 = vsel %vm1066_vm6, %v5705_v40, %v5707_v9  ;;  %6672 = vmatmul.msk.bf16.gmra.mxu2 %vm3037_vm5, %v13229_v36  ;;  %v13236_v24 = vld [vmem:[#allocation54_spill] sm:$0xff]  ;;  %v13245_v36 = vld [vmem:[#allocation9_spill] sm:$0xff] }
 0x2dd   : > { %v3991_v29 = vsel %vm1599_vm7, %v13227_v4, %v3990_v56  ;;  %v4179_v26 = vmax.f32 %v13225_v21, %v3989_v15  ;;  %v10301_v43 = vmax.f32 %v10214_v47, %v10285_v57  ;;  %v4909_v22 = vpack.c.bf16 %v10292_v2, %v10278_v8 }
 0x2de   : > { %v4180_v23 = vmax.f32 %v13223_v7, %v3991_v29  ;;  %v10307_v46 = vmax.f32 %v5570_v13, %v5706_v59  ;;  %v10309_v35 = vmax.f32 %v5571_v1, %v5708_v6  ;;  %v3993_v20 = vsel %vm1599_vm7, %v3990_v56, %v3992_v3 }
 0x2df   : > { %v4347_v60 = vrot.slane %v4179_v26, 1  ;;  %v10317_v47 = vmax.f32 %v10173_v0, %v10301_v43  ;;  %v4181_v50 = vmax.f32 %v13220_v48, %v3993_v20  ;;  %v3023_v0 = vpack.c.bf16 %v10275_v10, %v10264_v28  ;;  %v13235_v10 = vld [vmem:[#allocation90_spill] sm:$0xff] }
 0x2e0   : > { %v4348_v11 = vrot.slane %v4180_v23, 1  ;;  %v10324_v18 = vmax.f32 %v10220_v33, %v10307_v46  ;;  %v10328_v56 = vmax.f32 %v10222_v31, %v10309_v35  ;;  %v13234_v31 = vld [vmem:[#allocation49_spill] sm:$0xff]  ;;  %v2945_v7 = vrot.slane %v13235_v10, 6  ;;  %v13251_v10 = vld [vmem:[#allocation91_spill] sm:$0xff] }
 0x2e1   : > { %v6008_v63 = vmax.f32 %v10241_v5, %v10317_v47  ;;  %v4350_v13 = vrot.slane %v4181_v50, 1  ;;  %v2944_v54 = vrot.slane %v13234_v31, 6  ;;  %v13237_v21 = vrot.slane %v13236_v24, 1  ;;  %v13250_v31 = vld [vmem:[#allocation31_spill] sm:$0xff] }
 0x2e2   : > { %v4349_v48 = vsel %vm1066_vm6, %v4347_v60, %v4348_v11  ;;  %v10337_v1 = vmax.f32 %v10185_v52, %v10324_v18  ;;  %v10341_v33 = vmax.f32 %v10188_v55, %v10328_v56  ;;  %v13238_v52 = vld [vmem:[#allocation11_spill] sm:$0xff]  ;;  %v13246_v20 = vrot.slane %v13245_v36, 1 }
 0x2e3   : > { %v10343_v9 = vmax.f32 %v4179_v26, %v4349_v48  ;;  %6693 = vmatmul.msk.bf16.gmra.mxu0 %vm3037_vm5, %v6207_v16  ;;  %v4351_v5 = vsel %vm1066_vm6, %v4348_v11, %v4350_v13  ;;  %v10348_v28 = vmax.f32 %v4181_v50, %v4350_v13  ;;  %v13239_v19 = vrot.slane %v13238_v52, 1  ;;  %v13240_v16 = vld [vmem:[#allocation3_spill] sm:$0xff]  ;;  %v13248_v11 = vld [vmem:[#allocation4_spill] sm:$0xff] }
 0x2e4   : > { %v6006_v55 = vmax.f32 %v10245_v34, %v10337_v1  ;;  %v6007_v32 = vmax.f32 %v10249_v53, %v10341_v33  ;;  %v10360_v40 = vmax.f32 %v4180_v23, %v4351_v5  ;;  %v6111_v29 = vrot.slane %v6008_v63, 2  ;;  %v13242_v26 = vld [vmem:[#allocation55_spill] sm:$0xff]  ;;  %v13249_v48 = vld [vmem:[#allocation16_spill] sm:$0xff] }
 0x2e5   : > { %v3540_v15 = vsel %vm1066_vm6, %v13239_v19, %v13237_v21  ;;  %v10364_v4 = vmax.f32 %v13240_v16, %v10343_v9  ;;  %v10368_v3 = vmax.f32 %v13241_v44, %v10348_v28  ;;  %v13243_v59 = vrot.slane %v13242_v26, 1  ;;  %v13252_v44 = vld [vmem:[#allocation10_spill] sm:$0xff] }
 0x2e6   : > { %v13244_v6 = vmov %v13237_v21  ;;  %v6108_v60 = vrot.slane %v6006_v55, 2  ;;  %v6109_v50 = vrot.slane %v6007_v32, 2  ;;  %v10382_v63 = vmax.f32 %v13248_v11, %v10360_v40 }
 0x2e7   : > { %v3542_v34 = vsel %vm1066_vm6, %v13244_v6, %v13243_v59  ;;  %v13247_v53 = vmov %v13243_v59  ;;  %v10386_v13 = vmax.f32 %v13249_v48, %v10364_v4  ;;  %v10390_v5 = vmax.f32 %v13250_v31, %v10368_v3 }
 0x2e8   : > { %v3544_v23 = vsel %vm1066_vm6, %v13247_v53, %v13246_v20  ;;  %v2947_v21 = vrot.slane %v13251_v10, 6  ;;  %v3763_v19 = vmax.f32 %v13238_v52, %v3540_v15  ;;  %v3764_v16 = vmax.f32 %v13236_v24, %v3542_v34  ;;  %v10403_v53 = vpop.f32.mrf.mxu2 }
 0x2e9   : > { %v6110_v55 = vsel %vm1599_vm7, %v6108_v60, %v6109_v50  ;;  %v6112_v32 = vsel %vm1599_vm7, %v6109_v50, %v6111_v29  ;;  %v10399_v59 = vmax.f32 %v13252_v44, %v10382_v63  ;;  %v4707_v6 = vmax.f32 %v9961_v38, %v10386_v13  ;;  %13253 = vst [vmem:[#allocation73_spill] sm:$0xff] %v10403_v53 }
 0x2ea   : > { %v6208_v20 = vpack.c.bf16 %v6112_v32, %v6110_v55  ;;  %v4709_v11 = vmax.f32 %v13216_v37, %v10390_v5  ;;  %v3765_v15 = vmax.f32 %v13242_v26, %v3544_v23  ;;  %v13254_v34 = vrot.slane %v13245_v36, 1  ;;  %6650 = vmatmul.msk.bf16.gmra.mxu1 %vm3037_vm5, %v3023_v0 }
 0x2eb   : > { %v4708_v29 = vmax.f32 %v13214_v39, %v10399_v59  ;;  %v5149_v50 = vrot.slane %v4707_v6, 1  ;;  %v4822_v48 = vrot.slane %v4707_v6, 4  ;;  %v3994_v38 = vrot.slane %v3763_v19, 2  ;;  %6680 = vmatmul.msk.bf16.gmra.mxu3 %vm3037_vm5, %v4909_v22 }
 0x2ec   : > { %v3766_v60 = vmax.f32 %v13245_v36, %v13254_v34  ;;  %v5152_v31 = vrot.slane %v4709_v11, 1  ;;  %v4825_v10 = vrot.slane %v4709_v11, 4  ;;  %v3995_v55 = vrot.slane %v3764_v16, 2  ;;  %6673 = vmatmul.msk.bf16.gmra.mxu2 %vm3037_vm5, %v13256_v25 }
 0x2ed   : > { %v3997_v32 = vrot.slane %v3765_v15, 2  ;;  %v5150_v36 = vrot.slane %v4708_v29, 1  ;;  %v4823_v23 = vrot.slane %v4708_v29, 4  ;;  %v2946_v39 = vsel %vm392_vm0, %v2944_v54, %v2945_v7 }
 0x2ee   : > { %v3999_v0 = vrot.slane %v3766_v60, 2  ;;  %v5295_v34 = vmax.f32 %v4709_v11, %v5152_v31  ;;  %v3996_v51 = vsel %vm1599_vm7, %v3994_v38, %v3995_v55  ;;  %v2948_v54 = vsel %vm392_vm0, %v2945_v7, %v2947_v21 }
 0x2ef   : > { %v3998_v58 = vsel %vm1599_vm7, %v3995_v55, %v3997_v32  ;;  %v5151_v37 = vsel %vm1066_vm6, %v5149_v50, %v5150_v36  ;;  %v5153_v53 = vsel %vm1066_vm6, %v5150_v36, %v5152_v31  ;;  %v4824_v8 = vsel %vm4791_vm8, %v4822_v48, %v4823_v23 }
 0x2f0   : > { %v4826_v2 = vsel %vm4791_vm8, %v4823_v23, %v4825_v10  ;;  %v5293_v22 = vmax.f32 %v4707_v6, %v5151_v37  ;;  %v5294_v60 = vmax.f32 %v4708_v29, %v5153_v53  ;;  %v5432_v11 = vrot.slane %v5295_v34, 2  ;;  %v10433_v6 = vpop.f32.mrf.mxu2 }
 0x2f1   : > { %v4910_v61 = vpack.c.bf16 %v4826_v2, %v4824_v8  ;;  %v4000_v38 = vsel %vm1599_vm7, %v3997_v32, %v3999_v0  ;;  %v4182_v55 = vmax.f32 %v3763_v19, %v3996_v51  ;;  %v4183_v44 = vmax.f32 %v3764_v16, %v3998_v58  ;;  %13257 = vst [vmem:[#allocation5_spill] sm:$0xff] %v10433_v6 }
 0x2f2   : > { %v5429_v27 = vrot.slane %v5293_v22, 2  ;;  %v5430_v25 = vrot.slane %v5294_v60, 2  ;;  %v5575_v41 = vmax.f32 %v5295_v34, %v5432_v11  ;;  %v4184_v50 = vmax.f32 %v3765_v15, %v4000_v38  ;;  %v13258_v34 = vld [vmem:[#allocation8_spill] sm:$0xff] }
 0x2f3   : > { %v4352_v45 = vrot.slane %v4182_v55, 1  ;;  %v4353_v31 = vrot.slane %v4183_v44, 1  ;;  %v2949_v48 = vrot.slane %v13238_v52, 6  ;;  %v12394_v10 = vrot.slane %v13236_v24, 6  ;;  %6694 = vmatmul.msk.bf16.gmra.mxu0 %vm3037_vm5, %v6208_v20 }
 0x2f4   : > { %v5431_v7 = vsel %vm1599_vm7, %v5429_v27, %v5430_v25  ;;  %v5433_v21 = vsel %vm1599_vm7, %v5430_v25, %v5432_v11  ;;  %v5712_v51 = vrot.slane %v5575_v41, 1  ;;  %v4355_v58 = vrot.slane %v4184_v50, 1  ;;  %v13262_v11 = vld [vmem:[#allocation39_spill] sm:$0xff]  ;;  %v13264_v25 = vld [vmem:[#allocation33_spill] sm:$0xff] }
 0x2f5   : > { %v5573_v19 = vmax.f32 %v5293_v22, %v5431_v7  ;;  %v5574_v16 = vmax.f32 %v5294_v60, %v5433_v21  ;;  %v3024_v53 = vpack.c.bf16 %v2948_v54, %v2946_v39  ;;  %v4354_v15 = vsel %vm1066_vm6, %v4352_v45, %v4353_v31 }
 0x2f6   : > { %v10438_v29 = vmax.f32 %v5575_v41, %v5712_v51  ;;  %v4356_v52 = vsel %vm1066_vm6, %v4353_v31, %v4355_v58  ;;  %v10441_v32 = vmax.f32 %v4182_v55, %v4354_v15  ;;  %v10443_v20 = vmax.f32 %v4184_v50, %v4355_v58 }
 0x2f7   : > { %v5709_v37 = vrot.slane %v5573_v19, 1  ;;  %v5710_v36 = vrot.slane %v5574_v16, 1  ;;  %v10445_v27 = vmax.f32 %v4183_v44, %v4356_v52  ;;  %v10450_v23 = vsel %vm392_vm0, %v2949_v48, %v12394_v10  ;;  %v13259_v44 = vld [vmem:[#allocation34_spill] sm:$0xff] }
 0x2f8   : > { %v10454_v45 = vmax.f32 %v10285_v57, %v10438_v29  ;;  %v10458_v41 = vmax.f32 %v10343_v9, %v10441_v32  ;;  %v10462_v0 = vmax.f32 %v10348_v28, %v10443_v20  ;;  %v2819_v39 = vmax.f32 %v13259_v44, %v13258_v34  ;;  %v13260_v57 = vld [vmem:[#allocation7_spill] sm:$0xff]  ;;  %v13266_v48 = vld [vmem:[#allocation26_spill] sm:$0xff]  ;;  %v10530_v44 = vpop.f32.mrf.mxu2 }
 0x2f9   : > { %v5711_v8 = vsel %vm1066_vm6, %v5709_v37, %v5710_v36  ;;  %v5713_v2 = vsel %vm1066_vm6, %v5710_v36, %v5712_v51  ;;  %v10470_v22 = vmax.f32 %v10360_v40, %v10445_v27  ;;  %v13261_v60 = vrot.slane %v13260_v57, 1  ;;  %v13265_v40 = vld [vmem:[#allocation98_spill] sm:$0xff]  ;;  %13270 = vst [vmem:[#allocation78_spill] sm:$0xff] %v10530_v44 }
 0x2fa   : > { %v13263_v9 = vrot.slane %v13262_v11, 1  ;;  %v10477_v38 = vmax.f32 %v5573_v19, %v5711_v8  ;;  %v10479_v28 = vmax.f32 %v5574_v16, %v5713_v2  ;;  %v10483_v55 = vmax.f32 %v10225_v14, %v10454_v45  ;;  %6651 = vmatmul.msk.bf16.gmra.mxu1 %vm3037_vm5, %v3024_v53  ;;  %v13267_v51 = vld [vmem:[#allocation58_spill] sm:$0xff] }
 0x2fb   : > { %v10487_v50 = vmax.f32 %v13264_v25, %v10458_v41  ;;  %v10492_v31 = vmax.f32 %v13265_v40, %v10470_v22  ;;  %v10496_v7 = vmax.f32 %v13266_v48, %v10462_v0  ;;  %v2952_v21 = vrot.slane %v13242_v26, 6  ;;  %6681 = vmatmul.msk.bf16.gmra.mxu3 %vm3037_vm5, %v4910_v61  ;;  %v13271_v8 = vld [vmem:[#allocation38_spill] sm:$0xff] }
 0x2fc   : > { %v3547_v54 = vsel %vm1066_vm6, %v13263_v9, %v13261_v60  ;;  %v13268_v58 = vrot.slane %v13267_v51, 1  ;;  %v13269_v14 = vmov %v13261_v60  ;;  %v10506_v16 = vmax.f32 %v10307_v46, %v10477_v38  ;;  %6674 = vmatmul.msk.bf16.gmra.mxu2 %vm3037_vm5, %v13271_v8 }
 0x2fd   : > { %v10510_v53 = vmax.f32 %v10309_v35, %v10479_v28  ;;  %v6011_v15 = vmax.f32 %v10317_v47, %v10483_v55  ;;  %v4710_v26 = vmax.f32 %v10386_v13, %v10487_v50  ;;  %v4711_v52 = vmax.f32 %v10399_v59, %v10492_v31 }
 0x2fe   : > { %v3549_v19 = vsel %vm1066_vm6, %v13269_v14, %v13268_v58  ;;  %v4712_v37 = vmax.f32 %v10390_v5, %v10496_v7  ;;  %v3550_v46 = vrot.slane %v2819_v39, 1  ;;  %v3767_v36 = vmax.f32 %v13262_v11, %v3547_v54 }
 0x2ff   : > { %v10524_v35 = vmax.f32 %v10234_v42, %v10506_v16  ;;  %v10528_v47 = vmax.f32 %v10237_v49, %v10510_v53  ;;  %v6116_v13 = vrot.slane %v6011_v15, 2  ;;  %v5154_v61 = vrot.slane %v4710_v26, 1 }
 0x300   : > { %v5155_v59 = vrot.slane %v4711_v52, 1  ;;  %v5157_v5 = vrot.slane %v4712_v37, 1  ;;  %v4827_v2 = vrot.slane %v4710_v26, 4  ;;  %v4828_v60 = vrot.slane %v4711_v52, 4 }
 0x301   : > { %v6009_v9 = vmax.f32 %v10337_v1, %v10524_v35  ;;  %v6010_v42 = vmax.f32 %v10341_v33, %v10528_v47  ;;  %v4830_v54 = vrot.slane %v4712_v37, 4  ;;  %v13272_v49 = vmov %v13268_v58 }
 0x302   : > { %v3551_v25 = vsel %vm1066_vm6, %v13272_v49, %v3550_v46  ;;  %v5156_v40 = vsel %vm1066_vm6, %v5154_v61, %v5155_v59  ;;  %v5158_v48 = vsel %vm1066_vm6, %v5155_v59, %v5157_v5  ;;  %v5298_v58 = vmax.f32 %v4712_v37, %v5157_v5 }
 0x303   : > { %v4829_v14 = vsel %vm4791_vm8, %v4827_v2, %v4828_v60  ;;  %v6113_v15 = vrot.slane %v6009_v9, 2  ;;  %v6114_v8 = vrot.slane %v6010_v42, 2  ;;  %v5296_v10 = vmax.f32 %v4710_v26, %v5156_v40 }
 0x304   : > { %v5297_v44 = vmax.f32 %v4711_v52, %v5158_v48  ;;  %v5437_v1 = vrot.slane %v5298_v58, 2  ;;  %v13273_v6 = vrot.slane %v13236_v24, 6  ;;  %v4831_v30 = vsel %vm4791_vm8, %v4828_v60, %v4830_v54 }
 0x305   : > { %v3768_v49 = vmax.f32 %v13260_v57, %v3549_v19  ;;  %v6115_v61 = vsel %vm1599_vm7, %v6113_v15, %v6114_v8  ;;  %v6117_v59 = vsel %vm1599_vm7, %v6114_v8, %v6116_v13  ;;  %v5434_v37 = vrot.slane %v5296_v10, 2 }
 0x306   : > { %v2953_v33 = vsel %vm392_vm0, %v13273_v6, %v2952_v21  ;;  %v5435_v5 = vrot.slane %v5297_v44, 2  ;;  %v6209_v2 = vpack.c.bf16 %v6117_v59, %v6115_v61  ;;  %v5578_v9 = vmax.f32 %v5298_v58, %v5437_v1 }
 0x307   : > { %v4911_v42 = vpack.c.bf16 %v4831_v30, %v4829_v14  ;;  %v3769_v26 = vmax.f32 %v13267_v51, %v3551_v25  ;;  %v3770_v6 = vmax.f32 %v2819_v39, %v3550_v46  ;;  %v4001_v21 = vrot.slane %v3767_v36, 2 }
 0x308   : > { %v5436_v52 = vsel %vm1599_vm7, %v5434_v37, %v5435_v5  ;;  %v5438_v24 = vsel %vm1599_vm7, %v5435_v5, %v5437_v1  ;;  %6695 = vmatmul.msk.bf16.gmra.mxu0 %vm3037_vm5, %v6209_v2  ;;  %v5717_v54 = vrot.slane %v5578_v9, 1  ;;  %v4002_v40 = vrot.slane %v3768_v49, 2 }
 0x309   : > { %v5576_v19 = vmax.f32 %v5296_v10, %v5436_v52  ;;  %v5577_v60 = vmax.f32 %v5297_v44, %v5438_v24  ;;  %v3025_v13 = vpack.c.bf16 %v2953_v33, %v10450_v23  ;;  %v4004_v48 = vrot.slane %v3769_v26, 2 }
 0x30a   : > { %v4006_v15 = vrot.slane %v3770_v6, 2  ;;  %v2954_v30 = vrot.slane %v13262_v11, 6  ;;  %v10557_v14 = vmax.f32 %v5578_v9, %v5717_v54  ;;  %v4003_v8 = vsel %vm1599_vm7, %v4001_v21, %v4002_v40  ;;  %v13275_v9 = vld [vmem:[#allocation92_spill] sm:$0xff] }
 0x30b   : > { %v5714_v58 = vrot.slane %v5576_v19, 1  ;;  %v5715_v25 = vrot.slane %v5577_v60, 1  ;;  %v4005_v39 = vsel %vm1599_vm7, %v4002_v40, %v4004_v48  ;;  %v4185_v10 = vmax.f32 %v3767_v36, %v4003_v8  ;;  %6652 = vmatmul.msk.bf16.gmra.mxu1 %vm3037_vm5, %v3025_v13  ;;  %6682 = vmatmul.msk.bf16.gmra.mxu3 %vm3037_vm5, %v4911_v42 }
 0x30c   : > { %v4007_v46 = vsel %vm1599_vm7, %v4004_v48, %v4006_v15  ;;  %v2955_v44 = vrot.slane %v13260_v57, 6  ;;  %v10567_v11 = vmax.f32 %v10438_v29, %v10557_v14  ;;  %v4186_v33 = vmax.f32 %v3768_v49, %v4005_v39  ;;  %v13274_v29 = vld [vmem:[#allocation85_spill] sm:$0xff] }
 0x30d   : > { %v5716_v1 = vsel %vm1066_vm6, %v5714_v58, %v5715_v25  ;;  %v5718_v23 = vsel %vm1066_vm6, %v5715_v25, %v5717_v54  ;;  %v4187_v37 = vmax.f32 %v3769_v26, %v4007_v46  ;;  %v4357_v5 = vrot.slane %v4185_v10, 1  ;;  %v10601_v54 = vpop.f32.mrf.mxu1  ;;  %v13280_v25 = vld [vmem:[#allocation32_spill] sm:$0xff] }
 0x30e   : > { %v10570_v61 = vmax.f32 %v5576_v19, %v5716_v1  ;;  %v10572_v59 = vmax.f32 %v5577_v60, %v5718_v23  ;;  %v10576_v57 = vmax.f32 %v10301_v43, %v10567_v11  ;;  %v4358_v36 = vrot.slane %v4186_v33, 1  ;;  %v13277_v19 = vld [vmem:[#allocation47_spill] sm:$0xff] }
 0x30f   : > { %v2957_v2 = vrot.slane %v13267_v51, 6  ;;  %v10582_v52 = vmax.f32 %v13275_v9, %v13274_v29  ;;  %v4360_v43 = vrot.slane %v4187_v37, 1  ;;  %v2956_v21 = vsel %vm392_vm0, %v2954_v30, %v2955_v44  ;;  %v13278_v30 = vld [vmem:[#allocation21_spill] sm:$0xff] }
 0x310   : > { %v10587_v6 = vmax.f32 %v10477_v38, %v10570_v61  ;;  %v10591_v26 = vmax.f32 %v10479_v28, %v10572_v59  ;;  %v6014_v42 = vmax.f32 %v10483_v55, %v10576_v57  ;;  %v4359_v51 = vsel %vm1066_vm6, %v4357_v5, %v4358_v36 }
 0x311   : > { %v10599_v60 = vmax.f32 %v13277_v19, %v10582_v52  ;;  %v4361_v55 = vsel %vm1066_vm6, %v4358_v36, %v4360_v43  ;;  %v10612_v40 = vmax.f32 %v4185_v10, %v4359_v51  ;;  %v10616_v48 = vmax.f32 %v4187_v37, %v4360_v43 }
 0x312   : > { %v10605_v38 = vmax.f32 %v10324_v18, %v10587_v6  ;;  %v10609_v28 = vmax.f32 %v10328_v56, %v10591_v26  ;;  %v10614_v13 = vmax.f32 %v4186_v33, %v4361_v55  ;;  %v2958_v15 = vsel %vm392_vm0, %v2955_v44, %v2957_v2 }
 0x313   : > { %v13279_v58 = vrot.slane %v13278_v30, 1  ;;  %v13281_v8 = vrot.slane %v13280_v25, 1  ;;  %v10630_v46 = vmax.f32 %v10441_v32, %v10612_v40  ;;  %v2823_v10 = vmax.f32 %v13258_v34, %v10599_v60 }
 0x314   : > { %v6012_v56 = vmax.f32 %v10524_v35, %v10605_v38  ;;  %v6013_v39 = vmax.f32 %v10528_v47, %v10609_v28  ;;  %v6121_v44 = vrot.slane %v6014_v42, 2  ;;  %v10636_v1 = vmax.f32 %v10445_v27, %v10614_v13  ;;  %v13283_v35 = vld [vmem:[#allocation28_spill] sm:$0xff] }
 0x315   : > { %v3554_v18 = vsel %vm1066_vm6, %v13281_v8, %v13279_v58  ;;  %v10640_v23 = vmax.f32 %v10443_v20, %v10616_v48  ;;  %v13284_v33 = vrot.slane %v13283_v35, 1  ;;  %v13285_v47 = vmov %v13279_v58 }
 0x316   : > { %13282 = vst [vmem:[#allocation79_spill] sm:$0xff] %v10636_v1  ;;  %v6118_v32 = vrot.slane %v6012_v56, 2  ;;  %v6119_v5 = vrot.slane %v6013_v39, 2  ;;  %v10649_v34 = vmax.f32 %v10364_v4, %v10630_v46  ;;  %v3026_v36 = vpack.c.bf16 %v2958_v15, %v2956_v21 }
 0x317   : > { %v3556_v37 = vsel %vm1066_vm6, %v13285_v47, %v13284_v33  ;;  %v10653_v27 = vmax.f32 %v10382_v63, %v10636_v1  ;;  %v10657_v20 = vmax.f32 %v10368_v3, %v10640_v23  ;;  %v3557_v2 = vrot.slane %v2823_v10, 1 }
 0x318   : > { %v3771_v29 = vmax.f32 %v13280_v25, %v3554_v18  ;;  %v6120_v9 = vsel %vm1599_vm7, %v6118_v32, %v6119_v5  ;;  %v6122_v43 = vsel %vm1599_vm7, %v6119_v5, %v6121_v44  ;;  %v4713_v4 = vmax.f32 %v10487_v50, %v10649_v34  ;;  %v3101_v44 = vpop.f32.mrf.mxu1 }
 0x319   : > { %v3772_v42 = vmax.f32 %v13278_v30, %v3556_v37  ;;  %v6210_v51 = vpack.c.bf16 %v6122_v43, %v6120_v9  ;;  %v4714_v63 = vmax.f32 %v10492_v31, %v10653_v27  ;;  %v4715_v3 = vmax.f32 %v10496_v7, %v10657_v20 }
 0x31a   : > { %v13286_v21 = vmov %v13284_v33  ;;  %v5159_v55 = vrot.slane %v4713_v4, 1  ;;  %v4832_v15 = vrot.slane %v4713_v4, 4  ;;  %v3774_v8 = vmax.f32 %v2823_v10, %v3557_v2 }
 0x31b   : > { %v3558_v19 = vsel %vm1066_vm6, %v13286_v21, %v3557_v2  ;;  %6696 = vmatmul.msk.bf16.gmra.mxu0 %vm3037_vm5, %v6210_v51  ;;  %v5160_v50 = vrot.slane %v4714_v63, 1  ;;  %v5162_v18 = vrot.slane %v4715_v3, 1  ;;  %v4833_v56 = vrot.slane %v4714_v63, 4  ;;  %6653 = vmatmul.msk.bf16.gmra.mxu1 %vm3037_vm5, %v3026_v36  ;;  %v13287_v2 = vld [vmem:[#allocation62_spill] sm:$0xff] }
 0x31c   : > { %v3773_v58 = vmax.f32 %v13283_v35, %v3558_v19  ;;  %v4835_v39 = vrot.slane %v4715_v3, 4  ;;  %v4008_v31 = vrot.slane %v3771_v29, 2  ;;  %v4009_v33 = vrot.slane %v3772_v42, 2 }
 0x31d   : > { %v4013_v7 = vrot.slane %v3774_v8, 2  ;;  %v5161_v37 = vsel %vm1066_vm6, %v5159_v55, %v5160_v50  ;;  %v5163_v32 = vsel %vm1066_vm6, %v5160_v50, %v5162_v18  ;;  %v5301_v5 = vmax.f32 %v4715_v3, %v5162_v18 }
 0x31e   : > { %v4011_v47 = vrot.slane %v3773_v58, 2  ;;  %v4834_v10 = vsel %vm4791_vm8, %v4832_v15, %v4833_v56  ;;  %v5299_v43 = vmax.f32 %v4713_v4, %v5161_v37  ;;  %v5300_v51 = vmax.f32 %v4714_v63, %v5163_v32 }
 0x31f   : > { %v4836_v21 = vsel %vm4791_vm8, %v4833_v56, %v4835_v39  ;;  %v5442_v19 = vrot.slane %v5301_v5, 2  ;;  %v4010_v49 = vsel %vm1599_vm7, %v4008_v31, %v4009_v33  ;;  %v2959_v4 = vrot.slane %v13280_v25, 6 }
 0x320   : > { %v4912_v24 = vpack.c.bf16 %v4836_v21, %v4834_v10  ;;  %v4012_v8 = vsel %vm1599_vm7, %v4009_v33, %v4011_v47  ;;  %v5439_v55 = vrot.slane %v5299_v43, 2  ;;  %v5440_v1 = vrot.slane %v5300_v51, 2 }
 0x321   : > { %v4014_v3 = vsel %vm1599_vm7, %v4011_v47, %v4013_v7  ;;  %v4188_v50 = vmax.f32 %v3771_v29, %v4010_v49  ;;  %v5581_v36 = vmax.f32 %v5301_v5, %v5442_v19  ;;  %v4189_v15 = vmax.f32 %v3772_v42, %v4012_v8 }
 0x322   : > { %6683 = vmatmul.msk.bf16.gmra.mxu3 %vm3037_vm5, %v4912_v24  ;;  %v4190_v18 = vmax.f32 %v3773_v58, %v4014_v3  ;;  %v5441_v63 = vsel %vm1599_vm7, %v5439_v55, %v5440_v1  ;;  %v5443_v56 = vsel %vm1599_vm7, %v5440_v1, %v5442_v19  ;;  %v2960_v31 = vrot.slane %v13278_v30, 6  ;;  %v3104_v30 = vpop.f32.mrf.mxu1 }
 0x323   : > { %v4362_v39 = vrot.slane %v4188_v50, 1  ;;  %v5579_v33 = vmax.f32 %v5299_v43, %v5441_v63  ;;  %v5580_v37 = vmax.f32 %v5300_v51, %v5443_v56  ;;  %v5722_v32 = vrot.slane %v5581_v36, 1 }
 0x324   : > { %v4363_v10 = vrot.slane %v4189_v15, 1  ;;  %v10690_v49 = vadd.f32 %v10123_v17, %v10601_v54  ;;  %v4365_v24 = vrot.slane %v4190_v18, 1  ;;  %v2961_v29 = vsel %vm392_vm0, %v2959_v4, %v2960_v31 }
 0x325   : > { %v2962_v25 = vrot.slane %v13283_v35, 6  ;;  %v5719_v42 = vrot.slane %v5579_v33, 1  ;;  %v5720_v58 = vrot.slane %v5580_v37, 1  ;;  %v10694_v47 = vmax.f32 %v5581_v36, %v5722_v32 }
 0x326   : > { %v4364_v1 = vsel %vm1066_vm6, %v4362_v39, %v4363_v10  ;;  %v4366_v7 = vsel %vm1066_vm6, %v4363_v10, %v4365_v24  ;;  %v10700_v43 = vmax.f32 %v4190_v18, %v4365_v24  ;;  %v4985_v10 = vpop.f32.mrf.mxu3 }
 0x327   : > { %v10698_v5 = vmax.f32 %v4188_v50, %v4364_v1  ;;  %v2963_v17 = vsel %vm392_vm0, %v2960_v31, %v2962_v25  ;;  %v5721_v54 = vsel %vm1066_vm6, %v5719_v42, %v5720_v58  ;;  %v5723_v51 = vsel %vm1066_vm6, %v5720_v58, %v5722_v32 }
 0x328   : > { %v10707_v35 = vmax.f32 %v10557_v14, %v10694_v47  ;;  %v10709_v21 = vmax.f32 %v4189_v15, %v4366_v7  ;;  %v10711_v19 = vmax.f32 %v5579_v33, %v5721_v54  ;;  %v10713_v8 = vmax.f32 %v5580_v37, %v5723_v51 }
 0x329   : > { %v10717_v55 = vmax.f32 %v10612_v40, %v10698_v5  ;;  %v10721_v3 = vmax.f32 %v10616_v48, %v10700_v43  ;;  %v10724_v50 = vadd.f32 %v10157_v12, %v3101_v44  ;;  %v10727_v14 = vadd.f32 %v10202_v62, %v3104_v30  ;;  %v13288_v44 = vld [vmem:[#allocation96_spill] sm:$0xff] }
 0x32a   : > { %v10731_v36 = vmax.f32 %v10454_v45, %v10707_v35  ;;  %v10735_v15 = vmax.f32 %v10614_v13, %v10709_v21  ;;  %v10739_v40 = vmax.f32 %v10570_v61, %v10711_v19  ;;  %v10743_v48 = vmax.f32 %v10572_v59, %v10713_v8  ;;  %v3106_v58 = vpop.f32.mrf.mxu1 }
 0x32b   : > { %v10747_v12 = vmax.f32 %v10458_v41, %v10717_v55  ;;  %v10751_v62 = vmax.f32 %v10462_v0, %v10721_v3  ;;  %v3027_v61 = vpack.c.bf16 %v2963_v17, %v2961_v29  ;;  %v2827_v59 = vmax.f32 %v10599_v60, %v13288_v44  ;;  %v13289_v60 = vld [vmem:[#allocation48_spill] sm:$0xff] }
 0x32c   : > { %v6017_v45 = vmax.f32 %v10576_v57, %v10731_v36  ;;  %v10757_v13 = vmax.f32 %v10470_v22, %v10735_v15  ;;  %v10763_v18 = vmax.f32 %v10506_v16, %v10739_v40  ;;  %v10767_v41 = vmax.f32 %v10510_v53, %v10743_v48  ;;  %v13291_v16 = vld [vmem:[#allocation17_spill] sm:$0xff]  ;;  %v13293_v53 = vld [vmem:[#allocation22_spill] sm:$0xff] }
 0x32d   : > { %v4716_v0 = vmax.f32 %v10649_v34, %v10747_v12  ;;  %v4718_v57 = vmax.f32 %v10657_v20, %v10751_v62  ;;  %6654 = vmatmul.msk.bf16.gmra.mxu1 %vm3037_vm5, %v3027_v61  ;;  %v13290_v63 = vrot.slane %v13289_v60, 1  ;;  %v13292_v56 = vrot.slane %v13291_v16, 1 }
 0x32e   : > { %v6126_v22 = vrot.slane %v6017_v45, 2  ;;  %v4717_v4 = vmax.f32 %v10653_v27, %v10757_v13  ;;  %v13294_v31 = vrot.slane %v13293_v53, 1  ;;  %v6015_v20 = vmax.f32 %v10605_v38, %v10763_v18 }
 0x32f   : > { %v3561_v39 = vsel %vm1066_vm6, %v13292_v56, %v13290_v63  ;;  %v13295_v33 = vmov %v13290_v63  ;;  %v6016_v27 = vmax.f32 %v10609_v28, %v10767_v41  ;;  %v5164_v37 = vrot.slane %v4716_v0, 1 }
 0x330   : > { %v3563_v34 = vsel %vm1066_vm6, %v13295_v33, %v13294_v31  ;;  %v5167_v32 = vrot.slane %v4718_v57, 1  ;;  %v5165_v24 = vrot.slane %v4717_v4, 1  ;;  %v4837_v29 = vrot.slane %v4716_v0, 4  ;;  %v13296_v31 = vld [vmem:[#allocation71_spill] sm:$0xff] }
 0x331   : > { %v4838_v25 = vrot.slane %v4717_v4, 4  ;;  %v4840_v42 = vrot.slane %v4718_v57, 4  ;;  %v6123_v1 = vrot.slane %v6015_v20, 2  ;;  %v6124_v30 = vrot.slane %v6016_v27, 2 }
 0x332   : > { %v5304_v7 = vmax.f32 %v4718_v57, %v5167_v32  ;;  %v3564_v17 = vrot.slane %v2827_v59, 1  ;;  %v5166_v54 = vsel %vm1066_vm6, %v5164_v37, %v5165_v24  ;;  %v5168_v51 = vsel %vm1066_vm6, %v5165_v24, %v5167_v32 }
 0x333   : > { %v4839_v38 = vsel %vm4791_vm8, %v4837_v29, %v4838_v25  ;;  %v4841_v28 = vsel %vm4791_vm8, %v4838_v25, %v4840_v42  ;;  %v6125_v45 = vsel %vm1599_vm7, %v6123_v1, %v6124_v30  ;;  %v6127_v61 = vsel %vm1599_vm7, %v6124_v30, %v6126_v22  ;;  %v13298_v25 = vld [vmem:[#allocation27_spill] sm:$0xff] }
 0x334   : > { %v5302_v63 = vmax.f32 %v4716_v0, %v5166_v54  ;;  %v5303_v56 = vmax.f32 %v4717_v4, %v5168_v51  ;;  %v10797_v33 = vadd.f32 %v13296_v31, %v3106_v58  ;;  %v6211_v20 = vpack.c.bf16 %v6127_v61, %v6125_v45  ;;  %v13299_v61 = vld [vmem:[#allocation86_spill] sm:$0xff]  ;;  %v13300_v31 = vld [vmem:[#allocation93_spill] sm:$0xff] }
 0x335   : > { %v5447_v57 = vrot.slane %v5304_v7, 2  ;;  %v4913_v27 = vpack.c.bf16 %v4841_v28, %v4839_v38  ;;  %v5065_v37 = vadd.f32 %v4985_v10, %v10690_v49  ;;  %v13297_v24 = vrot.slane %v13293_v53, 1 }
 0x336   : > { %v5444_v9 = vrot.slane %v5302_v63, 2  ;;  %v5445_v32 = vrot.slane %v5303_v56, 2  ;;  %6697 = vmatmul.msk.bf16.gmra.mxu0 %vm3037_vm5, %v6211_v20  ;;  %v3775_v22 = vmax.f32 %v13291_v16, %v3561_v39  ;;  %v3776_v4 = vmax.f32 %v13289_v60, %v3563_v34 }
 0x337   : > { %v3565_v29 = vsel %vm1066_vm6, %v13297_v24, %v3564_v17  ;;  %v5584_v0 = vmax.f32 %v5304_v7, %v5447_v57  ;;  %6684 = vmatmul.msk.bf16.gmra.mxu3 %vm3037_vm5, %v4913_v27  ;;  %v3778_v1 = vmax.f32 %v2827_v59, %v3564_v17  ;;  %v10813_v20 = vmax.f32 %v13300_v31, %v13299_v61  ;;  %v3109_v31 = vpop.f32.mrf.mxu1 }
 0x338   : > { %v5446_v58 = vsel %vm1599_vm7, %v5444_v9, %v5445_v32  ;;  %v5448_v49 = vsel %vm1599_vm7, %v5445_v32, %v5447_v57  ;;  %v3777_v10 = vmax.f32 %v13293_v53, %v3565_v29  ;;  %v4015_v38 = vrot.slane %v3775_v22, 2  ;;  %v4987_v9 = vpop.f32.mrf.mxu3 }
 0x339   : > { %v5582_v30 = vmax.f32 %v5302_v63, %v5446_v58  ;;  %v5583_v54 = vmax.f32 %v5303_v56, %v5448_v49  ;;  %v5727_v51 = vrot.slane %v5584_v0, 1  ;;  %v4016_v28 = vrot.slane %v3776_v4, 2  ;;  %v10837_v49 = vld [vmem:[%s12048_s4] ss:$0 sm:$0xff] }
 0x33a   : > { %v4018_v45 = vrot.slane %v3777_v10, 2  ;;  %v4020_v7 = vrot.slane %v3778_v1, 2  ;;  %v10822_v63 = vmax.f32 %v10582_v52, %v10813_v20 }
 0x33b   : > { %v5724_v39 = vrot.slane %v5582_v30, 1  ;;  %v5725_v34 = vrot.slane %v5583_v54, 1  ;;  %v10815_v27 = vmax.f32 %v5584_v0, %v5727_v51  ;;  %v4017_v57 = vsel %vm1599_vm7, %v4015_v38, %v4016_v28 }
 0x33c   : > { %v4019_v59 = vsel %vm1599_vm7, %v4016_v28, %v4018_v45  ;;  %v4021_v17 = vsel %vm1599_vm7, %v4018_v45, %v4020_v7  ;;  %v4191_v29 = vmax.f32 %v3775_v22, %v4017_v57  ;;  %v10846_v22 = vmax.f32 %v13288_v44, %v10822_v63 }
 0x33d   : > { %v5726_v56 = vsel %vm1066_vm6, %v5724_v39, %v5725_v34  ;;  %v5728_v32 = vsel %vm1066_vm6, %v5725_v34, %v5727_v51  ;;  %v10828_v24 = vmax.f32 %v10694_v47, %v10815_v27  ;;  %v4192_v52 = vmax.f32 %v3776_v4, %v4019_v59  ;;  %v6286_v47 = vpop.f32.mrf.mxu0 }
 0x33e   : > { %v10830_v0 = vmax.f32 %v5582_v30, %v5726_v56  ;;  %v10832_v58 = vmax.f32 %v5583_v54, %v5728_v32  ;;  %v4193_v1 = vmax.f32 %v3777_v10, %v4021_v17  ;;  %v5066_v51 = vadd.f32 %v4987_v9, %v10724_v50 }
 0x33f   : > { %v10841_v38 = vmax.f32 %v10567_v11, %v10828_v24  ;;  %v4367_v28 = vrot.slane %v4191_v29, 1  ;;  %v6366_v10 = vadd.f32 %v6286_v47, %v5065_v37  ;;  %v4368_v11 = vrot.slane %v4192_v52, 1  ;;  %v13304_v47 = vld [vmem:[#allocation20_spill] sm:$0xff] }
 0x340   : > { %v10850_v30 = vmax.f32 %v10711_v19, %v10830_v0  ;;  %v10854_v4 = vmax.f32 %v10713_v8, %v10832_v58  ;;  %v4370_v54 = vrot.slane %v4193_v1, 1  ;;  %v2964_v45 = vrot.slane %v13291_v16, 6  ;;  %v4990_v57 = vpop.f32.mrf.mxu3 }
 0x341   : > { %v6020_v50 = vmax.f32 %v10731_v36, %v10841_v38  ;;  %v2965_v44 = vrot.slane %v13289_v60, 6  ;;  %v6402_v8 = vadd.f32 %v10837_v49, %v6366_v10  ;;  %v4369_v37 = vsel %vm1066_vm6, %v4367_v28, %v4368_v11  ;;  %v13306_v10 = vld [vmem:[#allocation53_spill] sm:$0xff] }
 0x342   : > { %v10863_v7 = vmax.f32 %v10587_v6, %v10850_v30  ;;  %v10867_v19 = vmax.f32 %v10591_v26, %v10854_v4  ;;  %v4371_v36 = vsel %vm1066_vm6, %v4368_v11, %v4370_v54  ;;  %v10877_v6 = vmax.f32 %v4191_v29, %v4369_v37 }
 0x343   : > { %v6131_v39 = vrot.slane %v6020_v50, 2  ;;  %v10879_v60 = vmax.f32 %v4193_v1, %v4370_v54  ;;  %v6434_v34 = vmax.f32 %v6402_v8, 0.0  ;;  %v10885_v9 = vmax.f32 %v4192_v52, %v4371_v36 }
 0x344   : > { %v6018_v26 = vmax.f32 %v10763_v18, %v10863_v7  ;;  %v6019_v16 = vmax.f32 %v10767_v41, %v10867_v19  ;;  %v10889_v59 = vmax.f32 %v10698_v5, %v10877_v6  ;;  %v2966_v56 = vsel %vm392_vm0, %v2964_v45, %v2965_v44 }
 0x345   : > { %v10893_v17 = vmax.f32 %v10700_v43, %v10879_v60  ;;  %v2967_v32 = vrot.slane %v13293_v53, 6  ;;  %6467 = vst.msk [vmem:[%s10874_s16] sm:$0xff] %vm6466_vm9, %v6434_v34  ;;  %v10901_v41 = vmax.f32 %v10709_v21, %v10885_v9  ;;  %v3571_v52 = vrot.slane %v10846_v22, 1  ;;  %v6288_v1 = vpop.f32.mrf.mxu0  ;;  %v13309_v34 = vld [vmem:[#allocation12_spill] sm:$0xff] }
 0x346   : > { %13301 = vst [vmem:[#allocation80_spill] sm:$0xff] %v10889_v59  ;;  %v6128_v18 = vrot.slane %v6018_v26, 2  ;;  %v6129_v29 = vrot.slane %v6019_v16, 2  ;;  %v10906_v5 = vmax.f32 %v10630_v46, %v10889_v59  ;;  %v13305_v28 = vrot.slane %v13304_v47, 1  ;;  %v13308_v46 = vld [vmem:[#allocation79_spill] sm:$0xff] }
 0x347   : > { %13302 = vst [vmem:[#allocation75_spill] sm:$0xff] %v10893_v17  ;;  %v10910_v43 = vmax.f32 %v10640_v23, %v10893_v17  ;;  %v2968_v53 = vsel %vm392_vm0, %v2965_v44, %v2967_v32  ;;  %v13307_v11 = vrot.slane %v13306_v10, 1  ;;  %v10922_v45 = vmax.f32 %v13308_v46, %v10901_v41 }
 0x348   : > { %13303 = vst [vmem:[#allocation67_spill] sm:$0xff] %v10901_v41  ;;  %v6130_v50 = vsel %vm1599_vm7, %v6128_v18, %v6129_v29  ;;  %v6132_v54 = vsel %vm1599_vm7, %v6129_v29, %v6131_v39  ;;  %v6367_v8 = vadd.f32 %v6288_v1, %v5066_v51  ;;  %v4719_v37 = vmax.f32 %v10747_v12, %v10906_v5  ;;  %v13314_v41 = vld [vmem:[#allocation73_spill] sm:$0xff] }
 0x349   : > { %v3568_v21 = vsel %vm1066_vm6, %v13307_v11, %v13305_v28  ;;  %v6212_v23 = vpack.c.bf16 %v6132_v54, %v6130_v50  ;;  %v4721_v44 = vmax.f32 %v10751_v62, %v10910_v43  ;;  %v3028_v36 = vpack.c.bf16 %v2968_v53, %v2966_v56  ;;  %v3111_v50 = vpop.f32.mrf.mxu1 }
 0x34a   : > { %v4720_v26 = vmax.f32 %v10757_v13, %v10922_v45  ;;  %v6403_v16 = vadd.f32 %v10837_v49, %v6367_v8  ;;  %v13310_v39 = vrot.slane %v13309_v34, 1  ;;  %v13311_v32 = vmov %v13305_v28 }
 0x34b   : > { %6698 = vmatmul.msk.bf16.gmra.mxu0 %vm3037_vm5, %v6212_v23  ;;  %v5169_v12 = vrot.slane %v4719_v37, 1  ;;  %v5172_v62 = vrot.slane %v4721_v44, 1  ;;  %6655 = vmatmul.msk.bf16.gmra.mxu1 %vm3037_vm5, %v3028_v36  ;;  %v4842_v13 = vrot.slane %v4719_v37, 4  ;;  %v4845_v56 = vrot.slane %v4721_v44, 4 }
 0x34c   : > { %v3570_v18 = vsel %vm1066_vm6, %v13311_v32, %v13310_v39  ;;  %v13312_v51 = vmov %v13310_v39  ;;  %v5170_v1 = vrot.slane %v4720_v26, 1  ;;  %v6435_v53 = vmax.f32 %v6403_v16, 0.0 }
 0x34d   : > { %v3572_v29 = vsel %vm1066_vm6, %v13312_v51, %v3571_v52  ;;  %v4843_v28 = vrot.slane %v4720_v26, 4  ;;  %v3779_v11 = vmax.f32 %v13306_v10, %v3568_v21  ;;  %v5307_v54 = vmax.f32 %v4721_v44, %v5172_v62  ;;  %v13313_v51 = vld [vmem:[#allocation72_spill] sm:$0xff] }
 0x34e   : > { %v3780_v46 = vmax.f32 %v13304_v47, %v3570_v18  ;;  %v3781_v8 = vmax.f32 %v13309_v34, %v3572_v29  ;;  %v3782_v23 = vmax.f32 %v10846_v22, %v3571_v52  ;;  %v5171_v39 = vsel %vm1066_vm6, %v5169_v12, %v5170_v1  ;;  %6468 = vst.msk [vmem:[%s10874_s16 + $0x8] sm:$0xff] %vm6466_vm9, %v6435_v53  ;;  %v4992_v18 = vpop.f32.mrf.mxu3 }
 0x34f   : > { %v5173_v32 = vsel %vm1066_vm6, %v5170_v1, %v5172_v62  ;;  %v4844_v36 = vsel %vm4791_vm8, %v4842_v13, %v4843_v28  ;;  %v4846_v16 = vsel %vm4791_vm8, %v4843_v28, %v4845_v56  ;;  %v3330_v21 = vadd.f32 %v13313_v51, %v3109_v31 }
 0x350   : > { %v5305_v42 = vmax.f32 %v4719_v37, %v5171_v39  ;;  %v5306_v44 = vmax.f32 %v4720_v26, %v5173_v32  ;;  %v5452_v17 = vrot.slane %v5307_v54, 2  ;;  %v10953_v29 = vadd.f32 %v13314_v41, %v3111_v50  ;;  %v13315_v26 = vld [vmem:[#allocation35_spill] sm:$0xff] }
 0x351   : > { %v4914_v22 = vpack.c.bf16 %v4846_v16, %v4844_v36  ;;  %v4022_v52 = vrot.slane %v3779_v11, 2  ;;  %v4023_v12 = vrot.slane %v3780_v46, 2  ;;  %v4025_v53 = vrot.slane %v3781_v8, 2 }
 0x352   : > { %v5449_v59 = vrot.slane %v5305_v42, 2  ;;  %v5450_v62 = vrot.slane %v5306_v44, 2  ;;  %v5587_v1 = vmax.f32 %v5307_v54, %v5452_v17  ;;  %v5067_v13 = vadd.f32 %v4990_v57, %v10727_v14 }
 0x353   : > { %6685 = vmatmul.msk.bf16.gmra.mxu3 %vm3037_vm5, %v4914_v22  ;;  %v4024_v31 = vsel %vm1599_vm7, %v4022_v52, %v4023_v12  ;;  %v4027_v37 = vrot.slane %v3782_v23, 2  ;;  %v13316_v56 = vrot.slane %v13315_v26, 1  ;;  %v4026_v54 = vsel %vm1599_vm7, %v4023_v12, %v4025_v53  ;;  %v6291_v23 = vpop.f32.mrf.mxu0 }
 0x354   : > { %v5451_v41 = vsel %vm1599_vm7, %v5449_v59, %v5450_v62  ;;  %v5453_v50 = vsel %vm1599_vm7, %v5450_v62, %v5452_v17  ;;  %v5732_v39 = vrot.slane %v5587_v1, 1  ;;  %v4194_v57 = vmax.f32 %v3779_v11, %v4024_v31 }
 0x355   : > { %v10961_v28 = vmax.f32 %v13315_v26, %v13316_v56  ;;  %v5585_v32 = vmax.f32 %v5305_v42, %v5451_v41  ;;  %v5586_v36 = vmax.f32 %v5306_v44, %v5453_v50  ;;  %v4028_v14 = vsel %vm1599_vm7, %v4025_v53, %v4027_v37 }
 0x356   : > { %v10967_v16 = vmax.f32 %v5587_v1, %v5732_v39  ;;  %v4195_v51 = vmax.f32 %v3780_v46, %v4026_v54  ;;  %v4196_v22 = vmax.f32 %v3781_v8, %v4028_v14  ;;  %v6368_v17 = vadd.f32 %v6291_v23, %v5067_v13  ;;  %v13317_v8 = vld [vmem:[#allocation56_spill] sm:$0xff] }
 0x357   : > { %v10971_v52 = vmax.f32 %v13299_v61, %v10961_v28  ;;  %v5729_v59 = vrot.slane %v5585_v32, 1  ;;  %v5730_v26 = vrot.slane %v5586_v36, 1  ;;  %v4372_v62 = vrot.slane %v4194_v57, 1 }
 0x358   : > { %v10975_v42 = vmax.f32 %v10815_v27, %v10967_v16  ;;  %v5068_v44 = vadd.f32 %v4992_v18, %v10797_v33  ;;  %v4373_v11 = vrot.slane %v4195_v51, 1  ;;  %v4375_v12 = vrot.slane %v4196_v22, 1  ;;  %v4995_v27 = vpop.f32.mrf.mxu3 }
 0x359   : > { %v5731_v1 = vsel %vm1066_vm6, %v5729_v59, %v5730_v26  ;;  %v5733_v46 = vsel %vm1066_vm6, %v5730_v26, %v5732_v39  ;;  %v6404_v61 = vadd.f32 %v10837_v49, %v6368_v17  ;;  %v10983_v53 = vmax.f32 %v13317_v8, %v10971_v52  ;;  %v3114_v8 = vpop.f32.mrf.mxu1 }
 0x35a   : > { %v10985_v13 = vmax.f32 %v5585_v32, %v5731_v1  ;;  %v10987_v31 = vmax.f32 %v5586_v36, %v5733_v46  ;;  %v10991_v33 = vmax.f32 %v10707_v35, %v10975_v42  ;;  %v4374_v18 = vsel %vm1066_vm6, %v4372_v62, %v4373_v11 }
 0x35b   : > { %v6436_v37 = vmax.f32 %v6404_v61, 0.0  ;;  %v4376_v56 = vsel %vm1066_vm6, %v4373_v11, %v4375_v12  ;;  %v10995_v41 = vmax.f32 %v4194_v57, %v4374_v18  ;;  %v10997_v50 = vmax.f32 %v4196_v22, %v4375_v12  ;;  %v6293_v26 = vpop.f32.mrf.mxu0 }
 0x35c   : > { %v11001_v39 = vmax.f32 %v10830_v0, %v10985_v13  ;;  %v11005_v54 = vmax.f32 %v10832_v58, %v10987_v31  ;;  %v6023_v35 = vmax.f32 %v10841_v38, %v10991_v33  ;;  %v11009_v32 = vmax.f32 %v4195_v51, %v4376_v56  ;;  %v13319_v58 = vld [vmem:[#allocation61_spill] sm:$0xff] }
 0x35d   : > { %6469 = vst.msk [vmem:[%s10874_s16 + $0x10] sm:$0xff] %vm6466_vm9, %v6436_v37  ;;  %v5069_v36 = vadd.f32 %v4995_v27, %v3330_v21  ;;  %v11015_v14 = vmax.f32 %v10877_v6, %v10995_v41  ;;  %v11019_v0 = vmax.f32 %v10879_v60, %v10997_v50  ;;  %v13318_v57 = vrot.slane %v13287_v2, 1 }
 0x35e   : > { %v13320_v23 = vrot.slane %v13319_v58, 1  ;;  %v11028_v38 = vmax.f32 %v10739_v40, %v11001_v39  ;;  %v11032_v21 = vmax.f32 %v10743_v48, %v11005_v54  ;;  %v11036_v6 = vmax.f32 %v10885_v9, %v11009_v32 }
 0x35f   : > { %v11040_v60 = vmax.f32 %v10822_v63, %v10983_v53  ;;  %v6136_v51 = vrot.slane %v6023_v35, 2  ;;  %v11044_v59 = vmax.f32 %v10717_v55, %v11015_v14  ;;  %v11048_v40 = vmax.f32 %v10721_v3, %v11019_v0 }
 0x360   : > { %v3575_v22 = vsel %vm1066_vm6, %v13320_v23, %v13318_v57  ;;  %v2969_v48 = vrot.slane %v13306_v10, 6  ;;  %v6021_v9 = vmax.f32 %v10863_v7, %v11028_v38  ;;  %v6022_v17 = vmax.f32 %v10867_v19, %v11032_v21 }
 0x361   : > { %v11057_v63 = vmax.f32 %v10735_v15, %v11036_v6  ;;  %v6369_v62 = vadd.f32 %v6293_v26, %v5068_v44  ;;  %v4722_v55 = vmax.f32 %v10906_v5, %v11044_v59  ;;  %v4724_v3 = vmax.f32 %v10910_v43, %v11048_v40 }
 0x362   : > { %v2970_v11 = vrot.slane %v13304_v47, 6  ;;  %v2972_v10 = vrot.slane %v13309_v34, 6  ;;  %v6133_v12 = vrot.slane %v6021_v9, 2  ;;  %v6134_v7 = vrot.slane %v6022_v17, 2 }
 0x363   : > { %v4723_v19 = vmax.f32 %v10922_v45, %v11057_v63  ;;  %v6405_v1 = vadd.f32 %v10837_v49, %v6369_v62  ;;  %v5174_v15 = vrot.slane %v4722_v55, 1  ;;  %v5177_v44 = vrot.slane %v4724_v3, 1  ;;  %v6296_v9 = vpop.f32.mrf.mxu0 }
 0x364   : > { %v2971_v46 = vsel %vm392_vm0, %v2969_v48, %v2970_v11  ;;  %v2973_v5 = vsel %vm392_vm0, %v2970_v11, %v2972_v10  ;;  %v6135_v43 = vsel %vm1599_vm7, %v6133_v12, %v6134_v7  ;;  %v6137_v47 = vsel %vm1599_vm7, %v6134_v7, %v6136_v51  ;;  %v13323_v11 = vld [vmem:[#allocation5_spill] sm:$0xff] }
 0x365   : > { %v5175_v61 = vrot.slane %v4723_v19, 1  ;;  %v6437_v34 = vmax.f32 %v6405_v1, 0.0  ;;  %v6213_v27 = vpack.c.bf16 %v6137_v47, %v6135_v43  ;;  %v5310_v18 = vmax.f32 %v4724_v3, %v5177_v44 }
 0x366   : > { %v3029_v37 = vpack.c.bf16 %v2973_v5, %v2971_v46  ;;  %v3783_v45 = vmax.f32 %v13319_v58, %v3575_v22  ;;  %v4847_v57 = vrot.slane %v4722_v55, 4  ;;  %v4848_v23 = vrot.slane %v4723_v19, 4 }
 0x367   : > { %v5176_v56 = vsel %vm1066_vm6, %v5174_v15, %v5175_v61  ;;  %v5178_v35 = vsel %vm1066_vm6, %v5175_v61, %v5177_v44  ;;  %6470 = vst.msk [vmem:[%s10874_s16 + $0x18] sm:$0xff] %vm6466_vm9, %v6437_v34  ;;  %6699 = vmatmul.msk.bf16.gmra.mxu0 %vm3037_vm5, %v6213_v27  ;;  %v5457_v48 = vrot.slane %v5310_v18, 2  ;;  %v13321_v17 = vrot.slane %v13298_v25, 1 }
 0x368   : > { %v5308_v26 = vmax.f32 %v4722_v55, %v5176_v56  ;;  %v5309_v51 = vmax.f32 %v4723_v19, %v5178_v35  ;;  %6656 = vmatmul.msk.bf16.gmra.mxu1 %vm3037_vm5, %v3029_v37  ;;  %v13322_v22 = vrot.slane %v13287_v2, 1  ;;  %v3335_v10 = vadd.f32 %v13323_v11, %v3114_v8  ;;  %v4997_v19 = vpop.f32.mrf.mxu3  ;;  %v13327_v11 = vld [vmem:[#allocation19_spill] sm:$0xff] }
 0x369   : > { %v4849_v12 = vsel %vm4791_vm8, %v4847_v57, %v4848_v23  ;;  %v4850_v7 = vrot.slane %v4724_v3, 4  ;;  %v6370_v1 = vadd.f32 %v6296_v9, %v5069_v36  ;;  %v5590_v55 = vmax.f32 %v5310_v18, %v5457_v48 }
 0x36a   : > { %v3577_v62 = vsel %vm1066_vm6, %v13322_v22, %v13321_v17  ;;  %v5454_v15 = vrot.slane %v5308_v26, 2  ;;  %v5455_v44 = vrot.slane %v5309_v51, 2  ;;  %v3578_v46 = vrot.slane %v11040_v60, 1 }
 0x36b   : > { %v4851_v5 = vsel %vm4791_vm8, %v4848_v23, %v4850_v7  ;;  %v6406_v43 = vadd.f32 %v10837_v49, %v6370_v1  ;;  %v3784_v47 = vmax.f32 %v13287_v2, %v3577_v62  ;;  %v4029_v61 = vrot.slane %v3783_v45, 2 }
 0x36c   : > { %v5456_v34 = vsel %vm1599_vm7, %v5454_v15, %v5455_v44  ;;  %v5458_v8 = vsel %vm1599_vm7, %v5455_v44, %v5457_v48  ;;  %v5737_v3 = vrot.slane %v5590_v55, 1  ;;  %v4915_v36 = vpack.c.bf16 %v4851_v5, %v4849_v12 }
 0x36d   : > { %v5588_v27 = vmax.f32 %v5308_v26, %v5456_v34  ;;  %v5589_v37 = vmax.f32 %v5309_v51, %v5458_v8  ;;  %v6438_v18 = vmax.f32 %v6406_v43, 0.0  ;;  %v13324_v56 = vmov %v13321_v17  ;;  %v13325_v26 = vld [vmem:[#allocation46_spill] sm:$0xff]  ;;  %v11128_v8 = vpop.f32.mrf.mxu1 }
 0x36e   : > { %v3579_v35 = vsel %vm1066_vm6, %v13324_v56, %v3578_v46  ;;  %v11095_v57 = vmax.f32 %v5590_v55, %v5737_v3  ;;  %6686 = vmatmul.msk.bf16.gmra.mxu3 %vm3037_vm5, %v4915_v36  ;;  %v3786_v9 = vmax.f32 %v11040_v60, %v3578_v46  ;;  %v4030_v17 = vrot.slane %v3784_v47, 2 }
 0x36f   : > { %v3785_v23 = vmax.f32 %v13298_v25, %v3579_v35  ;;  %v5734_v22 = vrot.slane %v5588_v27, 1  ;;  %v5735_v48 = vrot.slane %v5589_v37, 1  ;;  %6471 = vst.msk [vmem:[%s10874_s16 + $0x20] sm:$0xff] %vm6466_vm9, %v6438_v18  ;;  %v13326_v51 = vrot.slane %v13325_v26, 1 }
 0x370   : > { %v3580_v12 = vrot.slane %v13327_v11, 1  ;;  %v11110_v7 = vmax.f32 %v10967_v16, %v11095_v57  ;;  %v4031_v1 = vsel %vm1599_vm7, %v4029_v61, %v4030_v17  ;;  %v4034_v60 = vrot.slane %v3786_v9, 2  ;;  %v5000_v18 = vpop.f32.mrf.mxu3  ;;  %v13329_v9 = vld [vmem:[#allocation14_spill] sm:$0xff] }
 0x371   : > { %v11105_v62 = vmax.f32 %v13325_v26, %v13326_v51  ;;  %v4032_v15 = vrot.slane %v3785_v23, 2  ;;  %v5736_v44 = vsel %vm1066_vm6, %v5734_v22, %v5735_v48  ;;  %v5738_v55 = vsel %vm1066_vm6, %v5735_v48, %v5737_v3 }
 0x372   : > { %v4197_v46 = vmax.f32 %v3783_v45, %v4031_v1  ;;  %v11119_v43 = vmax.f32 %v5588_v27, %v5736_v44  ;;  %v11121_v34 = vmax.f32 %v5589_v37, %v5738_v55  ;;  %v11125_v16 = vmax.f32 %v10828_v24, %v11110_v7 }
 0x373   : > { %v11117_v5 = vmax.f32 %v10961_v28, %v11105_v62  ;;  %v4033_v61 = vsel %vm1599_vm7, %v4030_v17, %v4032_v15  ;;  %v4035_v36 = vsel %vm1599_vm7, %v4032_v15, %v4034_v60  ;;  %v13330_v17 = vld [vmem:[#allocation13_spill] sm:$0xff]  ;;  %v11158_v26 = vadd.f32 %v5000_v18, %v3335_v10  ;;  %v6298_v18 = vpop.f32.mrf.mxu0 }
 0x374   : > { %v4198_v3 = vmax.f32 %v3784_v47, %v4033_v61  ;;  %v4377_v45 = vrot.slane %v4197_v46, 1  ;;  %v11137_v27 = vmax.f32 %v10985_v13, %v11119_v43  ;;  %v11141_v24 = vmax.f32 %v10987_v31, %v11121_v34 }
 0x375   : > { %13328 = vst [vmem:[#allocation42_spill] sm:$0xff] %v11117_v5  ;;  %v11133_v28 = vmax.f32 %v10813_v20, %v11117_v5  ;;  %v6026_v37 = vmax.f32 %v10991_v33, %v11125_v16  ;;  %v4199_v56 = vmax.f32 %v3785_v23, %v4035_v36  ;;  %v3581_v20 = vrot.slane %v13329_v9, 1 }
 0x376   : > { %v4378_v35 = vrot.slane %v4198_v3, 1  ;;  %v3583_v22 = vrot.slane %v13330_v17, 1  ;;  %v11151_v13 = vmax.f32 %v10850_v30, %v11137_v27  ;;  %v11155_v31 = vmax.f32 %v10854_v4, %v11141_v24 }
 0x377   : > { %v2839_v47 = vmax.f32 %v10983_v53, %v11133_v28  ;;  %v5070_v33 = vadd.f32 %v4997_v19, %v10953_v29  ;;  %v4380_v48 = vrot.slane %v4199_v56, 1  ;;  %v6141_v23 = vrot.slane %v6026_v37, 2 }
 0x378   : > { %v4379_v53 = vsel %vm1066_vm6, %v4377_v45, %v4378_v35  ;;  %v6024_v1 = vmax.f32 %v11028_v38, %v11151_v13  ;;  %v6025_v30 = vmax.f32 %v11032_v21, %v11155_v31  ;;  %v3582_v10 = vsel %vm1066_vm6, %v3580_v12, %v3581_v20 }
 0x379   : > { %v3585_v51 = vrot.slane %v2839_v47, 1  ;;  %v4381_v15 = vsel %vm1066_vm6, %v4378_v35, %v4380_v48  ;;  %v11166_v60 = vmax.f32 %v4197_v46, %v4379_v53  ;;  %v11170_v29 = vmax.f32 %v4199_v56, %v4380_v48  ;;  %v3119_v56 = vpop.f32.mrf.mxu1 }
 0x37a   : > { %v11168_v4 = vmax.f32 %v4198_v3, %v4381_v15  ;;  %v3584_v19 = vsel %vm1066_vm6, %v3581_v20, %v3583_v22  ;;  %v6138_v44 = vrot.slane %v6024_v1, 2  ;;  %v6139_v55 = vrot.slane %v6025_v30, 2  ;;  %v3339_v30 = vpop.f32.mrf.mxu2 }
 0x37b   : > { %v11176_v38 = vmax.f32 %v10995_v41, %v11166_v60  ;;  %v3586_v21 = vsel %vm1066_vm6, %v3583_v22, %v3585_v51  ;;  %v11185_v61 = vmax.f32 %v10997_v50, %v11170_v29  ;;  %v2974_v12 = vrot.slane %v13319_v58, 6  ;;  %v13334_v41 = vld [vmem:[#allocation80_spill] sm:$0xff]  ;;  %v13335_v50 = vld [vmem:[#allocation67_spill] sm:$0xff] }
 0x37c   : > { %v11181_v46 = vmax.f32 %v11009_v32, %v11168_v4  ;;  %v2975_v36 = vrot.slane %v13287_v2, 6  ;;  %v6140_v3 = vsel %vm1599_vm7, %v6138_v44, %v6139_v55  ;;  %v6142_v45 = vsel %vm1599_vm7, %v6139_v55, %v6141_v23  ;;  %v13336_v58 = vld [vmem:[#allocation75_spill] sm:$0xff]  ;;  %v5002_v44 = vpop.f32.mrf.mxu3 }
 0x37d   : > { %13331 = vst [vmem:[#allocation76_spill] sm:$0xff] %v11176_v38  ;;  %v11193_v37 = vmax.f32 %v13334_v41, %v11176_v38  ;;  %v3787_v32 = vmax.f32 %v13327_v11, %v3582_v10  ;;  %v6214_v35 = vpack.c.bf16 %v6142_v45, %v6140_v3  ;;  %v11202_v2 = vmax.f32 %v13336_v58, %v11185_v61 }
 0x37e   : > { %13332 = vst [vmem:[#allocation68_spill] sm:$0xff] %v11181_v46  ;;  %v11198_v20 = vmax.f32 %v13335_v50, %v11181_v46  ;;  %v6371_v22 = vadd.f32 %v6298_v18, %v5070_v33  ;;  %v2976_v23 = vsel %vm392_vm0, %v2974_v12, %v2975_v36  ;;  %v2977_v53 = vrot.slane %v13298_v25, 6 }
 0x37f   : > { %13333 = vst [vmem:[#allocation60_spill] sm:$0xff] %v11185_v61  ;;  %v4725_v48 = vmax.f32 %v11044_v59, %v11193_v37  ;;  %v3788_v1 = vmax.f32 %v13329_v9, %v3584_v19  ;;  %6700 = vmatmul.msk.bf16.gmra.mxu0 %vm3037_vm5, %v6214_v35  ;;  %v4727_v10 = vmax.f32 %v11048_v40, %v11202_v2  ;;  %v4036_v50 = vrot.slane %v3787_v32, 2 }
 0x380   : > { %v4726_v15 = vmax.f32 %v11057_v63, %v11198_v20  ;;  %v6407_v33 = vadd.f32 %v10837_v49, %v6371_v22  ;;  %v3789_v59 = vmax.f32 %v13330_v17, %v3586_v21  ;;  %v2978_v25 = vsel %vm392_vm0, %v2975_v36, %v2977_v53 }
 0x381   : > { %v5179_v55 = vrot.slane %v4725_v48, 1  ;;  %v4852_v12 = vrot.slane %v4725_v48, 4  ;;  %v3790_v19 = vmax.f32 %v2839_v47, %v3585_v51  ;;  %v5182_v45 = vrot.slane %v4727_v10, 1  ;;  %v13337_v47 = vld [vmem:[#allocation78_spill] sm:$0xff]  ;;  %v3121_v61 = vpop.f32.mrf.mxu1 }
 0x382   : > { %v5180_v3 = vrot.slane %v4726_v15, 1  ;;  %v6439_v41 = vmax.f32 %v6407_v33, 0.0  ;;  %v3030_v18 = vpack.c.bf16 %v2978_v25, %v2976_v23  ;;  %v4853_v35 = vrot.slane %v4726_v15, 4  ;;  %v6301_v33 = vpop.f32.mrf.mxu0 }
 0x383   : > { %v4855_v63 = vrot.slane %v4727_v10, 4  ;;  %v4037_v58 = vrot.slane %v3788_v1, 2  ;;  %v5313_v46 = vmax.f32 %v4727_v10, %v5182_v45  ;;  %v4039_v21 = vrot.slane %v3789_v59, 2 }
 0x384   : > { %v5181_v40 = vsel %vm1066_vm6, %v5179_v55, %v5180_v3  ;;  %v5183_v22 = vsel %vm1066_vm6, %v5180_v3, %v5182_v45  ;;  %6472 = vst.msk [vmem:[%s10874_s16 + $0x28] sm:$0xff] %vm6466_vm9, %v6439_v41  ;;  %6657 = vmatmul.msk.bf16.gmra.mxu1 %vm3037_vm5, %v3030_v18  ;;  %v3337_v51 = vadd.f32 %v13337_v47, %v11128_v8  ;;  %v11233_v47 = vld [vmem:[#allocation2 + $0x1e4] sm:$0xf] }
 0x385   : > { %v5311_v36 = vmax.f32 %v4725_v48, %v5181_v40  ;;  %v5312_v53 = vmax.f32 %v4726_v15, %v5183_v22  ;;  %v4854_v23 = vsel %vm4791_vm8, %v4852_v12, %v4853_v35  ;;  %v3340_v25 = vadd.f32 %v3339_v30, %v3119_v56 }
 0x386   : > { %v5462_v38 = vrot.slane %v5313_v46, 2  ;;  %v4856_v55 = vsel %vm4791_vm8, %v4853_v35, %v4855_v63  ;;  %v6372_v3 = vadd.f32 %v6301_v33, %v11158_v26  ;;  %v4038_v18 = vsel %vm1599_vm7, %v4036_v50, %v4037_v58  ;;  %v3341_v35 = vpop.f32.mrf.mxu2 }
 0x387   : > { %v5459_v10 = vrot.slane %v5311_v36, 2  ;;  %v5460_v45 = vrot.slane %v5312_v53, 2  ;;  %v4916_v41 = vpack.c.bf16 %v4856_v55, %v4854_v23  ;;  %v4040_v48 = vsel %vm1599_vm7, %v4037_v58, %v4039_v21 }
 0x388   : > { %v5593_v5 = vmax.f32 %v5313_v46, %v5462_v38  ;;  %v6408_v8 = vadd.f32 %v10837_v49, %v6372_v3  ;;  %v4041_v15 = vrot.slane %v3790_v19, 2  ;;  %v4200_v30 = vmax.f32 %v3787_v32, %v4038_v18  ;;  %v5005_v46 = vpop.f32.mrf.mxu3 }
 0x389   : > { %v5461_v12 = vsel %vm1599_vm7, %v5459_v10, %v5460_v45  ;;  %v5463_v56 = vsel %vm1599_vm7, %v5460_v45, %v5462_v38  ;;  %6687 = vmatmul.msk.bf16.gmra.mxu3 %vm3037_vm5, %v4916_v41  ;;  %v4201_v26 = vmax.f32 %v3788_v1, %v4040_v48  ;;  %v11235_v23 = vadd.f32 %v3341_v35, %v3121_v61  ;;  %v11242_v1 = vld [vmem:[#allocation2 + $0x1e8] sm:$0xff]  }
 0x38a   : > { %v5591_v63 = vmax.f32 %v5311_v36, %v5461_v12  ;;  %v5592_v40 = vmax.f32 %v5312_v53, %v5463_v56  ;;  %v5742_v50 = vrot.slane %v5593_v5, 1  ;;  %v6440_v22 = vmax.f32 %v6408_v8, 0.0 }
 0x38b   : > { %v4042_v19 = vsel %vm1599_vm7, %v4039_v21, %v4041_v15  ;;  %v4382_v58 = vrot.slane %v4200_v30, 1  ;;  %v4383_v33 = vrot.slane %v4201_v26, 1  ;;  %v5072_v36 = vadd.f32 %v5002_v44, %v3337_v51 }
 0x38c   : > { %v5739_v38 = vrot.slane %v5591_v63, 1  ;;  %v5740_v55 = vrot.slane %v5592_v40, 1  ;;  %v11238_v3 = vmax.f32 %v5593_v5, %v5742_v50  ;;  %6473 = vst.msk [vmem:[%s10874_s16 + $0x30] sm:$0xff] %vm6466_vm9, %v6440_v22  ;;  %v4202_v32 = vmax.f32 %v3789_v59, %v4042_v19  ;;  %v6303_v22 = vpop.f32.mrf.mxu0 }
 0x38d   : > { %v11244_v53 = vadd.f32 %v5005_v46, %v3340_v25  ;;  %v4384_v10 = vsel %vm1066_vm6, %v4382_v58, %v4383_v33  ;;  %v938_v61 = vunpack.c.l.bf16 %v11233_v47  ;;  %v6825_v51 = vunpack.c.l.bf16 %v11242_v1  ;;  %v11261_v25 = vld [vmem:[#allocation2 + $0x1f0] sm:$0x7] }
 0x38e   : > { %v5741_v21 = vsel %vm1066_vm6, %v5739_v38, %v5740_v55  ;;  %v5743_v45 = vsel %vm1066_vm6, %v5740_v55, %v5742_v50  ;;  %v11252_v5 = vmax.f32 %v11095_v57, %v11238_v3  ;;  %v4385_v41 = vrot.slane %v4202_v32, 1 }
 0x38f   : > { %v11254_v18 = vmax.f32 %v5591_v63, %v5741_v21  ;;  %v11256_v59 = vmax.f32 %v5592_v40, %v5743_v45  ;;  %v11258_v44 = vmax.f32 %v4200_v30, %v4384_v10  ;;  %v6826_v57 = vunpack.c.h.bf16 %v11242_v1 }
 0x390   : > { %v11265_v8 = vmax.f32 %v10975_v42, %v11252_v5  ;;  %v4386_v48 = vsel %vm1066_vm6, %v4383_v33, %v4385_v41  ;;  %v11268_v15 = vmax.f32 %v4202_v32, %v4385_v41  ;;  %v1235_v40 = vrot.slane %v938_v61, 1 }
 0x391   : > { %v11273_v12 = vmax.f32 %v11119_v43, %v11254_v18  ;;  %v11277_v56 = vmax.f32 %v11121_v34, %v11256_v59  ;;  %v11279_v30 = vmax.f32 %v4201_v26, %v4386_v48  ;;  %v11283_v42 = vmax.f32 %v11166_v60, %v11258_v44 }
 0x392   : > { %v6029_v35 = vmax.f32 %v11125_v16, %v11265_v8  ;;  %v11289_v63 = vmax.f32 %v11170_v29, %v11268_v15  ;;  %v941_v43 = vunpack.c.l.bf16 %v11261_v25  ;;  %v2980_v58 = vrot.slane %v13329_v9, 6 }
 0x393   : > { %v11296_v34 = vmax.f32 %v11001_v39, %v11273_v12  ;;  %v11300_v60 = vmax.f32 %v11005_v54, %v11277_v56  ;;  %v11304_v16 = vmax.f32 %v11168_v4, %v11279_v30  ;;  %v11308_v29 = vmax.f32 %v11015_v14, %v11283_v42 }
 0x394   : > { %v6146_v26 = vrot.slane %v6029_v35, 2  ;;  %v11312_v50 = vmax.f32 %v11019_v0, %v11289_v63  ;;  %v2979_v39 = vrot.slane %v13327_v11, 6  ;;  %v1236_v54 = vrot.slane %v6825_v51, 1 }
 0x395   : > { %v6027_v46 = vmax.f32 %v11151_v13, %v11296_v34  ;;  %v6028_v4 = vmax.f32 %v11155_v31, %v11300_v60  ;;  %v11323_v14 = vmax.f32 %v11036_v6, %v11304_v16  ;;  %v4728_v0 = vmax.f32 %v11193_v37, %v11308_v29 }
 0x396   : > { %v4730_v19 = vmax.f32 %v11202_v2, %v11312_v50  ;;  %v6373_v11 = vadd.f32 %v6303_v22, %v5072_v36  ;;  %v2982_v33 = vrot.slane %v13330_v17, 6  ;;  %v2981_v10 = vsel %vm392_vm0, %v2979_v39, %v2980_v58  ;;  %v3124_v17 = vpop.f32.mrf.mxu1 }
 0x397   : > { %v6143_v38 = vrot.slane %v6027_v46, 2  ;;  %v6144_v13 = vrot.slane %v6028_v4, 2  ;;  %v4729_v31 = vmax.f32 %v11198_v20, %v11323_v14  ;;  %v5184_v55 = vrot.slane %v4728_v0, 1  ;;  %v3344_v4 = vpop.f32.mrf.mxu2 }
 0x398   : > { %v5187_v32 = vrot.slane %v4730_v19, 1  ;;  %v6409_v6 = vadd.f32 %v10837_v49, %v6373_v11  ;;  %v2983_v37 = vsel %vm392_vm0, %v2980_v58, %v2982_v33  ;;  %v1238_v20 = vrot.slane %v6826_v57, 1  ;;  %v6306_v33 = vpop.f32.mrf.mxu0 }
 0x399   : > { %v6145_v2 = vsel %vm1599_vm7, %v6143_v38, %v6144_v13  ;;  %v6147_v36 = vsel %vm1599_vm7, %v6144_v13, %v6146_v26  ;;  %v5185_v9 = vrot.slane %v4729_v31, 1  ;;  %v3031_v21 = vpack.c.bf16 %v2983_v37, %v2981_v10 }
 0x39a   : > { %v6215_v45 = vpack.c.bf16 %v6147_v36, %v6145_v2  ;;  %v5316_v41 = vmax.f32 %v4730_v19, %v5187_v32  ;;  %v6441_v48 = vmax.f32 %v6409_v6, 0.0  ;;  %v4857_v39 = vrot.slane %v4728_v0, 4 }
 0x39b   : > { %v5186_v35 = vsel %vm1066_vm6, %v5184_v55, %v5185_v9  ;;  %v5188_v22 = vsel %vm1066_vm6, %v5185_v9, %v5187_v32  ;;  %6658 = vmatmul.msk.bf16.gmra.mxu1 %vm3037_vm5, %v3031_v21  ;;  %v4858_v46 = vrot.slane %v4729_v31, 4  ;;  %v1237_v38 = vsel %vm1066_vm6, %v1235_v40, %v1236_v54 }
 0x39c   : > { %6701 = vmatmul.msk.bf16.gmra.mxu0 %vm3037_vm5, %v6215_v45  ;;  %v5314_v26 = vmax.f32 %v4728_v0, %v5186_v35  ;;  %v5315_v11 = vmax.f32 %v4729_v31, %v5188_v22  ;;  %v5467_v58 = vrot.slane %v5316_v41, 2  ;;  %6474 = vst.msk [vmem:[%s10874_s16 + $0x38] sm:$0xff] %vm6466_vm9, %v6441_v48  ;;  %v11347_v13 = vadd.f32 %v3344_v4, %v3124_v17  ;;  %v11360_v45 = vld [vmem:[#allocation2 + $0x1f8] sm:$0xff]  }
 0x39d   : > { %v4859_v55 = vsel %vm4791_vm8, %v4857_v39, %v4858_v46  ;;  %v4860_v32 = vrot.slane %v4730_v19, 4  ;;  %v6374_v6 = vadd.f32 %v6306_v33, %v11244_v53  ;;  %v1239_v36 = vsel %vm1066_vm6, %v1236_v54, %v1238_v20  ;;  %v11372_v39 = vld [vmem:[#allocation2 + $0x200] sm:$0xf] }
 0x39e   : > { %v5464_v10 = vrot.slane %v5314_v26, 2  ;;  %v5465_v37 = vrot.slane %v5315_v11, 2  ;;  %v5596_v2 = vmax.f32 %v5316_v41, %v5467_v58  ;;  %v1240_v9 = vrot.slane %v941_v43, 1 }
 0x39f   : > { %v4861_v0 = vsel %vm4791_vm8, %v4858_v46, %v4860_v32  ;;  %v6410_v31 = vadd.f32 %v10837_v49, %v6374_v6  ;;  %v1471_v40 = vmax.f32 %v938_v61, %v1237_v38  ;;  %v1472_v47 = vmax.f32 %v6825_v51, %v1239_v36  ;;  %v833_v6 = vld [vmem:[#allocation2 + $0x204] sm:$0x7] }
 0x3a0   : > { %v5466_v21 = vsel %vm1599_vm7, %v5464_v10, %v5465_v37  ;;  %v5468_v19 = vsel %vm1599_vm7, %v5465_v37, %v5467_v58  ;;  %v5747_v53 = vrot.slane %v5596_v2, 1  ;;  %v4917_v17 = vpack.c.bf16 %v4861_v0, %v4859_v55 }
 0x3a1   : > { %v5594_v54 = vmax.f32 %v5314_v26, %v5466_v21  ;;  %v5595_v41 = vmax.f32 %v5315_v11, %v5468_v19  ;;  %v6442_v48 = vmax.f32 %v6410_v31, 0.0  ;;  %v1241_v49 = vsel %vm1066_vm6, %v1238_v20, %v1240_v9 }
 0x3a2   : > { %v11363_v35 = vmax.f32 %v5596_v2, %v5747_v53  ;;  %6688 = vmatmul.msk.bf16.gmra.mxu3 %vm3037_vm5, %v4917_v17  ;;  %v1473_v61 = vmax.f32 %v6826_v57, %v1241_v49  ;;  %v1474_v22 = vmax.f32 %v941_v43, %v1240_v9  ;;  %v1768_v20 = vrot.slane %v1471_v40, 2 }
 0x3a3   : > { %v5744_v46 = vrot.slane %v5594_v54, 1  ;;  %v5745_v4 = vrot.slane %v5595_v41, 1  ;;  %6475 = vst.msk [vmem:[%s10874_s16 + $0x40] sm:$0xff] %vm6466_vm9, %v6442_v48  ;;  %v6829_v26 = vunpack.c.l.bf16 %v11360_v45  ;;  %v1769_v51 = vrot.slane %v1472_v47, 2 }
 0x3a4   : > { %v11379_v11 = vmax.f32 %v11238_v3, %v11363_v35  ;;  %v1771_v58 = vrot.slane %v1473_v61, 2  ;;  %v1773_v1 = vrot.slane %v1474_v22, 2  ;;  %v6830_v43 = vunpack.c.h.bf16 %v11360_v45 }
 0x3a5   : > { %v5746_v57 = vsel %vm1066_vm6, %v5744_v46, %v5745_v4  ;;  %v5748_v25 = vsel %vm1066_vm6, %v5745_v4, %v5747_v53  ;;  %v944_v33 = vunpack.c.l.bf16 %v11372_v39  ;;  %v1770_v3 = vsel %vm1599_vm7, %v1768_v20, %v1769_v51 }
 0x3a6   : > { %13338 = vst [vmem:[#allocation77_spill] sm:$0xff] %v11379_v11  ;;  %v11385_v38 = vmax.f32 %v5594_v54, %v5746_v57  ;;  %v11387_v55 = vmax.f32 %v5595_v41, %v5748_v25  ;;  %v11391_v32 = vmax.f32 %v11110_v7, %v11379_v11  ;;  %v1772_v10 = vsel %vm1599_vm7, %v1769_v51, %v1771_v58  ;;  %v3126_v54 = vpop.f32.mrf.mxu1  ;;  %v13342_v25 = vld [vmem:[#allocation94_spill] sm:$0xff] }
 0x3a7   : > { %v1774_v37 = vsel %vm1599_vm7, %v1771_v58, %v1773_v1  ;;  %v2004_v2 = vmax.f32 %v1471_v40, %v1770_v3  ;;  %v2007_v36 = vmax.f32 %v1474_v22, %v1773_v1  ;;  %v2005_v9 = vmax.f32 %v1472_v47, %v1772_v10 }
 0x3a8   : > { %v11398_v0 = vmax.f32 %v11254_v18, %v11385_v38  ;;  %v11402_v31 = vmax.f32 %v11256_v59, %v11387_v55  ;;  %v6032_v7 = vmax.f32 %v11265_v8, %v11391_v32  ;;  %v2006_v21 = vmax.f32 %v1473_v61, %v1774_v37  ;;  %v3346_v61 = vpop.f32.mrf.mxu2 }
 0x3a9   : > { %v2300_v19 = vrot.slane %v2004_v2, 1  ;;  %v2305_v53 = vrot.slane %v2007_v36, 1  ;;  %v945_v17 = vunpack.c.l.bf16 %v833_v6  ;;  %v2301_v59 = vrot.slane %v2005_v9, 1 }
 0x3aa   : > { %13339 = vst [vmem:[#allocation74_spill] sm:$0xff] %v11398_v0  ;;  %v11408_v40 = vmax.f32 %v11137_v27, %v11398_v0  ;;  %v11412_v18 = vmax.f32 %v11141_v24, %v11402_v31  ;;  %v6151_v41 = vrot.slane %v6032_v7, 2  ;;  %v2303_v48 = vrot.slane %v2006_v21, 1  ;;  %v13344_v7 = vld [vmem:[#allocation95_spill] sm:$0xff] }
 0x3ab   : > { %13340 = vst [vmem:[#allocation82_spill] sm:$0xff] %v11402_v31  ;;  %v11414_v49 = vmax.f32 %v2007_v36, %v2305_v53  ;;  %v1242_v8 = vrot.slane %v6829_v26, 1  ;;  %v1243_v47 = vrot.slane %v6830_v43, 1  ;;  %v2302_v46 = vsel %vm1066_vm6, %v2300_v19, %v2301_v59  ;;  %v5007_v36 = vpop.f32.mrf.mxu3 }
 0x3ac   : > { %v6030_v22 = vmax.f32 %v11296_v34, %v11408_v40  ;;  %v6031_v27 = vmax.f32 %v11300_v60, %v11412_v18  ;;  %v1245_v24 = vrot.slane %v944_v33, 1  ;;  %v2304_v4 = vsel %vm1066_vm6, %v2301_v59, %v2303_v48 }
 0x3ad   : > { %v2306_v20 = vsel %vm1066_vm6, %v2303_v48, %v2305_v53  ;;  %v11427_v51 = vmax.f32 %v2004_v2, %v2302_v46  ;;  %v11431_v58 = vmax.f32 %v11105_v62, %v11414_v49  ;;  %v11433_v57 = vmax.f32 %v2005_v9, %v2304_v4 }
 0x3ae   : > { %v6148_v1 = vrot.slane %v6030_v22, 2  ;;  %v6149_v34 = vrot.slane %v6031_v27, 2  ;;  %v11435_v60 = vmax.f32 %v2006_v21, %v2306_v20  ;;  %v1244_v10 = vsel %vm1066_vm6, %v1242_v8, %v1243_v47  ;;  %v13346_v21 = vld [vmem:[#allocation40_spill] sm:$0xff]  ;;  %v13350_v22 = vld [vmem:[#allocation43_spill] sm:$0xff]  ;;  %v13351_v20 = vld [vmem:[#allocation97_spill] sm:$0xff] }
 0x3af   : > { %13341 = vst [vmem:[#allocation81_spill] sm:$0xff] %v11431_v58  ;;  %v11439_v3 = vmax.f32 %v13342_v25, %v11427_v51  ;;  %v11443_v6 = vmax.f32 %v10971_v52, %v11431_v58  ;;  %v1246_v37 = vsel %vm1066_vm6, %v1243_v47, %v1245_v24  ;;  %v11451_v9 = vmax.f32 %v13344_v7, %v11433_v57  ;;  %v13348_v52 = vld [vmem:[#allocation57_spill] sm:$0xff] }
 0x3b0   : > { %v6150_v62 = vsel %vm1599_vm7, %v6148_v1, %v6149_v34  ;;  %v6152_v2 = vsel %vm1599_vm7, %v6149_v34, %v6151_v41  ;;  %v11455_v19 = vmax.f32 %v13346_v21, %v11435_v60  ;;  %v1247_v8 = vrot.slane %v945_v17, 1  ;;  %v13349_v41 = vld [vmem:[#allocation44_spill] sm:$0xff]  ;;  %v13353_v21 = vld [vmem:[#allocation41_spill] sm:$0xff] }
 0x3b1   : > { %13343 = vst [vmem:[#allocation83_spill] sm:$0xff] %v11439_v3  ;;  %v6216_v53 = vpack.c.bf16 %v6152_v2, %v6150_v62  ;;  %v11459_v59 = vmax.f32 %v13348_v52, %v11439_v3  ;;  %v2843_v48 = vmax.f32 %v11133_v28, %v11443_v6  ;;  %v11465_v47 = vmax.f32 %v13349_v41, %v11451_v9  ;;  %v3129_v62 = vpop.f32.mrf.mxu1  ;;  %v13352_v2 = vld [vmem:[#allocation88_spill] sm:$0xff]  ;;  %v3349_v41 = vpop.f32.mrf.mxu2 }
 0x3b2   : > { %13345 = vst [vmem:[#allocation23_spill] sm:$0xff] %v11451_v9  ;;  %v11469_v27 = vmax.f32 %v13350_v22, %v11455_v19  ;;  %v1475_v46 = vmax.f32 %v6829_v26, %v1244_v10  ;;  %v1476_v4 = vmax.f32 %v6830_v43, %v1246_v37  ;;  %v1248_v28 = vsel %vm1066_vm6, %v1245_v24, %v1247_v8 }
 0x3b3   : > { %13347 = vst [vmem:[#allocation84_spill] sm:$0xff] %v11455_v19  ;;  %6702 = vmatmul.msk.bf16.gmra.mxu0 %vm3037_vm5, %v6216_v53  ;;  %v2840_v1 = vmax.f32 %v13351_v20, %v11459_v59  ;;  %v3592_v34 = vrot.slane %v2843_v48, 1  ;;  %v1478_v25 = vmax.f32 %v945_v17, %v1247_v8  ;;  %v2841_v7 = vmax.f32 %v13352_v2, %v11465_v47  ;;  %v5010_v9 = vpop.f32.mrf.mxu3 }
 0x3b4   : > { %v2842_v52 = vmax.f32 %v13353_v21, %v11469_v27  ;;  %v1477_v45 = vmax.f32 %v944_v33, %v1248_v28  ;;  %v1775_v26 = vrot.slane %v1475_v46, 2  ;;  %v1776_v37 = vrot.slane %v1476_v4, 2 }
 0x3b5   : > { %v3587_v43 = vrot.slane %v2840_v1, 1  ;;  %v3794_v10 = vmax.f32 %v2843_v48, %v3592_v34  ;;  %v1780_v53 = vrot.slane %v1478_v25, 2  ;;  %v11483_v22 = vadd.f32 %v3346_v61, %v3126_v54 }
 0x3b6   : > { %v3588_v24 = vrot.slane %v2841_v7, 1  ;;  %v3590_v17 = vrot.slane %v2842_v52, 1  ;;  %v1778_v8 = vrot.slane %v1477_v45, 2  ;;  %v11485_v20 = vadd.f32 %v3349_v41, %v3129_v62 }
 0x3b7   : > { %v4048_v2 = vrot.slane %v3794_v10, 2  ;;  %v1777_v31 = vsel %vm1599_vm7, %v1775_v26, %v1776_v37  ;;  %v2011_v21 = vmax.f32 %v1478_v25, %v1780_v53  ;;  %v5074_v25 = vadd.f32 %v5007_v36, %v11235_v23 }
 0x3b8   : > { %v3589_v39 = vsel %vm1066_vm6, %v3587_v43, %v3588_v24  ;;  %v3591_v33 = vsel %vm1066_vm6, %v3588_v24, %v3590_v17  ;;  %v3593_v48 = vsel %vm1066_vm6, %v3590_v17, %v3592_v34  ;;  %v1779_v28 = vsel %vm1599_vm7, %v1776_v37, %v1778_v8 }
 0x3b9   : > { %v3791_v0 = vmax.f32 %v2840_v1, %v3589_v39  ;;  %v3792_v54 = vmax.f32 %v2841_v7, %v3591_v33  ;;  %v3793_v61 = vmax.f32 %v2842_v52, %v3593_v48  ;;  %v1781_v19 = vsel %vm1599_vm7, %v1778_v8, %v1780_v53  ;;  %v11503_v52 = vld [vmem:[#allocation2 + $0x210] sm:$0xff]   ;;  %v11525_v39 = vld [vmem:[#allocation2 + $0x20c] sm:$0xf] }
 0x3ba   : > { %v2008_v62 = vmax.f32 %v1475_v46, %v1777_v31  ;;  %v2009_v41 = vmax.f32 %v1476_v4, %v1779_v28  ;;  %v2010_v10 = vmax.f32 %v1477_v45, %v1781_v19  ;;  %v2312_v58 = vrot.slane %v2011_v21, 1 }
 0x3bb   : > { %v4043_v26 = vrot.slane %v3791_v0, 2  ;;  %v4044_v43 = vrot.slane %v3792_v54, 2  ;;  %v4046_v3 = vrot.slane %v3793_v61, 2  ;;  %v11497_v1 = vadd.f32 %v5010_v9, %v11347_v13 }
 0x3bc   : > { %v2307_v24 = vrot.slane %v2008_v62, 1  ;;  %v2308_v11 = vrot.slane %v2009_v41, 1  ;;  %v2310_v34 = vrot.slane %v2010_v10, 1  ;;  %v11494_v17 = vmax.f32 %v2011_v21, %v2312_v58 }
 0x3bd   : > { %v4045_v7 = vsel %vm1599_vm7, %v4043_v26, %v4044_v43  ;;  %v4047_v31 = vsel %vm1599_vm7, %v4044_v43, %v4046_v3  ;;  %v4049_v19 = vsel %vm1599_vm7, %v4046_v3, %v4048_v2  ;;  %v11548_v26 = vld [vmem:[#allocation2 + $0x218] sm:$0x7] }
 0x3be   : > { %v4203_v46 = vmax.f32 %v3791_v0, %v4045_v7  ;;  %v4204_v4 = vmax.f32 %v3792_v54, %v4047_v31  ;;  %v4205_v23 = vmax.f32 %v3793_v61, %v4049_v19  ;;  %v2309_v36 = vsel %vm1066_vm6, %v2307_v24, %v2308_v11 }
 0x3bf   : > { %v2311_v45 = vsel %vm1066_vm6, %v2308_v11, %v2310_v34  ;;  %v2313_v37 = vsel %vm1066_vm6, %v2310_v34, %v2312_v58  ;;  %v11507_v53 = vmax.f32 %v2008_v62, %v2309_v36  ;;  %v11511_v13 = vmax.f32 %v11414_v49, %v11494_v17  ;;  %v13356_v11 = vld [vmem:[#allocation42_spill] sm:$0xff] }
 0x3c0   : > { %v4387_v9 = vrot.slane %v4203_v46, 1  ;;  %v4388_v8 = vrot.slane %v4204_v4, 1  ;;  %v4390_v3 = vrot.slane %v4205_v23, 1  ;;  %v11513_v0 = vmax.f32 %v2009_v41, %v2311_v45  ;;  %v13359_v41 = vld [vmem:[#allocation52_spill] sm:$0xff] }
 0x3c1   : > { %13354 = vst [vmem:[#allocation50_spill] sm:$0xff] %v11511_v13  ;;  %v11515_v2 = vmax.f32 %v2010_v10, %v2313_v37  ;;  %v11519_v21 = vmax.f32 %v11427_v51, %v11507_v53  ;;  %v11523_v58 = vmax.f32 %v13356_v11, %v11511_v13  ;;  %v13367_v45 = vld [vmem:[#allocation76_spill] sm:$0xff] }
 0x3c2   : > { %v4389_v33 = vsel %vm1066_vm6, %v4387_v9, %v4388_v8  ;;  %v4391_v48 = vsel %vm1066_vm6, %v4388_v8, %v4390_v3  ;;  %v11530_v28 = vmax.f32 %v4205_v23, %v4390_v3  ;;  %v11534_v54 = vmax.f32 %v11433_v57, %v11513_v0  ;;  %v13361_v57 = vld [vmem:[#allocation51_spill] sm:$0xff]  ;;  %v6308_v23 = vpop.f32.mrf.mxu0  ;;  %v13368_v9 = vld [vmem:[#allocation68_spill] sm:$0xff] }
 0x3c3   : > { %13355 = vst [vmem:[#allocation87_spill] sm:$0xff] %v11519_v21  ;;  %v11536_v51 = vmax.f32 %v4203_v46, %v4389_v33  ;;  %v11538_v61 = vmax.f32 %v4204_v4, %v4391_v48  ;;  %v11542_v62 = vmax.f32 %v11435_v60, %v11515_v2  ;;  %v11546_v10 = vmax.f32 %v13359_v41, %v11519_v21  ;;  %v13366_v4 = vld [vmem:[#allocation60_spill] sm:$0xff] }
 0x3c4   : > { %13357 = vst [vmem:[#allocation29_spill] sm:$0xff] %v11534_v54  ;;  %v11552_v43 = vmax.f32 %v11268_v15, %v11530_v28  ;;  %v11556_v24 = vmax.f32 %v13361_v57, %v11534_v54  ;;  %v2847_v34 = vmax.f32 %v11443_v6, %v11523_v58  ;;  %v12413_v60 = vunpack.c.l.bf16 %v11525_v39  ;;  %v13364_v15 = vld [vmem:[#allocation36_spill] sm:$0xff] }
 0x3c5   : > { %13358 = vst [vmem:[#allocation37_spill] sm:$0xff] %v11542_v62  ;;  %v11563_v7 = vmax.f32 %v11258_v44, %v11536_v51  ;;  %v11567_v31 = vmax.f32 %v11279_v30, %v11538_v61  ;;  %v11571_v19 = vmax.f32 %v13364_v15, %v11542_v62  ;;  %v2844_v46 = vmax.f32 %v11459_v59, %v11546_v10  ;;  %v11602_v15 = vld [vmem:[%s12048_s4] ss:$0 sm:$0xff] }
 0x3c6   : > { %13360 = vst [vmem:[#allocation69_spill] sm:$0xff] %v11552_v43  ;;  %v11577_v6 = vmax.f32 %v13366_v4, %v11552_v43  ;;  %v2845_v44 = vmax.f32 %v11465_v47, %v11556_v24  ;;  %v6375_v59 = vadd.f32 %v6308_v23, %v5074_v25  ;;  %v3599_v3 = vrot.slane %v2847_v34, 1 }
 0x3c7   : > { %13362 = vst [vmem:[#allocation6_spill] sm:$0xff] %v11563_v7  ;;  %v11585_v37 = vmax.f32 %v13367_v45, %v11563_v7  ;;  %v11589_v8 = vmax.f32 %v13368_v9, %v11567_v31  ;;  %v2846_v47 = vmax.f32 %v11469_v27, %v11571_v19  ;;  %v3594_v33 = vrot.slane %v2844_v46, 1 }
 0x3c8   : > { %13363 = vst [vmem:[#allocation18_spill] sm:$0xff] %v11567_v31  ;;  %v4733_v11 = vmax.f32 %v11312_v50, %v11577_v6  ;;  %v3595_v48 = vrot.slane %v2845_v44, 1  ;;  %v6411_v25 = vadd.f32 %v11602_v15, %v6375_v59  ;;  %v1249_v50 = vrot.slane %v12413_v60, 1 }
 0x3c9   : > { %13365 = vst [vmem:[#allocation25_spill] sm:$0xff] %v11571_v19  ;;  %v4731_v41 = vmax.f32 %v11308_v29, %v11585_v37  ;;  %v4732_v57 = vmax.f32 %v11323_v14, %v11589_v8  ;;  %v3597_v45 = vrot.slane %v2846_v47, 1  ;;  %v3798_v62 = vmax.f32 %v2847_v34, %v3599_v3 }
 0x3ca   : > { %v5192_v27 = vrot.slane %v4733_v11, 1  ;;  %v4865_v4 = vrot.slane %v4733_v11, 4  ;;  %v3596_v23 = vsel %vm1066_vm6, %v3594_v33, %v3595_v48  ;;  %v6443_v30 = vmax.f32 %v6411_v25, 0.0  ;;  %v6311_v43 = vpop.f32.mrf.mxu0 }
 0x3cb   : > { %v5189_v29 = vrot.slane %v4731_v41, 1  ;;  %v5190_v9 = vrot.slane %v4732_v57, 1  ;;  %v4862_v14 = vrot.slane %v4731_v41, 4  ;;  %v4863_v49 = vrot.slane %v4732_v57, 4 }
 0x3cc   : > { %v5319_v36 = vmax.f32 %v4733_v11, %v5192_v27  ;;  %v3598_v13 = vsel %vm1066_vm6, %v3595_v48, %v3597_v45  ;;  %6476 = vst.msk [vmem:[%s10874_s16 + $0x48] sm:$0xff] %vm6466_vm9, %v6443_v30  ;;  %v3795_v60 = vmax.f32 %v2844_v46, %v3596_v23  ;;  %v3600_v25 = vsel %vm1066_vm6, %v3597_v45, %v3599_v3 }
 0x3cd   : > { %v5191_v59 = vsel %vm1066_vm6, %v5189_v29, %v5190_v9  ;;  %v5193_v54 = vsel %vm1066_vm6, %v5190_v9, %v5192_v27  ;;  %v3796_v21 = vmax.f32 %v2845_v44, %v3598_v13  ;;  %v4864_v11 = vsel %vm4791_vm8, %v4862_v14, %v4863_v49 }
 0x3ce   : > { %v5317_v31 = vmax.f32 %v4731_v41, %v5191_v59  ;;  %v5318_v33 = vmax.f32 %v4732_v57, %v5193_v54  ;;  %v5472_v7 = vrot.slane %v5319_v36, 2  ;;  %v4866_v19 = vsel %vm4791_vm8, %v4863_v49, %v4865_v4  ;;  %v5012_v4 = vpop.f32.mrf.mxu3 }
 0x3cf   : > { %v6376_v34 = vadd.f32 %v6311_v43, %v11497_v1  ;;  %v13369_v48 = vunpack.c.l.bf16 %v11503_v52  ;;  %v4918_v46 = vpack.c.bf16 %v4866_v19, %v4864_v11  ;;  %v3797_v54 = vmax.f32 %v2846_v47, %v3600_v25 }
 0x3d0   : > { %v5469_v27 = vrot.slane %v5317_v31, 2  ;;  %v5470_v9 = vrot.slane %v5318_v33, 2  ;;  %v5599_v30 = vmax.f32 %v5319_v36, %v5472_v7  ;;  %v4050_v44 = vrot.slane %v3795_v60, 2 }
 0x3d1   : > { %v1250_v29 = vrot.slane %v13369_v48, 1  ;;  %v6412_v13 = vadd.f32 %v11602_v15, %v6376_v34  ;;  %v4051_v41 = vrot.slane %v3796_v21, 2  ;;  %6689 = vmatmul.msk.bf16.gmra.mxu3 %vm3037_vm5, %v4918_v46  ;;  %v4055_v1 = vrot.slane %v3798_v62, 2 }
 0x3d2   : > { %v5471_v3 = vsel %vm1599_vm7, %v5469_v27, %v5470_v9  ;;  %v5473_v57 = vsel %vm1599_vm7, %v5470_v9, %v5472_v7  ;;  %v5752_v49 = vrot.slane %v5599_v30, 1  ;;  %v4053_v47 = vrot.slane %v3797_v54, 2 }
 0x3d3   : > { %v5597_v43 = vmax.f32 %v5317_v31, %v5471_v3  ;;  %v5598_v23 = vmax.f32 %v5318_v33, %v5473_v57  ;;  %v6444_v45 = vmax.f32 %v6412_v13, 0.0  ;;  %v4052_v19 = vsel %vm1599_vm7, %v4050_v44, %v4051_v41 }
 0x3d4   : > { %v11624_v36 = vmax.f32 %v5599_v30, %v5752_v49  ;;  %v4206_v14 = vmax.f32 %v3795_v60, %v4052_v19  ;;  %v1251_v59 = vsel %vm1066_vm6, %v1249_v50, %v1250_v29  ;;  %v13370_v7 = vunpack.c.h.bf16 %v11503_v52 }
 0x3d5   : > { %v5749_v25 = vrot.slane %v5597_v43, 1  ;;  %v5750_v11 = vrot.slane %v5598_v23, 1  ;;  %6477 = vst.msk [vmem:[%s10874_s16 + $0x50] sm:$0xff] %vm6466_vm9, %v6444_v45  ;;  %v13371_v62 = vunpack.c.l.bf16 %v11548_v26  ;;  %v4054_v48 = vsel %vm1599_vm7, %v4051_v41, %v4053_v47 }
 0x3d6   : > { %v1252_v34 = vrot.slane %v13370_v7, 1  ;;  %v11635_v33 = vmax.f32 %v11363_v35, %v11624_v36  ;;  %v4056_v60 = vsel %vm1599_vm7, %v4053_v47, %v4055_v1  ;;  %v4392_v27 = vrot.slane %v4206_v14, 1 }
 0x3d7   : > { %v1254_v31 = vrot.slane %v13371_v62, 1  ;;  %v5751_v50 = vsel %vm1066_vm6, %v5749_v25, %v5750_v11  ;;  %v5753_v9 = vsel %vm1066_vm6, %v5750_v11, %v5752_v49  ;;  %v4207_v30 = vmax.f32 %v3796_v21, %v4054_v48 }
 0x3d8   : > { %v4208_v46 = vmax.f32 %v3797_v54, %v4056_v60  ;;  %v11641_v13 = vmax.f32 %v5597_v43, %v5751_v50  ;;  %v11643_v44 = vmax.f32 %v5598_v23, %v5753_v9  ;;  %v11647_v3 = vmax.f32 %v11252_v5, %v11635_v33 }
 0x3d9   : > { %v1253_v35 = vsel %vm1066_vm6, %v1250_v29, %v1252_v34  ;;  %v4393_v41 = vrot.slane %v4207_v30, 1  ;;  %v1255_v1 = vsel %vm1066_vm6, %v1252_v34, %v1254_v31  ;;  %v13372_v45 = vunpack.c.l.bf16 %v11525_v39 }
 0x3da   : > { %v4395_v57 = vrot.slane %v4208_v46, 1  ;;  %v11655_v21 = vmax.f32 %v11385_v38, %v11641_v13  ;;  %v11659_v54 = vmax.f32 %v11387_v55, %v11643_v44  ;;  %v5076_v5 = vadd.f32 %v5012_v4, %v11483_v22  ;;  %v5015_v22 = vpop.f32.mrf.mxu3 }
 0x3db   : > { %v1479_v19 = vmax.f32 %v13372_v45, %v1251_v59  ;;  %v13373_v49 = vunpack.c.l.bf16 %v11503_v52  ;;  %v6035_v43 = vmax.f32 %v11391_v32, %v11647_v3  ;;  %v4394_v23 = vsel %vm1066_vm6, %v4392_v27, %v4393_v41 }
 0x3dc   : > { %v4396_v39 = vsel %vm1066_vm6, %v4393_v41, %v4395_v57  ;;  %v11668_v47 = vmax.f32 %v4208_v46, %v4395_v57  ;;  %v11672_v38 = vmax.f32 %v11273_v12, %v11655_v21  ;;  %v11676_v55 = vmax.f32 %v11277_v56, %v11659_v54 }
 0x3dd   : > { %v1480_v29 = vmax.f32 %v13373_v49, %v1253_v35  ;;  %v11678_v4 = vmax.f32 %v4206_v14, %v4394_v23  ;;  %v13374_v59 = vmov %v13370_v7  ;;  %v11682_v25 = vmax.f32 %v4207_v30, %v4396_v39 }
 0x3de   : > { %v1481_v32 = vmax.f32 %v13374_v59, %v1255_v1  ;;  %v11686_v11 = vmax.f32 %v11530_v28, %v11668_v47  ;;  %v13375_v7 = vmov %v13371_v62  ;;  %v1782_v34 = vrot.slane %v1479_v19, 2 }
 0x3df   : > { %v1482_v12 = vmax.f32 %v13375_v7, %v1254_v31  ;;  %v6033_v56 = vmax.f32 %v11408_v40, %v11672_v38  ;;  %v6034_v14 = vmax.f32 %v11412_v18, %v11676_v55  ;;  %v11696_v52 = vmax.f32 %v11536_v51, %v11678_v4  ;;  %v6313_v51 = vpop.f32.mrf.mxu0 }
 0x3e0   : > { %v1783_v62 = vrot.slane %v1480_v29, 2  ;;  %v6156_v48 = vrot.slane %v6035_v43, 2  ;;  %v5077_v60 = vadd.f32 %v5015_v22, %v11485_v20  ;;  %v11701_v28 = vmax.f32 %v11538_v61, %v11682_v25 }
 0x3e1   : > { %v11705_v26 = vmax.f32 %v11289_v63, %v11686_v11  ;;  %v6153_v40 = vrot.slane %v6033_v56, 2  ;;  %v6154_v31 = vrot.slane %v6034_v14, 2  ;;  %v11709_v18 = vmax.f32 %v11283_v42, %v11696_v52 }
 0x3e2   : > { %v1785_v27 = vrot.slane %v1481_v32, 2  ;;  %v11713_v50 = vmax.f32 %v11304_v16, %v11701_v28  ;;  %v6377_v61 = vadd.f32 %v6313_v51, %v5076_v5  ;;  %v1787_v9 = vrot.slane %v1482_v12, 2 }
 0x3e3   : > { %v4736_v20 = vmax.f32 %v11577_v6, %v11705_v26  ;;  %v6155_v63 = vsel %vm1599_vm7, %v6153_v40, %v6154_v31  ;;  %v6157_v30 = vsel %vm1599_vm7, %v6154_v31, %v6156_v48  ;;  %v4734_v46 = vmax.f32 %v11585_v37, %v11709_v18 }
 0x3e4   : > { %v1784_v42 = vsel %vm1599_vm7, %v1782_v34, %v1783_v62  ;;  %v6217_v35 = vpack.c.bf16 %v6157_v30, %v6155_v63  ;;  %v4735_v41 = vmax.f32 %v11589_v8, %v11713_v50  ;;  %v6413_v57 = vadd.f32 %v11602_v15, %v6377_v61 }
 0x3e5   : > { %v5197_v16 = vrot.slane %v4736_v20, 1  ;;  %v5194_v1 = vrot.slane %v4734_v46, 1  ;;  %v4867_v6 = vrot.slane %v4734_v46, 4  ;;  %v4870_v45 = vrot.slane %v4736_v20, 4 }
 0x3e6   : > { %v1786_v5 = vsel %vm1599_vm7, %v1783_v62, %v1785_v27  ;;  %6703 = vmatmul.msk.bf16.gmra.mxu0 %vm3037_vm5, %v6217_v35  ;;  %v5195_v49 = vrot.slane %v4735_v41, 1  ;;  %v6445_v37 = vmax.f32 %v6413_v57, 0.0  ;;  %v4868_v23 = vrot.slane %v4735_v41, 4 }
 0x3e7   : > { %v5322_v43 = vmax.f32 %v4736_v20, %v5197_v16  ;;  %v1788_v39 = vsel %vm1599_vm7, %v1785_v27, %v1787_v9  ;;  %v2012_v22 = vmax.f32 %v1479_v19, %v1784_v42  ;;  %v2013_v59 = vmax.f32 %v1480_v29, %v1786_v5  ;;  %v6316_v31 = vpop.f32.mrf.mxu0  ;;  %v11734_v19 = vld [vmem:[#allocation2 + $0x220] sm:$0xff]  }
 0x3e8   : > { %v2015_v8 = vmax.f32 %v1482_v12, %v1787_v9  ;;  %v5196_v7 = vsel %vm1066_vm6, %v5194_v1, %v5195_v49  ;;  %v5198_v34 = vsel %vm1066_vm6, %v5195_v49, %v5197_v16  ;;  %6478 = vst.msk [vmem:[%s10874_s16 + $0x58] sm:$0xff] %vm6466_vm9, %v6445_v37  ;;  %v4869_v14 = vsel %vm4791_vm8, %v4867_v6, %v4868_v23 }
 0x3e9   : > { %v5477_v56 = vrot.slane %v5322_v43, 2  ;;  %v5320_v62 = vmax.f32 %v4734_v46, %v5196_v7  ;;  %v5321_v48 = vmax.f32 %v4735_v41, %v5198_v34  ;;  %v4871_v40 = vsel %vm4791_vm8, %v4868_v23, %v4870_v45 }
 0x3ea   : > { %v4919_v20 = vpack.c.bf16 %v4871_v40, %v4869_v14  ;;  %v6378_v27 = vadd.f32 %v6316_v31, %v5077_v60  ;;  %v2014_v61 = vmax.f32 %v1481_v32, %v1788_v39  ;;  %v2314_v9 = vrot.slane %v2012_v22, 1 }
 0x3eb   : > { %v5602_v51 = vmax.f32 %v5322_v43, %v5477_v56  ;;  %v5474_v29 = vrot.slane %v5320_v62, 2  ;;  %v5475_v12 = vrot.slane %v5321_v48, 2  ;;  %v2315_v42 = vrot.slane %v2013_v59, 1 }
 0x3ec   : > { %6690 = vmatmul.msk.bf16.gmra.mxu3 %vm3037_vm5, %v4919_v20  ;;  %v6414_v30 = vadd.f32 %v11602_v15, %v6378_v27  ;;  %v2319_v46 = vrot.slane %v2015_v8, 1  ;;  %v2317_v16 = vrot.slane %v2014_v61, 1  ;;  %v12419_v60 = vunpack.c.l.bf16 %v11734_v19  ;;  %v841_v27 = vld [vmem:[#allocation2 + $0x22c] sm:$0x7] }
 0x3ed   : > { %v5757_v63 = vrot.slane %v5602_v51, 1  ;;  %v5476_v35 = vsel %vm1599_vm7, %v5474_v29, %v5475_v12  ;;  %v5478_v41 = vsel %vm1599_vm7, %v5475_v12, %v5477_v56  ;;  %v2316_v45 = vsel %vm1066_vm6, %v2314_v9, %v2315_v42  ;;  %v13377_v12 = vld [vmem:[#allocation83_spill] sm:$0xff]  ;;  %v13378_v9 = vld [vmem:[#allocation81_spill] sm:$0xff] }
 0x3ee   : > { %v5600_v57 = vmax.f32 %v5320_v62, %v5476_v35  ;;  %v5601_v1 = vmax.f32 %v5321_v48, %v5478_v41  ;;  %v6446_v32 = vmax.f32 %v6414_v30, 0.0  ;;  %v2318_v5 = vsel %vm1066_vm6, %v2315_v42, %v2317_v16  ;;  %v840_v62 = vld [vmem:[#allocation2 + $0x228] sm:$0xf]  ;;  %v3131_v35 = vpop.f32.mrf.mxu1 }
 0x3ef   : > { %v11741_v6 = vmax.f32 %v5602_v51, %v5757_v63  ;;  %v2320_v49 = vsel %vm1066_vm6, %v2317_v16, %v2319_v46  ;;  %v11746_v43 = vmax.f32 %v2015_v8, %v2319_v46  ;;  %v11754_v7 = vmax.f32 %v2012_v22, %v2316_v45  ;;  %v13382_v46 = vld [vmem:[#allocation84_spill] sm:$0xff] }
 0x3f0   : > { %v5754_v37 = vrot.slane %v5600_v57, 1  ;;  %v5755_v23 = vrot.slane %v5601_v1, 1  ;;  %6479 = vst.msk [vmem:[%s10874_s16 + $0x60] sm:$0xff] %vm6466_vm9, %v6446_v32  ;;  %v11756_v34 = vmax.f32 %v2013_v59, %v2318_v5  ;;  %v11758_v56 = vmax.f32 %v2014_v61, %v2320_v49  ;;  %v13385_v49 = vld [vmem:[#allocation25_spill] sm:$0xff] }
 0x3f1   : > { %v11750_v39 = vmax.f32 %v11624_v36, %v11741_v6  ;;  %v2655_v14 = vmax.f32 %v11494_v17, %v11746_v43  ;;  %v6838_v8 = vunpack.c.h.bf16 %v11734_v19  ;;  %v13376_v36 = vld [vmem:[#allocation77_spill] sm:$0xff]  ;;  %v2652_v22 = vmax.f32 %v11507_v53, %v11754_v7 }
 0x3f2   : > { %v5756_v48 = vsel %vm1066_vm6, %v5754_v37, %v5755_v23  ;;  %v5758_v40 = vsel %vm1066_vm6, %v5755_v23, %v5757_v63  ;;  %v2653_v17 = vmax.f32 %v11513_v0, %v11756_v34  ;;  %v2654_v20 = vmax.f32 %v11515_v2, %v11758_v56  ;;  %v13381_v2 = vld [vmem:[#allocation23_spill] sm:$0xff]  ;;  %v3351_v23 = vpop.f32.mrf.mxu2 }
 0x3f3   : > { %v11767_v31 = vmax.f32 %v13376_v36, %v11750_v39  ;;  %v11771_v59 = vmax.f32 %v5600_v57, %v5756_v48  ;;  %v11773_v51 = vmax.f32 %v5601_v1, %v5758_v40  ;;  %v11782_v61 = vmax.f32 %v13377_v12, %v2652_v22  ;;  %v13383_v1 = vld [vmem:[#allocation74_spill] sm:$0xff] }
 0x3f4   : > { %v11785_v63 = vmax.f32 %v13378_v9, %v2655_v14  ;;  %v952_v53 = vunpack.c.l.bf16 %v840_v62  ;;  %v11796_v42 = vmax.f32 %v13381_v2, %v2653_v17  ;;  %v1257_v62 = vrot.slane %v6838_v8, 1 }
 0x3f5   : > { %v6038_v29 = vmax.f32 %v11647_v3, %v11767_v31  ;;  %v11789_v30 = vmax.f32 %v11641_v13, %v11771_v59  ;;  %v11793_v0 = vmax.f32 %v11643_v44, %v11773_v51  ;;  %v11799_v3 = vmax.f32 %v13382_v46, %v2654_v20  ;;  %v13384_v44 = vld [vmem:[#allocation82_spill] sm:$0xff] }
 0x3f6   : > { %v2848_v16 = vmax.f32 %v11546_v10, %v11782_v61  ;;  %v2851_v57 = vmax.f32 %v11523_v58, %v11785_v63  ;;  %v953_v13 = vunpack.c.l.bf16 %v841_v27  ;;  %v2849_v5 = vmax.f32 %v11556_v24, %v11796_v42 }
 0x3f7   : > { %13379 = vst [vmem:[#allocation70_spill] sm:$0xff] %v11789_v30  ;;  %v6161_v41 = vrot.slane %v6038_v29, 2  ;;  %v11807_v32 = vmax.f32 %v13383_v1, %v11789_v30  ;;  %v11811_v45 = vmax.f32 %v13384_v44, %v11793_v0  ;;  %v2850_v37 = vmax.f32 %v13385_v49, %v11799_v3 }
 0x3f8   : > { %13380 = vst [vmem:[#allocation59_spill] sm:$0xff] %v11793_v0  ;;  %v3601_v10 = vrot.slane %v2848_v16, 1  ;;  %v3606_v14 = vrot.slane %v2851_v57, 1  ;;  %v1256_v58 = vrot.slane %v12419_v60, 1  ;;  %v3602_v36 = vrot.slane %v2849_v5, 1 }
 0x3f9   : > { %v6036_v48 = vmax.f32 %v11672_v38, %v11807_v32  ;;  %v6037_v40 = vmax.f32 %v11676_v55, %v11811_v45  ;;  %v3604_v22 = vrot.slane %v2850_v37, 1  ;;  %v1259_v20 = vrot.slane %v952_v53, 1 }
 0x3fa   : > { %v3802_v17 = vmax.f32 %v2851_v57, %v3606_v14  ;;  %v1258_v24 = vsel %vm1066_vm6, %v1256_v58, %v1257_v62  ;;  %v1261_v27 = vrot.slane %v953_v13, 1  ;;  %v3603_v9 = vsel %vm1066_vm6, %v3601_v10, %v3602_v36 }
 0x3fb   : > { %v6158_v29 = vrot.slane %v6036_v48, 2  ;;  %v6159_v12 = vrot.slane %v6037_v40, 2  ;;  %v3605_v2 = vsel %vm1066_vm6, %v3602_v36, %v3604_v22  ;;  %v3607_v46 = vsel %vm1066_vm6, %v3604_v22, %v3606_v14 }
 0x3fc   : > { %v3799_v1 = vmax.f32 %v2848_v16, %v3603_v9  ;;  %v3800_v38 = vmax.f32 %v2849_v5, %v3605_v2  ;;  %v4062_v44 = vrot.slane %v3802_v17, 2  ;;  %v3801_v57 = vmax.f32 %v2850_v37, %v3607_v46  ;;  %v3134_v5 = vpop.f32.mrf.mxu1  ;;  %v5017_v37 = vpop.f32.mrf.mxu3 }
 0x3fd   : > { %v6160_v55 = vsel %vm1599_vm7, %v6158_v29, %v6159_v12  ;;  %v6162_v49 = vsel %vm1599_vm7, %v6159_v12, %v6161_v41  ;;  %v1260_v58 = vsel %vm1066_vm6, %v1257_v62, %v1259_v20  ;;  %v1262_v40 = vsel %vm1066_vm6, %v1259_v20, %v1261_v27  ;;  %v3354_v20 = vpop.f32.mrf.mxu2 }
 0x3fe   : > { %v6218_v60 = vpack.c.bf16 %v6162_v49, %v6160_v55  ;;  %v4057_v0 = vrot.slane %v3799_v1, 2  ;;  %v4058_v48 = vrot.slane %v3800_v38, 2  ;;  %v4060_v10 = vrot.slane %v3801_v57, 2 }
 0x3ff   : > { %v13386_v36 = vunpack.c.l.bf16 %v11734_v19  ;;  %v1484_v14 = vmax.f32 %v6838_v8, %v1260_v58  ;;  %v1485_v16 = vmax.f32 %v952_v53, %v1262_v40  ;;  %v1486_v41 = vmax.f32 %v953_v13, %v1261_v27 }
 0x400   : > { %6704 = vmatmul.msk.bf16.gmra.mxu0 %vm3037_vm5, %v6218_v60  ;;  %v4059_v22 = vsel %vm1599_vm7, %v4057_v0, %v4058_v48  ;;  %v4061_v62 = vsel %vm1599_vm7, %v4058_v48, %v4060_v10  ;;  %v4063_v17 = vsel %vm1599_vm7, %v4060_v10, %v4062_v44  ;;  %v3352_v8 = vadd.f32 %v3351_v23, %v3131_v35 }
 0x401   : > { %v1483_v30 = vmax.f32 %v13386_v36, %v1258_v24  ;;  %v4209_v29 = vmax.f32 %v3799_v1, %v4059_v22  ;;  %v4210_v9 = vmax.f32 %v3800_v38, %v4061_v62  ;;  %v4211_v2 = vmax.f32 %v3801_v57, %v4063_v17 }
 0x402   : > { %v1790_v19 = vrot.slane %v1484_v14, 2  ;;  %v1792_v24 = vrot.slane %v1485_v16, 2  ;;  %v1794_v46 = vrot.slane %v1486_v41, 2 }
 0x403   : > { %v1789_v12 = vrot.slane %v1483_v30, 2  ;;  %v4397_v53 = vrot.slane %v4209_v29, 1  ;;  %v4398_v55 = vrot.slane %v4210_v9, 1  ;;  %v4400_v60 = vrot.slane %v4211_v2, 1 }
 0x404   : > { %v1793_v13 = vsel %vm1599_vm7, %v1790_v19, %v1792_v24  ;;  %v1795_v27 = vsel %vm1599_vm7, %v1792_v24, %v1794_v46  ;;  %v2019_v1 = vmax.f32 %v1486_v41, %v1794_v46  ;;  %v11855_v17 = vpop.f32.mrf.mxu1  ;;  %v13388_v24 = vld [vmem:[#allocation6_spill] sm:$0xff] }
 0x405   : > { %v1791_v0 = vsel %vm1599_vm7, %v1789_v12, %v1790_v19  ;;  %v2017_v44 = vmax.f32 %v1484_v14, %v1793_v13  ;;  %v4399_v58 = vsel %vm1066_vm6, %v4397_v53, %v4398_v55  ;;  %v4401_v38 = vsel %vm1066_vm6, %v4398_v55, %v4400_v60  ;;  %v11868_v46 = vpop.f32.mrf.mxu2 }
 0x406   : > { %v2016_v49 = vmax.f32 %v1483_v30, %v1791_v0  ;;  %v11842_v57 = vmax.f32 %v4211_v2, %v4400_v60  ;;  %v2018_v35 = vmax.f32 %v1485_v16, %v1795_v27  ;;  %v11844_v23 = vmax.f32 %v4209_v29, %v4399_v58  ;;  %v13387_v29 = vld [vmem:[#allocation69_spill] sm:$0xff] }
 0x407   : > { %v11846_v48 = vmax.f32 %v4210_v9, %v4401_v38  ;;  %v2322_v10 = vrot.slane %v2017_v44, 1  ;;  %v2326_v30 = vrot.slane %v2019_v1, 1  ;;  %v5078_v14 = vadd.f32 %v5017_v37, %v3352_v8  ;;  %v6318_v9 = vpop.f32.mrf.mxu0  ;;  %v5020_v37 = vpop.f32.mrf.mxu3 }
 0x408   : > { %v2321_v40 = vrot.slane %v2016_v49, 1  ;;  %v4616_v36 = vmax.f32 %v11668_v47, %v11842_v57  ;;  %v2324_v22 = vrot.slane %v2018_v35, 1  ;;  %v4614_v41 = vmax.f32 %v11678_v4, %v11844_v23  ;;  %v13389_v4 = vld [vmem:[#allocation18_spill] sm:$0xff] }
 0x409   : > { %v4615_v62 = vmax.f32 %v11682_v25, %v11846_v48  ;;  %v3355_v19 = vadd.f32 %v3354_v20, %v3134_v5  ;;  %v6379_v25 = vadd.f32 %v6318_v9, %v5078_v14  ;;  %v2551_v58 = vmax.f32 %v2019_v1, %v2326_v30 }
 0x40a   : > { %v2323_v16 = vsel %vm1066_vm6, %v2321_v40, %v2322_v10  ;;  %v11858_v12 = vmax.f32 %v13387_v29, %v4616_v36  ;;  %v2325_v2 = vsel %vm1066_vm6, %v2322_v10, %v2324_v22  ;;  %v2327_v47 = vsel %vm1066_vm6, %v2324_v22, %v2326_v30  ;;  %v13390_v22 = vld [vmem:[#allocation87_spill] sm:$0xff] }
 0x40b   : > { %v11863_v8 = vmax.f32 %v13388_v24, %v4614_v41  ;;  %v11866_v53 = vmax.f32 %v13389_v4, %v4615_v62  ;;  %v2548_v60 = vmax.f32 %v2016_v49, %v2323_v16  ;;  %v2549_v0 = vmax.f32 %v2017_v44, %v2325_v2  ;;  %v13392_v62 = vld [vmem:[#allocation37_spill] sm:$0xff] }
 0x40c   : > { %v4739_v55 = vmax.f32 %v11705_v26, %v11858_v12  ;;  %v2550_v13 = vmax.f32 %v2018_v35, %v2327_v47  ;;  %v6415_v20 = vadd.f32 %v11602_v15, %v6379_v25  ;;  %v2659_v36 = vmax.f32 %v11746_v43, %v2551_v58  ;;  %v11891_v25 = vpop.f32.mrf.mxu1 }
 0x40d   : > { %v4737_v27 = vmax.f32 %v11709_v18, %v11863_v8  ;;  %v4738_v5 = vmax.f32 %v11713_v50, %v11866_v53  ;;  %v2656_v40 = vmax.f32 %v11754_v7, %v2548_v60  ;;  %v2657_v10 = vmax.f32 %v11756_v34, %v2549_v0  ;;  %v13391_v50 = vld [vmem:[#allocation29_spill] sm:$0xff]  ;;  %v13393_v34 = vld [vmem:[#allocation50_spill] sm:$0xff]  ;;  %v11898_v58 = vpop.f32.mrf.mxu2 }
 0x40e   : > { %v5202_v38 = vrot.slane %v4739_v55, 1  ;;  %v2658_v26 = vmax.f32 %v11758_v56, %v2550_v13  ;;  %v6447_v35 = vmax.f32 %v6415_v20, 0.0  ;;  %v5079_v30 = vadd.f32 %v5020_v37, %v3355_v19 }
 0x40f   : > { %v5199_v49 = vrot.slane %v4737_v27, 1  ;;  %v5200_v44 = vrot.slane %v4738_v5, 1  ;;  %v2756_v14 = vmax.f32 %v13390_v22, %v2656_v40  ;;  %v2757_v41 = vmax.f32 %v13391_v50, %v2657_v10  ;;  %v6321_v43 = vpop.f32.mrf.mxu0  ;;  %v11894_v0 = vpop.f32.mrf.mxu3 }
 0x410   : > { %v5325_v18 = vmax.f32 %v4739_v55, %v5202_v38  ;;  %v2758_v1 = vmax.f32 %v13392_v62, %v2658_v26  ;;  %6480 = vst.msk [vmem:[%s10874_s16 + $0x68] sm:$0xff] %vm6466_vm9, %v6447_v35  ;;  %v2759_v56 = vmax.f32 %v13393_v34, %v2659_v36  ;;  %v6380_v47 = vadd.f32 %v6321_v43, %v5079_v30 }
 0x411   : > { %v5201_v16 = vsel %vm1066_vm6, %v5199_v49, %v5200_v44  ;;  %v5203_v7 = vsel %vm1066_vm6, %v5200_v44, %v5202_v38  ;;  %v2852_v24 = vmax.f32 %v11782_v61, %v2756_v14  ;;  %v2853_v4 = vmax.f32 %v11796_v42, %v2757_v41 }
 0x412   : > { %v5323_v29 = vmax.f32 %v4737_v27, %v5201_v16  ;;  %v5324_v9 = vmax.f32 %v4738_v5, %v5203_v7  ;;  %v5482_v2 = vrot.slane %v5325_v18, 2  ;;  %v2854_v60 = vmax.f32 %v11799_v3, %v2758_v1 }
 0x413   : > { %v6416_v13 = vadd.f32 %v11602_v15, %v6380_v47  ;;  %v2855_v27 = vmax.f32 %v11785_v63, %v2759_v56  ;;  %v3608_v5 = vrot.slane %v2852_v24, 1  ;;  %v3609_v20 = vrot.slane %v2853_v4, 1 }
 0x414   : > { %v5479_v19 = vrot.slane %v5323_v29, 2  ;;  %v5480_v37 = vrot.slane %v5324_v9, 2  ;;  %v5605_v55 = vmax.f32 %v5325_v18, %v5482_v2  ;;  %v3611_v40 = vrot.slane %v2854_v60, 1  ;;  %v11921_v47 = vpop.f32.mrf.mxu1 }
 0x415   : > { %v6448_v3 = vmax.f32 %v6416_v13, 0.0  ;;  %v3610_v49 = vsel %vm1066_vm6, %v3608_v5, %v3609_v20  ;;  %v3613_v35 = vrot.slane %v2855_v27, 1 }
 0x416   : > { %v5481_v61 = vsel %vm1599_vm7, %v5479_v19, %v5480_v37  ;;  %v5483_v42 = vsel %vm1599_vm7, %v5480_v37, %v5482_v2  ;;  %v5762_v38 = vrot.slane %v5605_v55, 1  ;;  %v3612_v63 = vsel %vm1066_vm6, %v3609_v20, %v3611_v40 }
 0x417   : > { %v5603_v10 = vmax.f32 %v5323_v29, %v5481_v61  ;;  %v5604_v26 = vmax.f32 %v5324_v9, %v5483_v42  ;;  %v3803_v36 = vmax.f32 %v2852_v24, %v3610_v49  ;;  %6481 = vst.msk [vmem:[%s10874_s16 + $0x70] sm:$0xff] %vm6466_vm9, %v6448_v3  ;;  %v3804_v14 = vmax.f32 %v2853_v4, %v3612_v63  ;;  %v5025_v37 = vpop.f32.mrf.mxu3 }
 0x418   : > { %v11903_v44 = vmax.f32 %v5605_v55, %v5762_v38  ;;  %v3614_v41 = vsel %vm1066_vm6, %v3611_v40, %v3613_v35  ;;  %v3806_v62 = vmax.f32 %v2855_v27, %v3613_v35  ;;  %v3357_v63 = vadd.f32 %v11868_v46, %v11855_v17 }
 0x419   : > { %v5759_v18 = vrot.slane %v5603_v10, 1  ;;  %v5760_v22 = vrot.slane %v5604_v26, 1  ;;  %v4064_v1 = vrot.slane %v3803_v36, 2  ;;  %v3805_v7 = vmax.f32 %v2854_v60, %v3614_v41 }
 0x41a   : > { %v5942_v50 = vmax.f32 %v11741_v6, %v11903_v44  ;;  %v4065_v34 = vrot.slane %v3804_v14, 2  ;;  %v4069_v2 = vrot.slane %v3806_v62, 2  ;;  %v6323_v62 = vpop.f32.mrf.mxu0 }
 0x41b   : > { %v5761_v30 = vsel %vm1066_vm6, %v5759_v18, %v5760_v22  ;;  %v5763_v16 = vsel %vm1066_vm6, %v5760_v22, %v5762_v38  ;;  %v4067_v43 = vrot.slane %v3805_v7, 2 }
 0x41c   : > { %v11913_v56 = vmax.f32 %v5603_v10, %v5761_v30  ;;  %v11915_v29 = vmax.f32 %v5604_v26, %v5763_v16  ;;  %v11918_v9 = vmax.f32 %v11635_v33, %v5942_v50  ;;  %v4066_v6 = vsel %vm1599_vm7, %v4064_v1, %v4065_v34  ;;  %v11929_v33 = vpop.f32.mrf.mxu2 }
 0x41d   : > { %v4212_v19 = vmax.f32 %v3803_v36, %v4066_v6  ;;  %v4068_v55 = vsel %vm1599_vm7, %v4065_v34, %v4067_v43  ;;  %v4070_v60 = vsel %vm1599_vm7, %v4067_v43, %v4069_v2  ;;  %v5080_v50 = vadd.f32 %v11894_v0, %v3357_v63 }
 0x41e   : > { %v5940_v24 = vmax.f32 %v11771_v59, %v11913_v56  ;;  %v5941_v4 = vmax.f32 %v11773_v51, %v11915_v29  ;;  %v6041_v59 = vmax.f32 %v11767_v31, %v11918_v9  ;;  %v4213_v5 = vmax.f32 %v3804_v14, %v4068_v55  ;;  %v11951_v14 = vpop.f32.mrf.mxu1 }
 0x41f   : > { %v4214_v20 = vmax.f32 %v3805_v7, %v4070_v60  ;;  %v4402_v51 = vrot.slane %v4212_v19, 1  ;;  %v5027_v1 = vpop.f32.mrf.mxu3  ;;  %v6381_v16 = vadd.f32 %v6323_v62, %v5080_v50 }
 0x420   : > { %v11932_v13 = vmax.f32 %v11655_v21, %v5940_v24  ;;  %v11935_v27 = vmax.f32 %v11659_v54, %v5941_v4  ;;  %v4403_v38 = vrot.slane %v4213_v5, 1  ;;  %v6166_v26 = vrot.slane %v6041_v59, 2 }
 0x421   : > { %v4405_v40 = vrot.slane %v4214_v20, 1 }
 0x422   : > { %v6039_v61 = vmax.f32 %v11807_v32, %v11932_v13  ;;  %v6040_v42 = vmax.f32 %v11811_v45, %v11935_v27  ;;  %v4404_v54 = vsel %vm1066_vm6, %v4402_v51, %v4403_v38 }
 0x423   : > { %v4406_v3 = vsel %vm1066_vm6, %v4403_v38, %v4405_v40  ;;  %v4548_v49 = vmax.f32 %v4212_v19, %v4404_v54  ;;  %v4550_v31 = vmax.f32 %v4214_v20, %v4405_v40  ;;  %v6326_v19 = vpop.f32.mrf.mxu0  ;;  %v3362_v38 = vadd.f32 %v11929_v33, %v11921_v47 }
 0x424   : > { %v6163_v10 = vrot.slane %v6039_v61, 2  ;;  %v6164_v21 = vrot.slane %v6040_v42, 2  ;;  %v4549_v36 = vmax.f32 %v4213_v5, %v4406_v3  ;;  %v3364_v30 = vpop.f32.mrf.mxu2 }
 0x425   : > { %v4617_v18 = vmax.f32 %v11844_v23, %v4548_v49  ;;  %v4619_v22 = vmax.f32 %v11842_v57, %v4550_v31  ;;  %v5082_v49 = vadd.f32 %v5027_v1, %v3362_v38  ;;  %v3365_v62 = vadd.f32 %v3364_v30, %v11951_v14 }
 0x426   : > { %v6165_v35 = vsel %vm1599_vm7, %v6163_v10, %v6164_v21  ;;  %v6167_v32 = vsel %vm1599_vm7, %v6164_v21, %v6166_v26  ;;  %v4618_v41 = vmax.f32 %v11846_v48, %v4549_v36  ;;  %v6417_v48 = vadd.f32 %v11602_v15, %v6381_v16  ;;  %v3146_v59 = vpop.f32.mrf.mxu1 }
 0x427   : > { %v6219_v45 = vpack.c.bf16 %v6167_v32, %v6165_v35  ;;  %v4680_v17 = vmax.f32 %v11696_v52, %v4617_v18  ;;  %v4682_v46 = vmax.f32 %v11686_v11, %v4619_v22  ;;  %v3360_v11 = vadd.f32 %v11898_v58, %v11891_v25  ;;  %v5030_v55 = vpop.f32.mrf.mxu3 }
 0x428   : > { %v4681_v23 = vmax.f32 %v11701_v28, %v4618_v41  ;;  %v6449_v6 = vmax.f32 %v6417_v48, 0.0 }
 0x429   : > { %6705 = vmatmul.msk.bf16.gmra.mxu0 %vm3037_vm5, %v6219_v45  ;;  %v4740_v57 = vmax.f32 %v11863_v8, %v4680_v17  ;;  %v4742_v7 = vmax.f32 %v11858_v12, %v4682_v46  ;;  %v5081_v24 = vadd.f32 %v5025_v37, %v3360_v11 }
 0x42a   : > { %v4741_v0 = vmax.f32 %v11866_v53, %v4681_v23  ;;  %6482 = vst.msk [vmem:[%s10874_s16 + $0x78] sm:$0xff] %vm6466_vm9, %v6449_v6  ;;  %v13394_v23 = vld [vmem:[#allocation70_spill] sm:$0xff] }
 0x42b   : > { %v5204_v34 = vrot.slane %v4740_v57, 1  ;;  %v5207_v2 = vrot.slane %v4742_v7, 1  ;;  %v6382_v60 = vadd.f32 %v6326_v19, %v5081_v24  ;;  %v6328_v63 = vpop.f32.mrf.mxu0 }
 0x42c   : > { %v5205_v52 = vrot.slane %v4741_v0, 1  ;;  %v3366_v20 = vpop.f32.mrf.mxu2  ;;  %v6383_v45 = vadd.f32 %v6328_v63, %v5082_v49 }
 0x42d   : > { %v5328_v43 = vmax.f32 %v4742_v7, %v5207_v2  ;;  %v6418_v37 = vadd.f32 %v11602_v15, %v6382_v60  ;;  %v3367_v6 = vadd.f32 %v3366_v20, %v3146_v59 }
 0x42e   : > { %v5206_v28 = vsel %vm1066_vm6, %v5204_v34, %v5205_v52  ;;  %v5208_v4 = vsel %vm1066_vm6, %v5205_v52, %v5207_v2  ;;  %v6419_v22 = vadd.f32 %v11602_v15, %v6383_v45  ;;  %v3149_v50 = vpop.f32.mrf.mxu1 }
 0x42f   : > { %v5326_v12 = vmax.f32 %v4740_v57, %v5206_v28  ;;  %v5327_v8 = vmax.f32 %v4741_v0, %v5208_v4  ;;  %v5487_v53 = vrot.slane %v5328_v43, 2  ;;  %v6450_v21 = vmax.f32 %v6418_v37, 0.0  ;;  %v5032_v35 = vpop.f32.mrf.mxu3  ;;  %v13395_v57 = vld [vmem:[#allocation59_spill] sm:$0xff] }
 0x430   : > { %v6451_v1 = vmax.f32 %v6419_v22, 0.0  ;;  %v5083_v0 = vadd.f32 %v5030_v55, %v3365_v62 }
 0x431   : > { %v5484_v5 = vrot.slane %v5326_v12, 2  ;;  %v5485_v25 = vrot.slane %v5327_v8, 2  ;;  %v5608_v58 = vmax.f32 %v5328_v43, %v5487_v53  ;;  %6483 = vst.msk [vmem:[%s10874_s16 + $0x80] sm:$0xff] %vm6466_vm9, %v6450_v21 }
 0x432   : > { %6484 = vst.msk [vmem:[%s10874_s16 + $0x88] sm:$0xff] %vm6466_vm9, %v6451_v1 }
 0x433   : > { %v5486_v51 = vsel %vm1599_vm7, %v5484_v5, %v5485_v25  ;;  %v5488_v61 = vsel %vm1599_vm7, %v5485_v25, %v5487_v53  ;;  %v5767_v42 = vrot.slane %v5608_v58, 1 }
 0x434   : > { %v5606_v40 = vmax.f32 %v5326_v12, %v5486_v51  ;;  %v5607_v10 = vmax.f32 %v5327_v8, %v5488_v61  ;;  %v3369_v46 = vpop.f32.mrf.mxu2 }
 0x435   : > { %v5888_v26 = vmax.f32 %v5608_v58, %v5767_v42  ;;  %v3370_v19 = vadd.f32 %v3369_v46, %v3149_v50 }
 0x436   : > { %v5764_v54 = vrot.slane %v5606_v40, 1  ;;  %v5765_v3 = vrot.slane %v5607_v10, 1 }
 0x437   : > { %v5945_v31 = vmax.f32 %v11903_v44, %v5888_v26  ;;  %v5035_v34 = vpop.f32.mrf.mxu3 }
 0x438   : > { %v5766_v32 = vsel %vm1066_vm6, %v5764_v54, %v5765_v3  ;;  %v5768_v36 = vsel %vm1066_vm6, %v5765_v3, %v5767_v42  ;;  %v5085_v60 = vadd.f32 %v5035_v34, %v3370_v19 }
 0x439   : > { %v5886_v47 = vmax.f32 %v5606_v40, %v5766_v32  ;;  %v5887_v33 = vmax.f32 %v5607_v10, %v5768_v36  ;;  %v5996_v18 = vmax.f32 %v11750_v39, %v5945_v31 }
 0x43b   : > { %v5943_v41 = vmax.f32 %v11913_v56, %v5886_v47  ;;  %v5944_v17 = vmax.f32 %v11915_v29, %v5887_v33  ;;  %v6044_v44 = vmax.f32 %v11918_v9, %v5996_v18  ;;  %v6331_v29 = vpop.f32.mrf.mxu0 }
 0x43c   : > { %v6384_v9 = vadd.f32 %v6331_v29, %v5083_v0  ;;  %v3371_v28 = vpop.f32.mrf.mxu2 }
 0x43d   : > { %v5994_v16 = vmax.f32 %v13394_v23, %v5943_v41  ;;  %v5995_v7 = vmax.f32 %v13395_v57, %v5944_v17  ;;  %v6171_v56 = vrot.slane %v6044_v44, 2  ;;  %v12012_v17 = vld [vmem:[%s12048_s4] ss:$0 sm:$0xff] }
 0x43e   : > { %v6420_v14 = vadd.f32 %v11602_v15, %v6384_v9 }
 0x43f   : > { %v6042_v39 = vmax.f32 %v11932_v13, %v5994_v16  ;;  %v6043_v48 = vmax.f32 %v11935_v27, %v5995_v7  ;;  %v3151_v13 = vpop.f32.mrf.mxu1  ;;  %v5084_v27 = vadd.f32 %v5032_v35, %v3367_v6  ;;  %v5037_v12 = vpop.f32.mrf.mxu3 }
 0x440   : > { %v6452_v24 = vmax.f32 %v6420_v14, 0.0  ;;  %v3372_v51 = vadd.f32 %v3371_v28, %v3151_v13 }
 0x441   : > { %v6168_v2 = vrot.slane %v6042_v39, 2  ;;  %v6169_v11 = vrot.slane %v6043_v48, 2 }
 0x442   : > { %6485 = vst.msk [vmem:[%s10874_s16 + $0x90] sm:$0xff] %vm6466_vm9, %v6452_v24  ;;  %v5086_v42 = vadd.f32 %v5037_v12, %v3372_v51 }
 0x443   : > { %v6170_v30 = vsel %vm1599_vm7, %v6168_v2, %v6169_v11  ;;  %v6172_v52 = vsel %vm1599_vm7, %v6169_v11, %v6171_v56  ;;  %v6333_v4 = vpop.f32.mrf.mxu0 }
 0x444   : > { %v6220_v43 = vpack.c.bf16 %v6172_v52, %v6170_v30  ;;  %v6385_v8 = vadd.f32 %v6333_v4, %v5084_v27  ;;  %v3374_v25 = vpop.f32.mrf.mxu2 }
 0x446   : > { %6706 = vmatmul.msk.bf16.gmra.mxu0 %vm3037_vm5, %v6220_v43  ;;  %v6421_v53 = vadd.f32 %v11602_v15, %v6385_v8 }
 0x447   : > { %v3154_v59 = vpop.f32.mrf.mxu1  ;;  %v5040_v20 = vpop.f32.mrf.mxu3 }
 0x448   : > { %v6453_v55 = vmax.f32 %v6421_v53, 0.0  ;;  %v3375_v3 = vadd.f32 %v3374_v25, %v3154_v59 }
 0x44a   : > { %6486 = vst.msk [vmem:[%s10874_s16 + $0x98] sm:$0xff] %vm6466_vm9, %v6453_v55  ;;  %v5087_v31 = vadd.f32 %v5040_v20, %v3375_v3 }
 0x44b   : > { %v6336_v5 = vpop.f32.mrf.mxu0 }
 0x44c   : > { %v6386_v58 = vadd.f32 %v6336_v5, %v5085_v60  ;;  %v3376_v21 = vpop.f32.mrf.mxu2 }
 0x44e   : > { %v6422_v37 = vadd.f32 %v11602_v15, %v6386_v58 }
 0x44f   : > { %v3156_v10 = vpop.f32.mrf.mxu1  ;;  %v5042_v54 = vpop.f32.mrf.mxu3 }
 0x450   : > { %v6454_v61 = vmax.f32 %v6422_v37, 0.0  ;;  %v3377_v47 = vadd.f32 %v3376_v21, %v3156_v10 }
 0x452   : > { %6487 = vst.msk [vmem:[%s10874_s16 + $0xa0] sm:$0xff] %vm6466_vm9, %v6454_v61  ;;  %v5088_v22 = vadd.f32 %v5042_v54, %v3377_v47 }
 0x453   : > { %v6338_v38 = vpop.f32.mrf.mxu0 }
 0x454   : > { %v6387_v40 = vadd.f32 %v6338_v38, %v5086_v42  ;;  %v3379_v45 = vpop.f32.mrf.mxu2 }
 0x456   : > { %v6423_v26 = vadd.f32 %v11602_v15, %v6387_v40 }
 0x457   : > { %v3159_v36 = vpop.f32.mrf.mxu1  ;;  %v5045_v18 = vpop.f32.mrf.mxu3 }
 0x458   : > { %v6455_v49 = vmax.f32 %v6423_v26, 0.0 }
 0x45a   : > { %6488 = vst.msk [vmem:[%s10874_s16 + $0xa8] sm:$0xff] %vm6466_vm9, %v6455_v49 }
 0x45b   : > { %v6341_v63 = vpop.f32.mrf.mxu0 }
 0x45c   : > { %v6388_v35 = vadd.f32 %v6341_v63, %v5087_v31  ;;  %v3381_v1 = vpop.f32.mrf.mxu2 }
 0x45e   : > { %v6424_v32 = vadd.f32 %v11602_v15, %v6388_v35  ;;  %v3380_v15 = vadd.f32 %v3379_v45, %v3159_v36 }
 0x45f   : > { %v3161_v62 = vpop.f32.mrf.mxu1  ;;  %v5047_v16 = vpop.f32.mrf.mxu3 }
 0x460   : > { %v6456_v33 = vmax.f32 %v6424_v32, 0.0  ;;  %v5089_v23 = vadd.f32 %v5045_v18, %v3380_v15  ;;  %v3382_v39 = vadd.f32 %v3381_v1, %v3161_v62 }
 0x462   : > { %6489 = vst.msk [vmem:[%s10874_s16 + $0xb0] sm:$0xff] %vm6466_vm9, %v6456_v33  ;;  %v5090_v56 = vadd.f32 %v5047_v16, %v3382_v39 }
 0x463   : > { %v6343_v50 = vpop.f32.mrf.mxu0 }
 0x464   : > { %v6389_v41 = vadd.f32 %v6343_v50, %v5088_v22  ;;  %v3384_v2 = vpop.f32.mrf.mxu2 }
 0x466   : > { %v6425_v44 = vadd.f32 %v12012_v17, %v6389_v41 }
 0x467   : > { %v3164_v29 = vpop.f32.mrf.mxu1  ;;  %v5050_v11 = vpop.f32.mrf.mxu3 }
 0x468   : > { %v6457_v46 = vmax.f32 %v6425_v44, 0.0  ;;  %v3385_v30 = vadd.f32 %v3384_v2, %v3164_v29 }
 0x46a   : > { %6490 = vst.msk [vmem:[%s10874_s16 + $0xb8] sm:$0xff] %vm6466_vm9, %v6457_v46  ;;  %v5091_v6 = vadd.f32 %v5050_v11, %v3385_v30 }
 0x46b   : > { %v6346_v57 = vpop.f32.mrf.mxu0 }
 0x46c   : > { %v6390_v7 = vadd.f32 %v6346_v57, %v5089_v23  ;;  %v3386_v27 = vpop.f32.mrf.mxu2 }
 0x46e   : > { %v6426_v0 = vadd.f32 %v12012_v17, %v6390_v7 }
 0x46f   : > { %v3166_v13 = vpop.f32.mrf.mxu1  ;;  %v5052_v4 = vpop.f32.mrf.mxu3 }
 0x470   : > { %v6458_v48 = vmax.f32 %v6426_v0, 0.0  ;;  %v3387_v12 = vadd.f32 %v3386_v27, %v3166_v13 }
 0x472   : > { %6491 = vst.msk [vmem:[%s10874_s16 + $0xc0] sm:$0xff] %vm6466_vm9, %v6458_v48  ;;  %v5092_v53 = vadd.f32 %v5052_v4, %v3387_v12 }
 0x473   : > { %v6348_v34 = vpop.f32.mrf.mxu0 }
 0x474   : > { %v6391_v9 = vadd.f32 %v6348_v34, %v5090_v56  ;;  %v3389_v25 = vpop.f32.mrf.mxu2 }
 0x476   : > { %v6427_v14 = vadd.f32 %v12012_v17, %v6391_v9 }
 0x477   : > { %v3169_v5 = vpop.f32.mrf.mxu1  ;;  %v5055_v58 = vpop.f32.mrf.mxu3 }
 0x478   : > { %v6459_v52 = vmax.f32 %v6427_v14, 0.0  ;;  %v3390_v20 = vadd.f32 %v3389_v25, %v3169_v5 }
 0x47a   : > { %6492 = vst.msk [vmem:[%s10874_s16 + $0xc8] sm:$0xff] %vm6466_vm9, %v6459_v52  ;;  %v5093_v37 = vadd.f32 %v5055_v58, %v3390_v20 }
 0x47c   : > { %v3391_v40 = vpop.f32.mrf.mxu2 }
 0x47d   : > { %v6351_v43 = vpop.f32.mrf.mxu0 }
 0x47e   : > { %v6392_v24 = vadd.f32 %v6351_v43, %v5091_v6 }
 0x47f   : > { %v3171_v42 = vpop.f32.mrf.mxu1  ;;  %v5057_v10 = vpop.f32.mrf.mxu3 }
 0x480   : > { %v6428_v28 = vadd.f32 %v12012_v17, %v6392_v24  ;;  %v3392_v21 = vadd.f32 %v3391_v40, %v3171_v42 }
 0x482   : > { %v6460_v8 = vmax.f32 %v6428_v28, 0.0  ;;  %v5094_v54 = vadd.f32 %v5057_v10, %v3392_v21 }
 0x484   : > { %6493 = vst.msk [vmem:[%s10874_s16 + $0xd0] sm:$0xff] %vm6466_vm9, %v6460_v8  ;;  %v3394_v32 = vpop.f32.mrf.mxu2 }
 0x485   : > { %v6353_v19 = vpop.f32.mrf.mxu0 }
 0x486   : > { %v6393_v55 = vadd.f32 %v6353_v19, %v5092_v53 }
 0x487   : > { %v3174_v35 = vpop.f32.mrf.mxu1  ;;  %v5060_v36 = vpop.f32.mrf.mxu3 }
 0x488   : > { %v6429_v60 = vadd.f32 %v12012_v17, %v6393_v55  ;;  %v3395_v45 = vadd.f32 %v3394_v32, %v3174_v35 }
 0x48a   : > { %v6461_v59 = vmax.f32 %v6429_v60, 0.0  ;;  %v5095_v47 = vadd.f32 %v5060_v36, %v3395_v45 }
 0x48c   : > { %6494 = vst.msk [vmem:[%s10874_s16 + $0xd8] sm:$0xff] %vm6466_vm9, %v6461_v59  ;;  %v3396_v41 = vpop.f32.mrf.mxu2 }
 0x48f   : > { %v3176_v22 = vpop.f32.mrf.mxu1  ;;  %v5062_v44 = vpop.f32.mrf.mxu3 }
 0x490   : > { %v3397_v15 = vadd.f32 %v3396_v41, %v3176_v22 }
 0x492   : > { %v5096_v62 = vadd.f32 %v5062_v44, %v3397_v15 }
 0x4a6   : > { %v6356_v51 = vpop.f32.mrf.mxu0 }
 0x4a7   : > { %v6394_v61 = vadd.f32 %v6356_v51, %v5093_v37 }
 0x4a9   : > { %v6430_v38 = vadd.f32 %v12012_v17, %v6394_v61 }
 0x4ab   : > { %v6462_v26 = vmax.f32 %v6430_v38, 0.0 }
 0x4ad   : > { %6495 = vst.msk [vmem:[%s10874_s16 + $0xe0] sm:$0xff] %vm6466_vm9, %v6462_v26 }
 0x4ae   : > { %v6358_v3 = vpop.f32.mrf.mxu0 }
 0x4af   : > { %v6395_v49 = vadd.f32 %v6358_v3, %v5094_v54 }
 0x4b1   : > { %v6431_v31 = vadd.f32 %v12012_v17, %v6395_v49 }
 0x4b3   : > { %v6463_v63 = vmax.f32 %v6431_v31, 0.0 }
 0x4b5   : > { %6496 = vst.msk [vmem:[%s10874_s16 + $0xe8] sm:$0xff] %vm6466_vm9, %v6463_v63 }
 0x4c3   : > { %v6361_v33 = vpop.f32.mrf.mxu0 }
 0x4c4   : > { %v6396_v18 = vadd.f32 %v6361_v33, %v5095_v47 }
 0x4c6   : > { %v6432_v50 = vadd.f32 %v12012_v17, %v6396_v18 }
 0x4c8   : > { %v6464_v46 = vmax.f32 %v6432_v50, 0.0 }
 0x4ca   : > { %6497 = vst.msk [vmem:[%s10874_s16 + $0xf0] sm:$0xff] %vm6466_vm9, %v6464_v46 }
 0x4cb   : > { %v6363_v1 = vpop.f32.mrf.mxu0 }
 0x4cc   : > { %v6397_v23 = vadd.f32 %v6363_v1, %v5096_v62 }
 0x4ce   : > { %v6433_v16 = vadd.f32 %v12012_v17, %v6397_v23 }
 0x4d0   : > { %v6465_v57 = vmax.f32 %v6433_v16, 0.0 }
 0x4d2   : > { %6498 = vst.msk [vmem:[%s10874_s16 + $0xf8] sm:$0xff] %vm6466_vm9, %v6465_v57 }
 0x4d3 PF: > { %s15_s18 = sadd.s32 1, %s6889_s18  }
 0x4d4   : > { %p12_p4 = scmp.ge.s32.totalorder %s15_s18, 4  }
 0x4d6   :  { %14 = sbr.rel (!%p12_p4) target bundleno = 1 (0x1), region = 72 }

</bundles_post_ra>
